<compile_context>
chip_gen: v5e
topology: v5e:2x2
jax: 0.10.0
libtpu: 0.0.40
codegen_flags: <defaults>
</compile_context>

<pallas_src>
import functools

import jax
import jax.numpy as jnp
from jax.experimental import pallas as pl
from jax.experimental.pallas import tpu as pltpu


def _round_up(x, m):
    return ((x + m - 1) // m) * m


# ---------------------------------------------------------------------------
# Fused Pallas kernel: one image per grid step
# ---------------------------------------------------------------------------
def _fused_double_conv_kernel(xpf_ref, w1_ref, w2_ref, wsc_ref, alpha_ref, o_ref, y1_scr,
                              *, Ws, M1, Mout):
    """
    xpf_ref : (1, R, Cin)   circularly 2-padded image, flattened rows (row = a*(W+4)+b)
    w1_ref  : (9, Cin, Cp)  conv1 taps, tap index t = kh*3 + kw   (Cp = Cout padded to 128)
    w2_ref  : (9, Cp,  Cp)  conv2 taps
    wsc_ref : (Cin, Cp)     1x1 shortcut weights
    alpha_ref: (1, 2) SMEM  PReLU alphas (alpha1, alpha2)
    o_ref   : (1, Mout, Cp) flat output rows (junk columns / padded channels sliced in XLA)
    y1_scr  : (M1, Cp)      VMEM scratch holding PReLU(conv1) incl. its circular halo ring
    """
    a1 = alpha_ref[0, 0]
    a2 = alpha_ref[0, 1]

    # ---- conv1 (+ halo over-compute): 9 accumulating MXU matmuls into VMEM scratch ---------
    for kh in range(3):
        for kw in range(3):
            off = kh * Ws + kw
            t = jnp.dot(xpf_ref[0, off:off + M1, :], w1_ref[kh * 3 + kw],
                        preferred_element_type=jnp.float32)
            if kh == 0 and kw == 0:
                y1_scr[...] = t
            else:
                y1_scr[...] += t
    y1 = y1_scr[...]
    y1_scr[...] = jnp.where(y1 > 0, y1, a1 * y1)          # PReLU #1, stays on-chip

    # ---- conv2: 9 accumulating MXU matmuls, accumulated straight into the output block -----
    for kh in range(3):
        for kw in range(3):
            off = kh * Ws + kw
            t = jnp.dot(y1_scr[off:off + Mout, :], w2_ref[kh * 3 + kw],
                        preferred_element_type=jnp.float32)
            if kh == 0 and kw == 0:
                o_ref[0] = t
            else:
                o_ref[0] += t

    # ---- PReLU #2 + 1x1 shortcut on the original pixels (offset 2*Ws+2 in padded rows) -----
    y2 = o_ref[0]
    sc = jnp.dot(xpf_ref[0, 2 * Ws + 2: 2 * Ws + 2 + Mout, :], wsc_ref[...],
                 preferred_element_type=jnp.float32)
    o_ref[0] = jnp.where(y2 > 0, y2, a2 * y2) + sc


# ---------------------------------------------------------------------------
# Wrapper: boundary layout plumbing (NCHW in/out) + pallas_call
# ---------------------------------------------------------------------------
def double_conv_normal_forward(x, params):
    """x: (N, Cin, H, W) float32 NCHW -> (N, Cout, H, W) float32."""
    N, Cin, H, W = x.shape
    w1 = params["w1"]            # (Cout, Cin, 3, 3)
    w2 = params["w2"]            # (Cout, Cout, 3, 3)
    wsc = params["w_shortcut"]   # (Cout, Cin, 1, 1)
    Cout = w1.shape[0]

    Cp = _round_up(Cout, 128)                   # lane-dense output channels
    Ws = W + 4                                  # flat row stride of the 2-padded image
    Mout = H * Ws                               # stage-2 output rows (junk cols dropped later)
    M1 = _round_up(Mout + 2 * Ws + 2, 8)        # stage-1 rows (core + circular halo ring)
    R = _round_up(M1 + 2 * Ws + 2, 8)           # rows of the flattened, padded input tile

    # --- cheap one-time layout plumbing in XLA --------------------------------
    x_nhwc = jnp.transpose(x, (0, 2, 3, 1))                                 # NCHW -> NHWC
    xp = jnp.pad(x_nhwc, ((0, 0), (2, 2), (2, 2), (0, 0)), mode="wrap")     # circular pad by 2
    xpf = xp.reshape(N, (H + 4) * Ws, Cin)
    xpf = jnp.pad(xpf, ((0, 0), (0, R - (H + 4) * Ws), (0, 0)))             # (N, R, Cin)

    w1m = jnp.transpose(w1, (2, 3, 1, 0)).reshape(9, Cin, Cout)
    w1m = jnp.pad(w1m, ((0, 0), (0, 0), (0, Cp - Cout)))                    # (9, Cin, Cp)
    w2m = jnp.transpose(w2, (2, 3, 1, 0)).reshape(9, Cout, Cout)
    w2m = jnp.pad(w2m, ((0, 0), (0, Cp - Cout), (0, Cp - Cout)))            # (9, Cp, Cp)
    wscm = jnp.pad(wsc.reshape(Cout, Cin).T, ((0, 0), (0, Cp - Cout)))      # (Cin, Cp)
    alphas = jnp.stack([params["alpha1"], params["alpha2"]]).reshape(1, 2).astype(jnp.float32)

    kernel = functools.partial(_fused_double_conv_kernel, Ws=Ws, M1=M1, Mout=Mout)

    flops = 2 * N * (M1 * 9 * Cin * Cp + Mout * 9 * Cp * Cp + Mout * Cin * Cp)
    bytes_accessed = 4 * (N * (R * Cin + Mout * Cp)
                          + 9 * Cin * Cp + 9 * Cp * Cp + Cin * Cp + 2)

    # VMEM working set: double-buffered input/output blocks + weights + y1 scratch; 2x headroom
    # for Mosaic relayout temporaries, clamped to a ceiling that is safe on v7x (64 MiB VMEM).
    vmem_est = 4 * (2 * R * Cin + 2 * Mout * Cp + M1 * Cp
                    + 2 * (9 * Cin * Cp + 9 * Cp * Cp + Cin * Cp))
    vmem_limit = int(min(max(2 * vmem_est, 32 * 1024 * 1024), 48 * 1024 * 1024))

    out_flat = pl.pallas_call(
        kernel,
        out_shape=jax.ShapeDtypeStruct((N, Mout, Cp), jnp.float32),
        grid=(N,),
        in_specs=[
            pl.BlockSpec((1, R, Cin), lambda n: (n, 0, 0)),       # streamed per image
            pl.BlockSpec((9, Cin, Cp), lambda n: (0, 0, 0)),      # weights: resident
            pl.BlockSpec((9, Cp, Cp), lambda n: (0, 0, 0)),
            pl.BlockSpec((Cin, Cp), lambda n: (0, 0)),
            pl.BlockSpec(memory_space=pltpu.MemorySpace.SMEM),    # PReLU alphas (scalars)
        ],
        out_specs=pl.BlockSpec((1, Mout, Cp), lambda n: (n, 0, 0)),
        scratch_shapes=[pltpu.VMEM((M1, Cp), jnp.float32)],
        compiler_params=pltpu.CompilerParams(
            dimension_semantics=("parallel",),
            vmem_limit_bytes=vmem_limit,
        ),
        cost_estimate=pl.CostEstimate(
            flops=flops, transcendentals=0, bytes_accessed=bytes_accessed),
    )(xpf, w1m, w2m, wscm, alphas)

    # drop junk columns / padded channels, back to NCHW at the module boundary
    out = out_flat.reshape(N, H, Ws, Cp)[:, :, :W, :Cout]
    return jnp.transpose(out, (0, 3, 1, 2))


# ---------------------------------------------------------------------------
# Parameters + pure-JAX reference (for correctness check)
# ---------------------------------------------------------------------------
def init_params(key, in_channels, out_channels):
    k1, k2, k3 = jax.random.split(key, 3)
    w1 = jax.random.normal(k1, (out_channels, in_channels, 3, 3), jnp.float32) * 0.1
    w2 = jax.random.normal(k2, (out_channels, out_channels, 3, 3), jnp.float32) * 0.1
    wsc = jax.random.normal(k3, (out_channels, in_channels, 1, 1), jnp.float32) * 0.1
    # nn.PReLU() default: single shared parameter initialized to 0.25; all convs bias=False.
    return {"w1": w1, "w2": w2, "w_shortcut": wsc,
            "alpha1": jnp.float32(0.25), "alpha2": jnp.float32(0.25)}


def _reference_forward(x, params):
    dn = ("NCHW", "OIHW", "NCHW")

    def conv_circ3(v, w):
        vp = jnp.pad(v, ((0, 0), (0, 0), (1, 1), (1, 1)), mode="wrap")
        return jax.lax.conv_general_dilated(vp, w, (1, 1), "VALID", dimension_numbers=dn)

    def prelu(v, a):
        return jnp.where(v > 0, v, a * v)

    y = prelu(conv_circ3(x, params["w1"]), params["alpha1"])
    y = prelu(conv_circ3(y, params["w2"]), params["alpha2"])
    sc = jax.lax.conv_general_dilated(x, params["w_shortcut"], (1, 1), "VALID",
                                      dimension_numbers=dn)
    return y + sc


if __name__ == "__main__":
    key = jax.random.PRNGKey(0)
    kx, kp = jax.random.split(key)

    N, Cin, Cout, H, W = 2, 4, 8, 16, 16
    x = jax.random.normal(kx, (N, Cin, H, W), jnp.float32)
    params = init_params(kp, Cin, Cout)

    out = jax.jit(double_conv_normal_forward)(x, params)
    out = jax.block_until_ready(out)
    assert out.shape == (N, Cout, H, W), out.shape

    ref = _reference_forward(x, params)
    assert jnp.allclose(out, ref, rtol=2e-2, atol=2e-2), float(jnp.max(jnp.abs(out - ref)))
    print("KERNEL_OK")
</pallas_src>

<mosaic_0001>
module attributes {stable_mosaic.version = 11 : i64} {
  func.func @_fused_double_conv_kernel(%arg0: i32, %arg1: memref<1x416x4xf32, #tpu.memory_space<vmem>>, %arg2: memref<9x4x128xf32, #tpu.memory_space<vmem>>, %arg3: memref<9x128x128xf32, #tpu.memory_space<vmem>>, %arg4: memref<4x128xf32, #tpu.memory_space<vmem>>, %arg5: memref<1x2xf32, #tpu.memory_space<smem>>, %arg6: memref<1x320x128xf32, #tpu.memory_space<vmem>>, %arg7: memref<368x128xf32, #tpu.memory_space<vmem>>) attributes {dimension_semantics = [#tpu.dimension_semantics<parallel>], iteration_bounds = array<i64: 2>, scalar_prefetch = 0 : i64, scratch_operands = 1 : i64, tpu.core_type = #tpu.core_type<tc>, window_params = [{transform_indices = @transform_0, window_bounds = array<i64: 1, 416, 4>}, {pipeline_mode = #tpu.pipeline_mode<synchronous>, transform_indices = @transform_1, window_bounds = array<i64: 9, 4, 128>}, {pipeline_mode = #tpu.pipeline_mode<synchronous>, transform_indices = @transform_2, window_bounds = array<i64: 9, 128, 128>}, {pipeline_mode = #tpu.pipeline_mode<synchronous>, transform_indices = @transform_3, window_bounds = array<i64: 4, 128>}, {transform_indices = @transform_4, window_bounds = array<i64: 1, 2>}, {transform_indices = @transform_5, window_bounds = array<i64: 1, 320, 128>}]} {
    %c0 = arith.constant 0 : index
    %c0_0 = arith.constant 0 : index
    %0 = memref.load %arg5[%c0, %c0_0] : memref<1x2xf32, #tpu.memory_space<smem>>
    %c0_1 = arith.constant 0 : index
    %c1 = arith.constant 1 : index
    %1 = memref.load %arg5[%c0_1, %c1] : memref<1x2xf32, #tpu.memory_space<smem>>
    %c0_2 = arith.constant 0 : index
    %c0_3 = arith.constant 0 : index
    %c0_4 = arith.constant 0 : index
    %2 = vector.load %arg1[%c0_2, %c0_3, %c0_4] : memref<1x416x4xf32, #tpu.memory_space<vmem>>, vector<1x368x4xf32>
    %3 = vector.shape_cast %2 : vector<1x368x4xf32> to vector<368x4xf32>
    %c0_5 = arith.constant 0 : index
    %c0_6 = arith.constant 0 : index
    %c0_7 = arith.constant 0 : index
    %4 = vector.load %arg2[%c0_5, %c0_6, %c0_7] : memref<9x4x128xf32, #tpu.memory_space<vmem>>, vector<1x4x128xf32>
    %5 = vector.shape_cast %4 : vector<1x4x128xf32> to vector<4x128xf32>
    %cst = arith.constant dense<0.000000e+00> : vector<368x128xf32>
    %6 = tpu.matmul %3, %5, %cst {dimension_numbers = #tpu.dot_dimension_numbers<[1], [0], [0], [1], [0, 0, 1, 1], [], []>} : vector<368x4xf32>, vector<4x128xf32>, vector<368x128xf32> -> vector<368x128xf32>
    %c0_8 = arith.constant 0 : index
    %c0_9 = arith.constant 0 : index
    %7 = vector.load %arg7[%c0_8, %c0_9] : memref<368x128xf32, #tpu.memory_space<vmem>>, vector<368x128xf32>
    tpu.vector_store %arg7[%c0_8, %c0_9], %6 {strides = array<i32>} : memref<368x128xf32, #tpu.memory_space<vmem>>, vector<368x128xf32>,
    %c0_10 = arith.constant 0 : index
    %c1_11 = arith.constant 1 : index
    %c0_12 = arith.constant 0 : index
    %8 = vector.load %arg1[%c0_10, %c1_11, %c0_12] : memref<1x416x4xf32, #tpu.memory_space<vmem>>, vector<1x368x4xf32>
    %9 = vector.shape_cast %8 : vector<1x368x4xf32> to vector<368x4xf32>
    %c1_13 = arith.constant 1 : index
    %c0_14 = arith.constant 0 : index
    %c0_15 = arith.constant 0 : index
    %10 = vector.load %arg2[%c1_13, %c0_14, %c0_15] : memref<9x4x128xf32, #tpu.memory_space<vmem>>, vector<1x4x128xf32>
    %11 = vector.shape_cast %10 : vector<1x4x128xf32> to vector<4x128xf32>
    %cst_16 = arith.constant dense<0.000000e+00> : vector<368x128xf32>
    %12 = tpu.matmul %9, %11, %cst_16 {dimension_numbers = #tpu.dot_dimension_numbers<[1], [0], [0], [1], [0, 0, 1, 1], [], []>} : vector<368x4xf32>, vector<4x128xf32>, vector<368x128xf32> -> vector<368x128xf32>
    %c0_17 = arith.constant 0 : index
    %c0_18 = arith.constant 0 : index
    %13 = vector.load %arg7[%c0_17, %c0_18] : memref<368x128xf32, #tpu.memory_space<vmem>>, vector<368x128xf32>
    %14 = arith.addf %13, %12 : vector<368x128xf32>
    %c0_19 = arith.constant 0 : index
    %c0_20 = arith.constant 0 : index
    %15 = vector.load %arg7[%c0_19, %c0_20] : memref<368x128xf32, #tpu.memory_space<vmem>>, vector<368x128xf32>
    tpu.vector_store %arg7[%c0_19, %c0_20], %14 {strides = array<i32>} : memref<368x128xf32, #tpu.memory_space<vmem>>, vector<368x128xf32>,
    %c0_21 = arith.constant 0 : index
    %c2 = arith.constant 2 : index
    %c0_22 = arith.constant 0 : index
    %16 = vector.load %arg1[%c0_21, %c2, %c0_22] : memref<1x416x4xf32, #tpu.memory_space<vmem>>, vector<1x368x4xf32>
    %17 = vector.shape_cast %16 : vector<1x368x4xf32> to vector<368x4xf32>
    %c2_23 = arith.constant 2 : index
    %c0_24 = arith.constant 0 : index
    %c0_25 = arith.constant 0 : index
    %18 = vector.load %arg2[%c2_23, %c0_24, %c0_25] : memref<9x4x128xf32, #tpu.memory_space<vmem>>, vector<1x4x128xf32>
    %19 = vector.shape_cast %18 : vector<1x4x128xf32> to vector<4x128xf32>
    %cst_26 = arith.constant dense<0.000000e+00> : vector<368x128xf32>
    %20 = tpu.matmul %17, %19, %cst_26 {dimension_numbers = #tpu.dot_dimension_numbers<[1], [0], [0], [1], [0, 0, 1, 1], [], []>} : vector<368x4xf32>, vector<4x128xf32>, vector<368x128xf32> -> vector<368x128xf32>
    %c0_27 = arith.constant 0 : index
    %c0_28 = arith.constant 0 : index
    %21 = vector.load %arg7[%c0_27, %c0_28] : memref<368x128xf32, #tpu.memory_space<vmem>>, vector<368x128xf32>
    %22 = arith.addf %21, %20 : vector<368x128xf32>
    %c0_29 = arith.constant 0 : index
    %c0_30 = arith.constant 0 : index
    %23 = vector.load %arg7[%c0_29, %c0_30] : memref<368x128xf32, #tpu.memory_space<vmem>>, vector<368x128xf32>
    tpu.vector_store %arg7[%c0_29, %c0_30], %22 {strides = array<i32>} : memref<368x128xf32, #tpu.memory_space<vmem>>, vector<368x128xf32>,
    %c0_31 = arith.constant 0 : index
    %c20 = arith.constant 20 : index
    %c0_32 = arith.constant 0 : index
    %24 = vector.load %arg1[%c0_31, %c20, %c0_32] : memref<1x416x4xf32, #tpu.memory_space<vmem>>, vector<1x368x4xf32>
    %25 = vector.shape_cast %24 : vector<1x368x4xf32> to vector<368x4xf32>
    %c3 = arith.constant 3 : index
    %c0_33 = arith.constant 0 : index
    %c0_34 = arith.constant 0 : index
    %26 = vector.load %arg2[%c3, %c0_33, %c0_34] : memref<9x4x128xf32, #tpu.memory_space<vmem>>, vector<1x4x128xf32>
    %27 = vector.shape_cast %26 : vector<1x4x128xf32> to vector<4x128xf32>
    %cst_35 = arith.constant dense<0.000000e+00> : vector<368x128xf32>
    %28 = tpu.matmul %25, %27, %cst_35 {dimension_numbers = #tpu.dot_dimension_numbers<[1], [0], [0], [1], [0, 0, 1, 1], [], []>} : vector<368x4xf32>, vector<4x128xf32>, vector<368x128xf32> -> vector<368x128xf32>
    %c0_36 = arith.constant 0 : index
    %c0_37 = arith.constant 0 : index
    %29 = vector.load %arg7[%c0_36, %c0_37] : memref<368x128xf32, #tpu.memory_space<vmem>>, vector<368x128xf32>
    %30 = arith.addf %29, %28 : vector<368x128xf32>
    %c0_38 = arith.constant 0 : index
    %c0_39 = arith.constant 0 : index
    %31 = vector.load %arg7[%c0_38, %c0_39] : memref<368x128xf32, #tpu.memory_space<vmem>>, vector<368x128xf32>
    tpu.vector_store %arg7[%c0_38, %c0_39], %30 {strides = array<i32>} : memref<368x128xf32, #tpu.memory_space<vmem>>, vector<368x128xf32>,
    %c0_40 = arith.constant 0 : index
    %c21 = arith.constant 21 : index
    %c0_41 = arith.constant 0 : index
    %32 = vector.load %arg1[%c0_40, %c21, %c0_41] : memref<1x416x4xf32, #tpu.memory_space<vmem>>, vector<1x368x4xf32>
    %33 = vector.shape_cast %32 : vector<1x368x4xf32> to vector<368x4xf32>
    %c4 = arith.constant 4 : index
    %c0_42 = arith.constant 0 : index
    %c0_43 = arith.constant 0 : index
    %34 = vector.load %arg2[%c4, %c0_42, %c0_43] : memref<9x4x128xf32, #tpu.memory_space<vmem>>, vector<1x4x128xf32>
    %35 = vector.shape_cast %34 : vector<1x4x128xf32> to vector<4x128xf32>
    %cst_44 = arith.constant dense<0.000000e+00> : vector<368x128xf32>
    %36 = tpu.matmul %33, %35, %cst_44 {dimension_numbers = #tpu.dot_dimension_numbers<[1], [0], [0], [1], [0, 0, 1, 1], [], []>} : vector<368x4xf32>, vector<4x128xf32>, vector<368x128xf32> -> vector<368x128xf32>
    %c0_45 = arith.constant 0 : index
    %c0_46 = arith.constant 0 : index
    %37 = vector.load %arg7[%c0_45, %c0_46] : memref<368x128xf32, #tpu.memory_space<vmem>>, vector<368x128xf32>
    %38 = arith.addf %37, %36 : vector<368x128xf32>
    %c0_47 = arith.constant 0 : index
    %c0_48 = arith.constant 0 : index
    %39 = vector.load %arg7[%c0_47, %c0_48] : memref<368x128xf32, #tpu.memory_space<vmem>>, vector<368x128xf32>
    tpu.vector_store %arg7[%c0_47, %c0_48], %38 {strides = array<i32>} : memref<368x128xf32, #tpu.memory_space<vmem>>, vector<368x128xf32>,
    %c0_49 = arith.constant 0 : index
    %c22 = arith.constant 22 : index
    %c0_50 = arith.constant 0 : index
    %40 = vector.load %arg1[%c0_49, %c22, %c0_50] : memref<1x416x4xf32, #tpu.memory_space<vmem>>, vector<1x368x4xf32>
    %41 = vector.shape_cast %40 : vector<1x368x4xf32> to vector<368x4xf32>
    %c5 = arith.constant 5 : index
    %c0_51 = arith.constant 0 : index
    %c0_52 = arith.constant 0 : index
    %42 = vector.load %arg2[%c5, %c0_51, %c0_52] : memref<9x4x128xf32, #tpu.memory_space<vmem>>, vector<1x4x128xf32>
    %43 = vector.shape_cast %42 : vector<1x4x128xf32> to vector<4x128xf32>
    %cst_53 = arith.constant dense<0.000000e+00> : vector<368x128xf32>
    %44 = tpu.matmul %41, %43, %cst_53 {dimension_numbers = #tpu.dot_dimension_numbers<[1], [0], [0], [1], [0, 0, 1, 1], [], []>} : vector<368x4xf32>, vector<4x128xf32>, vector<368x128xf32> -> vector<368x128xf32>
    %c0_54 = arith.constant 0 : index
    %c0_55 = arith.constant 0 : index
    %45 = vector.load %arg7[%c0_54, %c0_55] : memref<368x128xf32, #tpu.memory_space<vmem>>, vector<368x128xf32>
    %46 = arith.addf %45, %44 : vector<368x128xf32>
    %c0_56 = arith.constant 0 : index
    %c0_57 = arith.constant 0 : index
    %47 = vector.load %arg7[%c0_56, %c0_57] : memref<368x128xf32, #tpu.memory_space<vmem>>, vector<368x128xf32>
    tpu.vector_store %arg7[%c0_56, %c0_57], %46 {strides = array<i32>} : memref<368x128xf32, #tpu.memory_space<vmem>>, vector<368x128xf32>,
    %c0_58 = arith.constant 0 : index
    %c40 = arith.constant 40 : index
    %c0_59 = arith.constant 0 : index
    %48 = vector.load %arg1[%c0_58, %c40, %c0_59] : memref<1x416x4xf32, #tpu.memory_space<vmem>>, vector<1x368x4xf32>
    %49 = vector.shape_cast %48 : vector<1x368x4xf32> to vector<368x4xf32>
    %c6 = arith.constant 6 : index
    %c0_60 = arith.constant 0 : index
    %c0_61 = arith.constant 0 : index
    %50 = vector.load %arg2[%c6, %c0_60, %c0_61] : memref<9x4x128xf32, #tpu.memory_space<vmem>>, vector<1x4x128xf32>
    %51 = vector.shape_cast %50 : vector<1x4x128xf32> to vector<4x128xf32>
    %cst_62 = arith.constant dense<0.000000e+00> : vector<368x128xf32>
    %52 = tpu.matmul %49, %51, %cst_62 {dimension_numbers = #tpu.dot_dimension_numbers<[1], [0], [0], [1], [0, 0, 1, 1], [], []>} : vector<368x4xf32>, vector<4x128xf32>, vector<368x128xf32> -> vector<368x128xf32>
    %c0_63 = arith.constant 0 : index
    %c0_64 = arith.constant 0 : index
    %53 = vector.load %arg7[%c0_63, %c0_64] : memref<368x128xf32, #tpu.memory_space<vmem>>, vector<368x128xf32>
    %54 = arith.addf %53, %52 : vector<368x128xf32>
    %c0_65 = arith.constant 0 : index
    %c0_66 = arith.constant 0 : index
    %55 = vector.load %arg7[%c0_65, %c0_66] : memref<368x128xf32, #tpu.memory_space<vmem>>, vector<368x128xf32>
    tpu.vector_store %arg7[%c0_65, %c0_66], %54 {strides = array<i32>} : memref<368x128xf32, #tpu.memory_space<vmem>>, vector<368x128xf32>,
    %c0_67 = arith.constant 0 : index
    %c41 = arith.constant 41 : index
    %c0_68 = arith.constant 0 : index
    %56 = vector.load %arg1[%c0_67, %c41, %c0_68] : memref<1x416x4xf32, #tpu.memory_space<vmem>>, vector<1x368x4xf32>
    %57 = vector.shape_cast %56 : vector<1x368x4xf32> to vector<368x4xf32>
    %c7 = arith.constant 7 : index
    %c0_69 = arith.constant 0 : index
    %c0_70 = arith.constant 0 : index
    %58 = vector.load %arg2[%c7, %c0_69, %c0_70] : memref<9x4x128xf32, #tpu.memory_space<vmem>>, vector<1x4x128xf32>
    %59 = vector.shape_cast %58 : vector<1x4x128xf32> to vector<4x128xf32>
    %cst_71 = arith.constant dense<0.000000e+00> : vector<368x128xf32>
    %60 = tpu.matmul %57, %59, %cst_71 {dimension_numbers = #tpu.dot_dimension_numbers<[1], [0], [0], [1], [0, 0, 1, 1], [], []>} : vector<368x4xf32>, vector<4x128xf32>, vector<368x128xf32> -> vector<368x128xf32>
    %c0_72 = arith.constant 0 : index
    %c0_73 = arith.constant 0 : index
    %61 = vector.load %arg7[%c0_72, %c0_73] : memref<368x128xf32, #tpu.memory_space<vmem>>, vector<368x128xf32>
    %62 = arith.addf %61, %60 : vector<368x128xf32>
    %c0_74 = arith.constant 0 : index
    %c0_75 = arith.constant 0 : index
    %63 = vector.load %arg7[%c0_74, %c0_75] : memref<368x128xf32, #tpu.memory_space<vmem>>, vector<368x128xf32>
    tpu.vector_store %arg7[%c0_74, %c0_75], %62 {strides = array<i32>} : memref<368x128xf32, #tpu.memory_space<vmem>>, vector<368x128xf32>,
    %c0_76 = arith.constant 0 : index
    %c42 = arith.constant 42 : index
    %c0_77 = arith.constant 0 : index
    %64 = vector.load %arg1[%c0_76, %c42, %c0_77] : memref<1x416x4xf32, #tpu.memory_space<vmem>>, vector<1x368x4xf32>
    %65 = vector.shape_cast %64 : vector<1x368x4xf32> to vector<368x4xf32>
    %c8 = arith.constant 8 : index
    %c0_78 = arith.constant 0 : index
    %c0_79 = arith.constant 0 : index
    %66 = vector.load %arg2[%c8, %c0_78, %c0_79] : memref<9x4x128xf32, #tpu.memory_space<vmem>>, vector<1x4x128xf32>
    %67 = vector.shape_cast %66 : vector<1x4x128xf32> to vector<4x128xf32>
    %cst_80 = arith.constant dense<0.000000e+00> : vector<368x128xf32>
    %68 = tpu.matmul %65, %67, %cst_80 {dimension_numbers = #tpu.dot_dimension_numbers<[1], [0], [0], [1], [0, 0, 1, 1], [], []>} : vector<368x4xf32>, vector<4x128xf32>, vector<368x128xf32> -> vector<368x128xf32>
    %c0_81 = arith.constant 0 : index
    %c0_82 = arith.constant 0 : index
    %69 = vector.load %arg7[%c0_81, %c0_82] : memref<368x128xf32, #tpu.memory_space<vmem>>, vector<368x128xf32>
    %70 = arith.addf %69, %68 : vector<368x128xf32>
    %c0_83 = arith.constant 0 : index
    %c0_84 = arith.constant 0 : index
    %71 = vector.load %arg7[%c0_83, %c0_84] : memref<368x128xf32, #tpu.memory_space<vmem>>, vector<368x128xf32>
    tpu.vector_store %arg7[%c0_83, %c0_84], %70 {strides = array<i32>} : memref<368x128xf32, #tpu.memory_space<vmem>>, vector<368x128xf32>,
    %c0_85 = arith.constant 0 : index
    %c0_86 = arith.constant 0 : index
    %72 = vector.load %arg7[%c0_85, %c0_86] : memref<368x128xf32, #tpu.memory_space<vmem>>, vector<368x128xf32>
    %cst_87 = arith.constant 0.000000e+00 : f32
    %73 = vector.broadcast %cst_87 : f32 to vector<368x128xf32>
    %74 = arith.cmpf ogt, %72, %73 : vector<368x128xf32>
    %75 = vector.broadcast %0 : f32 to vector<368x128xf32>
    %76 = arith.mulf %75, %72 : vector<368x128xf32>
    %77 = arith.select %74, %72, %76 : vector<368x128xi1>, vector<368x128xf32>
    %c0_88 = arith.constant 0 : index
    %c0_89 = arith.constant 0 : index
    %78 = vector.load %arg7[%c0_88, %c0_89] : memref<368x128xf32, #tpu.memory_space<vmem>>, vector<368x128xf32>
    tpu.vector_store %arg7[%c0_88, %c0_89], %77 {strides = array<i32>} : memref<368x128xf32, #tpu.memory_space<vmem>>, vector<368x128xf32>,
    %c0_90 = arith.constant 0 : index
    %c0_91 = arith.constant 0 : index
    %79 = vector.load %arg7[%c0_90, %c0_91] : memref<368x128xf32, #tpu.memory_space<vmem>>, vector<320x128xf32>
    %c0_92 = arith.constant 0 : index
    %c0_93 = arith.constant 0 : index
    %c0_94 = arith.constant 0 : index
    %80 = vector.load %arg3[%c0_92, %c0_93, %c0_94] : memref<9x128x128xf32, #tpu.memory_space<vmem>>, vector<1x128x128xf32>
    %81 = vector.shape_cast %80 : vector<1x128x128xf32> to vector<128x128xf32>
    %cst_95 = arith.constant dense<0.000000e+00> : vector<320x128xf32>
    %82 = tpu.matmul %79, %81, %cst_95 {dimension_numbers = #tpu.dot_dimension_numbers<[1], [0], [0], [1], [0, 0, 1, 1], [], []>} : vector<320x128xf32>, vector<128x128xf32>, vector<320x128xf32> -> vector<320x128xf32>
    %c0_96 = arith.constant 0 : index
    %c0_97 = arith.constant 0 : index
    %c0_98 = arith.constant 0 : index
    %83 = vector.load %arg6[%c0_96, %c0_97, %c0_98] : memref<1x320x128xf32, #tpu.memory_space<vmem>>, vector<1x320x128xf32>
    %84 = vector.shape_cast %83 : vector<1x320x128xf32> to vector<320x128xf32>
    %85 = vector.shape_cast %82 : vector<320x128xf32> to vector<1x320x128xf32>
    tpu.vector_store %arg6[%c0_96, %c0_97, %c0_98], %85 {strides = array<i32>} : memref<1x320x128xf32, #tpu.memory_space<vmem>>, vector<1x320x128xf32>,
    %c1_99 = arith.constant 1 : index
    %c0_100 = arith.constant 0 : index
    %86 = vector.load %arg7[%c1_99, %c0_100] : memref<368x128xf32, #tpu.memory_space<vmem>>, vector<320x128xf32>
    %c1_101 = arith.constant 1 : index
    %c0_102 = arith.constant 0 : index
    %c0_103 = arith.constant 0 : index
    %87 = vector.load %arg3[%c1_101, %c0_102, %c0_103] : memref<9x128x128xf32, #tpu.memory_space<vmem>>, vector<1x128x128xf32>
    %88 = vector.shape_cast %87 : vector<1x128x128xf32> to vector<128x128xf32>
    %cst_104 = arith.constant dense<0.000000e+00> : vector<320x128xf32>
    %89 = tpu.matmul %86, %88, %cst_104 {dimension_numbers = #tpu.dot_dimension_numbers<[1], [0], [0], [1], [0, 0, 1, 1], [], []>} : vector<320x128xf32>, vector<128x128xf32>, vector<320x128xf32> -> vector<320x128xf32>
    %c0_105 = arith.constant 0 : index
    %c0_106 = arith.constant 0 : index
    %c0_107 = arith.constant 0 : index
    %90 = vector.load %arg6[%c0_105, %c0_106, %c0_107] : memref<1x320x128xf32, #tpu.memory_space<vmem>>, vector<1x320x128xf32>
    %91 = vector.shape_cast %90 : vector<1x320x128xf32> to vector<320x128xf32>
    %92 = arith.addf %91, %89 : vector<320x128xf32>
    %c0_108 = arith.constant 0 : index
    %c0_109 = arith.constant 0 : index
    %c0_110 = arith.constant 0 : index
    %93 = vector.load %arg6[%c0_108, %c0_109, %c0_110] : memref<1x320x128xf32, #tpu.memory_space<vmem>>, vector<1x320x128xf32>
    %94 = vector.shape_cast %93 : vector<1x320x128xf32> to vector<320x128xf32>
    %95 = vector.shape_cast %92 : vector<320x128xf32> to vector<1x320x128xf32>
    tpu.vector_store %arg6[%c0_108, %c0_109, %c0_110], %95 {strides = array<i32>} : memref<1x320x128xf32, #tpu.memory_space<vmem>>, vector<1x320x128xf32>,
    %c2_111 = arith.constant 2 : index
    %c0_112 = arith.constant 0 : index
    %96 = vector.load %arg7[%c2_111, %c0_112] : memref<368x128xf32, #tpu.memory_space<vmem>>, vector<320x128xf32>
    %c2_113 = arith.constant 2 : index
    %c0_114 = arith.constant 0 : index
    %c0_115 = arith.constant 0 : index
    %97 = vector.load %arg3[%c2_113, %c0_114, %c0_115] : memref<9x128x128xf32, #tpu.memory_space<vmem>>, vector<1x128x128xf32>
    %98 = vector.shape_cast %97 : vector<1x128x128xf32> to vector<128x128xf32>
    %cst_116 = arith.constant dense<0.000000e+00> : vector<320x128xf32>
    %99 = tpu.matmul %96, %98, %cst_116 {dimension_numbers = #tpu.dot_dimension_numbers<[1], [0], [0], [1], [0, 0, 1, 1], [], []>} : vector<320x128xf32>, vector<128x128xf32>, vector<320x128xf32> -> vector<320x128xf32>
    %c0_117 = arith.constant 0 : index
    %c0_118 = arith.constant 0 : index
    %c0_119 = arith.constant 0 : index
    %100 = vector.load %arg6[%c0_117, %c0_118, %c0_119] : memref<1x320x128xf32, #tpu.memory_space<vmem>>, vector<1x320x128xf32>
    %101 = vector.shape_cast %100 : vector<1x320x128xf32> to vector<320x128xf32>
    %102 = arith.addf %101, %99 : vector<320x128xf32>
    %c0_120 = arith.constant 0 : index
    %c0_121 = arith.constant 0 : index
    %c0_122 = arith.constant 0 : index
    %103 = vector.load %arg6[%c0_120, %c0_121, %c0_122] : memref<1x320x128xf32, #tpu.memory_space<vmem>>, vector<1x320x128xf32>
    %104 = vector.shape_cast %103 : vector<1x320x128xf32> to vector<320x128xf32>
    %105 = vector.shape_cast %102 : vector<320x128xf32> to vector<1x320x128xf32>
    tpu.vector_store %arg6[%c0_120, %c0_121, %c0_122], %105 {strides = array<i32>} : memref<1x320x128xf32, #tpu.memory_space<vmem>>, vector<1x320x128xf32>,
    %c20_123 = arith.constant 20 : index
    %c0_124 = arith.constant 0 : index
    %106 = vector.load %arg7[%c20_123, %c0_124] : memref<368x128xf32, #tpu.memory_space<vmem>>, vector<320x128xf32>
    %c3_125 = arith.constant 3 : index
    %c0_126 = arith.constant 0 : index
    %c0_127 = arith.constant 0 : index
    %107 = vector.load %arg3[%c3_125, %c0_126, %c0_127] : memref<9x128x128xf32, #tpu.memory_space<vmem>>, vector<1x128x128xf32>
    %108 = vector.shape_cast %107 : vector<1x128x128xf32> to vector<128x128xf32>
    %cst_128 = arith.constant dense<0.000000e+00> : vector<320x128xf32>
    %109 = tpu.matmul %106, %108, %cst_128 {dimension_numbers = #tpu.dot_dimension_numbers<[1], [0], [0], [1], [0, 0, 1, 1], [], []>} : vector<320x128xf32>, vector<128x128xf32>, vector<320x128xf32> -> vector<320x128xf32>
    %c0_129 = arith.constant 0 : index
    %c0_130 = arith.constant 0 : index
    %c0_131 = arith.constant 0 : index
    %110 = vector.load %arg6[%c0_129, %c0_130, %c0_131] : memref<1x320x128xf32, #tpu.memory_space<vmem>>, vector<1x320x128xf32>
    %111 = vector.shape_cast %110 : vector<1x320x128xf32> to vector<320x128xf32>
    %112 = arith.addf %111, %109 : vector<320x128xf32>
    %c0_132 = arith.constant 0 : index
    %c0_133 = arith.constant 0 : index
    %c0_134 = arith.constant 0 : index
    %113 = vector.load %arg6[%c0_132, %c0_133, %c0_134] : memref<1x320x128xf32, #tpu.memory_space<vmem>>, vector<1x320x128xf32>
    %114 = vector.shape_cast %113 : vector<1x320x128xf32> to vector<320x128xf32>
    %115 = vector.shape_cast %112 : vector<320x128xf32> to vector<1x320x128xf32>
    tpu.vector_store %arg6[%c0_132, %c0_133, %c0_134], %115 {strides = array<i32>} : memref<1x320x128xf32, #tpu.memory_space<vmem>>, vector<1x320x128xf32>,
    %c21_135 = arith.constant 21 : index
    %c0_136 = arith.constant 0 : index
    %116 = vector.load %arg7[%c21_135, %c0_136] : memref<368x128xf32, #tpu.memory_space<vmem>>, vector<320x128xf32>
    %c4_137 = arith.constant 4 : index
    %c0_138 = arith.constant 0 : index
    %c0_139 = arith.constant 0 : index
    %117 = vector.load %arg3[%c4_137, %c0_138, %c0_139] : memref<9x128x128xf32, #tpu.memory_space<vmem>>, vector<1x128x128xf32>
    %118 = vector.shape_cast %117 : vector<1x128x128xf32> to vector<128x128xf32>
    %cst_140 = arith.constant dense<0.000000e+00> : vector<320x128xf32>
    %119 = tpu.matmul %116, %118, %cst_140 {dimension_numbers = #tpu.dot_dimension_numbers<[1], [0], [0], [1], [0, 0, 1, 1], [], []>} : vector<320x128xf32>, vector<128x128xf32>, vector<320x128xf32> -> vector<320x128xf32>
    %c0_141 = arith.constant 0 : index
    %c0_142 = arith.constant 0 : index
    %c0_143 = arith.constant 0 : index
    %120 = vector.load %arg6[%c0_141, %c0_142, %c0_143] : memref<1x320x128xf32, #tpu.memory_space<vmem>>, vector<1x320x128xf32>
    %121 = vector.shape_cast %120 : vector<1x320x128xf32> to vector<320x128xf32>
    %122 = arith.addf %121, %119 : vector<320x128xf32>
    %c0_144 = arith.constant 0 : index
    %c0_145 = arith.constant 0 : index
    %c0_146 = arith.constant 0 : index
    %123 = vector.load %arg6[%c0_144, %c0_145, %c0_146] : memref<1x320x128xf32, #tpu.memory_space<vmem>>, vector<1x320x128xf32>
    %124 = vector.shape_cast %123 : vector<1x320x128xf32> to vector<320x128xf32>
    %125 = vector.shape_cast %122 : vector<320x128xf32> to vector<1x320x128xf32>
    tpu.vector_store %arg6[%c0_144, %c0_145, %c0_146], %125 {strides = array<i32>} : memref<1x320x128xf32, #tpu.memory_space<vmem>>, vector<1x320x128xf32>,
    %c22_147 = arith.constant 22 : index
    %c0_148 = arith.constant 0 : index
    %126 = vector.load %arg7[%c22_147, %c0_148] : memref<368x128xf32, #tpu.memory_space<vmem>>, vector<320x128xf32>
    %c5_149 = arith.constant 5 : index
    %c0_150 = arith.constant 0 : index
    %c0_151 = arith.constant 0 : index
    %127 = vector.load %arg3[%c5_149, %c0_150, %c0_151] : memref<9x128x128xf32, #tpu.memory_space<vmem>>, vector<1x128x128xf32>
    %128 = vector.shape_cast %127 : vector<1x128x128xf32> to vector<128x128xf32>
    %cst_152 = arith.constant dense<0.000000e+00> : vector<320x128xf32>
    %129 = tpu.matmul %126, %128, %cst_152 {dimension_numbers = #tpu.dot_dimension_numbers<[1], [0], [0], [1], [0, 0, 1, 1], [], []>} : vector<320x128xf32>, vector<128x128xf32>, vector<320x128xf32> -> vector<320x128xf32>
    %c0_153 = arith.constant 0 : index
    %c0_154 = arith.constant 0 : index
    %c0_155 = arith.constant 0 : index
    %130 = vector.load %arg6[%c0_153, %c0_154, %c0_155] : memref<1x320x128xf32, #tpu.memory_space<vmem>>, vector<1x320x128xf32>
    %131 = vector.shape_cast %130 : vector<1x320x128xf32> to vector<320x128xf32>
    %132 = arith.addf %131, %129 : vector<320x128xf32>
    %c0_156 = arith.constant 0 : index
    %c0_157 = arith.constant 0 : index
    %c0_158 = arith.constant 0 : index
    %133 = vector.load %arg6[%c0_156, %c0_157, %c0_158] : memref<1x320x128xf32, #tpu.memory_space<vmem>>, vector<1x320x128xf32>
    %134 = vector.shape_cast %133 : vector<1x320x128xf32> to vector<320x128xf32>
    %135 = vector.shape_cast %132 : vector<320x128xf32> to vector<1x320x128xf32>
    tpu.vector_store %arg6[%c0_156, %c0_157, %c0_158], %135 {strides = array<i32>} : memref<1x320x128xf32, #tpu.memory_space<vmem>>, vector<1x320x128xf32>,
    %c40_159 = arith.constant 40 : index
    %c0_160 = arith.constant 0 : index
    %136 = vector.load %arg7[%c40_159, %c0_160] : memref<368x128xf32, #tpu.memory_space<vmem>>, vector<320x128xf32>
    %c6_161 = arith.constant 6 : index
    %c0_162 = arith.constant 0 : index
    %c0_163 = arith.constant 0 : index
    %137 = vector.load %arg3[%c6_161, %c0_162, %c0_163] : memref<9x128x128xf32, #tpu.memory_space<vmem>>, vector<1x128x128xf32>
    %138 = vector.shape_cast %137 : vector<1x128x128xf32> to vector<128x128xf32>
    %cst_164 = arith.constant dense<0.000000e+00> : vector<320x128xf32>
    %139 = tpu.matmul %136, %138, %cst_164 {dimension_numbers = #tpu.dot_dimension_numbers<[1], [0], [0], [1], [0, 0, 1, 1], [], []>} : vector<320x128xf32>, vector<128x128xf32>, vector<320x128xf32> -> vector<320x128xf32>
    %c0_165 = arith.constant 0 : index
    %c0_166 = arith.constant 0 : index
    %c0_167 = arith.constant 0 : index
    %140 = vector.load %arg6[%c0_165, %c0_166, %c0_167] : memref<1x320x128xf32, #tpu.memory_space<vmem>>, vector<1x320x128xf32>
    %141 = vector.shape_cast %140 : vector<1x320x128xf32> to vector<320x128xf32>
    %142 = arith.addf %141, %139 : vector<320x128xf32>
    %c0_168 = arith.constant 0 : index
    %c0_169 = arith.constant 0 : index
    %c0_170 = arith.constant 0 : index
    %143 = vector.load %arg6[%c0_168, %c0_169, %c0_170] : memref<1x320x128xf32, #tpu.memory_space<vmem>>, vector<1x320x128xf32>
    %144 = vector.shape_cast %143 : vector<1x320x128xf32> to vector<320x128xf32>
    %145 = vector.shape_cast %142 : vector<320x128xf32> to vector<1x320x128xf32>
    tpu.vector_store %arg6[%c0_168, %c0_169, %c0_170], %145 {strides = array<i32>} : memref<1x320x128xf32, #tpu.memory_space<vmem>>, vector<1x320x128xf32>,
    %c41_171 = arith.constant 41 : index
    %c0_172 = arith.constant 0 : index
    %146 = vector.load %arg7[%c41_171, %c0_172] : memref<368x128xf32, #tpu.memory_space<vmem>>, vector<320x128xf32>
    %c7_173 = arith.constant 7 : index
    %c0_174 = arith.constant 0 : index
    %c0_175 = arith.constant 0 : index
    %147 = vector.load %arg3[%c7_173, %c0_174, %c0_175] : memref<9x128x128xf32, #tpu.memory_space<vmem>>, vector<1x128x128xf32>
    %148 = vector.shape_cast %147 : vector<1x128x128xf32> to vector<128x128xf32>
    %cst_176 = arith.constant dense<0.000000e+00> : vector<320x128xf32>
    %149 = tpu.matmul %146, %148, %cst_176 {dimension_numbers = #tpu.dot_dimension_numbers<[1], [0], [0], [1], [0, 0, 1, 1], [], []>} : vector<320x128xf32>, vector<128x128xf32>, vector<320x128xf32> -> vector<320x128xf32>
    %c0_177 = arith.constant 0 : index
    %c0_178 = arith.constant 0 : index
    %c0_179 = arith.constant 0 : index
    %150 = vector.load %arg6[%c0_177, %c0_178, %c0_179] : memref<1x320x128xf32, #tpu.memory_space<vmem>>, vector<1x320x128xf32>
    %151 = vector.shape_cast %150 : vector<1x320x128xf32> to vector<320x128xf32>
    %152 = arith.addf %151, %149 : vector<320x128xf32>
    %c0_180 = arith.constant 0 : index
    %c0_181 = arith.constant 0 : index
    %c0_182 = arith.constant 0 : index
    %153 = vector.load %arg6[%c0_180, %c0_181, %c0_182] : memref<1x320x128xf32, #tpu.memory_space<vmem>>, vector<1x320x128xf32>
    %154 = vector.shape_cast %153 : vector<1x320x128xf32> to vector<320x128xf32>
    %155 = vector.shape_cast %152 : vector<320x128xf32> to vector<1x320x128xf32>
    tpu.vector_store %arg6[%c0_180, %c0_181, %c0_182], %155 {strides = array<i32>} : memref<1x320x128xf32, #tpu.memory_space<vmem>>, vector<1x320x128xf32>,
    %c42_183 = arith.constant 42 : index
    %c0_184 = arith.constant 0 : index
    %156 = vector.load %arg7[%c42_183, %c0_184] : memref<368x128xf32, #tpu.memory_space<vmem>>, vector<320x128xf32>
    %c8_185 = arith.constant 8 : index
    %c0_186 = arith.constant 0 : index
    %c0_187 = arith.constant 0 : index
    %157 = vector.load %arg3[%c8_185, %c0_186, %c0_187] : memref<9x128x128xf32, #tpu.memory_space<vmem>>, vector<1x128x128xf32>
    %158 = vector.shape_cast %157 : vector<1x128x128xf32> to vector<128x128xf32>
    %cst_188 = arith.constant dense<0.000000e+00> : vector<320x128xf32>
    %159 = tpu.matmul %156, %158, %cst_188 {dimension_numbers = #tpu.dot_dimension_numbers<[1], [0], [0], [1], [0, 0, 1, 1], [], []>} : vector<320x128xf32>, vector<128x128xf32>, vector<320x128xf32> -> vector<320x128xf32>
    %c0_189 = arith.constant 0 : index
    %c0_190 = arith.constant 0 : index
    %c0_191 = arith.constant 0 : index
    %160 = vector.load %arg6[%c0_189, %c0_190, %c0_191] : memref<1x320x128xf32, #tpu.memory_space<vmem>>, vector<1x320x128xf32>
    %161 = vector.shape_cast %160 : vector<1x320x128xf32> to vector<320x128xf32>
    %162 = arith.addf %161, %159 : vector<320x128xf32>
    %c0_192 = arith.constant 0 : index
    %c0_193 = arith.constant 0 : index
    %c0_194 = arith.constant 0 : index
    %163 = vector.load %arg6[%c0_192, %c0_193, %c0_194] : memref<1x320x128xf32, #tpu.memory_space<vmem>>, vector<1x320x128xf32>
    %164 = vector.shape_cast %163 : vector<1x320x128xf32> to vector<320x128xf32>
    %165 = vector.shape_cast %162 : vector<320x128xf32> to vector<1x320x128xf32>
    tpu.vector_store %arg6[%c0_192, %c0_193, %c0_194], %165 {strides = array<i32>} : memref<1x320x128xf32, #tpu.memory_space<vmem>>, vector<1x320x128xf32>,
    %c0_195 = arith.constant 0 : index
    %c0_196 = arith.constant 0 : index
    %c0_197 = arith.constant 0 : index
    %166 = vector.load %arg6[%c0_195, %c0_196, %c0_197] : memref<1x320x128xf32, #tpu.memory_space<vmem>>, vector<1x320x128xf32>
    %167 = vector.shape_cast %166 : vector<1x320x128xf32> to vector<320x128xf32>
    %c0_198 = arith.constant 0 : index
    %c42_199 = arith.constant 42 : index
    %c0_200 = arith.constant 0 : index
    %168 = vector.load %arg1[%c0_198, %c42_199, %c0_200] : memref<1x416x4xf32, #tpu.memory_space<vmem>>, vector<1x320x4xf32>
    %169 = vector.shape_cast %168 : vector<1x320x4xf32> to vector<320x4xf32>
    %c0_201 = arith.constant 0 : index
    %c0_202 = arith.constant 0 : index
    %170 = vector.load %arg4[%c0_201, %c0_202] : memref<4x128xf32, #tpu.memory_space<vmem>>, vector<4x128xf32>
    %cst_203 = arith.constant dense<0.000000e+00> : vector<320x128xf32>
    %171 = tpu.matmul %169, %170, %cst_203 {dimension_numbers = #tpu.dot_dimension_numbers<[1], [0], [0], [1], [0, 0, 1, 1], [], []>} : vector<320x4xf32>, vector<4x128xf32>, vector<320x128xf32> -> vector<320x128xf32>
    %cst_204 = arith.constant 0.000000e+00 : f32
    %172 = vector.broadcast %cst_204 : f32 to vector<320x128xf32>
    %173 = arith.cmpf ogt, %167, %172 : vector<320x128xf32>
    %174 = vector.broadcast %1 : f32 to vector<320x128xf32>
    %175 = arith.mulf %174, %167 : vector<320x128xf32>
    %176 = arith.select %173, %167, %175 : vector<320x128xi1>, vector<320x128xf32>
    %177 = arith.addf %176, %171 : vector<320x128xf32>
    %c0_205 = arith.constant 0 : index
    %c0_206 = arith.constant 0 : index
    %c0_207 = arith.constant 0 : index
    %178 = vector.load %arg6[%c0_205, %c0_206, %c0_207] : memref<1x320x128xf32, #tpu.memory_space<vmem>>, vector<1x320x128xf32>
    %179 = vector.shape_cast %178 : vector<1x320x128xf32> to vector<320x128xf32>
    %180 = vector.shape_cast %177 : vector<320x128xf32> to vector<1x320x128xf32>
    tpu.vector_store %arg6[%c0_205, %c0_206, %c0_207], %180 {strides = array<i32>} : memref<1x320x128xf32, #tpu.memory_space<vmem>>, vector<1x320x128xf32>,
    return
  }
  func.func @transform_0(%arg0: i32) -> (i32, i32, i32) {
    %c0_i32 = arith.constant 0 : i32
    %c0_i32_0 = arith.constant 0 : i32
    %c0_i32_1 = arith.constant 0 : i32
    return %arg0, %c0_i32, %c0_i32_0 : i32, i32, i32
  }
  func.func @transform_1(%arg0: i32) -> (i32, i32, i32) {
    %c0_i32 = arith.constant 0 : i32
    %c0_i32_0 = arith.constant 0 : i32
    %c0_i32_1 = arith.constant 0 : i32
    %c0_i32_2 = arith.constant 0 : i32
    return %c0_i32, %c0_i32_0, %c0_i32_1 : i32, i32, i32
  }
  func.func @transform_2(%arg0: i32) -> (i32, i32, i32) {
    %c0_i32 = arith.constant 0 : i32
    %c0_i32_0 = arith.constant 0 : i32
    %c0_i32_1 = arith.constant 0 : i32
    %c0_i32_2 = arith.constant 0 : i32
    return %c0_i32, %c0_i32_0, %c0_i32_1 : i32, i32, i32
  }
  func.func @transform_3(%arg0: i32) -> (i32, i32) {
    %c0_i32 = arith.constant 0 : i32
    %c0_i32_0 = arith.constant 0 : i32
    %c0_i32_1 = arith.constant 0 : i32
    return %c0_i32, %c0_i32_0 : i32, i32
  }
  func.func @transform_4(%arg0: i32) -> (i32, i32) {
    %c0_i32 = arith.constant 0 : i32
    %c0_i32_0 = arith.constant 0 : i32
    %c0_i32_1 = arith.constant 0 : i32
    return %c0_i32, %c0_i32_0 : i32, i32
  }
  func.func @transform_5(%arg0: i32) -> (i32, i32, i32) {
    %c0_i32 = arith.constant 0 : i32
    %c0_i32_0 = arith.constant 0 : i32
    %c0_i32_1 = arith.constant 0 : i32
    return %arg0, %c0_i32, %c0_i32_0 : i32, i32, i32
  }
}

</mosaic_0001>

<bundles_post_ra>
// kernel: double_conv_normal_forward.1
= control target key start
LH: loop header
LB: loop body
LE: loop exit
PB: predicated region body
PF: predicated region fallthrough
CT: control target
= control target key end

     0   :  { %10 = vsyncpa [#allocation4], 0  ;;  %s8768_s18 = smov 0   ;;  %s11063_s0 = inlined_call_operand.vmem [shape: f32[2,416,4], index: 0, kind: input, shape index: {}]   ;;  %s11064_s1 = inlined_call_operand.vmem [shape: f32[9,4,128], index: 1, kind: input, shape index: {}]   ;;  %s11065_s2 = inlined_call_operand.vmem [shape: f32[9,128,128], index: 2, kind: input, shape index: {}]   ;;  %s11066_s3 = inlined_call_operand.vmem [shape: f32[4,128], index: 3, kind: input, shape index: {}]   ;;  %s11067_s4 = inlined_call_operand.vmem [shape: f32[1,2], index: 4, kind: input, shape index: {}]   ;;  %s11068_s5 = inlined_call_operand.vmem [shape: f32[2,320,128], index: 5, kind: output, shape index: {}]  }
   0x1 LB: > { %s8073_s19 = sadd.s32 4294967295, %s8735_s18   ;;  %p8075_p0 = scmp.ge.s32.totalorder %s8735_s18, 1  ;;  %s8735_s18 = sphi %s8768_s18, %s16_s18  }
   0x2   : > { %p157_p1 = scmp.lt.s32.totalorder %s8735_s18, 3  ;;  %s178_s22 = sshll.u32 %s11067_s4, 4  ;;  %s179_s22 = int_to_ptr.vmem [resolvable:$true] %s178_s22 }
   0x3   : > { %p8698_p3 = scmp.eq.s32.totalorder %s8073_s19, 0  ;;  %s8737_s23 = smov [#allocation3]  }
   0x4   : > { %p158_p2 = pnand %p8075_p0, %p157_p1 }
   0x6   : > { %p8694_p4 = pneg %p158_p2  ;;  %199 = sbr.rel (%p158_p2) target bundleno = 2188 (0x88c), region = 40 }
   0x8   : > { %p8695_p5 = pnand %p8698_p3, %p8694_p4 }
   0xa   : > { %8697 = dma.vmem_to_smem (!%p8695_p5), %s179_s22, 16, %s8737_s23, [#allocation4]  }
   0xb   : > { %8730 = dma.done.wait (%p8698_p3), [#allocation4], 16  }
   0xc   : > { %8732 = vsyncadd (%p8698_p3), [#allocation4], 4294967280 }
   0xd   : > { %206 = sfence }
   0xe   : > { %v287_v0 = vld [vmem:[%s11064_s1] sm:$0xf]  ;;  %vm427_vm0 = vcmask 1043456   ;;  %p229_p6 = scmp.lt.s32.totalorder %s8073_s19, 1  ;;  %v8130_v1 = vld [vmem:[%s11064_s1 + $0x4] sm:$0xf] }
   0xf   : > { %8083 = vmatpush.msk.msra.mxu0 %vm427_vm0, %v287_v0  ;;  %8685 = vmatpush.msk.msra.mxu1 %vm427_vm0, %v8130_v1  ;;  %vm288_vm1 = vcmask 31744   ;;  %v8178_v6 = vld [vmem:[%s11064_s1 + $0x8] sm:$0xf]  ;;  %v8226_v8 = vld [vmem:[%s11064_s1 + $0xc] sm:$0xf]  ;;  %s239_s9 = sld [smem:[#allocation3]] }
  0x10   : > { %s11070_s19 = smov (!%p229_p6, %s8073_s19), 1  ;;  %8686 = vmatpush.msk.msra.mxu2 %vm427_vm0, %v8178_v6  ;;  %8687 = vmatpush.msk.msra.mxu3 %vm427_vm0, %v8226_v8 }
  0x11   : > { %8131 = vmatpush.msk.msrb.mxu0 %vm427_vm0, %v8130_v1  ;;  %s8688_s28 = smul.u32 416, %s11070_s19 }
  0x12   : > { %s8689_s14 = smul.u32 320, %s11070_s19 }
  0x13   : > { %s8794_s6 = scalar_lea.vmem %s11063_s0, %s8688_s28 }
  0x14   : > { %v241_v2 = vld [vmem:[%s8794_s6] sm:$0xff]  ;;  %v242_v3 = vld [vmem:[%s8794_s6 + $0x8] sm:$0xff]  ;;  %v243_v4 = vld [vmem:[%s8794_s6 + $0x10] sm:$0xff]  ;;  %s10341_s17 = scalar_lea.vmem %s11068_s5, %s8689_s14 }
  0x15   : > { %8084 = vmatmul.msk.f32.vlgmr.msra.gmra.mxu0 %vm288_vm1, %v241_v2  ;;  %v244_v5 = vld [vmem:[%s8794_s6 + $0x18] sm:$0xff]  ;;  %v1122_v7 = vld [vmem:[%s8794_s6 + $0x42] sm:$0xff]  ;;  %v1123_v12 = vld [vmem:[%s8794_s6 + $0x4a] sm:$0xff] }
  0x16   : > { %8179 = vmatpush.msk.msra.mxu0 %vm427_vm0, %v8178_v6  ;;  %8188 = vmatmul.msk.f32.vlgmr.msra.gmra.mxu2 %vm288_vm1, %v1122_v7  ;;  %v245_v9 = vld [vmem:[%s8794_s6 + $0x20] sm:$0xff]  ;;  %v1604_v10 = vld [vmem:[%s8794_s6 + $0x54] sm:$0xff]  ;;  %v246_v13 = vld [vmem:[%s8794_s6 + $0x28] sm:$0xff] }
  0x17   : > { %8236 = vmatmul.msk.f32.vlgmr.msra.gmra.mxu3 %vm288_vm1, %v1604_v10  ;;  %v640_v11 = vld [vmem:[%s8794_s6 + $0x41] sm:$0xff]  ;;  %v641_v15 = vld [vmem:[%s8794_s6 + $0x49] sm:$0xff]  ;;  %v1124_v16 = vld [vmem:[%s8794_s6 + $0x52] sm:$0xff] }
  0x18   : > { %8140 = vmatmul.msk.f32.vlgmr.msra.gmra.mxu1 %vm288_vm1, %v640_v11  ;;  %v1605_v14 = vld [vmem:[%s8794_s6 + $0x5c] sm:$0xff]  ;;  %v247_v17 = vld [vmem:[%s8794_s6 + $0x30] sm:$0xff]  ;;  %v1606_v18 = vld [vmem:[%s8794_s6 + $0x64] sm:$0xff] }
  0x19   : > { %v642_v19 = vld [vmem:[%s8794_s6 + $0x51] sm:$0xff]  ;;  %v1125_v20 = vld [vmem:[%s8794_s6 + $0x5a] sm:$0xff]  ;;  %v1126_v24 = vld [vmem:[%s8794_s6 + $0x62] sm:$0xff] }
  0x1a   : > { %v248_v21 = vld [vmem:[%s8794_s6 + $0x38] sm:$0xff]  ;;  %v1607_v22 = vld [vmem:[%s8794_s6 + $0x6c] sm:$0xff]  ;;  %v249_v25 = vld [vmem:[%s8794_s6 + $0x40] sm:$0xff] }
  0x1b   : > { %v643_v23 = vld [vmem:[%s8794_s6 + $0x59] sm:$0xff]  ;;  %v644_v27 = vld [vmem:[%s8794_s6 + $0x61] sm:$0xff]  ;;  %v1127_v28 = vld [vmem:[%s8794_s6 + $0x6a] sm:$0xff] }
  0x1c   : > { %v1608_v26 = vld [vmem:[%s8794_s6 + $0x74] sm:$0xff]  ;;  %v250_v29 = vld [vmem:[%s8794_s6 + $0x48] sm:$0xff]  ;;  %v1609_v30 = vld [vmem:[%s8794_s6 + $0x7c] sm:$0xff] }
  0x1d   : > { %8085 = vmatmul.msk.f32.gmra.mxu0 %vm288_vm1, %v242_v3  ;;  %v645_v31 = vld [vmem:[%s8794_s6 + $0x69] sm:$0xff]  ;;  %v1128_v32 = vld [vmem:[%s8794_s6 + $0x72] sm:$0xff]  ;;  %v1129_v36 = vld [vmem:[%s8794_s6 + $0x7a] sm:$0xff] }
  0x1e   : > { %8189 = vmatmul.msk.f32.gmra.mxu2 %vm288_vm1, %v1123_v12  ;;  %v251_v33 = vld [vmem:[%s8794_s6 + $0x50] sm:$0xff]  ;;  %v1610_v34 = vld [vmem:[%s8794_s6 + $0x84] sm:$0xff]  ;;  %v252_v37 = vld [vmem:[%s8794_s6 + $0x58] sm:$0xff] }
  0x1f   : > { %8237 = vmatmul.msk.f32.gmra.mxu3 %vm288_vm1, %v1605_v14  ;;  %v646_v35 = vld [vmem:[%s8794_s6 + $0x71] sm:$0xff]  ;;  %v647_v39 = vld [vmem:[%s8794_s6 + $0x79] sm:$0xff]  ;;  %v1130_v40 = vld [vmem:[%s8794_s6 + $0x82] sm:$0xff] }
  0x20   : > { %8141 = vmatmul.msk.f32.gmra.mxu1 %vm288_vm1, %v641_v15  ;;  %v1611_v38 = vld [vmem:[%s8794_s6 + $0x8c] sm:$0xff]  ;;  %v253_v41 = vld [vmem:[%s8794_s6 + $0x60] sm:$0xff]  ;;  %v1612_v42 = vld [vmem:[%s8794_s6 + $0x94] sm:$0xff] }
  0x21   : > { %v648_v43 = vld [vmem:[%s8794_s6 + $0x81] sm:$0xff]  ;;  %v1131_v44 = vld [vmem:[%s8794_s6 + $0x8a] sm:$0xff]  ;;  %v1132_v48 = vld [vmem:[%s8794_s6 + $0x92] sm:$0xff] }
  0x22   : > { %v254_v45 = vld [vmem:[%s8794_s6 + $0x68] sm:$0xff]  ;;  %v1613_v46 = vld [vmem:[%s8794_s6 + $0x9c] sm:$0xff]  ;;  %v255_v49 = vld [vmem:[%s8794_s6 + $0x70] sm:$0xff] }
  0x23   : > { %v649_v47 = vld [vmem:[%s8794_s6 + $0x89] sm:$0xff]  ;;  %v650_v51 = vld [vmem:[%s8794_s6 + $0x91] sm:$0xff]  ;;  %v1133_v52 = vld [vmem:[%s8794_s6 + $0x9a] sm:$0xff] }
  0x24   : > { %v1614_v50 = vld [vmem:[%s8794_s6 + $0xa4] sm:$0xff]  ;;  %v256_v53 = vld [vmem:[%s8794_s6 + $0x78] sm:$0xff]  ;;  %v1615_v54 = vld [vmem:[%s8794_s6 + $0xac] sm:$0xff] }
  0x25   : > { %8086 = vmatmul.msk.f32.gmra.mxu0 %vm288_vm1, %v243_v4  ;;  %v651_v55 = vld [vmem:[%s8794_s6 + $0x99] sm:$0xff]  ;;  %v1134_v56 = vld [vmem:[%s8794_s6 + $0xa2] sm:$0xff]  ;;  %v1135_v61 = vld [vmem:[%s8794_s6 + $0xaa] sm:$0xff] }
  0x26   : > { %8190 = vmatmul.msk.f32.gmra.mxu2 %vm288_vm1, %v1124_v16  ;;  %v257_v58 = vld [vmem:[%s8794_s6 + $0x80] sm:$0xff]  ;;  %v1616_v59 = vld [vmem:[%s8794_s6 + $0xb4] sm:$0xff]  ;;  %v258_v63 = vld [vmem:[%s8794_s6 + $0x88] sm:$0xff] }
  0x27   : > { %8238 = vmatmul.msk.f32.gmra.mxu3 %vm288_vm1, %v1606_v18  ;;  %v652_v60 = vld [vmem:[%s8794_s6 + $0xa1] sm:$0xff]  ;;  %v653_v1 = vld [vmem:[%s8794_s6 + $0xa9] sm:$0xff]  ;;  %v1136_v2 = vld [vmem:[%s8794_s6 + $0xb2] sm:$0xff] }
  0x28   : > { %8142 = vmatmul.msk.f32.gmra.mxu1 %vm288_vm1, %v642_v19  ;;  %v1617_v0 = vld [vmem:[%s8794_s6 + $0xbc] sm:$0xff]  ;;  %v259_v4 = vld [vmem:[%s8794_s6 + $0x90] sm:$0xff] }
  0x29   : > { %v654_v6 = vld [vmem:[%s8794_s6 + $0xb1] sm:$0xff]  ;;  %v1137_v7 = vld [vmem:[%s8794_s6 + $0xba] sm:$0xff]  ;;  %v1138_v12 = vld [vmem:[%s8794_s6 + $0xc2] sm:$0xff] }
  0x2a   : > { %v1619_v10 = vld [vmem:[%s8794_s6 + $0xcc] sm:$0xff]  ;;  %v655_v11 = vld [vmem:[%s8794_s6 + $0xb9] sm:$0xff] }
  0x2b   : > { %v261_v14 = vld [vmem:[%s8794_s6 + $0xa0] sm:$0xff]  ;;  %v1620_v16 = vld [vmem:[%s8794_s6 + $0xd4] sm:$0xff] }
  0x2d   : > { %8087 = vmatmul.msk.f32.gmra.mxu0 %vm288_vm1, %v244_v5  ;;  %v1618_v5 = vld [vmem:[%s8794_s6 + $0xc4] sm:$0xff] }
  0x2e   : > { %8191 = vmatmul.msk.f32.gmra.mxu2 %vm288_vm1, %v1125_v20  ;;  %v1139_v20 = vld [vmem:[%s8794_s6 + $0xca] sm:$0xff] }
  0x2f   : > { %8239 = vmatmul.msk.f32.gmra.mxu3 %vm288_vm1, %v1607_v22  ;;  %v262_v22 = vld [vmem:[%s8794_s6 + $0xa8] sm:$0xff] }
  0x30   : > { %8143 = vmatmul.msk.f32.gmra.mxu1 %vm288_vm1, %v643_v23 }
  0x35   : > { %8088 = vmatmul.msk.f32.gmra.mxu0 %vm288_vm1, %v245_v9  ;;  %v260_v9 = vld [vmem:[%s8794_s6 + $0x98] sm:$0xff] }
  0x36   : > { %8192 = vmatmul.msk.f32.gmra.mxu2 %vm288_vm1, %v1126_v24  ;;  %v1621_v24 = vld [vmem:[%s8794_s6 + $0xdc] sm:$0xff] }
  0x37   : > { %8240 = vmatmul.msk.f32.gmra.mxu3 %vm288_vm1, %v1608_v26 }
  0x38   : > { %8144 = vmatmul.msk.f32.gmra.mxu1 %vm288_vm1, %v644_v27 }
  0x3d   : > { %8089 = vmatmul.msk.f32.gmra.mxu0 %vm288_vm1, %v246_v13 }
  0x3e   : > { %8193 = vmatmul.msk.f32.gmra.mxu2 %vm288_vm1, %v1127_v28  ;;  %v1140_v28 = vld [vmem:[%s8794_s6 + $0xd2] sm:$0xff] }
  0x3f   : > { %8241 = vmatmul.msk.f32.gmra.mxu3 %vm288_vm1, %v1609_v30  ;;  %v263_v30 = vld [vmem:[%s8794_s6 + $0xb0] sm:$0xff] }
  0x40   : > { %8145 = vmatmul.msk.f32.gmra.mxu1 %vm288_vm1, %v645_v31 }
  0x45   : > { %8090 = vmatmul.msk.f32.gmra.mxu0 %vm288_vm1, %v247_v17  ;;  %v656_v17 = vld [vmem:[%s8794_s6 + $0xc1] sm:$0xff] }
  0x46   : > { %8194 = vmatmul.msk.f32.gmra.mxu2 %vm288_vm1, %v1128_v32  ;;  %v1622_v32 = vld [vmem:[%s8794_s6 + $0xe4] sm:$0xff] }
  0x47   : > { %8242 = vmatmul.msk.f32.gmra.mxu3 %vm288_vm1, %v1610_v34 }
  0x48   : > { %8146 = vmatmul.msk.f32.gmra.mxu1 %vm288_vm1, %v646_v35 }
  0x4d   : > { %8091 = vmatmul.msk.f32.gmra.mxu0 %vm288_vm1, %v248_v21 }
  0x4e   : > { %8195 = vmatmul.msk.f32.gmra.mxu2 %vm288_vm1, %v1129_v36  ;;  %v1141_v36 = vld [vmem:[%s8794_s6 + $0xda] sm:$0xff] }
  0x4f   : > { %8243 = vmatmul.msk.f32.gmra.mxu3 %vm288_vm1, %v1611_v38  ;;  %v264_v38 = vld [vmem:[%s8794_s6 + $0xb8] sm:$0xff] }
  0x50   : > { %8147 = vmatmul.msk.f32.gmra.mxu1 %vm288_vm1, %v647_v39 }
  0x55   : > { %8092 = vmatmul.msk.f32.gmra.mxu0 %vm288_vm1, %v249_v25  ;;  %v657_v25 = vld [vmem:[%s8794_s6 + $0xc9] sm:$0xff] }
  0x56   : > { %8196 = vmatmul.msk.f32.gmra.mxu2 %vm288_vm1, %v1130_v40  ;;  %v1623_v40 = vld [vmem:[%s8794_s6 + $0xec] sm:$0xff] }
  0x57   : > { %8244 = vmatmul.msk.f32.gmra.mxu3 %vm288_vm1, %v1612_v42 }
  0x58   : > { %8148 = vmatmul.msk.f32.gmra.mxu1 %vm288_vm1, %v648_v43 }
  0x5d   : > { %8093 = vmatmul.msk.f32.gmra.mxu0 %vm288_vm1, %v250_v29 }
  0x5e   : > { %8197 = vmatmul.msk.f32.gmra.mxu2 %vm288_vm1, %v1131_v44  ;;  %v1142_v44 = vld [vmem:[%s8794_s6 + $0xe2] sm:$0xff] }
  0x5f   : > { %8245 = vmatmul.msk.f32.gmra.mxu3 %vm288_vm1, %v1613_v46  ;;  %v265_v46 = vld [vmem:[%s8794_s6 + $0xc0] sm:$0xff] }
  0x60   : > { %8149 = vmatmul.msk.f32.gmra.mxu1 %vm288_vm1, %v649_v47 }
  0x65   : > { %8094 = vmatmul.msk.f32.gmra.mxu0 %vm288_vm1, %v251_v33  ;;  %v658_v33 = vld [vmem:[%s8794_s6 + $0xd1] sm:$0xff] }
  0x66   : > { %8198 = vmatmul.msk.f32.gmra.mxu2 %vm288_vm1, %v1132_v48  ;;  %v1624_v48 = vld [vmem:[%s8794_s6 + $0xf4] sm:$0xff] }
  0x67   : > { %8246 = vmatmul.msk.f32.gmra.mxu3 %vm288_vm1, %v1614_v50  ;;  %v660_v50 = vld [vmem:[%s8794_s6 + $0xe1] sm:$0xff] }
  0x68   : > { %8150 = vmatmul.msk.f32.gmra.mxu1 %vm288_vm1, %v650_v51 }
  0x6d   : > { %8095 = vmatmul.msk.f32.gmra.mxu0 %vm288_vm1, %v252_v37 }
  0x6e   : > { %8199 = vmatmul.msk.f32.gmra.mxu2 %vm288_vm1, %v1133_v52 }
  0x6f   : > { %8247 = vmatmul.msk.f32.gmra.mxu3 %vm288_vm1, %v1615_v54 }
  0x70   : > { %8151 = vmatmul.msk.f32.gmra.mxu1 %vm288_vm1, %v651_v55  ;;  %v1143_v55 = vld [vmem:[%s8794_s6 + $0xea] sm:$0xff] }
  0x75   : > { %8096 = vmatmul.msk.f32.gmra.mxu0 %vm288_vm1, %v253_v41  ;;  %v659_v41 = vld [vmem:[%s8794_s6 + $0xd9] sm:$0xff] }
  0x76   : > { %8200 = vmatmul.msk.f32.gmra.mxu2 %vm288_vm1, %v1134_v56 }
  0x77   : > { %8248 = vmatmul.msk.f32.gmra.mxu3 %vm288_vm1, %v1616_v59  ;;  %v1625_v59 = vld [vmem:[%s8794_s6 + $0xfc] sm:$0xff] }
  0x78   : > { %8152 = vmatmul.msk.f32.gmra.mxu1 %vm288_vm1, %v652_v60 }
  0x7d   : > { %8097 = vmatmul.msk.f32.gmra.mxu0 %vm288_vm1, %v254_v45 }
  0x7e   : > { %8201 = vmatmul.msk.f32.gmra.mxu2 %vm288_vm1, %v1135_v61  ;;  %v661_v61 = vld [vmem:[%s8794_s6 + $0xe9] sm:$0xff] }
  0x7f   : > { %8249 = vmatmul.msk.f32.gmra.mxu3 %vm288_vm1, %v1617_v0 }
  0x80   : > { %8153 = vmatmul.msk.f32.gmra.mxu1 %vm288_vm1, %v653_v1 }
  0x85   : > { %8098 = vmatmul.msk.f32.gmra.mxu0 %vm288_vm1, %v255_v49 }
  0x86   : > { %8202 = vmatmul.msk.f32.gmra.mxu2 %vm288_vm1, %v1136_v2  ;;  %v1144_v2 = vld [vmem:[%s8794_s6 + $0xf2] sm:$0xff] }
  0x87   : > { %8250 = vmatmul.msk.f32.gmra.mxu3 %vm288_vm1, %v1618_v5 }
  0x88   : > { %8154 = vmatmul.msk.f32.gmra.mxu1 %vm288_vm1, %v654_v6  ;;  %v1626_v6 = vld [vmem:[%s8794_s6 + $0x104] sm:$0xff] }
  0x8d   : > { %8099 = vmatmul.msk.f32.gmra.mxu0 %vm288_vm1, %v256_v53 }
  0x8e   : > { %8203 = vmatmul.msk.f32.gmra.mxu2 %vm288_vm1, %v1137_v7 }
  0x8f   : > { %8251 = vmatmul.msk.f32.gmra.mxu3 %vm288_vm1, %v1619_v10 }
  0x90   : > { %8155 = vmatmul.msk.f32.gmra.mxu1 %vm288_vm1, %v655_v11 }
  0x92   : > { %v448_v57 = vpop.f32.mrf.mxu0 }
  0x93   : > { %586 = vst [vmem:[#allocation2] sm:$0xff] %v448_v57  ;;  %v266_v57 = vld [vmem:[%s8794_s6 + $0xc8] sm:$0xff] }
  0x95   : > { %8100 = vmatmul.msk.f32.gmra.mxu0 %vm288_vm1, %v257_v58  ;;  %v862_v15 = vpop.f32.mrf.mxu1 }
  0x96   : > { %8204 = vmatmul.msk.f32.gmra.mxu2 %vm288_vm1, %v1138_v12 }
  0x97   : > { %8252 = vmatmul.msk.f32.gmra.mxu3 %vm288_vm1, %v1620_v16 }
  0x98   : > { %8156 = vmatmul.msk.f32.gmra.mxu1 %vm288_vm1, %v656_v17  ;;  %v1627_v17 = vld [vmem:[%s8794_s6 + $0x10c] sm:$0xff] }
  0x99   : > { %v1344_v18 = vpop.f32.mrf.mxu2 }
  0x9a   : > { %v451_v62 = vpop.f32.mrf.mxu0  ;;  %v1826_v19 = vpop.f32.mrf.mxu3 }
  0x9b   : > { %587 = vst [vmem:[#allocation2 + $0x8] sm:$0xff] %v451_v62 }
  0x9d   : > { %8101 = vmatmul.msk.f32.gmra.mxu0 %vm288_vm1, %v258_v63  ;;  %v865_v23 = vpop.f32.mrf.mxu1 }
  0x9e   : > { %8205 = vmatmul.msk.f32.gmra.mxu2 %vm288_vm1, %v1139_v20 }
  0x9f   : > { %8253 = vmatmul.msk.f32.gmra.mxu3 %vm288_vm1, %v1621_v24  ;;  %v1146_v24 = vld [vmem:[%s8794_s6 + $0x102] sm:$0xff] }
  0xa0   : > { %8157 = vmatmul.msk.f32.gmra.mxu1 %vm288_vm1, %v657_v25 }
  0xa1   : > { %v1347_v26 = vpop.f32.mrf.mxu2 }
  0xa2   : > { %v454_v3 = vpop.f32.mrf.mxu0  ;;  %v1829_v27 = vpop.f32.mrf.mxu3 }
  0xa3   : > { %588 = vst [vmem:[#allocation2 + $0x10] sm:$0xff] %v454_v3 }
  0xa5   : > { %8102 = vmatmul.msk.f32.gmra.mxu0 %vm288_vm1, %v259_v4  ;;  %v868_v31 = vpop.f32.mrf.mxu1  ;;  %v267_v4 = vld [vmem:[%s8794_s6 + $0xd0] sm:$0xff] }
  0xa6   : > { %8206 = vmatmul.msk.f32.gmra.mxu2 %vm288_vm1, %v1140_v28  ;;  %v1628_v28 = vld [vmem:[%s8794_s6 + $0x114] sm:$0xff] }
  0xa7   : > { %8254 = vmatmul.msk.f32.gmra.mxu3 %vm288_vm1, %v1622_v32 }
  0xa8   : > { %8158 = vmatmul.msk.f32.gmra.mxu1 %vm288_vm1, %v658_v33 }
  0xa9   : > { %v1350_v34 = vpop.f32.mrf.mxu2 }
  0xaa   : > { %v457_v8 = vpop.f32.mrf.mxu0  ;;  %v1832_v35 = vpop.f32.mrf.mxu3 }
  0xab   : > { %589 = vst [vmem:[#allocation2 + $0x18] sm:$0xff] %v457_v8  ;;  %v662_v8 = vld [vmem:[%s8794_s6 + $0xf1] sm:$0xff] }
  0xad   : > { %8103 = vmatmul.msk.f32.gmra.mxu0 %vm288_vm1, %v260_v9  ;;  %v8968_v39 = vpop.f32.mrf.mxu1 }
  0xae   : > { %8207 = vmatmul.msk.f32.gmra.mxu2 %vm288_vm1, %v1141_v36 }
  0xaf   : > { %8255 = vmatmul.msk.f32.gmra.mxu3 %vm288_vm1, %v1623_v40 }
  0xb0   : > { %8159 = vmatmul.msk.f32.gmra.mxu1 %vm288_vm1, %v659_v41  ;;  %v665_v41 = vld [vmem:[%s8794_s6 + $0x109] sm:$0xff] }
  0xb1   : > { %v8973_v42 = vpop.f32.mrf.mxu2 }
  0xb2   : > { %v460_v13 = vpop.f32.mrf.mxu0  ;;  %v8977_v43 = vpop.f32.mrf.mxu3 }
  0xb3   : > { %590 = vst [vmem:[#allocation2 + $0x20] sm:$0xff] %v460_v13  ;;  %v1145_v13 = vld [vmem:[%s8794_s6 + $0xfa] sm:$0xff] }
  0xb5   : > { %8104 = vmatmul.msk.f32.gmra.mxu0 %vm288_vm1, %v261_v14  ;;  %v8982_v47 = vpop.f32.mrf.mxu1 }
  0xb6   : > { %8208 = vmatmul.msk.f32.gmra.mxu2 %vm288_vm1, %v1142_v44 }
  0xb7   : > { %8256 = vmatmul.msk.f32.gmra.mxu3 %vm288_vm1, %v1624_v48  ;;  %v271_v48 = vld [vmem:[%s8794_s6 + $0xf0] sm:$0xff] }
  0xb8   : > { %8160 = vmatmul.msk.f32.gmra.mxu1 %vm288_vm1, %v660_v50  ;;  %v1630_v50 = vld [vmem:[%s8794_s6 + $0x124] sm:$0xff] }
  0xb9   : > { %v8987_v51 = vpop.f32.mrf.mxu2 }
  0xba   : > { %v463_v21 = vpop.f32.mrf.mxu0  ;;  %v8991_v53 = vpop.f32.mrf.mxu3 }
  0xbb   : > { %591 = vst [vmem:[#allocation2 + $0x28] sm:$0xff] %v463_v21 }
  0xbd   : > { %8105 = vmatmul.msk.f32.gmra.mxu0 %vm288_vm1, %v262_v22  ;;  %v8996_v58 = vpop.f32.mrf.mxu1 }
  0xbe   : > { %8209 = vmatmul.msk.f32.gmra.mxu2 %vm288_vm1, %v1143_v55 }
  0xbf   : > { %8257 = vmatmul.msk.f32.gmra.mxu3 %vm288_vm1, %v1625_v59  ;;  %v272_v59 = vld [vmem:[%s8794_s6 + $0xf8] sm:$0xff] }
  0xc0   : > { %8161 = vmatmul.msk.f32.gmra.mxu1 %vm288_vm1, %v661_v61  ;;  %v1631_v61 = vld [vmem:[%s8794_s6 + $0x12c] sm:$0xff] }
  0xc1   : > { %v9001_v62 = vpop.f32.mrf.mxu2 }
  0xc2   : > { %v466_v29 = vpop.f32.mrf.mxu0  ;;  %v9005_v0 = vpop.f32.mrf.mxu3 }
  0xc3   : > { %592 = vst [vmem:[#allocation2 + $0x30] sm:$0xff] %v466_v29 }
  0xc5   : > { %8106 = vmatmul.msk.f32.gmra.mxu0 %vm288_vm1, %v263_v30  ;;  %v9010_v5 = vpop.f32.mrf.mxu1  ;;  %v664_v30 = vld [vmem:[%s8794_s6 + $0x101] sm:$0xff] }
  0xc6   : > { %8210 = vmatmul.msk.f32.gmra.mxu2 %vm288_vm1, %v1144_v2 }
  0xc7   : > { %8258 = vmatmul.msk.f32.gmra.mxu3 %vm288_vm1, %v1626_v6  ;;  %v273_v6 = vld [vmem:[%s8794_s6 + $0x100] sm:$0xff] }
  0xc8   : > { %8162 = vmatmul.msk.f32.gmra.mxu1 %vm288_vm1, %v662_v8  ;;  %v1632_v8 = vld [vmem:[%s8794_s6 + $0x134] sm:$0xff] }
  0xc9   : > { %v9015_v9 = vpop.f32.mrf.mxu2 }
  0xca   : > { %v469_v37 = vpop.f32.mrf.mxu0  ;;  %v9019_v11 = vpop.f32.mrf.mxu3 }
  0xcb   : > { %593 = vst [vmem:[#allocation2 + $0x38] sm:$0xff] %v469_v37  ;;  %v270_v37 = vld [vmem:[%s8794_s6 + $0xe8] sm:$0xff] }
  0xcd   : > { %8107 = vmatmul.msk.f32.gmra.mxu0 %vm288_vm1, %v264_v38  ;;  %v9024_v16 = vpop.f32.mrf.mxu1 }
  0xce   : > { %8211 = vmatmul.msk.f32.gmra.mxu2 %vm288_vm1, %v1145_v13 }
  0xcf   : > { %8259 = vmatmul.msk.f32.gmra.mxu3 %vm288_vm1, %v1627_v17  ;;  %v274_v17 = vld [vmem:[%s8794_s6 + $0x108] sm:$0xff] }
  0xd1   : > { %v9030_v20 = vpop.f32.mrf.mxu2 }
  0xd2   : > { %v472_v45 = vpop.f32.mrf.mxu0  ;;  %v9035_v22 = vpop.f32.mrf.mxu3 }
  0xd3   : > { %v1030_v49 = vadd.f32 %v862_v15, %v472_v45  ;;  %v268_v15 = vld [vmem:[%s8794_s6 + $0xd8] sm:$0xff] }
  0xd5   : > { %8108 = vmatmul.msk.f32.gmra.mxu0 %vm288_vm1, %v265_v46  ;;  %v1512_v52 = vadd.f32 %v1344_v18, %v1030_v49  ;;  %v1148_v46 = vld [vmem:[%s8794_s6 + $0x112] sm:$0xff] }
  0xd6   : > { %8212 = vmatmul.msk.f32.gmra.mxu2 %vm288_vm1, %v1146_v24 }
  0xd7   : > { %v1994_v54 = vadd.f32 %v1826_v19, %v1512_v52  ;;  %v663_v19 = vld [vmem:[%s8794_s6 + $0xf9] sm:$0xff]  ;;  %8260 = vmatmul.msk.f32.gmra.mxu3 %vm288_vm1, %v1628_v28  ;;  %v666_v52 = vld [vmem:[%s8794_s6 + $0x111] sm:$0xff] }
  0xd8   : > { %8163 = vmatmul.msk.f32.gmra.mxu1 %vm288_vm1, %v663_v19  ;;  %v1633_v19 = vld [vmem:[%s8794_s6 + $0x13c] sm:$0xff]  ;;  %v275_v28 = vld [vmem:[%s8794_s6 + $0x110] sm:$0xff] }
  0xd9   : > { %2040 = vst [vmem:[#allocation2 + $0x40] sm:$0xff] %v1994_v54 }
  0xda   : > { %v475_v56 = vpop.f32.mrf.mxu0  ;;  %v9052_v33 = vpop.f32.mrf.mxu3 }
  0xdb   : > { %v1031_v60 = vadd.f32 %v865_v23, %v475_v56 }
  0xdd   : > { %8109 = vmatmul.msk.f32.gmra.mxu0 %vm288_vm1, %v266_v57  ;;  %v1513_v63 = vadd.f32 %v1347_v26, %v1031_v60  ;;  %v269_v26 = vld [vmem:[%s8794_s6 + $0xe0] sm:$0xff] }
  0xde   : > { %v1149_v57 = vld [vmem:[%s8794_s6 + $0x11a] sm:$0xff] }
  0xdf   : > { %v1995_v1 = vadd.f32 %v1829_v27, %v1513_v63  ;;  %v9041_v27 = vpop.f32.mrf.mxu1  ;;  %v667_v63 = vld [vmem:[%s8794_s6 + $0x119] sm:$0xff] }
  0xe0   : > { %8164 = vmatmul.msk.f32.gmra.mxu1 %vm288_vm1, %v664_v30  ;;  %v1634_v30 = vld [vmem:[%s8794_s6 + $0x144] sm:$0xff] }
  0xe1   : > { %2041 = vst [vmem:[#allocation2 + $0x48] sm:$0xff] %v1995_v1 }
  0xe2   : > { %v478_v3 = vpop.f32.mrf.mxu0  ;;  %v9069_v44 = vpop.f32.mrf.mxu3 }
  0xe3   : > { %v1032_v7 = vadd.f32 %v868_v31, %v478_v3  ;;  %v9047_v31 = vpop.f32.mrf.mxu2 }
  0xe5   : > { %8110 = vmatmul.msk.f32.gmra.mxu0 %vm288_vm1, %v267_v4  ;;  %v1514_v10 = vadd.f32 %v1350_v34, %v1032_v7  ;;  %v1150_v4 = vld [vmem:[%s8794_s6 + $0x122] sm:$0xff] }
  0xe7   : > { %v1996_v12 = vadd.f32 %v1832_v35, %v1514_v10  ;;  %v1147_v35 = vld [vmem:[%s8794_s6 + $0x10a] sm:$0xff]  ;;  %v9058_v38 = vpop.f32.mrf.mxu1  ;;  %v668_v10 = vld [vmem:[%s8794_s6 + $0x121] sm:$0xff] }
  0xe8   : > { %8213 = vmatmul.msk.f32.gmra.mxu2 %vm288_vm1, %v1147_v35  ;;  %8165 = vmatmul.msk.f32.gmra.mxu1 %vm288_vm1, %v665_v41  ;;  %v1635_v41 = vld [vmem:[%s8794_s6 + $0x14c] sm:$0xff] }
  0xe9   : > { %2042 = vst [vmem:[#allocation2 + $0x50] sm:$0xff] %v1996_v12 }
  0xea   : > { %v481_v14 = vpop.f32.mrf.mxu0  ;;  %v9086_v55 = vpop.f32.mrf.mxu3 }
  0xeb   : > { %v1033_v18 = vadd.f32 %v8968_v39, %v481_v14  ;;  %v1629_v39 = vld [vmem:[%s8794_s6 + $0x11c] sm:$0xff] }
  0xec   : > { %8261 = vmatmul.msk.f32.gmra.mxu3 %vm288_vm1, %v1629_v39  ;;  %v276_v39 = vld [vmem:[%s8794_s6 + $0x118] sm:$0xff] }
  0xed   : > { %8111 = vmatmul.msk.f32.gmra.mxu0 %vm288_vm1, %v268_v15  ;;  %v1515_v21 = vadd.f32 %v8973_v42, %v1033_v18  ;;  %v9064_v42 = vpop.f32.mrf.mxu2  ;;  %v1151_v15 = vld [vmem:[%s8794_s6 + $0x12a] sm:$0xff] }
  0xef   : > { %v1997_v23 = vadd.f32 %v8977_v43, %v1515_v21  ;;  %v9075_v49 = vpop.f32.mrf.mxu1  ;;  %v669_v21 = vld [vmem:[%s8794_s6 + $0x129] sm:$0xff] }
  0xf0   : > { %8214 = vmatmul.msk.f32.gmra.mxu2 %vm288_vm1, %v1148_v46  ;;  %8166 = vmatmul.msk.f32.gmra.mxu1 %vm288_vm1, %v666_v52  ;;  %v1636_v52 = vld [vmem:[%s8794_s6 + $0x154] sm:$0xff] }
  0xf1   : > { %2043 = vst [vmem:[#allocation2 + $0x58] sm:$0xff] %v1997_v23 }
  0xf2   : > { %v484_v25 = vpop.f32.mrf.mxu0  ;;  %v9103_v2 = vpop.f32.mrf.mxu3 }
  0xf3   : > { %v1034_v29 = vadd.f32 %v8982_v47, %v484_v25 }
  0xf4   : > { %8262 = vmatmul.msk.f32.gmra.mxu3 %vm288_vm1, %v1630_v50  ;;  %v277_v50 = vld [vmem:[%s8794_s6 + $0x120] sm:$0xff] }
  0xf5   : > { %8112 = vmatmul.msk.f32.gmra.mxu0 %vm288_vm1, %v269_v26  ;;  %v1516_v32 = vadd.f32 %v8987_v51, %v1034_v29  ;;  %v1152_v26 = vld [vmem:[%s8794_s6 + $0x132] sm:$0xff] }
  0xf7   : > { %v1998_v34 = vadd.f32 %v8991_v53, %v1516_v32  ;;  %v9081_v53 = vpop.f32.mrf.mxu2  ;;  %v9092_v60 = vpop.f32.mrf.mxu1  ;;  %v670_v32 = vld [vmem:[%s8794_s6 + $0x131] sm:$0xff] }
  0xf8   : > { %8215 = vmatmul.msk.f32.gmra.mxu2 %vm288_vm1, %v1149_v57  ;;  %8167 = vmatmul.msk.f32.gmra.mxu1 %vm288_vm1, %v667_v63  ;;  %v1637_v63 = vld [vmem:[%s8794_s6 + $0x15c] sm:$0xff] }
  0xf9   : > { %2044 = vst [vmem:[#allocation2 + $0x60] sm:$0xff] %v1998_v34 }
  0xfa   : > { %v487_v36 = vpop.f32.mrf.mxu0  ;;  %v9120_v13 = vpop.f32.mrf.mxu3 }
  0xfb   : > { %v1035_v40 = vadd.f32 %v8996_v58, %v487_v36 }
  0xfc   : > { %8263 = vmatmul.msk.f32.gmra.mxu3 %vm288_vm1, %v1631_v61  ;;  %v278_v61 = vld [vmem:[%s8794_s6 + $0x128] sm:$0xff] }
  0xfd   : > { %8113 = vmatmul.msk.f32.gmra.mxu0 %vm288_vm1, %v270_v37  ;;  %v1517_v43 = vadd.f32 %v9001_v62, %v1035_v40  ;;  %v1153_v37 = vld [vmem:[%s8794_s6 + $0x13a] sm:$0xff] }
  0xff   : > { %v1999_v45 = vadd.f32 %v9005_v0, %v1517_v43  ;;  %v9098_v0 = vpop.f32.mrf.mxu2  ;;  %v9109_v7 = vpop.f32.mrf.mxu1  ;;  %v671_v43 = vld [vmem:[%s8794_s6 + $0x139] sm:$0xff] }
 0x100   : > { %8216 = vmatmul.msk.f32.gmra.mxu2 %vm288_vm1, %v1150_v4  ;;  %8168 = vmatmul.msk.f32.gmra.mxu1 %vm288_vm1, %v668_v10  ;;  %v1638_v10 = vld [vmem:[%s8794_s6 + $0x164] sm:$0xff] }
 0x101   : > { %2045 = vst [vmem:[#allocation2 + $0x68] sm:$0xff] %v1999_v45 }
 0x102   : > { %v490_v47 = vpop.f32.mrf.mxu0  ;;  %v9137_v24 = vpop.f32.mrf.mxu3 }
 0x103   : > { %v1036_v51 = vadd.f32 %v9010_v5, %v490_v47 }
 0x104   : > { %8264 = vmatmul.msk.f32.gmra.mxu3 %vm288_vm1, %v1632_v8  ;;  %v279_v8 = vld [vmem:[%s8794_s6 + $0x130] sm:$0xff] }
 0x105   : > { %8114 = vmatmul.msk.f32.gmra.mxu0 %vm288_vm1, %v271_v48  ;;  %v1518_v54 = vadd.f32 %v9015_v9, %v1036_v51  ;;  %v1154_v48 = vld [vmem:[%s8794_s6 + $0x142] sm:$0xff] }
 0x107   : > { %v2000_v56 = vadd.f32 %v9019_v11, %v1518_v54  ;;  %v9115_v11 = vpop.f32.mrf.mxu2  ;;  %v9126_v18 = vpop.f32.mrf.mxu1  ;;  %v672_v54 = vld [vmem:[%s8794_s6 + $0x141] sm:$0xff] }
 0x108   : > { %8217 = vmatmul.msk.f32.gmra.mxu2 %vm288_vm1, %v1151_v15  ;;  %8169 = vmatmul.msk.f32.gmra.mxu1 %vm288_vm1, %v669_v21  ;;  %v1639_v21 = vld [vmem:[%s8794_s6 + $0x16c] sm:$0xff] }
 0x109   : > { %2046 = vst [vmem:[#allocation2 + $0x70] sm:$0xff] %v2000_v56 }
 0x10a   : > { %v493_v58 = vpop.f32.mrf.mxu0  ;;  %v9154_v35 = vpop.f32.mrf.mxu3 }
 0x10b   : > { %v1037_v62 = vadd.f32 %v9024_v16, %v493_v58 }
 0x10c   : > { %8265 = vmatmul.msk.f32.gmra.mxu3 %vm288_vm1, %v1633_v19  ;;  %v280_v19 = vld [vmem:[%s8794_s6 + $0x138] sm:$0xff] }
 0x10d   : > { %8115 = vmatmul.msk.f32.gmra.mxu0 %vm288_vm1, %v272_v59  ;;  %v1519_v1 = vadd.f32 %v9030_v20, %v1037_v62  ;;  %v1155_v59 = vld [vmem:[%s8794_s6 + $0x14a] sm:$0xff] }
 0x10f   : > { %v2001_v3 = vadd.f32 %v9035_v22, %v1519_v1  ;;  %v9132_v22 = vpop.f32.mrf.mxu2  ;;  %v9143_v29 = vpop.f32.mrf.mxu1  ;;  %v673_v1 = vld [vmem:[%s8794_s6 + $0x149] sm:$0xff] }
 0x110   : > { %8218 = vmatmul.msk.f32.gmra.mxu2 %vm288_vm1, %v1152_v26  ;;  %8170 = vmatmul.msk.f32.gmra.mxu1 %vm288_vm1, %v670_v32  ;;  %v1640_v32 = vld [vmem:[%s8794_s6 + $0x174] sm:$0xff] }
 0x111   : > { %2047 = vst [vmem:[#allocation2 + $0x78] sm:$0xff] %v2001_v3 }
 0x112   : > { %v496_v5 = vpop.f32.mrf.mxu0  ;;  %v9171_v46 = vpop.f32.mrf.mxu3 }
 0x113   : > { %v1038_v9 = vadd.f32 %v9041_v27, %v496_v5 }
 0x114   : > { %8266 = vmatmul.msk.f32.gmra.mxu3 %vm288_vm1, %v1634_v30  ;;  %v281_v30 = vld [vmem:[%s8794_s6 + $0x140] sm:$0xff] }
 0x115   : > { %8116 = vmatmul.msk.f32.gmra.mxu0 %vm288_vm1, %v273_v6  ;;  %v1520_v12 = vadd.f32 %v9047_v31, %v1038_v9  ;;  %v1156_v6 = vld [vmem:[%s8794_s6 + $0x152] sm:$0xff] }
 0x117   : > { %v2002_v14 = vadd.f32 %v9052_v33, %v1520_v12  ;;  %v9149_v33 = vpop.f32.mrf.mxu2  ;;  %v9160_v40 = vpop.f32.mrf.mxu1  ;;  %v674_v12 = vld [vmem:[%s8794_s6 + $0x151] sm:$0xff] }
 0x118   : > { %8219 = vmatmul.msk.f32.gmra.mxu2 %vm288_vm1, %v1153_v37  ;;  %8171 = vmatmul.msk.f32.gmra.mxu1 %vm288_vm1, %v671_v43  ;;  %v1641_v43 = vld [vmem:[%s8794_s6 + $0x17c] sm:$0xff] }
 0x119   : > { %2048 = vst [vmem:[#allocation2 + $0x80] sm:$0xff] %v2002_v14 }
 0x11a   : > { %v499_v16 = vpop.f32.mrf.mxu0  ;;  %v9188_v57 = vpop.f32.mrf.mxu3 }
 0x11b   : > { %v1039_v20 = vadd.f32 %v9058_v38, %v499_v16 }
 0x11c   : > { %8267 = vmatmul.msk.f32.gmra.mxu3 %vm288_vm1, %v1635_v41  ;;  %v282_v41 = vld [vmem:[%s8794_s6 + $0x148] sm:$0xff] }
 0x11d   : > { %8117 = vmatmul.msk.f32.gmra.mxu0 %vm288_vm1, %v274_v17  ;;  %v1521_v23 = vadd.f32 %v9064_v42, %v1039_v20  ;;  %v1157_v17 = vld [vmem:[%s8794_s6 + $0x15a] sm:$0xff] }
 0x11f   : > { %v2003_v25 = vadd.f32 %v9069_v44, %v1521_v23  ;;  %v9166_v44 = vpop.f32.mrf.mxu2  ;;  %v9177_v51 = vpop.f32.mrf.mxu1  ;;  %v675_v23 = vld [vmem:[%s8794_s6 + $0x159] sm:$0xff] }
 0x120   : > { %8220 = vmatmul.msk.f32.gmra.mxu2 %vm288_vm1, %v1154_v48  ;;  %8172 = vmatmul.msk.f32.gmra.mxu1 %vm288_vm1, %v672_v54 }
 0x121   : > { %2049 = vst [vmem:[#allocation2 + $0x88] sm:$0xff] %v2003_v25 }
 0x122   : > { %v502_v27 = vpop.f32.mrf.mxu0  ;;  %v9205_v4 = vpop.f32.mrf.mxu3 }
 0x123   : > { %v1040_v31 = vadd.f32 %v9075_v49, %v502_v27 }
 0x124   : > { %8268 = vmatmul.msk.f32.gmra.mxu3 %vm288_vm1, %v1636_v52 }
 0x125   : > { %8118 = vmatmul.msk.f32.gmra.mxu0 %vm288_vm1, %v275_v28  ;;  %v1522_v34 = vadd.f32 %v9081_v53, %v1040_v31  ;;  %v1158_v28 = vld [vmem:[%s8794_s6 + $0x162] sm:$0xff] }
 0x127   : > { %v2004_v36 = vadd.f32 %v9086_v55, %v1522_v34  ;;  %v9183_v55 = vpop.f32.mrf.mxu2  ;;  %v9194_v62 = vpop.f32.mrf.mxu1  ;;  %v676_v34 = vld [vmem:[%s8794_s6 + $0x161] sm:$0xff] }
 0x128   : > { %8221 = vmatmul.msk.f32.gmra.mxu2 %vm288_vm1, %v1155_v59  ;;  %8173 = vmatmul.msk.f32.gmra.mxu1 %vm288_vm1, %v673_v1  ;;  %v284_v59 = vld [vmem:[%s8794_s6 + $0x158] sm:$0xff] }
 0x129   : > { %2050 = vst [vmem:[#allocation2 + $0x90] sm:$0xff] %v2004_v36 }
 0x12a   : > { %v505_v38 = vpop.f32.mrf.mxu0  ;;  %v1880_v15 = vpop.f32.mrf.mxu3 }
 0x12b   : > { %v1041_v42 = vadd.f32 %v9092_v60, %v505_v38 }
 0x12c   : > { %8269 = vmatmul.msk.f32.gmra.mxu3 %vm288_vm1, %v1637_v63 }
 0x12d   : > { %8119 = vmatmul.msk.f32.gmra.mxu0 %vm288_vm1, %v276_v39  ;;  %v1523_v45 = vadd.f32 %v9098_v0, %v1041_v42  ;;  %v1159_v39 = vld [vmem:[%s8794_s6 + $0x16a] sm:$0xff] }
 0x12f   : > { %v2005_v47 = vadd.f32 %v9103_v2, %v1523_v45  ;;  %v9200_v2 = vpop.f32.mrf.mxu2  ;;  %v9211_v9 = vpop.f32.mrf.mxu1  ;;  %v677_v45 = vld [vmem:[%s8794_s6 + $0x169] sm:$0xff] }
 0x130   : > { %8222 = vmatmul.msk.f32.gmra.mxu2 %vm288_vm1, %v1156_v6  ;;  %8174 = vmatmul.msk.f32.gmra.mxu1 %vm288_vm1, %v674_v12 }
 0x131   : > { %2051 = vst [vmem:[#allocation2 + $0x98] sm:$0xff] %v2005_v47 }
 0x132   : > { %v508_v49 = vpop.f32.mrf.mxu0  ;;  %v1883_v26 = vpop.f32.mrf.mxu3 }
 0x133   : > { %v1042_v53 = vadd.f32 %v9109_v7, %v508_v49 }
 0x134   : > { %8270 = vmatmul.msk.f32.gmra.mxu3 %vm288_vm1, %v1638_v10  ;;  %v286_v10 = vld [vmem:[%s8794_s6 + $0x168] sm:$0xff] }
 0x135   : > { %8120 = vmatmul.msk.f32.gmra.mxu0 %vm288_vm1, %v277_v50  ;;  %v1524_v56 = vadd.f32 %v9115_v11, %v1042_v53 }
 0x137   : > { %v2006_v58 = vadd.f32 %v9120_v13, %v1524_v56  ;;  %v1398_v13 = vpop.f32.mrf.mxu2  ;;  %v919_v20 = vpop.f32.mrf.mxu1 }
 0x138   : > { %8223 = vmatmul.msk.f32.gmra.mxu2 %vm288_vm1, %v1157_v17  ;;  %8175 = vmatmul.msk.f32.gmra.mxu1 %vm288_vm1, %v675_v23  ;;  %v632_v17 = vld [vmem:[%s8794_s6 + $0x1] sm:$0xff] }
 0x139   : > { %2052 = vst [vmem:[#allocation2 + $0xa0] sm:$0xff] %v2006_v58 }
 0x13a   : > { %v511_v60 = vpop.f32.mrf.mxu0  ;;  %v1886_v37 = vpop.f32.mrf.mxu3 }
 0x13b   : > { %v1043_v0 = vadd.f32 %v9126_v18, %v511_v60 }
 0x13c   : > { %8271 = vmatmul.msk.f32.gmra.mxu3 %vm288_vm1, %v1639_v21 }
 0x13d   : > { %8121 = vmatmul.msk.f32.gmra.mxu0 %vm288_vm1, %v278_v61  ;;  %v1525_v3 = vadd.f32 %v9132_v22, %v1043_v0 }
 0x13f   : > { %v2007_v5 = vadd.f32 %v9137_v24, %v1525_v3  ;;  %v1401_v24 = vpop.f32.mrf.mxu2  ;;  %v922_v31 = vpop.f32.mrf.mxu1  ;;  %v285_v3 = vld [vmem:[%s8794_s6 + $0x160] sm:$0xff] }
 0x140   : > { %8224 = vmatmul.msk.f32.gmra.mxu2 %vm288_vm1, %v1158_v28  ;;  %8176 = vmatmul.msk.f32.gmra.mxu1 %vm288_vm1, %v676_v34 }
 0x141   : > { %2053 = vst [vmem:[#allocation2 + $0xa8] sm:$0xff] %v2007_v5 }
 0x142   : > { %v514_v7 = vpop.f32.mrf.mxu0  ;;  %v1889_v48 = vpop.f32.mrf.mxu3 }
 0x143   : > { %v1044_v11 = vadd.f32 %v9143_v29, %v514_v7 }
 0x144   : > { %8272 = vmatmul.msk.f32.gmra.mxu3 %vm288_vm1, %v1640_v32 }
 0x145   : > { %8122 = vmatmul.msk.f32.gmra.mxu0 %vm288_vm1, %v279_v8  ;;  %v1526_v14 = vadd.f32 %v9149_v33, %v1044_v11 }
 0x147   : > { %v2008_v16 = vadd.f32 %v9154_v35, %v1526_v14  ;;  %v1404_v35 = vpop.f32.mrf.mxu2  ;;  %v925_v42 = vpop.f32.mrf.mxu1 }
 0x148   : > { %8225 = vmatmul.msk.f32.gmra.mxu2 %vm288_vm1, %v1159_v39  ;;  %8177 = vmatmul.msk.f32.gmra.mxu1 %vm288_vm1, %v677_v45 }
 0x149   : > { %2054 = vst [vmem:[#allocation2 + $0xb0] sm:$0xff] %v2008_v16 }
 0x14a   : > { %v517_v18 = vpop.f32.mrf.mxu0  ;;  %v1892_v56 = vpop.f32.mrf.mxu3 }
 0x14b   : > { %v1045_v22 = vadd.f32 %v9160_v40, %v517_v18 }
 0x14c   : > { %8273 = vmatmul.msk.f32.gmra.mxu3 %vm288_vm1, %v1641_v43  ;;  %v635_v43 = vld [vmem:[%s8794_s6 + $0x19] sm:$0xff] }
 0x14d   : > { %8123 = vmatmul.msk.f32.gmra.mxu0 %vm288_vm1, %v280_v19  ;;  %v1527_v25 = vadd.f32 %v9166_v44, %v1045_v22  ;;  %v8709_v22 = vld [vmem:[%s11064_s1 + $0xc] sm:$0xf] }
 0x14f   : > { %v2009_v27 = vadd.f32 %v9171_v46, %v1527_v25  ;;  %v1407_v46 = vpop.f32.mrf.mxu2  ;;  %v928_v52 = vpop.f32.mrf.mxu1  ;;  %v633_v25 = vld [vmem:[%s8794_s6 + $0x9] sm:$0xff] }
 0x151   : > { %2055 = vst [vmem:[#allocation2 + $0xb8] sm:$0xff] %v2009_v27  ;;  %v8322_v27 = vld [vmem:[%s11064_s1 + $0x14] sm:$0xf] }
 0x152   : > { %v520_v29 = vpop.f32.mrf.mxu0  ;;  %v1895_v1 = vpop.f32.mrf.mxu3  ;;  %8323 = vmatpush.msk.msrb.mxu1 %vm427_vm0, %v8322_v27 }
 0x153   : > { %v1046_v33 = vadd.f32 %v9177_v51, %v520_v29  ;;  %v283_v51 = vld [vmem:[%s8794_s6 + $0x150] sm:$0xff] }
 0x155   : > { %8124 = vmatmul.msk.f32.gmra.mxu0 %vm288_vm1, %v281_v30  ;;  %v1528_v36 = vadd.f32 %v9183_v55, %v1046_v33 }
 0x157   : > { %v2010_v38 = vadd.f32 %v9188_v57, %v1528_v36  ;;  %v1410_v54 = vpop.f32.mrf.mxu2  ;;  %v931_v61 = vpop.f32.mrf.mxu1 }
 0x159   : > { %2056 = vst [vmem:[#allocation2 + $0xc0] sm:$0xff] %v2010_v38 }
 0x15a   : > { %v523_v40 = vpop.f32.mrf.mxu0  ;;  %v1898_v11 = vpop.f32.mrf.mxu3 }
 0x15b   : > { %v1047_v44 = vadd.f32 %v9194_v62, %v523_v40 }
 0x15d   : > { %8125 = vmatmul.msk.f32.gmra.mxu0 %vm288_vm1, %v282_v41  ;;  %v1529_v47 = vadd.f32 %v9200_v2, %v1047_v44 }
 0x15f   : > { %v2011_v49 = vadd.f32 %v9205_v4, %v1529_v47  ;;  %v1413_v63 = vpop.f32.mrf.mxu2  ;;  %v934_v6 = vpop.f32.mrf.mxu1  ;;  %v637_v47 = vld [vmem:[%s8794_s6 + $0x29] sm:$0xff] }
 0x161   : > { %2057 = vst [vmem:[#allocation2 + $0xc8] sm:$0xff] %v2011_v49 }
 0x162   : > { %v526_v50 = vpop.f32.mrf.mxu0 }
 0x163   : > { %v1048_v53 = vadd.f32 %v9211_v9, %v526_v50 }
 0x165   : > { %8126 = vmatmul.msk.f32.gmra.mxu0 %vm288_vm1, %v283_v51  ;;  %v1530_v55 = vadd.f32 %v1398_v13, %v1048_v53 }
 0x167   : > { %v2012_v57 = vadd.f32 %v1880_v15, %v1530_v55  ;;  %v1416_v8 = vpop.f32.mrf.mxu2  ;;  %v937_v15 = vpop.f32.mrf.mxu1 }
 0x169   : > { %2058 = vst [vmem:[#allocation2 + $0xd0] sm:$0xff] %v2012_v57 }
 0x16a   : > { %v529_v58 = vpop.f32.mrf.mxu0 }
 0x16b   : > { %v1049_v60 = vadd.f32 %v919_v20, %v529_v58 }
 0x16d   : > { %8127 = vmatmul.msk.f32.gmra.mxu0 %vm288_vm1, %v284_v59  ;;  %v1531_v62 = vadd.f32 %v1401_v24, %v1049_v60 }
 0x16f   : > { %v2013_v0 = vadd.f32 %v1883_v26, %v1531_v62  ;;  %v1419_v18 = vpop.f32.mrf.mxu2  ;;  %v1901_v20 = vpop.f32.mrf.mxu3 }
 0x170   : > { %v940_v26 = vpop.f32.mrf.mxu1 }
 0x171   : > { %2059 = vst [vmem:[#allocation2 + $0xd8] sm:$0xff] %v2013_v0  ;;  %v639_v0 = vld [vmem:[%s8794_s6 + $0x39] sm:$0xff] }
 0x172   : > { %v532_v2 = vpop.f32.mrf.mxu0 }
 0x173   : > { %v1050_v4 = vadd.f32 %v922_v31, %v532_v2  ;;  %v8370_v31 = vld [vmem:[%s11064_s1 + $0x18] sm:$0xf] }
 0x174   : > { %8371 = vmatpush.msk.msrb.mxu2 %vm427_vm0, %v8370_v31  ;;  %v1116_v31 = vld [vmem:[%s8794_s6 + $0x12] sm:$0xff] }
 0x175   : > { %8128 = vmatmul.msk.f32.gmra.mxu0 %vm288_vm1, %v285_v3  ;;  %v1532_v5 = vadd.f32 %v1404_v35, %v1050_v4  ;;  %v634_v35 = vld [vmem:[%s8794_s6 + $0x11] sm:$0xff] }
 0x177   : > { %v2014_v7 = vadd.f32 %v1886_v37, %v1532_v5  ;;  %v1422_v29 = vpop.f32.mrf.mxu2  ;;  %v1904_v32 = vpop.f32.mrf.mxu3 }
 0x178   : > { %v943_v37 = vpop.f32.mrf.mxu1 }
 0x179   : > { %2060 = vst [vmem:[#allocation2 + $0xe0] sm:$0xff] %v2014_v7 }
 0x17a   : > { %v535_v9 = vpop.f32.mrf.mxu0 }
 0x17b   : > { %v1051_v12 = vadd.f32 %v925_v42, %v535_v9 }
 0x17d   : > { %8129 = vmatmul.msk.f32.gmra.mxu0 %vm288_vm1, %v286_v10  ;;  %v1533_v13 = vadd.f32 %v1407_v46, %v1051_v12  ;;  %v8418_v46 = vld [vmem:[%s11064_s1 + $0x1c] sm:$0xf] }
 0x17e   : > { %8419 = vmatpush.msk.msrb.mxu3 %vm427_vm0, %v8418_v46  ;;  %v1118_v46 = vld [vmem:[%s8794_s6 + $0x22] sm:$0xff] }
 0x17f   : > { %v2015_v14 = vadd.f32 %v1889_v48, %v1533_v13  ;;  %v1425_v39 = vpop.f32.mrf.mxu2  ;;  %v1907_v41 = vpop.f32.mrf.mxu3  ;;  %8420 = vmatmul.msk.f32.vlgmr.msrb.gmra.mxu3 %vm288_vm1, %v637_v47 }
 0x180   : > { %v946_v48 = vpop.f32.mrf.mxu1 }
 0x181   : > { %2061 = vst [vmem:[#allocation2 + $0xe8] sm:$0xff] %v2015_v14 }
 0x182   : > { %v538_v16 = vpop.f32.mrf.mxu0 }
 0x183   : > { %v1052_v19 = vadd.f32 %v928_v52, %v538_v16  ;;  %v636_v52 = vld [vmem:[%s8794_s6 + $0x21] sm:$0xff] }
 0x185   : > { %8132 = vmatmul.msk.f32.vlgmr.msrb.gmra.mxu0 %vm288_vm1, %v632_v17  ;;  %v1534_v21 = vadd.f32 %v1410_v54, %v1052_v19  ;;  %v1114_v17 = vld [vmem:[%s8794_s6 + $0x2] sm:$0xff] }
 0x186   : > { %8227 = vmatpush.msk.msrb.mxu0 %vm427_vm0, %v8709_v22 }
 0x187   : > { %v2016_v23 = vadd.f32 %v1892_v56, %v1534_v21  ;;  %v1428_v50 = vpop.f32.mrf.mxu2  ;;  %v1910_v53 = vpop.f32.mrf.mxu3  ;;  %v638_v56 = vld [vmem:[%s8794_s6 + $0x31] sm:$0xff] }
 0x188   : > { %8421 = vmatmul.msk.f32.gmra.mxu3 %vm288_vm1, %v638_v56  ;;  %v949_v58 = vpop.f32.mrf.mxu1 }
 0x189   : > { %2062 = vst [vmem:[#allocation2 + $0xf0] sm:$0xff] %v2016_v23 }
 0x18a   : > { %v541_v24 = vpop.f32.mrf.mxu0 }
 0x18b   : > { %v1053_v28 = vadd.f32 %v931_v61, %v541_v24  ;;  %v1115_v24 = vld [vmem:[%s8794_s6 + $0xa] sm:$0xff] }
 0x18d   : > { %8133 = vmatmul.msk.f32.gmra.mxu0 %vm288_vm1, %v633_v25  ;;  %v1535_v30 = vadd.f32 %v1413_v63, %v1053_v28 }
 0x18f   : > { %v2017_v33 = vadd.f32 %v1895_v1, %v1535_v30  ;;  %v1431_v60 = vpop.f32.mrf.mxu2  ;;  %v1913_v62 = vpop.f32.mrf.mxu3 }
 0x190   : > { %8422 = vmatmul.msk.f32.gmra.mxu3 %vm288_vm1, %v639_v0  ;;  %v952_v3 = vpop.f32.mrf.mxu1 }
 0x191   : > { %2063 = vst [vmem:[#allocation2 + $0xf8] sm:$0xff] %v2017_v33 }
 0x192   : > { %v544_v34 = vpop.f32.mrf.mxu0 }
 0x193   : > { %v1054_v36 = vadd.f32 %v934_v6, %v544_v34 }
 0x195   : > { %8134 = vmatmul.msk.f32.gmra.mxu0 %vm288_vm1, %v634_v35  ;;  %v1536_v38 = vadd.f32 %v1416_v8, %v1054_v36 }
 0x197   : > { %v2018_v40 = vadd.f32 %v1898_v11, %v1536_v38  ;;  %v1434_v5 = vpop.f32.mrf.mxu2  ;;  %v1916_v7 = vpop.f32.mrf.mxu3  ;;  %v1117_v38 = vld [vmem:[%s8794_s6 + $0x1a] sm:$0xff] }
 0x198   : > { %v955_v11 = vpop.f32.mrf.mxu1 }
 0x199   : > { %2064 = vst [vmem:[#allocation2 + $0x100] sm:$0xff] %v2018_v40 }
 0x19a   : > { %v547_v42 = vpop.f32.mrf.mxu0 }
 0x19b   : > { %v1055_v44 = vadd.f32 %v937_v15, %v547_v42 }
 0x19d   : > { %8135 = vmatmul.msk.f32.gmra.mxu0 %vm288_vm1, %v635_v43  ;;  %v1537_v45 = vadd.f32 %v1419_v18, %v1055_v44 }
 0x19f   : > { %v2019_v49 = vadd.f32 %v1901_v20, %v1537_v45  ;;  %v1437_v13 = vpop.f32.mrf.mxu2  ;;  %v1919_v15 = vpop.f32.mrf.mxu3 }
 0x1a0   : > { %v958_v20 = vpop.f32.mrf.mxu1 }
 0x1a1   : > { %2065 = vst [vmem:[#allocation2 + $0x108] sm:$0xff] %v2019_v49 }
 0x1a2   : > { %v550_v51 = vpop.f32.mrf.mxu0 }
 0x1a3   : > { %v1056_v54 = vadd.f32 %v940_v26, %v550_v51 }
 0x1a5   : > { %8136 = vmatmul.msk.f32.gmra.mxu0 %vm288_vm1, %v636_v52  ;;  %v1538_v55 = vadd.f32 %v1422_v29, %v1056_v54 }
 0x1a7   : > { %v2020_v57 = vadd.f32 %v1904_v32, %v1538_v55  ;;  %v1440_v22 = vpop.f32.mrf.mxu2  ;;  %v1922_v25 = vpop.f32.mrf.mxu3  ;;  %v1119_v55 = vld [vmem:[%s8794_s6 + $0x2a] sm:$0xff] }
 0x1a8   : > { %v961_v29 = vpop.f32.mrf.mxu1 }
 0x1a9   : > { %2066 = vst [vmem:[#allocation2 + $0x110] sm:$0xff] %v2020_v57 }
 0x1aa   : > { %v553_v59 = vpop.f32.mrf.mxu0 }
 0x1ab   : > { %v1057_v61 = vadd.f32 %v943_v37, %v553_v59 }
 0x1ad   : > { %8137 = vmatmul.msk.f32.gmra.mxu0 %vm288_vm1, %v637_v47  ;;  %v1539_v63 = vadd.f32 %v1425_v39, %v1057_v61 }
 0x1af   : > { %v2021_v1 = vadd.f32 %v1907_v41, %v1539_v63  ;;  %v1443_v32 = vpop.f32.mrf.mxu2  ;;  %v1925_v34 = vpop.f32.mrf.mxu3 }
 0x1b0   : > { %v964_v39 = vpop.f32.mrf.mxu1 }
 0x1b1   : > { %2067 = vst [vmem:[#allocation2 + $0x118] sm:$0xff] %v2021_v1 }
 0x1b2   : > { %v556_v2 = vpop.f32.mrf.mxu0 }
 0x1b3   : > { %v1058_v4 = vadd.f32 %v946_v48, %v556_v2 }
 0x1b5   : > { %8138 = vmatmul.msk.f32.gmra.mxu0 %vm288_vm1, %v638_v56  ;;  %v1540_v6 = vadd.f32 %v1428_v50, %v1058_v4  ;;  %v8274_v50 = vld [vmem:[%s11064_s1 + $0x10] sm:$0xf] }
 0x1b7   : > { %v2022_v8 = vadd.f32 %v1910_v53, %v1540_v6  ;;  %v1446_v41 = vpop.f32.mrf.mxu2  ;;  %v1928_v43 = vpop.f32.mrf.mxu3 }
 0x1b8   : > { %v967_v48 = vpop.f32.mrf.mxu1 }
 0x1b9   : > { %2068 = vst [vmem:[#allocation2 + $0x120] sm:$0xff] %v2022_v8 }
 0x1ba   : > { %v559_v9 = vpop.f32.mrf.mxu0 }
 0x1bb   : > { %v1059_v10 = vadd.f32 %v949_v58, %v559_v9 }
 0x1bd   : > { %8139 = vmatmul.msk.f32.gmra.mxu0 %vm288_vm1, %v639_v0  ;;  %v1541_v12 = vadd.f32 %v1431_v60, %v1059_v10 }
 0x1bf   : > { %v2023_v14 = vadd.f32 %v1913_v62, %v1541_v12  ;;  %v1449_v51 = vpop.f32.mrf.mxu2  ;;  %v1931_v53 = vpop.f32.mrf.mxu3  ;;  %v1120_v62 = vld [vmem:[%s8794_s6 + $0x32] sm:$0xff] }
 0x1c0   : > { %v970_v58 = vpop.f32.mrf.mxu1  ;;  %v1596_v12 = vld [vmem:[%s8794_s6 + $0x14] sm:$0xff] }
 0x1c1   : > { %2069 = vst [vmem:[#allocation2 + $0x128] sm:$0xff] %v2023_v14  ;;  %v1597_v14 = vld [vmem:[%s8794_s6 + $0x1c] sm:$0xff] }
 0x1c2   : > { %v562_v16 = vpop.f32.mrf.mxu0 }
 0x1c3   : > { %v1060_v18 = vadd.f32 %v952_v3, %v562_v16  ;;  %v1598_v16 = vld [vmem:[%s8794_s6 + $0x24] sm:$0xff] }
 0x1c5   : > { %8180 = vmatmul.msk.f32.vlgmr.msra.gmra.mxu0 %vm288_vm1, %v1114_v17  ;;  %v1542_v19 = vadd.f32 %v1434_v5, %v1060_v18  ;;  %v1121_v5 = vld [vmem:[%s8794_s6 + $0x3a] sm:$0xff]  ;;  %v1599_v18 = vld [vmem:[%s8794_s6 + $0x2c] sm:$0xff] }
 0x1c6   : > { %8275 = vmatpush.msk.msra.mxu0 %vm427_vm0, %v8274_v50  ;;  %v3530_v50 = vld [vmem:[%s8794_s6 + $0x59] sm:$0xff] }
 0x1c7   : > { %v2024_v21 = vadd.f32 %v1916_v7, %v1542_v19  ;;  %v1452_v60 = vpop.f32.mrf.mxu2  ;;  %v1934_v63 = vpop.f32.mrf.mxu3 }
 0x1c8   : > { %v973_v3 = vpop.f32.mrf.mxu1 }
 0x1c9   : > { %2070 = vst [vmem:[#allocation2 + $0x130] sm:$0xff] %v2024_v21  ;;  %v3042_v21 = vld [vmem:[%s8794_s6 + $0x28] sm:$0xff] }
 0x1ca   : > { %v565_v23 = vpop.f32.mrf.mxu0  ;;  %8372 = vmatmul.msk.f32.vlgmr.msrb.gmra.mxu2 %vm288_vm1, %v3042_v21  ;;  %v3536_v21 = vld [vmem:[%s8794_s6 + $0x89] sm:$0xff] }
 0x1cb   : > { %v1061_v26 = vadd.f32 %v955_v11, %v565_v23  ;;  %v2560_v23 = vld [vmem:[%s8794_s6 + $0x16] sm:$0xff] }
 0x1cc   : > { %8324 = vmatmul.msk.f32.vlgmr.msrb.gmra.mxu1 %vm288_vm1, %v2560_v23 }
 0x1cd   : > { %8181 = vmatmul.msk.f32.gmra.mxu0 %vm288_vm1, %v1115_v24  ;;  %v1543_v27 = vadd.f32 %v1437_v13, %v1061_v26  ;;  %v3043_v26 = vld [vmem:[%s8794_s6 + $0x30] sm:$0xff] }
 0x1cf   : > { %v2025_v28 = vadd.f32 %v1919_v15, %v1543_v27  ;;  %v1455_v6 = vpop.f32.mrf.mxu2  ;;  %v1937_v8 = vpop.f32.mrf.mxu3  ;;  %v2561_v27 = vld [vmem:[%s8794_s6 + $0x1e] sm:$0xff] }
 0x1d1   : > { %2071 = vst [vmem:[#allocation2 + $0x138] sm:$0xff] %v2025_v28 }
 0x1d2   : > { %v568_v30 = vpop.f32.mrf.mxu0  ;;  %8373 = vmatmul.msk.f32.gmra.mxu2 %vm288_vm1, %v3043_v26  ;;  %v3055_v26 = vld [vmem:[%s8794_s6 + $0x90] sm:$0xff] }
 0x1d3   : > { %v1062_v33 = vadd.f32 %v958_v20, %v568_v30  ;;  %v1600_v20 = vld [vmem:[%s8794_s6 + $0x34] sm:$0xff] }
 0x1d4   : > { %8325 = vmatmul.msk.f32.gmra.mxu1 %vm288_vm1, %v2561_v27  ;;  %v3044_v30 = vld [vmem:[%s8794_s6 + $0x38] sm:$0xff] }
 0x1d5   : > { %8182 = vmatmul.msk.f32.gmra.mxu0 %vm288_vm1, %v1116_v31  ;;  %v1544_v35 = vadd.f32 %v1440_v22, %v1062_v33  ;;  %v8466_v22 = vld [vmem:[%s11064_s1 + $0x20] sm:$0xf]  ;;  %v2562_v31 = vld [vmem:[%s8794_s6 + $0x26] sm:$0xff]  ;;  %v3537_v27 = vld [vmem:[%s8794_s6 + $0x91] sm:$0xff] }
 0x1d6   : > { %v1603_v33 = vld [vmem:[%s8794_s6 + $0x4c] sm:$0xff] }
 0x1d7   : > { %v2026_v36 = vadd.f32 %v1922_v25, %v1544_v35  ;;  %v1601_v25 = vld [vmem:[%s8794_s6 + $0x3c] sm:$0xff] }
 0x1d8   : > { %v3527_v35 = vld [vmem:[%s8794_s6 + $0x41] sm:$0xff] }
 0x1d9   : > { %2072 = vst [vmem:[#allocation2 + $0x140] sm:$0xff] %v2026_v36  ;;  %8423 = vmatmul.msk.f32.gmra.mxu3 %vm288_vm1, %v3527_v35  ;;  %v2563_v36 = vld [vmem:[%s8794_s6 + $0x2e] sm:$0xff]  ;;  %v2574_v35 = vld [vmem:[%s8794_s6 + $0x86] sm:$0xff] }
 0x1da   : > { %v571_v37 = vpop.f32.mrf.mxu0  ;;  %8374 = vmatmul.msk.f32.gmra.mxu2 %vm288_vm1, %v3044_v30 }
 0x1db   : > { %v1063_v40 = vadd.f32 %v961_v29, %v571_v37  ;;  %v1602_v29 = vld [vmem:[%s8794_s6 + $0x44] sm:$0xff] }
 0x1dc   : > { %8326 = vmatmul.msk.f32.gmra.mxu1 %vm288_vm1, %v2562_v31  ;;  %v2088_v31 = vld [vmem:[%s8794_s6 + $0x65] sm:$0xff] }
 0x1dd   : > { %8183 = vmatmul.msk.f32.gmra.mxu0 %vm288_vm1, %v1117_v38  ;;  %v1545_v42 = vadd.f32 %v1443_v32, %v1063_v40  ;;  %v2078_v38 = vld [vmem:[%s8794_s6 + $0x15] sm:$0xff]  ;;  %v3528_v40 = vld [vmem:[%s8794_s6 + $0x49] sm:$0xff] }
 0x1df   : > { %v2027_v44 = vadd.f32 %v1925_v34, %v1545_v42  ;;  %v3045_v34 = vld [vmem:[%s8794_s6 + $0x40] sm:$0xff] }
 0x1e1   : > { %2073 = vst [vmem:[#allocation2 + $0x148] sm:$0xff] %v2027_v44  ;;  %8424 = vmatmul.msk.f32.gmra.mxu3 %vm288_vm1, %v3528_v40  ;;  %v3047_v44 = vld [vmem:[%s8794_s6 + $0x50] sm:$0xff]  ;;  %v3539_v40 = vld [vmem:[%s8794_s6 + $0xa1] sm:$0xff] }
 0x1e2   : > { %v574_v45 = vpop.f32.mrf.mxu0  ;;  %8375 = vmatmul.msk.f32.gmra.mxu2 %vm288_vm1, %v3045_v34  ;;  %v3538_v34 = vld [vmem:[%s8794_s6 + $0x99] sm:$0xff] }
 0x1e3   : > { %v1064_v47 = vadd.f32 %v964_v39, %v574_v45  ;;  %v3046_v39 = vld [vmem:[%s8794_s6 + $0x48] sm:$0xff]  ;;  %v3529_v45 = vld [vmem:[%s8794_s6 + $0x51] sm:$0xff] }
 0x1e4   : > { %8327 = vmatmul.msk.f32.gmra.mxu1 %vm288_vm1, %v2563_v36 }
 0x1e5   : > { %8184 = vmatmul.msk.f32.gmra.mxu0 %vm288_vm1, %v1118_v46  ;;  %v1546_v49 = vadd.f32 %v1446_v41, %v1064_v47  ;;  %v2564_v41 = vld [vmem:[%s8794_s6 + $0x36] sm:$0xff]  ;;  %v2565_v46 = vld [vmem:[%s8794_s6 + $0x3e] sm:$0xff] }
 0x1e7   : > { %v2028_v52 = vadd.f32 %v1928_v43, %v1546_v49  ;;  %v2079_v43 = vld [vmem:[%s8794_s6 + $0x1d] sm:$0xff] }
 0x1e8   : > { %v3048_v49 = vld [vmem:[%s8794_s6 + $0x58] sm:$0xff] }
 0x1e9   : > { %2074 = vst [vmem:[#allocation2 + $0x150] sm:$0xff] %v2028_v52  ;;  %8425 = vmatmul.msk.f32.gmra.mxu3 %vm288_vm1, %v3529_v45  ;;  %v3058_v45 = vld [vmem:[%s8794_s6 + $0xa8] sm:$0xff] }
 0x1ea   : > { %v577_v54 = vpop.f32.mrf.mxu0  ;;  %8376 = vmatmul.msk.f32.gmra.mxu2 %vm288_vm1, %v3046_v39  ;;  %v3057_v39 = vld [vmem:[%s8794_s6 + $0xa0] sm:$0xff] }
 0x1eb   : > { %v1065_v56 = vadd.f32 %v967_v48, %v577_v54  ;;  %v2080_v48 = vld [vmem:[%s8794_s6 + $0x25] sm:$0xff] }
 0x1ec   : > { %8328 = vmatmul.msk.f32.gmra.mxu1 %vm288_vm1, %v2564_v41  ;;  %v3049_v54 = vld [vmem:[%s8794_s6 + $0x60] sm:$0xff]  ;;  %v2575_v41 = vld [vmem:[%s8794_s6 + $0x8e] sm:$0xff] }
 0x1ed   : > { %8185 = vmatmul.msk.f32.gmra.mxu0 %vm288_vm1, %v1119_v55  ;;  %v1547_v57 = vadd.f32 %v1449_v51, %v1065_v56  ;;  %v2566_v51 = vld [vmem:[%s8794_s6 + $0x46] sm:$0xff]  ;;  %v2567_v56 = vld [vmem:[%s8794_s6 + $0x4e] sm:$0xff] }
 0x1ee   : > { %v3531_v55 = vld [vmem:[%s8794_s6 + $0x61] sm:$0xff] }
 0x1ef   : > { %v2029_v59 = vadd.f32 %v1931_v53, %v1547_v57  ;;  %v2081_v53 = vld [vmem:[%s8794_s6 + $0x2d] sm:$0xff] }
 0x1f1   : > { %2075 = vst [vmem:[#allocation2 + $0x158] sm:$0xff] %v2029_v59  ;;  %8426 = vmatmul.msk.f32.gmra.mxu3 %vm288_vm1, %v3530_v50  ;;  %v3050_v59 = vld [vmem:[%s8794_s6 + $0x68] sm:$0xff] }
 0x1f2   : > { %v580_v61 = vpop.f32.mrf.mxu0  ;;  %8377 = vmatmul.msk.f32.gmra.mxu2 %vm288_vm1, %v3047_v44  ;;  %v2090_v44 = vld [vmem:[%s8794_s6 + $0x75] sm:$0xff] }
 0x1f3   : > { %v1066_v0 = vadd.f32 %v970_v58, %v580_v61  ;;  %v2082_v58 = vld [vmem:[%s8794_s6 + $0x35] sm:$0xff] }
 0x1f4   : > { %8329 = vmatmul.msk.f32.gmra.mxu1 %vm288_vm1, %v2565_v46  ;;  %v2568_v61 = vld [vmem:[%s8794_s6 + $0x56] sm:$0xff] }
 0x1f5   : > { %8186 = vmatmul.msk.f32.gmra.mxu0 %vm288_vm1, %v1120_v62  ;;  %v1548_v1 = vadd.f32 %v1452_v60, %v1066_v0  ;;  %v3532_v60 = vld [vmem:[%s8794_s6 + $0x69] sm:$0xff] }
 0x1f6   : > { %v3051_v0 = vld [vmem:[%s8794_s6 + $0x70] sm:$0xff] }
 0x1f7   : > { %v2030_v2 = vadd.f32 %v1934_v63, %v1548_v1  ;;  %v2083_v63 = vld [vmem:[%s8794_s6 + $0x3d] sm:$0xff]  ;;  %v3533_v1 = vld [vmem:[%s8794_s6 + $0x71] sm:$0xff] }
 0x1f9   : > { %2076 = vst [vmem:[#allocation2 + $0x160] sm:$0xff] %v2030_v2  ;;  %8427 = vmatmul.msk.f32.gmra.mxu3 %vm288_vm1, %v3531_v55  ;;  %v2569_v2 = vld [vmem:[%s8794_s6 + $0x5e] sm:$0xff]  ;;  %v3059_v55 = vld [vmem:[%s8794_s6 + $0xb0] sm:$0xff] }
 0x1fa   : > { %v583_v4 = vpop.f32.mrf.mxu0  ;;  %8378 = vmatmul.msk.f32.gmra.mxu2 %vm288_vm1, %v3048_v49  ;;  %v2576_v49 = vld [vmem:[%s8794_s6 + $0x96] sm:$0xff] }
 0x1fb   : > { %v1067_v7 = vadd.f32 %v973_v3, %v583_v4  ;;  %v2084_v4 = vld [vmem:[%s8794_s6 + $0x45] sm:$0xff] }
 0x1fc   : > { %8330 = vmatmul.msk.f32.gmra.mxu1 %vm288_vm1, %v2566_v51 }
 0x1fd   : > { %8187 = vmatmul.msk.f32.gmra.mxu0 %vm288_vm1, %v1121_v5  ;;  %v1549_v9 = vadd.f32 %v1455_v6, %v1067_v7  ;;  %v3052_v5 = vld [vmem:[%s8794_s6 + $0x78] sm:$0xff]  ;;  %v2570_v7 = vld [vmem:[%s8794_s6 + $0x66] sm:$0xff] }
 0x1fe   : > { %v3534_v6 = vld [vmem:[%s8794_s6 + $0x79] sm:$0xff] }
 0x1ff   : > { %v2031_v10 = vadd.f32 %v1937_v8, %v1549_v9  ;;  %v2085_v9 = vld [vmem:[%s8794_s6 + $0x4d] sm:$0xff] }
 0x201   : > { %2077 = vst [vmem:[#allocation2 + $0x168] sm:$0xff] %v2031_v10  ;;  %8428 = vmatmul.msk.f32.gmra.mxu3 %vm288_vm1, %v3532_v60  ;;  %v3053_v10 = vld [vmem:[%s8794_s6 + $0x80] sm:$0xff] }
 0x202   : > { %v9318_v11 = vpop.f32.mrf.mxu0  ;;  %8379 = vmatmul.msk.f32.gmra.mxu2 %vm288_vm1, %v3049_v54  ;;  %v9502_v51 = vpop.f32.mrf.mxu3  ;;  %v2091_v54 = vld [vmem:[%s8794_s6 + $0x7d] sm:$0xff] }
 0x204   : > { %8331 = vmatmul.msk.f32.gmra.mxu1 %vm288_vm1, %v2567_v56 }
 0x205   : > { %8228 = vmatmul.msk.f32.vlgmr.msrb.gmra.mxu0 %vm288_vm1, %v1596_v12  ;;  %v3535_v12 = vld [vmem:[%s8794_s6 + $0x81] sm:$0xff] }
 0x206   : > { %8467 = vmatpush.msk.msrb.mxu0 %vm427_vm0, %v8466_v22  ;;  %v2572_v22 = vld [vmem:[%s8794_s6 + $0x76] sm:$0xff] }
 0x209   : > { %8429 = vmatmul.msk.f32.gmra.mxu3 %vm288_vm1, %v3533_v1  ;;  %v3060_v1 = vld [vmem:[%s8794_s6 + $0xb8] sm:$0xff] }
 0x20a   : > { %v9322_v13 = vpop.f32.mrf.mxu0  ;;  %8380 = vmatmul.msk.f32.gmra.mxu2 %vm288_vm1, %v3050_v59  ;;  %v2577_v59 = vld [vmem:[%s8794_s6 + $0x9e] sm:$0xff] }
 0x20c   : > { %8332 = vmatmul.msk.f32.gmra.mxu1 %vm288_vm1, %v2568_v61  ;;  %v9518_v61 = vpop.f32.mrf.mxu3 }
 0x20d   : > { %8229 = vmatmul.msk.f32.gmra.mxu0 %vm288_vm1, %v1597_v14  ;;  %v2571_v14 = vld [vmem:[%s8794_s6 + $0x6e] sm:$0xff] }
 0x211   : > { %8430 = vmatmul.msk.f32.gmra.mxu3 %vm288_vm1, %v3534_v6 }
 0x212   : > { %v9326_v15 = vpop.f32.mrf.mxu0  ;;  %8381 = vmatmul.msk.f32.gmra.mxu2 %vm288_vm1, %v3051_v0  ;;  %v2092_v0 = vld [vmem:[%s8794_s6 + $0x85] sm:$0xff] }
 0x214   : > { %8333 = vmatmul.msk.f32.gmra.mxu1 %vm288_vm1, %v2569_v2 }
 0x215   : > { %8230 = vmatmul.msk.f32.gmra.mxu0 %vm288_vm1, %v1598_v16 }
 0x219   : > { %8431 = vmatmul.msk.f32.gmra.mxu3 %vm288_vm1, %v3535_v12  ;;  %v3061_v12 = vld [vmem:[%s8794_s6 + $0xc0] sm:$0xff] }
 0x21a   : > { %v9330_v17 = vpop.f32.mrf.mxu0  ;;  %8382 = vmatmul.msk.f32.gmra.mxu2 %vm288_vm1, %v3052_v5  ;;  %v2578_v5 = vld [vmem:[%s8794_s6 + $0xa6] sm:$0xff] }
 0x21c   : > { %8334 = vmatmul.msk.f32.gmra.mxu1 %vm288_vm1, %v2570_v7  ;;  %v9534_v7 = vpop.f32.mrf.mxu3 }
 0x21d   : > { %8231 = vmatmul.msk.f32.gmra.mxu0 %vm288_vm1, %v1599_v18  ;;  %v2086_v18 = vld [vmem:[%s8794_s6 + $0x55] sm:$0xff] }
 0x221   : > { %8432 = vmatmul.msk.f32.gmra.mxu3 %vm288_vm1, %v3536_v21  ;;  %v3543_v21 = vld [vmem:[%s8794_s6 + $0xc1] sm:$0xff] }
 0x222   : > { %v9334_v19 = vpop.f32.mrf.mxu0  ;;  %8383 = vmatmul.msk.f32.gmra.mxu2 %vm288_vm1, %v3053_v10  ;;  %v2093_v10 = vld [vmem:[%s8794_s6 + $0x8d] sm:$0xff] }
 0x224   : > { %8335 = vmatmul.msk.f32.gmra.mxu1 %vm288_vm1, %v2571_v14  ;;  %v4774_v14 = vld [vmem:[%s11065_s2 + $0x78] sm:$0xff] }
 0x225   : > { %8232 = vmatmul.msk.f32.gmra.mxu0 %vm288_vm1, %v1600_v20  ;;  %v3054_v20 = vld [vmem:[%s8794_s6 + $0x88] sm:$0xff]  ;;  %4775 = vmatpush.msra.mxu1 %v4774_v14 }
 0x229   : > { %8433 = vmatmul.msk.f32.gmra.mxu3 %vm288_vm1, %v3537_v27 }
 0x22a   : > { %v9346_v24 = vpop.f32.mrf.mxu0  ;;  %8384 = vmatmul.msk.f32.gmra.mxu2 %vm288_vm1, %v3054_v20 }
 0x22c   : > { %8336 = vmatmul.msk.f32.gmra.mxu1 %vm288_vm1, %v2572_v22 }
 0x22d   : > { %8233 = vmatmul.msk.f32.gmra.mxu0 %vm288_vm1, %v1601_v25  ;;  %v2087_v25 = vld [vmem:[%s8794_s6 + $0x5d] sm:$0xff] }
 0x231   : > { %8434 = vmatmul.msk.f32.gmra.mxu3 %vm288_vm1, %v3538_v34  ;;  %v2094_v34 = vld [vmem:[%s8794_s6 + $0x95] sm:$0xff] }
 0x232   : > { %v9354_v28 = vpop.f32.mrf.mxu0  ;;  %8385 = vmatmul.msk.f32.gmra.mxu2 %vm288_vm1, %v3055_v26  ;;  %v2579_v26 = vld [vmem:[%s8794_s6 + $0xae] sm:$0xff] }
 0x235   : > { %8234 = vmatmul.msk.f32.gmra.mxu0 %vm288_vm1, %v1602_v29  ;;  %v2573_v29 = vld [vmem:[%s8794_s6 + $0x7e] sm:$0xff] }
 0x236   : > { %8337 = vmatmul.msk.f32.gmra.mxu1 %vm288_vm1, %v2573_v29 }
 0x239   : > { %8435 = vmatmul.msk.f32.gmra.mxu3 %vm288_vm1, %v3539_v40 }
 0x23a   : > { %v9362_v32 = vpop.f32.mrf.mxu0 }
 0x23d   : > { %8235 = vmatmul.msk.f32.gmra.mxu0 %vm288_vm1, %v1603_v33  ;;  %v3056_v33 = vld [vmem:[%s8794_s6 + $0x98] sm:$0xff] }
 0x23e   : > { %8386 = vmatmul.msk.f32.gmra.mxu2 %vm288_vm1, %v3056_v33  ;;  %8338 = vmatmul.msk.f32.gmra.mxu1 %vm288_vm1, %v2574_v35  ;;  %v3062_v35 = vld [vmem:[%s8794_s6 + $0xc8] sm:$0xff] }
 0x242   : > { %v9372_v37 = vpop.f32.mrf.mxu0 }
 0x245   : > { %8276 = vmatmul.msk.f32.vlgmr.msra.gmra.mxu0 %vm288_vm1, %v2078_v38  ;;  %v2089_v38 = vld [vmem:[%s8794_s6 + $0x6d] sm:$0xff] }
 0x246   : > { %8387 = vmatmul.msk.f32.gmra.mxu2 %vm288_vm1, %v3057_v39  ;;  %8339 = vmatmul.msk.f32.gmra.mxu1 %vm288_vm1, %v2575_v41  ;;  %v977_v39 = vld [vmem:[#allocation2 + $0x8] sm:$0xff] }
 0x247   : > { %v3544_v41 = vld [vmem:[%s8794_s6 + $0xc9] sm:$0xff] }
 0x249   : > { %v2766_v46 = vpop.f32.mrf.mxu1 }
 0x24a   : > { %v9382_v42 = vpop.f32.mrf.mxu0 }
 0x24d   : > { %8277 = vmatmul.msk.f32.gmra.mxu0 %vm288_vm1, %v2079_v43  ;;  %v3248_v50 = vpop.f32.mrf.mxu2 }
 0x24e   : > { %8388 = vmatmul.msk.f32.gmra.mxu2 %vm288_vm1, %v3058_v45  ;;  %8340 = vmatmul.msk.f32.gmra.mxu1 %vm288_vm1, %v2576_v49 }
 0x251   : > { %v9509_v56 = vpop.f32.mrf.mxu1 }
 0x252   : > { %v9392_v47 = vpop.f32.mrf.mxu0 }
 0x255   : > { %8278 = vmatmul.msk.f32.gmra.mxu0 %vm288_vm1, %v2080_v48  ;;  %v3540_v48 = vld [vmem:[%s8794_s6 + $0xa9] sm:$0xff]  ;;  %v9515_v60 = vpop.f32.mrf.mxu2 }
 0x256   : > { %8436 = vmatmul.msk.f32.gmra.mxu3 %vm288_vm1, %v3540_v48  ;;  %8389 = vmatmul.msk.f32.gmra.mxu2 %vm288_vm1, %v3059_v55 }
 0x257   : > { %8341 = vmatmul.msk.f32.gmra.mxu1 %vm288_vm1, %v2577_v59  ;;  %v3063_v59 = vld [vmem:[%s8794_s6 + $0xd0] sm:$0xff] }
 0x259   : > { %v9525_v2 = vpop.f32.mrf.mxu1 }
 0x25a   : > { %v9402_v52 = vpop.f32.mrf.mxu0 }
 0x25d   : > { %8279 = vmatmul.msk.f32.gmra.mxu0 %vm288_vm1, %v2081_v53  ;;  %v9531_v6 = vpop.f32.mrf.mxu2 }
 0x25e   : > { %8390 = vmatmul.msk.f32.gmra.mxu2 %vm288_vm1, %v3060_v1  ;;  %v978_v1 = vld [vmem:[#allocation2 + $0x10] sm:$0xff] }
 0x25f   : > { %8342 = vmatmul.msk.f32.gmra.mxu1 %vm288_vm1, %v2578_v5  ;;  %v2581_v5 = vld [vmem:[%s8794_s6 + $0xbe] sm:$0xff] }
 0x261   : > { %v9544_v20 = vpop.f32.mrf.mxu1 }
 0x262   : > { %v9412_v57 = vpop.f32.mrf.mxu0 }
 0x265   : > { %8280 = vmatmul.msk.f32.gmra.mxu0 %vm288_vm1, %v2082_v58  ;;  %v3541_v58 = vld [vmem:[%s8794_s6 + $0xb1] sm:$0xff]  ;;  %v9554_v27 = vpop.f32.mrf.mxu2 }
 0x266   : > { %8437 = vmatmul.msk.f32.gmra.mxu3 %vm288_vm1, %v3541_v58  ;;  %8391 = vmatmul.msk.f32.gmra.mxu2 %vm288_vm1, %v3061_v12 }
 0x267   : > { %8343 = vmatmul.msk.f32.gmra.mxu1 %vm288_vm1, %v2579_v26 }
 0x269   : > { %v9564_v40 = vpop.f32.mrf.mxu1 }
 0x26a   : > { %v9422_v62 = vpop.f32.mrf.mxu0 }
 0x26d   : > { %8281 = vmatmul.msk.f32.gmra.mxu0 %vm288_vm1, %v2083_v63  ;;  %v9571_v45 = vpop.f32.mrf.mxu2 }
 0x26e   : > { %8392 = vmatmul.msk.f32.gmra.mxu2 %vm288_vm1, %v3062_v35 }
 0x272   : > { %v9432_v3 = vpop.f32.mrf.mxu0 }
 0x275   : > { %8282 = vmatmul.msk.f32.gmra.mxu0 %vm288_vm1, %v2084_v4  ;;  %v3542_v4 = vld [vmem:[%s8794_s6 + $0xb9] sm:$0xff] }
 0x276   : > { %8438 = vmatmul.msk.f32.gmra.mxu3 %vm288_vm1, %v3542_v4  ;;  %8393 = vmatmul.msk.f32.gmra.mxu2 %vm288_vm1, %v3063_v59  ;;  %v9582_v4 = vpop.f32.mrf.mxu1 }
 0x27a   : > { %v9442_v8 = vpop.f32.mrf.mxu0 }
 0x27d   : > { %8283 = vmatmul.msk.f32.gmra.mxu0 %vm288_vm1, %v2085_v9 }
 0x27e   : > { %8439 = vmatmul.msk.f32.gmra.mxu3 %vm288_vm1, %v3543_v21 }
 0x282   : > { %v9452_v16 = vpop.f32.mrf.mxu0 }
 0x285   : > { %8284 = vmatmul.msk.f32.gmra.mxu0 %vm288_vm1, %v2086_v18  ;;  %v976_v18 = vld [vmem:[#allocation2] sm:$0xff] }
 0x286   : > { %v1022_v22 = vadd.f32 %v976_v18, %v9318_v11  ;;  %8440 = vmatmul.msk.f32.gmra.mxu3 %vm288_vm1, %v3544_v41 }
 0x288   : > { %v1504_v29 = vadd.f32 %v9372_v37, %v1022_v22  ;;  %v1023_v37 = vadd.f32 %v977_v39, %v9322_v13  ;;  %v2096_v22 = vld [vmem:[%s8794_s6 + $0xa5] sm:$0xff] }
 0x28a   : > { %v9462_v23 = vpop.f32.mrf.mxu0  ;;  %v1986_v11 = vadd.f32 %v9452_v16, %v1504_v29  ;;  %v2580_v16 = vld [vmem:[%s8794_s6 + $0xb6] sm:$0xff]  ;;  %v1505_v48 = vadd.f32 %v9382_v42, %v1023_v37  ;;  %v9608_v29 = vpop.f32.mrf.mxu1 }
 0x28b   : > { %8344 = vmatmul.msk.f32.gmra.mxu1 %vm288_vm1, %v2580_v16  ;;  %v3545_v42 = vld [vmem:[%s8794_s6 + $0xd1] sm:$0xff]  ;;  %v3065_v16 = vld [vmem:[%s8794_s6 + $0xe0] sm:$0xff] }
 0x28c   : > { %v1987_v55 = vadd.f32 %v9462_v23, %v1505_v48 }
 0x28d   : > { %8285 = vmatmul.msk.f32.gmra.mxu0 %vm288_vm1, %v2087_v25  ;;  %v8529_v25 = vld [vmem:[%s11065_s2 + $0xf8] sm:$0xff] }
 0x28e   : > { %5009 = vmatpush.msra.mxu2 %v8529_v25  ;;  %8441 = vmatmul.msk.f32.gmra.mxu3 %vm288_vm1, %v3545_v42  ;;  %v3064_v25 = vld [vmem:[%s8794_s6 + $0xd8] sm:$0xff]  ;;  %v3066_v42 = vld [vmem:[%s8794_s6 + $0xe8] sm:$0xff] }
 0x28f   : > { %8394 = vmatmul.msk.f32.gmra.mxu2 %vm288_vm1, %v3064_v25  ;;  %v3067_v25 = vld [vmem:[%s8794_s6 + $0xf0] sm:$0xff] }
 0x292   : > { %v9472_v30 = vpop.f32.mrf.mxu0 }
 0x293   : > { %8345 = vmatmul.msk.f32.gmra.mxu1 %vm288_vm1, %v2581_v5  ;;  %v2584_v5 = vld [vmem:[%s8794_s6 + $0xd6] sm:$0xff] }
 0x295   : > { %8286 = vmatmul.msk.f32.gmra.mxu0 %vm288_vm1, %v2088_v31  ;;  %v9558_v31 = vpop.f32.mrf.mxu3 }
 0x297   : > { %8395 = vmatmul.msk.f32.gmra.mxu2 %vm288_vm1, %v3065_v16 }
 0x29a   : > { %v9482_v36 = vpop.f32.mrf.mxu0 }
 0x29d   : > { %8287 = vmatmul.msk.f32.gmra.mxu0 %vm288_vm1, %v2089_v38 }
 0x29f   : > { %8396 = vmatmul.msk.f32.gmra.mxu2 %vm288_vm1, %v3066_v42 }
 0x2a2   : > { %v9492_v43 = vpop.f32.mrf.mxu0 }
 0x2a5   : > { %8288 = vmatmul.msk.f32.gmra.mxu0 %vm288_vm1, %v2090_v44 }
 0x2a7   : > { %8397 = vmatmul.msk.f32.gmra.mxu2 %vm288_vm1, %v3067_v25  ;;  %v2103_v25 = vld [vmem:[%s8794_s6 + $0xdd] sm:$0xff] }
 0x2aa   : > { %v9504_v53 = vpop.f32.mrf.mxu0 }
 0x2ad   : > { %8289 = vmatmul.msk.f32.gmra.mxu0 %vm288_vm1, %v2091_v54  ;;  %v9575_v54 = vpop.f32.mrf.mxu3 }
 0x2b2   : > { %v9520_v63 = vpop.f32.mrf.mxu0 }
 0x2b5   : > { %8290 = vmatmul.msk.f32.gmra.mxu0 %vm288_vm1, %v2092_v0  ;;  %v9598_v14 = vpop.f32.mrf.mxu3 }
 0x2ba   : > { %v9536_v9 = vpop.f32.mrf.mxu0 }
 0x2bd   : > { %8291 = vmatmul.msk.f32.gmra.mxu0 %vm288_vm1, %v2093_v10  ;;  %v9593_v10 = vpop.f32.mrf.mxu2  ;;  %v9624_v39 = vpop.f32.mrf.mxu3 }
 0x2c2   : > { %v2284_v33 = vpop.f32.mrf.mxu0 }
 0x2c3   : > { %v2468_v38 = vadd.f32 %v2284_v33, %v1986_v11  ;;  %v3546_v11 = vld [vmem:[%s8794_s6 + $0xd9] sm:$0xff]  ;;  %v8528_v33 = vld [vmem:[%s11065_s2 + $0xf0] sm:$0xff] }
 0x2c4   : > { %8442 = vmatmul.msk.f32.gmra.mxu3 %vm288_vm1, %v3546_v11  ;;  %5010 = vmatpush.msra.mxu2 %v8528_v33  ;;  %v8527_v11 = vld [vmem:[%s11065_s2 + $0xe8] sm:$0xff] }
 0x2c5   : > { %8292 = vmatmul.msk.f32.gmra.mxu0 %vm288_vm1, %v2094_v34  ;;  %v2950_v44 = vadd.f32 %v2766_v46, %v2468_v38  ;;  %v2095_v46 = vld [vmem:[%s8794_s6 + $0x9d] sm:$0xff]  ;;  %v2582_v34 = vld [vmem:[%s8794_s6 + $0xc6] sm:$0xff]  ;;  %v9619_v35 = vpop.f32.mrf.mxu2  ;;  %v9644_v59 = vpop.f32.mrf.mxu3 }
 0x2c6   : > { %8346 = vmatmul.msk.f32.gmra.mxu1 %vm288_vm1, %v2582_v34  ;;  %5011 = vmatpush.msra.mxu2 %v8527_v11 }
 0x2c7   : > { %v3432_v49 = vadd.f32 %v3248_v50, %v2950_v44  ;;  %v1024_v50 = vadd.f32 %v978_v1, %v9326_v15  ;;  %v2097_v44 = vld [vmem:[%s8794_s6 + $0xad] sm:$0xff]  ;;  %v2098_v1 = vld [vmem:[%s8794_s6 + $0xb5] sm:$0xff] }
 0x2c9   : > { %v3914_v13 = vadd.f32 %v9502_v51, %v3432_v49  ;;  %v8545_v51 = vld [vmem:[%s11065_s2 + $0x178] sm:$0xff]  ;;  %v1506_v12 = vadd.f32 %v9392_v47, %v1024_v50  ;;  %v4773_v47 = vld [vmem:[%s11065_s2 + $0x70] sm:$0xff]  ;;  %v980_v49 = vld [vmem:[#allocation2 + $0x20] sm:$0xff] }
 0x2ca   : > { %v2287_v58 = vpop.f32.mrf.mxu0  ;;  %5323 = vmatpush.msra.mxu3 %v8545_v51  ;;  %4776 = vmatpush.msra.mxu1 %v4773_v47 }
 0x2cb   : > { %v2469_v0 = vadd.f32 %v2287_v58, %v1987_v55  ;;  %3960 = vst [vmem:[#allocation2] sm:$0xff] %v3914_v13  ;;  %v1026_v55 = vadd.f32 %v980_v49, %v9334_v19 }
 0x2cd   : > { %8293 = vmatmul.msk.f32.gmra.mxu0 %vm288_vm1, %v2095_v46  ;;  %v2951_v23 = vadd.f32 %v9509_v56, %v2469_v0  ;;  %v1988_v56 = vadd.f32 %v9472_v30, %v1506_v12  ;;  %v9639_v13 = vpop.f32.mrf.mxu2  ;;  %v1508_v58 = vadd.f32 %v9412_v57, %v1026_v55  ;;  %v8544_v57 = vld [vmem:[%s11065_s2 + $0x170] sm:$0xff] }
 0x2ce   : > { %5324 = vmatpush.msra.mxu3 %v8544_v57  ;;  %v2430_v57 = vld [vmem:[#allocation2 + $0x40] sm:$0xff] }
 0x2cf   : > { %v3433_v15 = vadd.f32 %v9515_v60, %v2951_v23  ;;  %v979_v60 = vld [vmem:[#allocation2 + $0x18] sm:$0xff]  ;;  %v1990_v19 = vadd.f32 %v9492_v43, %v1508_v58  ;;  %v3548_v43 = vld [vmem:[%s8794_s6 + $0xe9] sm:$0xff]  ;;  %v3069_v58 = vld [vmem:[%s8794_s6 + $0x100] sm:$0xff] }
 0x2d0   : > { %v1025_v30 = vadd.f32 %v979_v60, %v9330_v17  ;;  %v3549_v60 = vld [vmem:[%s8794_s6 + $0xf1] sm:$0xff] }
 0x2d1   : > { %v3915_v18 = vadd.f32 %v9518_v61, %v3433_v15 }
 0x2d2   : > { %v2290_v21 = vpop.f32.mrf.mxu0  ;;  %v1507_v38 = vadd.f32 %v9402_v52, %v1025_v30  ;;  %v9631_v52 = vpop.f32.mrf.mxu1  ;;  %v2585_v30 = vld [vmem:[%s8794_s6 + $0xde] sm:$0xff] }
 0x2d3   : > { %v2470_v26 = vadd.f32 %v2290_v21, %v1988_v56  ;;  %3961 = vst [vmem:[#allocation2 + $0x8] sm:$0xff] %v3915_v18  ;;  %v9667_v18 = vpop.f32.mrf.mxu3 }
 0x2d5   : > { %8294 = vmatmul.msk.f32.gmra.mxu0 %vm288_vm1, %v2096_v22  ;;  %v2952_v61 = vadd.f32 %v9525_v2, %v2470_v26  ;;  %v1989_v2 = vadd.f32 %v9482_v36, %v1507_v38  ;;  %v9662_v12 = vpop.f32.mrf.mxu2 }
 0x2d7   : > { %v3434_v17 = vadd.f32 %v9531_v6, %v2952_v61  ;;  %v3547_v6 = vld [vmem:[%s8794_s6 + $0xe1] sm:$0xff] }
 0x2d8   : > { %8443 = vmatmul.msk.f32.gmra.mxu3 %vm288_vm1, %v3547_v6 }
 0x2d9   : > { %v3916_v41 = vadd.f32 %v9534_v7, %v3434_v17  ;;  %v2583_v7 = vld [vmem:[%s8794_s6 + $0xce] sm:$0xff] }
 0x2da   : > { %v2293_v37 = vpop.f32.mrf.mxu0  ;;  %8347 = vmatmul.msk.f32.gmra.mxu1 %vm288_vm1, %v2583_v7  ;;  %v9654_v23 = vpop.f32.mrf.mxu1  ;;  %v2101_v7 = vld [vmem:[%s8794_s6 + $0xcd] sm:$0xff] }
 0x2db   : > { %v2471_v48 = vadd.f32 %v2293_v37, %v1989_v2  ;;  %3962 = vst [vmem:[#allocation2 + $0x10] sm:$0xff] %v3916_v41  ;;  %v9693_v34 = vpop.f32.mrf.mxu3  ;;  %v2100_v2 = vld [vmem:[%s8794_s6 + $0xc5] sm:$0xff]  ;;  %v3068_v41 = vld [vmem:[%s8794_s6 + $0xf8] sm:$0xff] }
 0x2dc   : > { %8398 = vmatmul.msk.f32.gmra.mxu2 %vm288_vm1, %v3068_v41  ;;  %v4770_v41 = vld [vmem:[%s11065_s2 + $0x58] sm:$0xff] }
 0x2dd   : > { %8295 = vmatmul.msk.f32.gmra.mxu0 %vm288_vm1, %v2097_v44  ;;  %v2953_v36 = vadd.f32 %v9544_v20, %v2471_v48  ;;  %v9688_v61 = vpop.f32.mrf.mxu2  ;;  %v983_v44 = vld [vmem:[#allocation2 + $0x38] sm:$0xff] }
 0x2de   : > { %v1029_v16 = vadd.f32 %v983_v44, %v9362_v32 }
 0x2df   : > { %v3435_v46 = vadd.f32 %v9554_v27, %v2953_v36  ;;  %v981_v27 = vld [vmem:[#allocation2 + $0x28] sm:$0xff] }
 0x2e0   : > { %8444 = vmatmul.msk.f32.gmra.mxu3 %vm288_vm1, %v3548_v43  ;;  %v1511_v49 = vadd.f32 %v9442_v8, %v1029_v16  ;;  %v8543_v8 = vld [vmem:[%s11065_s2 + $0x168] sm:$0xff] }
 0x2e1   : > { %v3917_v0 = vadd.f32 %v9558_v31, %v3435_v46  ;;  %v1027_v31 = vadd.f32 %v981_v27, %v9346_v24  ;;  %5325 = vmatpush.msra.mxu3 %v8543_v8  ;;  %v2102_v27 = vld [vmem:[%s8794_s6 + $0xd5] sm:$0xff]  ;;  %v3070_v43 = vld [vmem:[%s8794_s6 + $0x108] sm:$0xff] }
 0x2e2   : > { %v2296_v20 = vpop.f32.mrf.mxu0  ;;  %8348 = vmatmul.msk.f32.gmra.mxu1 %vm288_vm1, %v2584_v5  ;;  %v9677_v47 = vpop.f32.mrf.mxu1  ;;  %v1993_v32 = vadd.f32 %v9536_v9, %v1511_v49  ;;  %v3551_v9 = vld [vmem:[%s8794_s6 + $0x101] sm:$0xff]  ;;  %v2105_v49 = vld [vmem:[%s8794_s6 + $0xed] sm:$0xff] }
 0x2e3   : > { %v2472_v50 = vadd.f32 %v2296_v20, %v1990_v19  ;;  %3963 = vst [vmem:[#allocation2 + $0x18] sm:$0xff] %v3917_v0  ;;  %v1509_v15 = vadd.f32 %v9422_v62, %v1027_v31  ;;  %v4772_v62 = vld [vmem:[%s11065_s2 + $0x68] sm:$0xff]  ;;  %v9713_v55 = vpop.f32.mrf.mxu3  ;;  %v4771_v19 = vld [vmem:[%s11065_s2 + $0x60] sm:$0xff] }
 0x2e4   : > { %4777 = vmatpush.msra.mxu1 %v4772_v62  ;;  %8399 = vmatmul.msk.f32.gmra.mxu2 %vm288_vm1, %v3069_v58  ;;  %v2587_v0 = vld [vmem:[%s8794_s6 + $0xee] sm:$0xff] }
 0x2e5   : > { %8296 = vmatmul.msk.f32.gmra.mxu0 %vm288_vm1, %v2098_v1  ;;  %v2954_v51 = vadd.f32 %v9564_v40, %v2472_v50  ;;  %v1991_v24 = vadd.f32 %v9504_v53, %v1509_v15  ;;  %v2099_v40 = vld [vmem:[%s8794_s6 + $0xbd] sm:$0xff]  ;;  %v9708_v48 = vpop.f32.mrf.mxu2 }
 0x2e6   : > { %4778 = vmatpush.msra.mxu1 %v4771_v19  ;;  %v2588_v15 = vld [vmem:[%s8794_s6 + $0xf6] sm:$0xff]  ;;  %v2434_v19 = vld [vmem:[#allocation2 + $0x60] sm:$0xff] }
 0x2e7   : > { %v3436_v56 = vadd.f32 %v9571_v45, %v2954_v51  ;;  %v982_v45 = vld [vmem:[#allocation2 + $0x30] sm:$0xff] }
 0x2e8   : > { %v1028_v53 = vadd.f32 %v982_v45, %v9354_v28  ;;  %8445 = vmatmul.msk.f32.gmra.mxu3 %vm288_vm1, %v3549_v60  ;;  %4779 = vmatpush.msra.mxu1 %v4770_v41  ;;  %v2437_v41 = vld [vmem:[#allocation2 + $0x78] sm:$0xff] }
 0x2e9   : > { %v3918_v21 = vadd.f32 %v9575_v54, %v3436_v56 }
 0x2ea   : > { %v2299_v22 = vpop.f32.mrf.mxu0  ;;  %v1510_v33 = vadd.f32 %v9432_v3, %v1028_v53  ;;  %8349 = vmatmul.msk.f32.gmra.mxu1 %vm288_vm1, %v2585_v30  ;;  %v9700_v3 = vpop.f32.mrf.mxu1 }
 0x2eb   : > { %v2473_v26 = vadd.f32 %v2299_v22, %v1991_v24  ;;  %3964 = vst [vmem:[#allocation2 + $0x20] sm:$0xff] %v3918_v21  ;;  %v9737_v42 = vpop.f32.mrf.mxu3 }
 0x2ec   : > { %8400 = vmatmul.msk.f32.gmra.mxu2 %vm288_vm1, %v3070_v43 }
 0x2ed   : > { %8297 = vmatmul.msk.f32.gmra.mxu0 %vm288_vm1, %v2099_v40  ;;  %v2955_v54 = vadd.f32 %v9582_v4, %v2473_v26  ;;  %v1992_v4 = vadd.f32 %v9520_v63, %v1510_v33  ;;  %v9733_v20 = vpop.f32.mrf.mxu2  ;;  %v2431_v40 = vld [vmem:[#allocation2 + $0x48] sm:$0xff]  ;;  %v3071_v26 = vld [vmem:[%s8794_s6 + $0x110] sm:$0xff] }
 0x2ef   : > { %v3437_v28 = vadd.f32 %v9593_v10, %v2955_v54  ;;  %v3550_v10 = vld [vmem:[%s8794_s6 + $0xf9] sm:$0xff] }
 0x2f0   : > { %8446 = vmatmul.msk.f32.gmra.mxu3 %vm288_vm1, %v3550_v10 }
 0x2f1   : > { %v3919_v38 = vadd.f32 %v9598_v14, %v3437_v28  ;;  %v2586_v14 = vld [vmem:[%s8794_s6 + $0xe6] sm:$0xff]  ;;  %v2432_v28 = vld [vmem:[#allocation2 + $0x50] sm:$0xff] }
 0x2f2   : > { %v2302_v17 = vpop.f32.mrf.mxu0  ;;  %8350 = vmatmul.msk.f32.gmra.mxu1 %vm288_vm1, %v2586_v14  ;;  %v2433_v14 = vld [vmem:[#allocation2 + $0x58] sm:$0xff] }
 0x2f3   : > { %v2474_v37 = vadd.f32 %v2302_v17, %v1992_v4  ;;  %3965 = vst [vmem:[#allocation2 + $0x28] sm:$0xff] %v3919_v38  ;;  %v9757_v21 = vpop.f32.mrf.mxu3  ;;  %v2104_v4 = vld [vmem:[%s8794_s6 + $0xe5] sm:$0xff]  ;;  %v3072_v38 = vld [vmem:[%s8794_s6 + $0x118] sm:$0xff] }
 0x2f4   : > { %8401 = vmatmul.msk.f32.gmra.mxu2 %vm288_vm1, %v3071_v26  ;;  %v8542_v17 = vld [vmem:[%s11065_s2 + $0x160] sm:$0xff] }
 0x2f5   : > { %8298 = vmatmul.msk.f32.gmra.mxu0 %vm288_vm1, %v2100_v2  ;;  %v2956_v63 = vadd.f32 %v9608_v29, %v2474_v37  ;;  %v9753_v56 = vpop.f32.mrf.mxu2  ;;  %5326 = vmatpush.msra.mxu3 %v8542_v17  ;;  %v3554_v2 = vld [vmem:[%s8794_s6 + $0x119] sm:$0xff]  ;;  %v2590_v37 = vld [vmem:[%s8794_s6 + $0x106] sm:$0xff] }
 0x2f7   : > { %v3438_v6 = vadd.f32 %v9619_v35, %v2956_v63  ;;  %v9723_v35 = vpop.f32.mrf.mxu1 }
 0x2f8   : > { %8447 = vmatmul.msk.f32.gmra.mxu3 %vm288_vm1, %v3551_v9 }
 0x2f9   : > { %v3920_v36 = vadd.f32 %v9624_v39, %v3438_v6  ;;  %v3073_v6 = vld [vmem:[%s8794_s6 + $0x120] sm:$0xff] }
 0x2fa   : > { %v2305_v29 = vpop.f32.mrf.mxu0  ;;  %8351 = vmatmul.msk.f32.gmra.mxu1 %vm288_vm1, %v2587_v0  ;;  %v2106_v0 = vld [vmem:[%s8794_s6 + $0xf5] sm:$0xff] }
 0x2fb   : > { %v2475_v46 = vadd.f32 %v2305_v29, %v1993_v32  ;;  %3966 = vst [vmem:[#allocation2 + $0x30] sm:$0xff] %v3920_v36  ;;  %v9774_v11 = vpop.f32.mrf.mxu3  ;;  %v8525_v36 = vld [vmem:[%s11065_s2 + $0xd8] sm:$0xff]  ;;  %v3555_v29 = vld [vmem:[%s8794_s6 + $0x121] sm:$0xff] }
 0x2fc   : > { %8402 = vmatmul.msk.f32.gmra.mxu2 %vm288_vm1, %v3072_v38 }
 0x2fd   : > { %8299 = vmatmul.msk.f32.gmra.mxu0 %vm288_vm1, %v2101_v7  ;;  %v2957_v39 = vadd.f32 %v9631_v52, %v2475_v46  ;;  %v9770_v53 = vpop.f32.mrf.mxu2  ;;  %v2591_v7 = vld [vmem:[%s8794_s6 + $0x10e] sm:$0xff] }
 0x2ff   : > { %v3439_v1 = vadd.f32 %v9639_v13, %v2957_v39  ;;  %v9743_v51 = vpop.f32.mrf.mxu1  ;;  %v3552_v13 = vld [vmem:[%s8794_s6 + $0x109] sm:$0xff] }
 0x300   : > { %8448 = vmatmul.msk.f32.gmra.mxu3 %vm288_vm1, %v3552_v13 }
 0x301   : > { %v3921_v52 = vadd.f32 %v9644_v59, %v3439_v1  ;;  %v8526_v59 = vld [vmem:[%s11065_s2 + $0xe0] sm:$0xff]  ;;  %v3074_v1 = vld [vmem:[%s8794_s6 + $0x128] sm:$0xff] }
 0x302   : > { %v2308_v50 = vpop.f32.mrf.mxu0  ;;  %5012 = vmatpush.msra.mxu2 %v8526_v59  ;;  %8352 = vmatmul.msk.f32.gmra.mxu1 %vm288_vm1, %v2588_v15  ;;  %v2107_v59 = vld [vmem:[%s8794_s6 + $0xfd] sm:$0xff]  ;;  %v3075_v15 = vld [vmem:[%s8794_s6 + $0x130] sm:$0xff] }
 0x303   : > { %v2476_v31 = vadd.f32 %v2430_v57, %v2308_v50  ;;  %3967 = vst [vmem:[#allocation2 + $0x38] sm:$0xff] %v3921_v52  ;;  %v9797_v16 = vpop.f32.mrf.mxu3  ;;  %v2592_v57 = vld [vmem:[%s8794_s6 + $0x116] sm:$0xff] }
 0x304   : > { %8403 = vmatmul.msk.f32.gmra.mxu2 %vm288_vm1, %v3073_v6 }
 0x305   : > { %8300 = vmatmul.msk.f32.gmra.mxu0 %vm288_vm1, %v2102_v27  ;;  %v2958_v5 = vadd.f32 %v9654_v23, %v2476_v31  ;;  %v9793_v44 = vpop.f32.mrf.mxu2  ;;  %5013 = vmatpush.msra.mxu2 %v8525_v36 }
 0x307   : > { %v3440_v24 = vadd.f32 %v9662_v12, %v2958_v5  ;;  %v9763_v45 = vpop.f32.mrf.mxu1  ;;  %v3553_v12 = vld [vmem:[%s8794_s6 + $0x111] sm:$0xff]  ;;  %v2435_v5 = vld [vmem:[#allocation2 + $0x68] sm:$0xff] }
 0x308   : > { %8449 = vmatmul.msk.f32.gmra.mxu3 %vm288_vm1, %v3553_v12 }
 0x309   : > { %v3922_v23 = vadd.f32 %v9667_v18, %v3440_v24  ;;  %v2589_v18 = vld [vmem:[%s8794_s6 + $0xfe] sm:$0xff] }
 0x30a   : > { %v2311_v22 = vpop.f32.mrf.mxu0  ;;  %8353 = vmatmul.msk.f32.gmra.mxu1 %vm288_vm1, %v2589_v18  ;;  %v2108_v18 = vld [vmem:[%s8794_s6 + $0x105] sm:$0xff] }
 0x30b   : > { %v2477_v62 = vadd.f32 %v2431_v40, %v2311_v22  ;;  %3968 = vst [vmem:[#allocation2 + $0x40] sm:$0xff] %v3922_v23  ;;  %v9817_v8 = vpop.f32.mrf.mxu3  ;;  %v2593_v40 = vld [vmem:[%s8794_s6 + $0x11e] sm:$0xff] }
 0x30c   : > { %8404 = vmatmul.msk.f32.gmra.mxu2 %vm288_vm1, %v3074_v1 }
 0x30d   : > { %8301 = vmatmul.msk.f32.gmra.mxu0 %vm288_vm1, %v2103_v25  ;;  %v2959_v60 = vadd.f32 %v9677_v47, %v2477_v62  ;;  %v9813_v58 = vpop.f32.mrf.mxu2 }
 0x30f   : > { %v3441_v54 = vadd.f32 %v9688_v61, %v2959_v60  ;;  %v9783_v61 = vpop.f32.mrf.mxu1  ;;  %v2436_v60 = vld [vmem:[#allocation2 + $0x70] sm:$0xff] }
 0x310   : > { %8450 = vmatmul.msk.f32.gmra.mxu3 %vm288_vm1, %v3554_v2 }
 0x311   : > { %v3923_v30 = vadd.f32 %v9693_v34, %v3441_v54  ;;  %v3076_v54 = vld [vmem:[%s8794_s6 + $0x138] sm:$0xff] }
 0x312   : > { %v2314_v33 = vpop.f32.mrf.mxu0  ;;  %8354 = vmatmul.msk.f32.gmra.mxu1 %vm288_vm1, %v2590_v37  ;;  %v2109_v37 = vld [vmem:[%s8794_s6 + $0x10d] sm:$0xff] }
 0x313   : > { %v2478_v47 = vadd.f32 %v2432_v28, %v2314_v33  ;;  %3969 = vst [vmem:[#allocation2 + $0x48] sm:$0xff] %v3923_v30  ;;  %v9837_v31 = vpop.f32.mrf.mxu3  ;;  %v8524_v33 = vld [vmem:[%s11065_s2 + $0xd0] sm:$0xff]  ;;  %v3558_v28 = vld [vmem:[%s8794_s6 + $0x139] sm:$0xff] }
 0x314   : > { %8405 = vmatmul.msk.f32.gmra.mxu2 %vm288_vm1, %v3075_v15 }
 0x315   : > { %8302 = vmatmul.msk.f32.gmra.mxu0 %vm288_vm1, %v2104_v4  ;;  %v2960_v34 = vadd.f32 %v9700_v3, %v2478_v47  ;;  %v9833_v27 = vpop.f32.mrf.mxu2  ;;  %5014 = vmatpush.msra.mxu2 %v8524_v33  ;;  %v2594_v4 = vld [vmem:[%s8794_s6 + $0x126] sm:$0xff] }
 0x317   : > { %v3442_v10 = vadd.f32 %v9708_v48, %v2960_v34  ;;  %v9806_v48 = vpop.f32.mrf.mxu1 }
 0x318   : > { %8451 = vmatmul.msk.f32.gmra.mxu3 %vm288_vm1, %v3555_v29  ;;  %v2438_v29 = vld [vmem:[#allocation2 + $0x80] sm:$0xff] }
 0x319   : > { %v3924_v3 = vadd.f32 %v9713_v55, %v3442_v10  ;;  %v3077_v10 = vld [vmem:[%s8794_s6 + $0x140] sm:$0xff] }
 0x31a   : > { %v2317_v63 = vpop.f32.mrf.mxu0  ;;  %8355 = vmatmul.msk.f32.gmra.mxu1 %vm288_vm1, %v2591_v7  ;;  %v3078_v7 = vld [vmem:[%s8794_s6 + $0x148] sm:$0xff] }
 0x31b   : > { %v2479_v32 = vadd.f32 %v2433_v14, %v2317_v63  ;;  %3970 = vst [vmem:[#allocation2 + $0x50] sm:$0xff] %v3924_v3  ;;  %v9857_v62 = vpop.f32.mrf.mxu3  ;;  %v2595_v14 = vld [vmem:[%s8794_s6 + $0x12e] sm:$0xff] }
 0x31c   : > { %8406 = vmatmul.msk.f32.gmra.mxu2 %vm288_vm1, %v3076_v54 }
 0x31d   : > { %8303 = vmatmul.msk.f32.gmra.mxu0 %vm288_vm1, %v2105_v49  ;;  %v2961_v55 = vadd.f32 %v9723_v35, %v2479_v32  ;;  %v9853_v25 = vpop.f32.mrf.mxu2 }
 0x31f   : > { %v3443_v46 = vadd.f32 %v9733_v20, %v2961_v55  ;;  %v9823_v52 = vpop.f32.mrf.mxu1  ;;  %v3556_v20 = vld [vmem:[%s8794_s6 + $0x129] sm:$0xff]  ;;  %v2110_v55 = vld [vmem:[%s8794_s6 + $0x115] sm:$0xff] }
 0x320   : > { %8452 = vmatmul.msk.f32.gmra.mxu3 %vm288_vm1, %v3556_v20 }
 0x321   : > { %v3925_v9 = vadd.f32 %v9737_v42, %v3443_v46  ;;  %v8541_v42 = vld [vmem:[%s11065_s2 + $0x158] sm:$0xff] }
 0x322   : > { %v2320_v39 = vpop.f32.mrf.mxu0  ;;  %5327 = vmatpush.msra.mxu3 %v8541_v42  ;;  %8356 = vmatmul.msk.f32.gmra.mxu1 %vm288_vm1, %v2592_v57  ;;  %v2111_v42 = vld [vmem:[%s8794_s6 + $0x11d] sm:$0xff]  ;;  %v3079_v57 = vld [vmem:[%s8794_s6 + $0x150] sm:$0xff] }
 0x323   : > { %v2480_v35 = vadd.f32 %v2434_v19, %v2320_v39  ;;  %3971 = vst [vmem:[#allocation2 + $0x58] sm:$0xff] %v3925_v9  ;;  %v9877_v17 = vpop.f32.mrf.mxu3  ;;  %v2596_v19 = vld [vmem:[%s8794_s6 + $0x136] sm:$0xff] }
 0x324   : > { %8407 = vmatmul.msk.f32.gmra.mxu2 %vm288_vm1, %v3077_v10 }
 0x325   : > { %8304 = vmatmul.msk.f32.gmra.mxu0 %vm288_vm1, %v2106_v0  ;;  %v2962_v50 = vadd.f32 %v9743_v51, %v2480_v35  ;;  %v9873_v38 = vpop.f32.mrf.mxu2 }
 0x327   : > { %v3444_v43 = vadd.f32 %v9753_v56, %v2962_v50  ;;  %v9843_v23 = vpop.f32.mrf.mxu1  ;;  %v3557_v56 = vld [vmem:[%s8794_s6 + $0x131] sm:$0xff]  ;;  %v2439_v50 = vld [vmem:[#allocation2 + $0x88] sm:$0xff] }
 0x328   : > { %8453 = vmatmul.msk.f32.gmra.mxu3 %vm288_vm1, %v3557_v56 }
 0x329   : > { %v3926_v51 = vadd.f32 %v9757_v21, %v3444_v43  ;;  %v4769_v21 = vld [vmem:[%s11065_s2 + $0x50] sm:$0xff] }
 0x32a   : > { %v2323_v13 = vpop.f32.mrf.mxu0  ;;  %4780 = vmatpush.msra.mxu1 %v4769_v21  ;;  %v2440_v21 = vld [vmem:[#allocation2 + $0x90] sm:$0xff] }
 0x32b   : > { %v2481_v24 = vadd.f32 %v2435_v5, %v2323_v13  ;;  %3972 = vst [vmem:[#allocation2 + $0x60] sm:$0xff] %v3926_v51  ;;  %8357 = vmatmul.msk.f32.gmra.mxu1 %vm288_vm1, %v2593_v40  ;;  %v9897_v32 = vpop.f32.mrf.mxu3  ;;  %v8523_v51 = vld [vmem:[%s11065_s2 + $0xc8] sm:$0xff]  ;;  %v3561_v13 = vld [vmem:[%s8794_s6 + $0x151] sm:$0xff]  ;;  %v2597_v5 = vld [vmem:[%s8794_s6 + $0x13e] sm:$0xff] }
 0x32c   : > { %8408 = vmatmul.msk.f32.gmra.mxu2 %vm288_vm1, %v3078_v7  ;;  %v2112_v40 = vld [vmem:[%s8794_s6 + $0x125] sm:$0xff] }
 0x32d   : > { %8305 = vmatmul.msk.f32.gmra.mxu0 %vm288_vm1, %v2107_v59  ;;  %v2963_v22 = vadd.f32 %v9763_v45, %v2481_v24  ;;  %v9893_v49 = vpop.f32.mrf.mxu2  ;;  %5015 = vmatpush.msra.mxu2 %v8523_v51 }
 0x32f   : > { %v3445_v26 = vadd.f32 %v9770_v53, %v2963_v22  ;;  %v9866_v53 = vpop.f32.mrf.mxu1 }
 0x330   : > { %8454 = vmatmul.msk.f32.gmra.mxu3 %vm288_vm1, %v3558_v28  ;;  %v2441_v28 = vld [vmem:[#allocation2 + $0x98] sm:$0xff] }
 0x331   : > { %v3927_v45 = vadd.f32 %v9774_v11, %v3445_v26  ;;  %v3080_v26 = vld [vmem:[%s8794_s6 + $0x158] sm:$0xff] }
 0x332   : > { %v2326_v12 = vpop.f32.mrf.mxu0 }
 0x333   : > { %v2482_v30 = vadd.f32 %v2436_v60, %v2326_v12  ;;  %3973 = vst [vmem:[#allocation2 + $0x68] sm:$0xff] %v3927_v45  ;;  %8358 = vmatmul.msk.f32.gmra.mxu1 %vm288_vm1, %v2594_v4  ;;  %v9917_v35 = vpop.f32.mrf.mxu3  ;;  %v2598_v60 = vld [vmem:[%s8794_s6 + $0x146] sm:$0xff] }
 0x334   : > { %8409 = vmatmul.msk.f32.gmra.mxu2 %vm288_vm1, %v3079_v57  ;;  %v3081_v4 = vld [vmem:[%s8794_s6 + $0x160] sm:$0xff] }
 0x335   : > { %8306 = vmatmul.msk.f32.gmra.mxu0 %vm288_vm1, %v2108_v18  ;;  %v2964_v11 = vadd.f32 %v9783_v61, %v2482_v30  ;;  %v9913_v0 = vpop.f32.mrf.mxu2 }
 0x337   : > { %v3446_v47 = vadd.f32 %v9793_v44, %v2964_v11  ;;  %v9883_v3 = vpop.f32.mrf.mxu1  ;;  %v3559_v44 = vld [vmem:[%s8794_s6 + $0x141] sm:$0xff]  ;;  %v2113_v11 = vld [vmem:[%s8794_s6 + $0x12d] sm:$0xff] }
 0x338   : > { %8455 = vmatmul.msk.f32.gmra.mxu3 %vm288_vm1, %v3559_v44 }
 0x339   : > { %v3928_v2 = vadd.f32 %v9797_v16, %v3446_v47  ;;  %v8540_v16 = vld [vmem:[%s11065_s2 + $0x150] sm:$0xff] }
 0x33a   : > { %v2329_v34 = vpop.f32.mrf.mxu0  ;;  %5328 = vmatpush.msra.mxu3 %v8540_v16  ;;  %v2442_v16 = vld [vmem:[#allocation2 + $0xa0] sm:$0xff] }
 0x33b   : > { %v2483_v61 = vadd.f32 %v2437_v41, %v2329_v34  ;;  %3974 = vst [vmem:[#allocation2 + $0x70] sm:$0xff] %v3928_v2  ;;  %8359 = vmatmul.msk.f32.gmra.mxu1 %vm288_vm1, %v2595_v14  ;;  %v9937_v24 = vpop.f32.mrf.mxu3  ;;  %v3563_v34 = vld [vmem:[%s8794_s6 + $0x161] sm:$0xff]  ;;  %v2114_v14 = vld [vmem:[%s8794_s6 + $0x135] sm:$0xff] }
 0x33c   : > { %8410 = vmatmul.msk.f32.gmra.mxu2 %vm288_vm1, %v3080_v26  ;;  %v8522_v41 = vld [vmem:[%s11065_s2 + $0xc0] sm:$0xff] }
 0x33d   : > { %8307 = vmatmul.msk.f32.gmra.mxu0 %vm288_vm1, %v2109_v37  ;;  %v2965_v63 = vadd.f32 %v9806_v48, %v2483_v61  ;;  %v9933_v59 = vpop.f32.mrf.mxu2  ;;  %5016 = vmatpush.msra.mxu2 %v8522_v41  ;;  %v2599_v37 = vld [vmem:[%s8794_s6 + $0x14e] sm:$0xff] }
 0x33e   : > { %v2118_v41 = vld [vmem:[%s8794_s6 + $0x155] sm:$0xff] }
 0x33f   : > { %v3447_v6 = vadd.f32 %v9813_v58, %v2965_v63  ;;  %v9903_v9 = vpop.f32.mrf.mxu1  ;;  %v3560_v58 = vld [vmem:[%s8794_s6 + $0x149] sm:$0xff] }
 0x340   : > { %8456 = vmatmul.msk.f32.gmra.mxu3 %vm288_vm1, %v3560_v58 }
 0x341   : > { %v3929_v36 = vadd.f32 %v9817_v8, %v3447_v6  ;;  %v4768_v8 = vld [vmem:[%s11065_s2 + $0x48] sm:$0xff] }
 0x342   : > { %v2332_v48 = vpop.f32.mrf.mxu0  ;;  %4781 = vmatpush.msra.mxu1 %v4768_v8  ;;  %v3082_v6 = vld [vmem:[%s8794_s6 + $0x168] sm:$0xff] }
 0x343   : > { %v2484_v46 = vadd.f32 %v2438_v29, %v2332_v48  ;;  %3975 = vst [vmem:[#allocation2 + $0x78] sm:$0xff] %v3929_v36  ;;  %8360 = vmatmul.msk.f32.gmra.mxu1 %vm288_vm1, %v2596_v19  ;;  %v2443_v8 = vld [vmem:[#allocation2 + $0xa8] sm:$0xff]  ;;  %v2115_v19 = vld [vmem:[%s8794_s6 + $0x13d] sm:$0xff] }
 0x344   : > { %8411 = vmatmul.msk.f32.gmra.mxu2 %vm288_vm1, %v3081_v4 }
 0x345   : > { %8308 = vmatmul.msk.f32.gmra.mxu0 %vm288_vm1, %v2110_v55  ;;  %v2966_v39 = vadd.f32 %v9823_v52, %v2484_v46  ;;  %v9953_v18 = vpop.f32.mrf.mxu2 }
 0x347   : > { %v3448_v1 = vadd.f32 %v9833_v27, %v2966_v39  ;;  %v9926_v27 = vpop.f32.mrf.mxu1  ;;  %v9957_v30 = vpop.f32.mrf.mxu3 }
 0x348   : > { %8457 = vmatmul.msk.f32.gmra.mxu3 %vm288_vm1, %v3561_v13  ;;  %v2444_v13 = vld [vmem:[#allocation2 + $0xb0] sm:$0xff] }
 0x349   : > { %v3930_v52 = vadd.f32 %v9837_v31, %v3448_v1  ;;  %v3083_v1 = vld [vmem:[%s8794_s6 + $0x170] sm:$0xff] }
 0x34a   : > { %v2335_v20 = vpop.f32.mrf.mxu0 }
 0x34b   : > { %v2485_v43 = vadd.f32 %v2439_v50, %v2335_v20  ;;  %3976 = vst [vmem:[#allocation2 + $0x80] sm:$0xff] %v3930_v52  ;;  %8361 = vmatmul.msk.f32.gmra.mxu1 %vm288_vm1, %v2597_v5  ;;  %v2601_v50 = vld [vmem:[%s8794_s6 + $0x15e] sm:$0xff] }
 0x34c   : > { %8412 = vmatmul.msk.f32.gmra.mxu2 %vm288_vm1, %v3082_v6  ;;  %v3084_v5 = vld [vmem:[%s8794_s6 + $0x178] sm:$0xff] }
 0x34d   : > { %8309 = vmatmul.msk.f32.gmra.mxu0 %vm288_vm1, %v2111_v42  ;;  %v2967_v31 = vadd.f32 %v9843_v23, %v2485_v43  ;;  %v9976_v10 = vpop.f32.mrf.mxu2 }
 0x34f   : > { %v3449_v15 = vadd.f32 %v9853_v25, %v2967_v31  ;;  %v9943_v45 = vpop.f32.mrf.mxu1  ;;  %v3562_v25 = vld [vmem:[%s8794_s6 + $0x159] sm:$0xff]  ;;  %v2116_v31 = vld [vmem:[%s8794_s6 + $0x145] sm:$0xff] }
 0x350   : > { %8458 = vmatmul.msk.f32.gmra.mxu3 %vm288_vm1, %v3562_v25 }
 0x351   : > { %v3931_v56 = vadd.f32 %v9857_v62, %v3449_v15  ;;  %v8539_v62 = vld [vmem:[%s11065_s2 + $0x148] sm:$0xff] }
 0x352   : > { %v2338_v22 = vpop.f32.mrf.mxu0  ;;  %5329 = vmatpush.msra.mxu3 %v8539_v62  ;;  %v2445_v62 = vld [vmem:[#allocation2 + $0xb8] sm:$0xff] }
 0x353   : > { %v2486_v23 = vadd.f32 %v2440_v21, %v2338_v22  ;;  %3977 = vst [vmem:[#allocation2 + $0x88] sm:$0xff] %v3931_v56  ;;  %8362 = vmatmul.msk.f32.gmra.mxu1 %vm288_vm1, %v2598_v60  ;;  %v4766_v56 = vld [vmem:[%s11065_s2 + $0x38] sm:$0xff]  ;;  %v2117_v60 = vld [vmem:[%s8794_s6 + $0x14d] sm:$0xff] }
 0x354   : > { %8413 = vmatmul.msk.f32.gmra.mxu2 %vm288_vm1, %v3083_v1  ;;  %v3566_v22 = vld [vmem:[%s8794_s6 + $0x179] sm:$0xff] }
 0x355   : > { %8310 = vmatmul.msk.f32.gmra.mxu0 %vm288_vm1, %v2112_v40  ;;  %v2968_v12 = vadd.f32 %v9866_v53, %v2486_v23  ;;  %v9993_v55 = vpop.f32.mrf.mxu2  ;;  %v8521_v21 = vld [vmem:[%s11065_s2 + $0xb8] sm:$0xff]  ;;  %v2602_v40 = vld [vmem:[%s8794_s6 + $0x166] sm:$0xff] }
 0x356   : > { %5017 = vmatpush.msra.mxu2 %v8521_v21 }
 0x357   : > { %v3450_v54 = vadd.f32 %v9873_v38, %v2968_v12  ;;  %v9963_v2 = vpop.f32.mrf.mxu1 }
 0x358   : > { %8459 = vmatmul.msk.f32.gmra.mxu3 %vm288_vm1, %v3563_v34 }
 0x359   : > { %v3932_v33 = vadd.f32 %v9877_v17, %v3450_v54  ;;  %v4767_v17 = vld [vmem:[%s11065_s2 + $0x40] sm:$0xff] }
 0x35a   : > { %v2341_v53 = vpop.f32.mrf.mxu0  ;;  %4782 = vmatpush.msra.mxu1 %v4767_v17  ;;  %v3085_v54 = vld [vmem:[%s8794_s6 + $0x180] sm:$0xff] }
 0x35b   : > { %v2487_v47 = vadd.f32 %v2441_v28, %v2341_v53  ;;  %3978 = vst [vmem:[#allocation2 + $0x90] sm:$0xff] %v3932_v33  ;;  %8363 = vmatmul.msk.f32.gmra.mxu1 %vm288_vm1, %v2599_v37  ;;  %v2446_v17 = vld [vmem:[#allocation2 + $0xc0] sm:$0xff]  ;;  %v3086_v37 = vld [vmem:[%s8794_s6 + $0x188] sm:$0xff] }
 0x35c   : > { %8414 = vmatmul.msk.f32.gmra.mxu2 %vm288_vm1, %v3084_v5  ;;  %4783 = vmatpush.msra.mxu1 %v4766_v56  ;;  %v2449_v56 = vld [vmem:[#allocation2 + $0xd8] sm:$0xff] }
 0x35d   : > { %8311 = vmatmul.msk.f32.gmra.mxu0 %vm288_vm1, %v2113_v11  ;;  %v2969_v38 = vadd.f32 %v9883_v3, %v2487_v47  ;;  %v9980_v3 = vpop.f32.mrf.mxu3  ;;  %v10013_v42 = vpop.f32.mrf.mxu2 }
 0x35f   : > { %v3451_v61 = vadd.f32 %v9893_v49, %v2969_v38  ;;  %v9986_v48 = vpop.f32.mrf.mxu1  ;;  %v3564_v49 = vld [vmem:[%s8794_s6 + $0x169] sm:$0xff] }
 0x360   : > { %8460 = vmatmul.msk.f32.gmra.mxu3 %vm288_vm1, %v3564_v49  ;;  %v2447_v49 = vld [vmem:[#allocation2 + $0xc8] sm:$0xff] }
 0x361   : > { %v3933_v44 = vadd.f32 %v9897_v32, %v3451_v61  ;;  %v2600_v32 = vld [vmem:[%s8794_s6 + $0x156] sm:$0xff] }
 0x362   : > { %v2344_v63 = vpop.f32.mrf.mxu0 }
 0x363   : > { %v2488_v36 = vadd.f32 %v2442_v16, %v2344_v63  ;;  %3979 = vst [vmem:[#allocation2 + $0x98] sm:$0xff] %v3933_v44  ;;  %8364 = vmatmul.msk.f32.gmra.mxu1 %vm288_vm1, %v2600_v32  ;;  %v2604_v63 = vld [vmem:[%s8794_s6 + $0x176] sm:$0xff] }
 0x364   : > { %8415 = vmatmul.msk.f32.gmra.mxu2 %vm288_vm1, %v3085_v54  ;;  %v3087_v32 = vld [vmem:[%s8794_s6 + $0x190] sm:$0xff]  ;;  %v4764_v54 = vld [vmem:[%s11065_s2 + $0x28] sm:$0xff] }
 0x365   : > { %8312 = vmatmul.msk.f32.gmra.mxu0 %vm288_vm1, %v2114_v14  ;;  %v2970_v29 = vadd.f32 %v9903_v9, %v2488_v36  ;;  %v9997_v46 = vpop.f32.mrf.mxu3  ;;  %v10036_v26 = vpop.f32.mrf.mxu2 }
 0x367   : > { %v3452_v7 = vadd.f32 %v9913_v0, %v2970_v29  ;;  %v10003_v52 = vpop.f32.mrf.mxu1  ;;  %v3565_v0 = vld [vmem:[%s8794_s6 + $0x171] sm:$0xff]  ;;  %v2119_v29 = vld [vmem:[%s8794_s6 + $0x15d] sm:$0xff] }
 0x368   : > { %8461 = vmatmul.msk.f32.gmra.mxu3 %vm288_vm1, %v3565_v0 }
 0x369   : > { %v3934_v58 = vadd.f32 %v9917_v35, %v3452_v7  ;;  %v8538_v35 = vld [vmem:[%s11065_s2 + $0x140] sm:$0xff] }
 0x36a   : > { %v2347_v39 = vpop.f32.mrf.mxu0  ;;  %5330 = vmatpush.msra.mxu3 %v8538_v35 }
 0x36b   : > { %v2489_v9 = vadd.f32 %v2443_v8, %v2347_v39  ;;  %3980 = vst [vmem:[#allocation2 + $0xa0] sm:$0xff] %v3934_v58  ;;  %8365 = vmatmul.msk.f32.gmra.mxu1 %vm288_vm1, %v2601_v50  ;;  %v4765_v58 = vld [vmem:[%s11065_s2 + $0x30] sm:$0xff] }
 0x36c   : > { %8416 = vmatmul.msk.f32.gmra.mxu2 %vm288_vm1, %v3086_v37  ;;  %4784 = vmatpush.msra.mxu1 %v4765_v58  ;;  %v3569_v39 = vld [vmem:[%s8794_s6 + $0x191] sm:$0xff] }
 0x36d   : > { %8313 = vmatmul.msk.f32.gmra.mxu0 %vm288_vm1, %v2115_v19  ;;  %v2971_v20 = vadd.f32 %v9926_v27, %v2489_v9  ;;  %v10017_v43 = vpop.f32.mrf.mxu3  ;;  %v10053_v11 = vpop.f32.mrf.mxu2  ;;  %v8520_v8 = vld [vmem:[%s11065_s2 + $0xb0] sm:$0xff]  ;;  %v2605_v19 = vld [vmem:[%s8794_s6 + $0x17e] sm:$0xff] }
 0x36e   : > { %5018 = vmatpush.msra.mxu2 %v8520_v8  ;;  %v2448_v50 = vld [vmem:[#allocation2 + $0xd0] sm:$0xff]  ;;  %4785 = vmatpush.msra.mxu1 %v4764_v54  ;;  %v8518_v8 = vld [vmem:[%s11065_s2 + $0xa0] sm:$0xff] }
 0x36f   : > { %v3453_v57 = vadd.f32 %v9933_v59, %v2971_v20  ;;  %v10026_v59 = vpop.f32.mrf.mxu1  ;;  %v4007_v58 = vld [vmem:[%s8794_s6 + $0x32] sm:$0xff] }
 0x370   : > { %8462 = vmatmul.msk.f32.gmra.mxu3 %vm288_vm1, %v3566_v22 }
 0x371   : > { %v3935_v51 = vadd.f32 %v9937_v24, %v3453_v57 }
 0x372   : > { %v2350_v27 = vpop.f32.mrf.mxu0 }
 0x373   : > { %v2490_v15 = vadd.f32 %v2444_v13, %v2350_v27  ;;  %3981 = vst [vmem:[#allocation2 + $0xa8] sm:$0xff] %v3935_v51  ;;  %8366 = vmatmul.msk.f32.gmra.mxu1 %vm288_vm1, %v2602_v40 }
 0x374   : > { %8417 = vmatmul.msk.f32.gmra.mxu2 %vm288_vm1, %v3087_v32 }
 0x375   : > { %8314 = vmatmul.msk.f32.gmra.mxu0 %vm288_vm1, %v2116_v31  ;;  %v2972_v24 = vadd.f32 %v9943_v45, %v2490_v15  ;;  %v10040_v25 = vpop.f32.mrf.mxu3  ;;  %v10073_v16 = vpop.f32.mrf.mxu2 }
 0x377   : > { %v3454_v23 = vadd.f32 %v9953_v18, %v2972_v24  ;;  %v10046_v53 = vpop.f32.mrf.mxu1  ;;  %v3567_v18 = vld [vmem:[%s8794_s6 + $0x181] sm:$0xff]  ;;  %v8536_v24 = vld [vmem:[%s11065_s2 + $0x130] sm:$0xff] }
 0x378   : > { %8463 = vmatmul.msk.f32.gmra.mxu3 %vm288_vm1, %v3567_v18 }
 0x379   : > { %v3936_v45 = vadd.f32 %v9957_v30, %v3454_v23  ;;  %v2603_v30 = vld [vmem:[%s8794_s6 + $0x16e] sm:$0xff] }
 0x37a   : > { %v2353_v12 = vpop.f32.mrf.mxu0 }
 0x37b   : > { %v2491_v33 = vadd.f32 %v2445_v62, %v2353_v12  ;;  %3982 = vst [vmem:[#allocation2 + $0xb0] sm:$0xff] %v3936_v45  ;;  %8367 = vmatmul.msk.f32.gmra.mxu1 %vm288_vm1, %v2603_v30  ;;  %v2450_v45 = vld [vmem:[#allocation2 + $0xe0] sm:$0xff]  ;;  %v2122_v12 = vld [vmem:[%s8794_s6 + $0x175] sm:$0xff] }
 0x37d   : > { %8315 = vmatmul.msk.f32.gmra.mxu0 %vm288_vm1, %v2117_v60  ;;  %v2973_v28 = vadd.f32 %v9963_v2, %v2491_v33  ;;  %v10057_v47 = vpop.f32.mrf.mxu3  ;;  %v3335_v1 = vpop.f32.mrf.mxu2 }
 0x37f   : > { %v3455_v4 = vadd.f32 %v9976_v10, %v2973_v28  ;;  %v10063_v61 = vpop.f32.mrf.mxu1  ;;  %v3568_v10 = vld [vmem:[%s8794_s6 + $0x189] sm:$0xff] }
 0x380   : > { %8464 = vmatmul.msk.f32.gmra.mxu3 %vm288_vm1, %v3568_v10  ;;  %v2452_v10 = vld [vmem:[#allocation2 + $0xf0] sm:$0xff] }
 0x381   : > { %v3937_v34 = vadd.f32 %v9980_v3, %v3455_v4  ;;  %v8537_v3 = vld [vmem:[%s11065_s2 + $0x138] sm:$0xff]  ;;  %v2451_v4 = vld [vmem:[#allocation2 + $0xe8] sm:$0xff] }
 0x382   : > { %v2356_v38 = vpop.f32.mrf.mxu0  ;;  %5331 = vmatpush.msra.mxu3 %v8537_v3 }
 0x383   : > { %v2492_v2 = vadd.f32 %v2446_v17, %v2356_v38  ;;  %3983 = vst [vmem:[#allocation2 + $0xb8] sm:$0xff] %v3937_v34  ;;  %8368 = vmatmul.msk.f32.gmra.mxu1 %vm288_vm1, %v2604_v63 }
 0x384   : > { %5332 = vmatpush.msra.mxu3 %v8536_v24 }
 0x385   : > { %8316 = vmatmul.msk.f32.gmra.mxu0 %vm288_vm1, %v2118_v41  ;;  %v2974_v44 = vadd.f32 %v9986_v48, %v2492_v2  ;;  %v10077_v6 = vpop.f32.mrf.mxu3  ;;  %v3338_v13 = vpop.f32.mrf.mxu2 }
 0x387   : > { %v3456_v14 = vadd.f32 %v9993_v55, %v2974_v44  ;;  %v2853_v55 = vpop.f32.mrf.mxu1  ;;  %v4006_v44 = vld [vmem:[%s8794_s6 + $0x2a] sm:$0xff] }
 0x388   : > { %8465 = vmatmul.msk.f32.gmra.mxu3 %vm288_vm1, %v3569_v39 }
 0x389   : > { %v3938_v36 = vadd.f32 %v9997_v46, %v3456_v14 }
 0x38a   : > { %v2359_v48 = vpop.f32.mrf.mxu0 }
 0x38b   : > { %v2493_v7 = vadd.f32 %v2447_v49, %v2359_v48  ;;  %3984 = vst [vmem:[#allocation2 + $0xc0] sm:$0xff] %v3938_v36  ;;  %8369 = vmatmul.msk.f32.gmra.mxu1 %vm288_vm1, %v2605_v19  ;;  %v4763_v36 = vld [vmem:[%s11065_s2 + $0x20] sm:$0xff] }
 0x38c   : > { %4786 = vmatpush.msra.mxu1 %v4763_v36 }
 0x38d   : > { %8317 = vmatmul.msk.f32.gmra.mxu0 %vm288_vm1, %v2119_v29  ;;  %v2975_v46 = vadd.f32 %v10003_v52, %v2493_v7  ;;  %v3817_v0 = vpop.f32.mrf.mxu3  ;;  %v2120_v52 = vld [vmem:[%s8794_s6 + $0x165] sm:$0xff]  ;;  %v2453_v7 = vld [vmem:[#allocation2 + $0xf8] sm:$0xff] }
 0x38f   : > { %v3457_v9 = vadd.f32 %v10013_v42, %v2975_v46  ;;  %v2856_v51 = vpop.f32.mrf.mxu1 }
 0x391   : > { %v3939_v20 = vadd.f32 %v10017_v43, %v3457_v9  ;;  %v2121_v43 = vld [vmem:[%s8794_s6 + $0x16d] sm:$0xff] }
 0x392   : > { %v2362_v35 = vpop.f32.mrf.mxu0 }
 0x393   : > { %v2494_v57 = vadd.f32 %v2448_v50, %v2362_v35  ;;  %3985 = vst [vmem:[#allocation2 + $0xc8] sm:$0xff] %v3939_v20  ;;  %v2454_v35 = vld [vmem:[#allocation2 + $0x100] sm:$0xff] }
 0x394   : > { %v4008_v50 = vld [vmem:[%s8794_s6 + $0x3a] sm:$0xff] }
 0x395   : > { %8318 = vmatmul.msk.f32.gmra.mxu0 %vm288_vm1, %v2120_v52  ;;  %v2976_v27 = vadd.f32 %v10026_v59, %v2494_v57  ;;  %v3820_v42 = vpop.f32.mrf.mxu3 }
 0x397   : > { %v3458_v31 = vadd.f32 %v10036_v26, %v2976_v27  ;;  %v2859_v21 = vpop.f32.mrf.mxu1  ;;  %v3341_v26 = vpop.f32.mrf.mxu2 }
 0x399   : > { %v3940_v5 = vadd.f32 %v10040_v25, %v3458_v31 }
 0x39a   : > { %v2365_v15 = vpop.f32.mrf.mxu0 }
 0x39b   : > { %v2495_v22 = vadd.f32 %v2449_v56, %v2365_v15  ;;  %3986 = vst [vmem:[#allocation2 + $0xd0] sm:$0xff] %v3940_v5  ;;  %v2455_v5 = vld [vmem:[#allocation2 + $0x108] sm:$0xff] }
 0x39c   : > { %v4009_v15 = vld [vmem:[%s8794_s6 + $0x42] sm:$0xff] }
 0x39d   : > { %8319 = vmatmul.msk.f32.gmra.mxu0 %vm288_vm1, %v2121_v43  ;;  %v2977_v59 = vadd.f32 %v10046_v53, %v2495_v22  ;;  %v3823_v62 = vpop.f32.mrf.mxu3  ;;  %v8519_v53 = vld [vmem:[%s11065_s2 + $0xa8] sm:$0xff]  ;;  %v8534_v22 = vld [vmem:[%s11065_s2 + $0x120] sm:$0xff] }
 0x39e   : > { %5019 = vmatpush.msra.mxu2 %v8519_v53 }
 0x39f   : > { %v3459_v40 = vadd.f32 %v10053_v11, %v2977_v59  ;;  %v2862_v28 = vpop.f32.mrf.mxu1  ;;  %v3344_v34 = vpop.f32.mrf.mxu2  ;;  %v4762_v59 = vld [vmem:[%s11065_s2 + $0x18] sm:$0xff] }
 0x3a0   : > { %5020 = vmatpush.msra.mxu2 %v8518_v8  ;;  %4787 = vmatpush.msra.mxu1 %v4762_v59 }
 0x3a1   : > { %v3941_v23 = vadd.f32 %v10057_v47, %v3459_v40  ;;  %v2123_v47 = vld [vmem:[%s8794_s6 + $0x17d] sm:$0xff] }
 0x3a2   : > { %v2368_v25 = vpop.f32.mrf.mxu0 }
 0x3a3   : > { %v2496_v60 = vadd.f32 %v2450_v45, %v2368_v25  ;;  %3987 = vst [vmem:[#allocation2 + $0xd8] sm:$0xff] %v3941_v23  ;;  %v2456_v25 = vld [vmem:[#allocation2 + $0x110] sm:$0xff] }
 0x3a4   : > { %v4010_v45 = vld [vmem:[%s8794_s6 + $0x4a] sm:$0xff] }
 0x3a5   : > { %8320 = vmatmul.msk.f32.gmra.mxu0 %vm288_vm1, %v2122_v12  ;;  %v2978_v33 = vadd.f32 %v10063_v61, %v2496_v60  ;;  %v3826_v17 = vpop.f32.mrf.mxu3  ;;  %v8517_v60 = vld [vmem:[%s11065_s2 + $0x98] sm:$0xff] }
 0x3a6   : > { %5021 = vmatpush.msra.mxu2 %v8517_v60 }
 0x3a7   : > { %v3460_v18 = vadd.f32 %v10073_v16, %v2978_v33  ;;  %v8535_v16 = vld [vmem:[%s11065_s2 + $0x128] sm:$0xff]  ;;  %v3347_v14 = vpop.f32.mrf.mxu2 }
 0x3a8   : > { %v2865_v3 = vpop.f32.mrf.mxu1  ;;  %5333 = vmatpush.msra.mxu3 %v8535_v16 }
 0x3a9   : > { %v3942_v30 = vadd.f32 %v10077_v6, %v3460_v18 }
 0x3aa   : > { %v2371_v11 = vpop.f32.mrf.mxu0  ;;  %5334 = vmatpush.msra.mxu3 %v8534_v22 }
 0x3ab   : > { %v2497_v38 = vadd.f32 %v2451_v4, %v2371_v11  ;;  %3988 = vst [vmem:[#allocation2 + $0xe0] sm:$0xff] %v3942_v30  ;;  %v2457_v30 = vld [vmem:[#allocation2 + $0x118] sm:$0xff] }
 0x3ac   : > { %v4011_v11 = vld [vmem:[%s8794_s6 + $0x52] sm:$0xff] }
 0x3ad   : > { %8321 = vmatmul.msk.f32.gmra.mxu0 %vm288_vm1, %v2123_v47  ;;  %v2979_v41 = vadd.f32 %v2853_v55, %v2497_v38  ;;  %v3829_v48 = vpop.f32.mrf.mxu3 }
 0x3af   : > { %v3461_v37 = vadd.f32 %v3335_v1, %v2979_v41  ;;  %v3350_v19 = vpop.f32.mrf.mxu2 }
 0x3b0   : > { %v2868_v39 = vpop.f32.mrf.mxu1 }
 0x3b1   : > { %v3943_v2 = vadd.f32 %v3817_v0, %v3461_v37 }
 0x3b2   : > { %v2374_v61 = vpop.f32.mrf.mxu0 }
 0x3b3   : > { %v2498_v63 = vadd.f32 %v2452_v10, %v2374_v61  ;;  %3989 = vst [vmem:[#allocation2 + $0xe8] sm:$0xff] %v3943_v2  ;;  %v2458_v10 = vld [vmem:[#allocation2 + $0x120] sm:$0xff] }
 0x3b5   : > { %8468 = vmatmul.msk.f32.vlgmr.msrb.gmra.mxu0 %vm288_vm1, %v4006_v44  ;;  %v2980_v6 = vadd.f32 %v2856_v51, %v2498_v63  ;;  %v3832_v9 = vpop.f32.mrf.mxu3  ;;  %v4012_v44 = vld [vmem:[%s8794_s6 + $0x5a] sm:$0xff] }
 0x3b7   : > { %v3462_v49 = vadd.f32 %v3338_v13, %v2980_v6  ;;  %v3353_v13 = vpop.f32.mrf.mxu2 }
 0x3b8   : > { %v2871_v51 = vpop.f32.mrf.mxu1 }
 0x3b9   : > { %v3944_v29 = vadd.f32 %v3820_v42, %v3462_v49 }
 0x3ba   : > { %v2377_v32 = vpop.f32.mrf.mxu0 }
 0x3bb   : > { %v2499_v55 = vadd.f32 %v2453_v7, %v2377_v32  ;;  %3990 = vst [vmem:[#allocation2 + $0xf0] sm:$0xff] %v3944_v29  ;;  %v2459_v32 = vld [vmem:[#allocation2 + $0x128] sm:$0xff] }
 0x3bc   : > { %v4013_v7 = vld [vmem:[%s8794_s6 + $0x62] sm:$0xff] }
 0x3bd   : > { %8469 = vmatmul.msk.f32.gmra.mxu0 %vm288_vm1, %v4007_v58  ;;  %v2981_v46 = vadd.f32 %v2859_v21, %v2499_v55  ;;  %v3835_v56 = vpop.f32.mrf.mxu3  ;;  %v8516_v55 = vld [vmem:[%s11065_s2 + $0x90] sm:$0xff] }
 0x3be   : > { %5022 = vmatpush.msra.mxu2 %v8516_v55 }
 0x3bf   : > { %v3463_v1 = vadd.f32 %v3341_v26, %v2981_v46  ;;  %v3356_v12 = vpop.f32.mrf.mxu2 }
 0x3c0   : > { %v2874_v40 = vpop.f32.mrf.mxu1 }
 0x3c1   : > { %v3945_v0 = vadd.f32 %v3823_v62, %v3463_v1 }
 0x3c2   : > { %v2380_v20 = vpop.f32.mrf.mxu0 }
 0x3c3   : > { %v2500_v52 = vadd.f32 %v2454_v35, %v2380_v20  ;;  %3991 = vst [vmem:[#allocation2 + $0xf8] sm:$0xff] %v3945_v0  ;;  %v2460_v0 = vld [vmem:[#allocation2 + $0x130] sm:$0xff] }
 0x3c4   : > { %v4014_v20 = vld [vmem:[%s8794_s6 + $0x6a] sm:$0xff] }
 0x3c5   : > { %8470 = vmatmul.msk.f32.gmra.mxu0 %vm288_vm1, %v4008_v50  ;;  %v2982_v57 = vadd.f32 %v2862_v28, %v2500_v52  ;;  %v3838_v54 = vpop.f32.mrf.mxu3 }
 0x3c7   : > { %v3464_v27 = vadd.f32 %v3344_v34, %v2982_v57  ;;  %v3359_v34 = vpop.f32.mrf.mxu2  ;;  %v8532_v57 = vld [vmem:[%s11065_s2 + $0x110] sm:$0xff] }
 0x3c8   : > { %v2877_v4 = vpop.f32.mrf.mxu1 }
 0x3c9   : > { %v3946_v31 = vadd.f32 %v3826_v17, %v3464_v27  ;;  %v8533_v17 = vld [vmem:[%s11065_s2 + $0x118] sm:$0xff] }
 0x3ca   : > { %v2383_v42 = vpop.f32.mrf.mxu0  ;;  %5335 = vmatpush.msra.mxu3 %v8533_v17 }
 0x3cb   : > { %v2501_v43 = vadd.f32 %v2455_v5, %v2383_v42  ;;  %3992 = vst [vmem:[#allocation2 + $0x100] sm:$0xff] %v3946_v31  ;;  %v2461_v42 = vld [vmem:[#allocation2 + $0x138] sm:$0xff] }
 0x3cc   : > { %5336 = vmatpush.msra.mxu3 %v8532_v57  ;;  %v4015_v5 = vld [vmem:[%s8794_s6 + $0x72] sm:$0xff] }
 0x3cd   : > { %8471 = vmatmul.msk.f32.gmra.mxu0 %vm288_vm1, %v4009_v15  ;;  %v2983_v24 = vadd.f32 %v2865_v3, %v2501_v43  ;;  %v3841_v41 = vpop.f32.mrf.mxu3 }
 0x3cf   : > { %v3465_v21 = vadd.f32 %v3347_v14, %v2983_v24  ;;  %v4761_v14 = vld [vmem:[%s11065_s2 + $0x10] sm:$0xff]  ;;  %v3362_v6 = vpop.f32.mrf.mxu2  ;;  %v4760_v24 = vld [vmem:[%s11065_s2 + $0x8] sm:$0xff] }
 0x3d0   : > { %v2880_v63 = vpop.f32.mrf.mxu1  ;;  %4788 = vmatpush.msra.mxu1 %v4761_v14 }
 0x3d1   : > { %v3947_v26 = vadd.f32 %v3829_v48, %v3465_v21 }
 0x3d2   : > { %v2386_v23 = vpop.f32.mrf.mxu0  ;;  %4789 = vmatpush.msra.mxu1 %v4760_v24  ;;  %v8561_v24 = vld [vmem:[%s11065_s2 + $0x1f8] sm:$0xff] }
 0x3d3   : > { %v2502_v62 = vadd.f32 %v2456_v25, %v2386_v23  ;;  %3993 = vst [vmem:[#allocation2 + $0x108] sm:$0xff] %v3947_v26  ;;  %v2462_v26 = vld [vmem:[#allocation2 + $0x140] sm:$0xff] }
 0x3d4   : > { %v4016_v23 = vld [vmem:[%s8794_s6 + $0x7a] sm:$0xff] }
 0x3d5   : > { %8472 = vmatmul.msk.f32.gmra.mxu0 %vm288_vm1, %v4010_v45  ;;  %v2984_v33 = vadd.f32 %v2868_v39, %v2502_v62  ;;  %v3844_v48 = vpop.f32.mrf.mxu3 }
 0x3d7   : > { %v3466_v53 = vadd.f32 %v3350_v19, %v2984_v33  ;;  %v3365_v19 = vpop.f32.mrf.mxu2 }
 0x3d8   : > { %v2883_v46 = vpop.f32.mrf.mxu1 }
 0x3d9   : > { %v3948_v18 = vadd.f32 %v3832_v9, %v3466_v53 }
 0x3da   : > { %v2389_v28 = vpop.f32.mrf.mxu0 }
 0x3db   : > { %v2503_v47 = vadd.f32 %v2457_v30, %v2389_v28  ;;  %3994 = vst [vmem:[#allocation2 + $0x110] sm:$0xff] %v3948_v18  ;;  %v2463_v28 = vld [vmem:[#allocation2 + $0x148] sm:$0xff] }
 0x3dc   : > { %v4017_v30 = vld [vmem:[%s8794_s6 + $0x82] sm:$0xff] }
 0x3dd   : > { %8473 = vmatmul.msk.f32.gmra.mxu0 %vm288_vm1, %v4011_v11  ;;  %v2985_v38 = vadd.f32 %v2871_v51, %v2503_v47  ;;  %v3847_v35 = vpop.f32.mrf.mxu3 }
 0x3df   : > { %v3467_v37 = vadd.f32 %v3353_v13, %v2985_v38  ;;  %v3368_v15 = vpop.f32.mrf.mxu2 }
 0x3e0   : > { %v2886_v27 = vpop.f32.mrf.mxu1 }
 0x3e1   : > { %v3949_v2 = vadd.f32 %v3835_v56, %v3467_v37 }
 0x3e2   : > { %v2392_v61 = vpop.f32.mrf.mxu0 }
 0x3e3   : > { %v2504_v3 = vadd.f32 %v2458_v10, %v2392_v61  ;;  %3995 = vst [vmem:[#allocation2 + $0x118] sm:$0xff] %v3949_v2  ;;  %v2464_v61 = vld [vmem:[#allocation2 + $0x150] sm:$0xff] }
 0x3e4   : > { %v4018_v10 = vld [vmem:[%s8794_s6 + $0x8a] sm:$0xff] }
 0x3e5   : > { %8474 = vmatmul.msk.f32.gmra.mxu0 %vm288_vm1, %v4012_v44  ;;  %v2986_v16 = vadd.f32 %v2874_v40, %v2504_v3  ;;  %v3850_v43 = vpop.f32.mrf.mxu3 }
 0x3e7   : > { %v3468_v36 = vadd.f32 %v3356_v12, %v2986_v16  ;;  %v8515_v12 = vld [vmem:[%s11065_s2 + $0x88] sm:$0xff]  ;;  %v3371_v62 = vpop.f32.mrf.mxu2  ;;  %v4759_v16 = vld [vmem:[%s11065_s2] sm:$0xff] }
 0x3e8   : > { %v2889_v25 = vpop.f32.mrf.mxu1  ;;  %5023 = vmatpush.msra.mxu2 %v8515_v12  ;;  %4790 = vmatpush.msra.mxu1 %v4759_v16 }
 0x3e9   : > { %v3950_v49 = vadd.f32 %v3838_v54, %v3468_v36  ;;  %v8514_v36 = vld [vmem:[%s11065_s2 + $0x80] sm:$0xff] }
 0x3ea   : > { %v2395_v29 = vpop.f32.mrf.mxu0  ;;  %5024 = vmatpush.msra.mxu2 %v8514_v36  ;;  %5637 = vmatpush.msrb.mxu1 %v8561_v24 }
 0x3eb   : > { %v2505_v58 = vadd.f32 %v2459_v32, %v2395_v29  ;;  %3996 = vst [vmem:[#allocation2 + $0x120] sm:$0xff] %v3950_v49  ;;  %v2465_v29 = vld [vmem:[#allocation2 + $0x158] sm:$0xff] }
 0x3ec   : > { %v4019_v32 = vld [vmem:[%s8794_s6 + $0x92] sm:$0xff] }
 0x3ed   : > { %8475 = vmatmul.msk.f32.gmra.mxu0 %vm288_vm1, %v4013_v7  ;;  %v2987_v39 = vadd.f32 %v2877_v4, %v2505_v58  ;;  %v3853_v54 = vpop.f32.mrf.mxu3 }
 0x3ef   : > { %v3469_v8 = vadd.f32 %v3359_v34, %v2987_v39  ;;  %v8531_v34 = vld [vmem:[%s11065_s2 + $0x108] sm:$0xff]  ;;  %v3374_v38 = vpop.f32.mrf.mxu2 }
 0x3f0   : > { %v2892_v4 = vpop.f32.mrf.mxu1  ;;  %5337 = vmatpush.msra.mxu3 %v8531_v34  ;;  %v4024_v34 = vld [vmem:[%s8794_s6 + $0xba] sm:$0xff] }
 0x3f1   : > { %v3951_v1 = vadd.f32 %v3841_v41, %v3469_v8 }
 0x3f2   : > { %v2398_v9 = vpop.f32.mrf.mxu0 }
 0x3f3   : > { %v2506_v50 = vadd.f32 %v2460_v0, %v2398_v9  ;;  %3997 = vst [vmem:[#allocation2 + $0x128] sm:$0xff] %v3951_v1  ;;  %v2466_v1 = vld [vmem:[#allocation2 + $0x160] sm:$0xff] }
 0x3f4   : > { %v4020_v9 = vld [vmem:[%s8794_s6 + $0x9a] sm:$0xff] }
 0x3f5   : > { %8476 = vmatmul.msk.f32.gmra.mxu0 %vm288_vm1, %v4014_v20  ;;  %v2988_v52 = vadd.f32 %v2880_v63, %v2506_v50  ;;  %v3856_v41 = vpop.f32.mrf.mxu3 }
 0x3f7   : > { %v3470_v51 = vadd.f32 %v3362_v6, %v2988_v52  ;;  %v3377_v6 = vpop.f32.mrf.mxu2  ;;  %v8530_v52 = vld [vmem:[%s11065_s2 + $0x100] sm:$0xff] }
 0x3f8   : > { %v2895_v63 = vpop.f32.mrf.mxu1  ;;  %5338 = vmatpush.msra.mxu3 %v8530_v52 }
 0x3f9   : > { %v3952_v13 = vadd.f32 %v3844_v48, %v3470_v51 }
 0x3fa   : > { %v2401_v31 = vpop.f32.mrf.mxu0 }
 0x3fb   : > { %v2507_v56 = vadd.f32 %v2461_v42, %v2401_v31  ;;  %3998 = vst [vmem:[#allocation2 + $0x130] sm:$0xff] %v3952_v13  ;;  %v2467_v13 = vld [vmem:[#allocation2 + $0x168] sm:$0xff] }
 0x3fc   : > { %v4021_v31 = vld [vmem:[%s8794_s6 + $0xa2] sm:$0xff] }
 0x3fd   : > { %8477 = vmatmul.msk.f32.gmra.mxu0 %vm288_vm1, %v4015_v5  ;;  %v2989_v22 = vadd.f32 %v2883_v46, %v2507_v56  ;;  %v3859_v7 = vpop.f32.mrf.mxu3 }
 0x3ff   : > { %v3471_v59 = vadd.f32 %v3365_v19, %v2989_v22  ;;  %v3380_v0 = vpop.f32.mrf.mxu2 }
 0x400   : > { %v2898_v46 = vpop.f32.mrf.mxu1 }
 0x401   : > { %v3953_v21 = vadd.f32 %v3847_v35, %v3471_v59  ;;  %v8577_v59 = vld [vmem:[%s11065_s2 + $0x278] sm:$0xff] }
 0x402   : > { %v2404_v40 = vpop.f32.mrf.mxu0  ;;  %5951 = vmatpush.msrb.mxu2 %v8577_v59  ;;  %v4357_v59 = vld [vmem:[#allocation2 + $0x38] sm:$0xff] }
 0x403   : > { %v2508_v45 = vadd.f32 %v2462_v26, %v2404_v40  ;;  %3999 = vst [vmem:[#allocation2 + $0x138] sm:$0xff] %v3953_v21  ;;  %v4350_v26 = vld [vmem:[#allocation2] sm:$0xff] }
 0x405   : > { %8478 = vmatmul.msk.f32.gmra.mxu0 %vm288_vm1, %v4016_v23  ;;  %v2990_v60 = vadd.f32 %v2886_v27, %v2508_v45  ;;  %v3862_v35 = vpop.f32.mrf.mxu3  ;;  %v10209_v23 = vstv %s239_s9  ;;  %s8082_s9 = sld [smem:[#allocation3 + $0x1]] }
 0x407   : > { %v3472_v33 = vadd.f32 %v3368_v15, %v2990_v60  ;;  %v3383_v15 = vpop.f32.mrf.mxu2 }
 0x408   : > { %v2901_v42 = vpop.f32.mrf.mxu1 }
 0x409   : > { %v3954_v53 = vadd.f32 %v3850_v43, %v3472_v33  ;;  %v4023_v33 = vld [vmem:[%s8794_s6 + $0xb2] sm:$0xff] }
 0x40a   : > { %v2407_v18 = vpop.f32.mrf.mxu0 }
 0x40b   : > { %v2509_v11 = vadd.f32 %v2463_v28, %v2407_v18  ;;  %4000 = vst [vmem:[#allocation2 + $0x140] sm:$0xff] %v3954_v53 }
 0x40d   : > { %8479 = vmatmul.msk.f32.gmra.mxu0 %vm288_vm1, %v4017_v30  ;;  %v2991_v47 = vadd.f32 %v2889_v25, %v2509_v11  ;;  %v3865_v43 = vpop.f32.mrf.mxu3  ;;  %v4022_v25 = vld [vmem:[%s8794_s6 + $0xaa] sm:$0xff]  ;;  %v8593_v30 = vld [vmem:[%s11065_s2 + $0x2f8] sm:$0xff] }
 0x40e   : > { %v8560_v11 = vld [vmem:[%s11065_s2 + $0x1f0] sm:$0xff]  ;;  %6265 = vmatpush.msrb.mxu3 %v8593_v30 }
 0x40f   : > { %v3473_v17 = vadd.f32 %v3371_v62, %v2991_v47  ;;  %5638 = vmatpush.msrb.mxu1 %v8560_v11  ;;  %v4352_v47 = vld [vmem:[#allocation2 + $0x10] sm:$0xff] }
 0x411   : > { %v3955_v37 = vadd.f32 %v3853_v54, %v3473_v17  ;;  %v4351_v54 = vld [vmem:[#allocation2 + $0x8] sm:$0xff] }
 0x412   : > { %v2410_v2 = vpop.f32.mrf.mxu0 }
 0x413   : > { %v2510_v44 = vadd.f32 %v2464_v61, %v2410_v2  ;;  %4001 = vst [vmem:[#allocation2 + $0x148] sm:$0xff] %v3955_v37  ;;  %v8576_v61 = vld [vmem:[%s11065_s2 + $0x270] sm:$0xff] }
 0x414   : > { %5952 = vmatpush.msrb.mxu2 %v8576_v61 }
 0x415   : > { %8480 = vmatmul.msk.f32.gmra.mxu0 %vm288_vm1, %v4018_v10  ;;  %v2992_v3 = vadd.f32 %v2892_v4, %v2510_v44  ;;  %v4353_v44 = vld [vmem:[#allocation2 + $0x18] sm:$0xff] }
 0x417   : > { %v3474_v14 = vadd.f32 %v3374_v38, %v2992_v3  ;;  %v4025_v3 = vld [vmem:[%s8794_s6 + $0xc2] sm:$0xff] }
 0x419   : > { %v3956_v48 = vadd.f32 %v3856_v41, %v3474_v14 }
 0x41a   : > { %v2413_v49 = vpop.f32.mrf.mxu0 }
 0x41b   : > { %v2511_v58 = vadd.f32 %v2465_v29, %v2413_v49  ;;  %4002 = vst [vmem:[#allocation2 + $0x150] sm:$0xff] %v3956_v48  ;;  %v8592_v48 = vld [vmem:[%s11065_s2 + $0x2f0] sm:$0xff]  ;;  %v4354_v29 = vld [vmem:[#allocation2 + $0x20] sm:$0xff] }
 0x41c   : > { %6266 = vmatpush.msrb.mxu3 %v8592_v48 }
 0x41d   : > { %8481 = vmatmul.msk.f32.gmra.mxu0 %vm288_vm1, %v4019_v32  ;;  %v2993_v55 = vadd.f32 %v2895_v63, %v2511_v58  ;;  %v4026_v32 = vld [vmem:[%s8794_s6 + $0xca] sm:$0xff] }
 0x41f   : > { %v3475_v39 = vadd.f32 %v3377_v6, %v2993_v55 }
 0x421   : > { %v3957_v8 = vadd.f32 %v3859_v7, %v3475_v39 }
 0x422   : > { %v2416_v19 = vpop.f32.mrf.mxu0 }
 0x423   : > { %v2512_v20 = vadd.f32 %v2466_v1, %v2416_v19  ;;  %4003 = vst [vmem:[#allocation2 + $0x158] sm:$0xff] %v3957_v8  ;;  %v8559_v8 = vld [vmem:[%s11065_s2 + $0x1e8] sm:$0xff] }
 0x424   : > { %v8575_v19 = vld [vmem:[%s11065_s2 + $0x268] sm:$0xff]  ;;  %5639 = vmatpush.msrb.mxu1 %v8559_v8 }
 0x425   : > { %8482 = vmatmul.msk.f32.gmra.mxu0 %vm288_vm1, %v4020_v9  ;;  %v2994_v50 = vadd.f32 %v2898_v46, %v2512_v20  ;;  %5953 = vmatpush.msrb.mxu2 %v8575_v19  ;;  %v4355_v9 = vld [vmem:[#allocation2 + $0x28] sm:$0xff]  ;;  %v8589_v19 = vld [vmem:[%s11065_s2 + $0x2d8] sm:$0xff] }
 0x427   : > { %v3476_v57 = vadd.f32 %v3380_v0, %v2994_v50  ;;  %v4027_v0 = vld [vmem:[%s8794_s6 + $0xd2] sm:$0xff] }
 0x429   : > { %v3958_v51 = vadd.f32 %v3862_v35, %v3476_v57 }
 0x42a   : > { %v2419_v27 = vpop.f32.mrf.mxu0 }
 0x42b   : > { %v2513_v5 = vadd.f32 %v2467_v13, %v2419_v27  ;;  %4004 = vst [vmem:[#allocation2 + $0x160] sm:$0xff] %v3958_v51  ;;  %v4356_v27 = vld [vmem:[#allocation2 + $0x30] sm:$0xff]  ;;  %v4028_v13 = vld [vmem:[%s8794_s6 + $0xda] sm:$0xff] }
 0x42d   : > { %8483 = vmatmul.msk.f32.gmra.mxu0 %vm288_vm1, %v4021_v31  ;;  %v2995_v56 = vadd.f32 %v2901_v42, %v2513_v5 }
 0x42f   : > { %v3477_v22 = vadd.f32 %v3383_v15, %v2995_v56 }
 0x431   : > { %v3959_v21 = vadd.f32 %v3865_v43, %v3477_v22  ;;  %v8591_v43 = vld [vmem:[%s11065_s2 + $0x2e8] sm:$0xff]  ;;  %v8558_v22 = vld [vmem:[%s11065_s2 + $0x1e0] sm:$0xff] }
 0x432   : > { %v4212_v40 = vpop.f32.mrf.mxu0  ;;  %6267 = vmatpush.msrb.mxu3 %v8591_v43  ;;  %5640 = vmatpush.msrb.mxu1 %v8558_v22 }
 0x433   : > { %v4396_v45 = vadd.f32 %v4350_v26, %v4212_v40  ;;  %4005 = vst [vmem:[#allocation2 + $0x168] sm:$0xff] %v3959_v21  ;;  %v4029_v21 = vld [vmem:[%s8794_s6 + $0xe2] sm:$0xff] }
 0x435   : > { %vm4534_vm2 = vcmp.gt.f32.partialorder %v4396_v45, 0.0  ;;  %v4581_v12 = vmul.f32 %v10209_v23, %v4396_v45  ;;  %8484 = vmatmul.msk.f32.gmra.mxu0 %vm288_vm1, %v4022_v25 }
 0x437   : > { %v4627_v62 = vsel %vm4534_vm2, %v4396_v45, %v4581_v12 }
 0x438   : > { %4673 = vst [vmem:[#allocation2] sm:$0xff] %v4627_v62  ;;  %4791 = vmatmul.f32.vlgmr.msra.gmra.mxu1 %v4627_v62  ;;  %v8574_v62 = vld [vmem:[%s11065_s2 + $0x260] sm:$0xff] }
 0x439   : > { %5954 = vmatpush.msrb.mxu2 %v8574_v62 }
 0x43a   : > { %v4215_v60 = vpop.f32.mrf.mxu0 }
 0x43b   : > { %v4397_v53 = vadd.f32 %v4351_v54, %v4215_v60  ;;  %v4358_v54 = vld [vmem:[#allocation2 + $0x40] sm:$0xff] }
 0x43d   : > { %vm4535_vm3 = vcmp.gt.f32.partialorder %v4397_v53, 0.0  ;;  %v4582_v18 = vmul.f32 %v10209_v23, %v4397_v53  ;;  %8485 = vmatmul.msk.f32.gmra.mxu0 %vm288_vm1, %v4023_v33  ;;  %v4030_v33 = vld [vmem:[%s8794_s6 + $0xea] sm:$0xff] }
 0x43f   : > { %v4628_v28 = vsel %vm4535_vm3, %v4397_v53, %v4582_v18 }
 0x440   : > { %4674 = vst [vmem:[#allocation2 + $0x8] sm:$0xff] %v4628_v28  ;;  %4794 = vmatmul.f32.gmra.mxu1 %v4628_v28 }
 0x442   : > { %v4218_v4 = vpop.f32.mrf.mxu0 }
 0x443   : > { %v4398_v38 = vadd.f32 %v4352_v47, %v4218_v4  ;;  %v8590_v4 = vld [vmem:[%s11065_s2 + $0x2e0] sm:$0xff] }
 0x444   : > { %6268 = vmatpush.msrb.mxu3 %v8590_v4 }
 0x445   : > { %vm4536_vm4 = vcmp.gt.f32.partialorder %v4398_v38, 0.0  ;;  %v4583_v17 = vmul.f32 %v10209_v23, %v4398_v38  ;;  %8486 = vmatmul.msk.f32.gmra.mxu0 %vm288_vm1, %v4024_v34  ;;  %v4359_v34 = vld [vmem:[#allocation2 + $0x48] sm:$0xff] }
 0x446   : > { %6269 = vmatpush.msrb.mxu3 %v8589_v19 }
 0x447   : > { %v4629_v41 = vsel %vm4536_vm4, %v4398_v38, %v4583_v17  ;;  %v4952_v37 = vld [vmem:[#allocation2 + $0x1] sm:$0xff]  ;;  %v4031_v38 = vld [vmem:[%s8794_s6 + $0xf2] sm:$0xff] }
 0x448   : > { %v5266_v2 = vld [vmem:[#allocation2 + $0x2] sm:$0xff]  ;;  %4675 = vst [vmem:[#allocation2 + $0x10] sm:$0xff] %v4629_v41  ;;  %5025 = vmatmul.f32.vlgmr.msra.gmra.mxu2 %v4952_v37  ;;  %4797 = vmatmul.f32.gmra.mxu1 %v4629_v41 }
 0x449   : > { %5339 = vmatmul.f32.vlgmr.msra.gmra.mxu3 %v5266_v2 }
 0x44a   : > { %v4221_v10 = vpop.f32.mrf.mxu0 }
 0x44b   : > { %v4399_v63 = vadd.f32 %v4353_v44, %v4221_v10  ;;  %v8557_v10 = vld [vmem:[%s11065_s2 + $0x1d8] sm:$0xff] }
 0x44c   : > { %v8573_v44 = vld [vmem:[%s11065_s2 + $0x258] sm:$0xff]  ;;  %5641 = vmatpush.msrb.mxu1 %v8557_v10 }
 0x44d   : > { %vm4537_vm5 = vcmp.gt.f32.partialorder %v4399_v63, 0.0  ;;  %v4584_v16 = vmul.f32 %v10209_v23, %v4399_v63  ;;  %8487 = vmatmul.msk.f32.gmra.mxu0 %vm288_vm1, %v4025_v3  ;;  %5955 = vmatpush.msrb.mxu2 %v8573_v44 }
 0x44f   : > { %v4630_v14 = vsel %vm4537_vm5, %v4399_v63, %v4584_v16  ;;  %v4953_v6 = vld [vmem:[#allocation2 + $0x9] sm:$0xff]  ;;  %v4032_v16 = vld [vmem:[%s8794_s6 + $0xfa] sm:$0xff] }
 0x450   : > { %v5267_v36 = vld [vmem:[#allocation2 + $0xa] sm:$0xff]  ;;  %4676 = vst [vmem:[#allocation2 + $0x18] sm:$0xff] %v4630_v14  ;;  %5028 = vmatmul.f32.gmra.mxu2 %v4953_v6  ;;  %4800 = vmatmul.f32.gmra.mxu1 %v4630_v14 }
 0x451   : > { %5342 = vmatmul.f32.gmra.mxu3 %v5267_v36  ;;  %v4360_v63 = vld [vmem:[#allocation2 + $0x50] sm:$0xff] }
 0x452   : > { %v4224_v49 = vpop.f32.mrf.mxu0 }
 0x453   : > { %v4400_v7 = vadd.f32 %v4354_v29, %v4224_v49 }
 0x455   : > { %vm4538_vm6 = vcmp.gt.f32.partialorder %v4400_v7, 0.0  ;;  %v4585_v58 = vmul.f32 %v10209_v23, %v4400_v7  ;;  %8488 = vmatmul.msk.f32.gmra.mxu0 %vm288_vm1, %v4026_v32  ;;  %v4361_v32 = vld [vmem:[#allocation2 + $0x58] sm:$0xff] }
 0x457   : > { %v4631_v55 = vsel %vm4538_vm6, %v4400_v7, %v4585_v58  ;;  %v4954_v39 = vld [vmem:[#allocation2 + $0x11] sm:$0xff]  ;;  %v4033_v7 = vld [vmem:[%s8794_s6 + $0x102] sm:$0xff] }
 0x458   : > { %v5268_v46 = vld [vmem:[#allocation2 + $0x12] sm:$0xff]  ;;  %4677 = vst [vmem:[#allocation2 + $0x20] sm:$0xff] %v4631_v55  ;;  %5031 = vmatmul.f32.gmra.mxu2 %v4954_v39  ;;  %4803 = vmatmul.f32.gmra.mxu1 %v4631_v55 }
 0x459   : > { %5345 = vmatmul.f32.gmra.mxu3 %v5268_v46 }
 0x45a   : > { %v4227_v1 = vpop.f32.mrf.mxu0 }
 0x45b   : > { %v4401_v20 = vadd.f32 %v4355_v9, %v4227_v1  ;;  %v8556_v1 = vld [vmem:[%s11065_s2 + $0x1d0] sm:$0xff] }
 0x45c   : > { %5642 = vmatpush.msrb.mxu1 %v8556_v1 }
 0x45d   : > { %vm4539_vm7 = vcmp.gt.f32.partialorder %v4401_v20, 0.0  ;;  %v4586_v35 = vmul.f32 %v10209_v23, %v4401_v20  ;;  %8489 = vmatmul.msk.f32.gmra.mxu0 %vm288_vm1, %v4027_v0  ;;  %v4362_v0 = vld [vmem:[#allocation2 + $0x60] sm:$0xff] }
 0x45f   : > { %v4632_v50 = vsel %vm4539_vm7, %v4401_v20, %v4586_v35  ;;  %v4955_v52 = vld [vmem:[#allocation2 + $0x19] sm:$0xff]  ;;  %v4034_v20 = vld [vmem:[%s8794_s6 + $0x10a] sm:$0xff] }
 0x460   : > { %v5269_v57 = vld [vmem:[#allocation2 + $0x1a] sm:$0xff]  ;;  %4678 = vst [vmem:[#allocation2 + $0x28] sm:$0xff] %v4632_v50  ;;  %5034 = vmatmul.f32.gmra.mxu2 %v4955_v52  ;;  %4806 = vmatmul.f32.gmra.mxu1 %v4632_v50 }
 0x461   : > { %5348 = vmatmul.f32.gmra.mxu3 %v5269_v57 }
 0x462   : > { %v4230_v51 = vpop.f32.mrf.mxu0 }
 0x463   : > { %v4402_v31 = vadd.f32 %v4356_v27, %v4230_v51  ;;  %v8572_v27 = vld [vmem:[%s11065_s2 + $0x250] sm:$0xff] }
 0x464   : > { %5956 = vmatpush.msrb.mxu2 %v8572_v27 }
 0x465   : > { %vm4540_vm8 = vcmp.gt.f32.partialorder %v4402_v31, 0.0  ;;  %v4587_v42 = vmul.f32 %v10209_v23, %v4402_v31  ;;  %8490 = vmatmul.msk.f32.gmra.mxu0 %vm288_vm1, %v4028_v13 }
 0x467   : > { %v4633_v5 = vsel %vm4540_vm8, %v4402_v31, %v4587_v42  ;;  %v4956_v15 = vld [vmem:[#allocation2 + $0x21] sm:$0xff]  ;;  %v4035_v42 = vld [vmem:[%s8794_s6 + $0x112] sm:$0xff] }
 0x468   : > { %v5270_v56 = vld [vmem:[#allocation2 + $0x22] sm:$0xff]  ;;  %4679 = vst [vmem:[#allocation2 + $0x30] sm:$0xff] %v4633_v5  ;;  %5037 = vmatmul.f32.gmra.mxu2 %v4956_v15  ;;  %4809 = vmatmul.f32.gmra.mxu1 %v4633_v5 }
 0x469   : > { %5351 = vmatmul.f32.gmra.mxu3 %v5270_v56  ;;  %v4363_v31 = vld [vmem:[#allocation2 + $0x68] sm:$0xff] }
 0x46a   : > { %v4233_v24 = vpop.f32.mrf.mxu0 }
 0x46b   : > { %v4403_v40 = vadd.f32 %v4357_v59, %v4233_v24  ;;  %v8588_v24 = vld [vmem:[%s11065_s2 + $0x2d0] sm:$0xff] }
 0x46c   : > { %6270 = vmatpush.msrb.mxu3 %v8588_v24  ;;  %v8553_v24 = vld [vmem:[%s11065_s2 + $0x1b8] sm:$0xff] }
 0x46d   : > { %vm4541_vm9 = vcmp.gt.f32.partialorder %v4403_v40, 0.0  ;;  %v4588_v26 = vmul.f32 %v10209_v23, %v4403_v40  ;;  %8491 = vmatmul.msk.f32.gmra.mxu0 %vm288_vm1, %v4029_v21  ;;  %v4364_v21 = vld [vmem:[#allocation2 + $0x70] sm:$0xff] }
 0x46f   : > { %v4634_v25 = vsel %vm4541_vm9, %v4403_v40, %v4588_v26  ;;  %v4957_v45 = vld [vmem:[#allocation2 + $0x29] sm:$0xff]  ;;  %v4036_v40 = vld [vmem:[%s8794_s6 + $0x11a] sm:$0xff] }
 0x470   : > { %v5271_v12 = vld [vmem:[#allocation2 + $0x2a] sm:$0xff]  ;;  %4680 = vst [vmem:[#allocation2 + $0x38] sm:$0xff] %v4634_v25  ;;  %5040 = vmatmul.f32.gmra.mxu2 %v4957_v45  ;;  %4812 = vmatmul.f32.gmra.mxu1 %v4634_v25 }
 0x471   : > { %5354 = vmatmul.f32.gmra.mxu3 %v5271_v12 }
 0x472   : > { %v4236_v60 = vpop.f32.mrf.mxu0 }
 0x473   : > { %v4404_v53 = vadd.f32 %v4358_v54, %v4236_v60  ;;  %v8555_v60 = vld [vmem:[%s11065_s2 + $0x1c8] sm:$0xff] }
 0x474   : > { %v8571_v54 = vld [vmem:[%s11065_s2 + $0x248] sm:$0xff]  ;;  %5643 = vmatpush.msrb.mxu1 %v8555_v60 }
 0x475   : > { %vm4542_vm10 = vcmp.gt.f32.partialorder %v4404_v53, 0.0  ;;  %v4589_v18 = vmul.f32 %v10209_v23, %v4404_v53  ;;  %8492 = vmatmul.msk.f32.gmra.mxu0 %vm288_vm1, %v4030_v33  ;;  %5957 = vmatpush.msrb.mxu2 %v8571_v54 }
 0x477   : > { %v4635_v28 = vsel %vm4542_vm10, %v4404_v53, %v4589_v18  ;;  %v4958_v30 = vld [vmem:[#allocation2 + $0x31] sm:$0xff]  ;;  %v4037_v18 = vld [vmem:[%s8794_s6 + $0x122] sm:$0xff] }
 0x478   : > { %v5272_v11 = vld [vmem:[#allocation2 + $0x32] sm:$0xff]  ;;  %4681 = vst [vmem:[#allocation2 + $0x40] sm:$0xff] %v4635_v28  ;;  %5043 = vmatmul.f32.gmra.mxu2 %v4958_v30  ;;  %4815 = vmatmul.f32.gmra.mxu1 %v4635_v28 }
 0x479   : > { %5357 = vmatmul.f32.gmra.mxu3 %v5272_v11  ;;  %v4365_v53 = vld [vmem:[#allocation2 + $0x78] sm:$0xff] }
 0x47a   : > { %v4239_v47 = vpop.f32.mrf.mxu0 }
 0x47b   : > { %v4405_v17 = vadd.f32 %v4359_v34, %v4239_v47 }
 0x47d   : > { %vm4543_vm11 = vcmp.gt.f32.partialorder %v4405_v17, 0.0  ;;  %v4590_v41 = vmul.f32 %v10209_v23, %v4405_v17  ;;  %8493 = vmatmul.msk.f32.gmra.mxu0 %vm288_vm1, %v4031_v38  ;;  %v4366_v38 = vld [vmem:[#allocation2 + $0x80] sm:$0xff] }
 0x47f   : > { %v4636_v37 = vsel %vm4543_vm11, %v4405_v17, %v4590_v41  ;;  %v4959_v2 = vld [vmem:[#allocation2 + $0x39] sm:$0xff]  ;;  %v4038_v17 = vld [vmem:[%s8794_s6 + $0x12a] sm:$0xff] }
 0x480   : > { %v5273_v61 = vld [vmem:[#allocation2 + $0x3a] sm:$0xff]  ;;  %4682 = vst [vmem:[#allocation2 + $0x48] sm:$0xff] %v4636_v37  ;;  %5046 = vmatmul.f32.gmra.mxu2 %v4959_v2  ;;  %4818 = vmatmul.f32.gmra.mxu1 %v4636_v37 }
 0x481   : > { %5360 = vmatmul.f32.gmra.mxu3 %v5273_v61 }
 0x482   : > { %v4242_v3 = vpop.f32.mrf.mxu0 }
 0x483   : > { %v4406_v14 = vadd.f32 %v4360_v63, %v4242_v3  ;;  %v8587_v3 = vld [vmem:[%s11065_s2 + $0x2c8] sm:$0xff]  ;;  %v8554_v63 = vld [vmem:[%s11065_s2 + $0x1c0] sm:$0xff] }
 0x484   : > { %6271 = vmatpush.msrb.mxu3 %v8587_v3  ;;  %5644 = vmatpush.msrb.mxu1 %v8554_v63  ;;  %v8585_v3 = vld [vmem:[%s11065_s2 + $0x2b8] sm:$0xff]  ;;  %v8552_v63 = vld [vmem:[%s11065_s2 + $0x1b0] sm:$0xff] }
 0x485   : > { %vm4544_vm12 = vcmp.gt.f32.partialorder %v4406_v14, 0.0  ;;  %v4591_v6 = vmul.f32 %v10209_v23, %v4406_v14  ;;  %8494 = vmatmul.msk.f32.gmra.mxu0 %vm288_vm1, %v4032_v16 }
 0x486   : > { %5645 = vmatpush.msrb.mxu1 %v8553_v24  ;;  %v8584_v24 = vld [vmem:[%s11065_s2 + $0x2b0] sm:$0xff] }
 0x487   : > { %v4637_v36 = vsel %vm4544_vm12, %v4406_v14, %v4591_v6  ;;  %v4960_v48 = vld [vmem:[#allocation2 + $0x41] sm:$0xff]  ;;  %v4039_v6 = vld [vmem:[%s8794_s6 + $0x132] sm:$0xff] }
 0x488   : > { %v5274_v49 = vld [vmem:[#allocation2 + $0x42] sm:$0xff]  ;;  %4683 = vst [vmem:[#allocation2 + $0x50] sm:$0xff] %v4637_v36  ;;  %5049 = vmatmul.f32.gmra.mxu2 %v4960_v48  ;;  %4821 = vmatmul.f32.gmra.mxu1 %v4637_v36 }
 0x489   : > { %5363 = vmatmul.f32.gmra.mxu3 %v5274_v49  ;;  %v4367_v14 = vld [vmem:[#allocation2 + $0x88] sm:$0xff]  ;;  %5646 = vmatpush.msrb.mxu1 %v8552_v63 }
 0x48a   : > { %v4245_v29 = vpop.f32.mrf.mxu0 }
 0x48b   : > { %v4407_v58 = vadd.f32 %v4361_v32, %v4245_v29 }
 0x48d   : > { %vm4545_vm13 = vcmp.gt.f32.partialorder %v4407_v58, 0.0  ;;  %v4592_v55 = vmul.f32 %v10209_v23, %v4407_v58  ;;  %8495 = vmatmul.msk.f32.gmra.mxu0 %vm288_vm1, %v4033_v7 }
 0x48f   : > { %v4638_v39 = vsel %vm4545_vm13, %v4407_v58, %v4592_v55  ;;  %v4961_v46 = vld [vmem:[#allocation2 + $0x49] sm:$0xff]  ;;  %v8570_v58 = vld [vmem:[%s11065_s2 + $0x240] sm:$0xff] }
 0x490   : > { %v5275_v8 = vld [vmem:[#allocation2 + $0x4a] sm:$0xff]  ;;  %4684 = vst [vmem:[#allocation2 + $0x58] sm:$0xff] %v4638_v39  ;;  %5052 = vmatmul.f32.gmra.mxu2 %v4961_v46  ;;  %4824 = vmatmul.f32.gmra.mxu1 %v4638_v39  ;;  %v4040_v46 = vld [vmem:[%s8794_s6 + $0x13a] sm:$0xff] }
 0x491   : > { %5366 = vmatmul.f32.gmra.mxu3 %v5275_v8  ;;  %5958 = vmatpush.msrb.mxu2 %v8570_v58  ;;  %v4368_v39 = vld [vmem:[#allocation2 + $0x90] sm:$0xff] }
 0x492   : > { %v4248_v9 = vpop.f32.mrf.mxu0 }
 0x493   : > { %v4408_v35 = vadd.f32 %v4362_v0, %v4248_v9 }
 0x495   : > { %vm4546_vm14 = vcmp.gt.f32.partialorder %v4408_v35, 0.0  ;;  %v4593_v50 = vmul.f32 %v10209_v23, %v4408_v35  ;;  %8496 = vmatmul.msk.f32.gmra.mxu0 %vm288_vm1, %v4034_v20 }
 0x497   : > { %v4639_v52 = vsel %vm4546_vm14, %v4408_v35, %v4593_v50  ;;  %v4962_v57 = vld [vmem:[#allocation2 + $0x51] sm:$0xff]  ;;  %v8586_v35 = vld [vmem:[%s11065_s2 + $0x2c0] sm:$0xff] }
 0x498   : > { %v5276_v51 = vld [vmem:[#allocation2 + $0x52] sm:$0xff]  ;;  %4685 = vst [vmem:[#allocation2 + $0x60] sm:$0xff] %v4639_v52  ;;  %5055 = vmatmul.f32.gmra.mxu2 %v4962_v57  ;;  %4827 = vmatmul.f32.gmra.mxu1 %v4639_v52  ;;  %v4041_v57 = vld [vmem:[%s8794_s6 + $0x142] sm:$0xff] }
 0x499   : > { %5369 = vmatmul.f32.gmra.mxu3 %v5276_v51  ;;  %v4369_v52 = vld [vmem:[#allocation2 + $0x98] sm:$0xff] }
 0x49a   : > { %v4251_v13 = vpop.f32.mrf.mxu0  ;;  %6272 = vmatpush.msrb.mxu3 %v8586_v35  ;;  %v8607_v35 = vld [vmem:[%s11065_s2 + $0x368] sm:$0xff] }
 0x49b   : > { %v4409_v5 = vadd.f32 %v4363_v31, %v4251_v13 }
 0x49c   : > { %6273 = vmatpush.msrb.mxu3 %v8585_v3 }
 0x49d   : > { %vm4547_vm15 = vcmp.gt.f32.partialorder %v4409_v5, 0.0  ;;  %v4594_v15 = vmul.f32 %v10209_v23, %v4409_v5  ;;  %8497 = vmatmul.msk.f32.gmra.mxu0 %vm288_vm1, %v4035_v42 }
 0x49e   : > { %6274 = vmatpush.msrb.mxu3 %v8584_v24 }
 0x49f   : > { %v4640_v56 = vsel %vm4547_vm15, %v4409_v5, %v4594_v15  ;;  %v4963_v43 = vld [vmem:[#allocation2 + $0x59] sm:$0xff] }
 0x4a0   : > { %v5277_v22 = vld [vmem:[#allocation2 + $0x5a] sm:$0xff]  ;;  %4686 = vst [vmem:[#allocation2 + $0x68] sm:$0xff] %v4640_v56  ;;  %5058 = vmatmul.f32.gmra.mxu2 %v4963_v43  ;;  %4830 = vmatmul.f32.gmra.mxu1 %v4640_v56 }
 0x4a1   : > { %5372 = vmatmul.f32.gmra.mxu3 %v5277_v22 }
 0x4a2   : > { %v4254_v59 = vpop.f32.mrf.mxu0 }
 0x4a3   : > { %v4410_v26 = vadd.f32 %v4364_v21, %v4254_v59  ;;  %v8569_v59 = vld [vmem:[%s11065_s2 + $0x238] sm:$0xff] }
 0x4a4   : > { %5959 = vmatpush.msrb.mxu2 %v8569_v59 }
 0x4a5   : > { %vm4548_vm2 = vcmp.gt.f32.partialorder %v4410_v26, 0.0  ;;  %v4595_v25 = vmul.f32 %v10209_v23, %v4410_v26  ;;  %8498 = vmatmul.msk.f32.gmra.mxu0 %vm288_vm1, %v4036_v40  ;;  %v4370_v40 = vld [vmem:[#allocation2 + $0xa0] sm:$0xff] }
 0x4a7   : > { %v4641_v45 = vsel %vm4548_vm2, %v4410_v26, %v4595_v25  ;;  %v4964_v12 = vld [vmem:[#allocation2 + $0x61] sm:$0xff]  ;;  %v4042_v26 = vld [vmem:[%s8794_s6 + $0x14a] sm:$0xff] }
 0x4a8   : > { %v5278_v62 = vld [vmem:[#allocation2 + $0x62] sm:$0xff]  ;;  %4687 = vst [vmem:[#allocation2 + $0x70] sm:$0xff] %v4641_v45  ;;  %5061 = vmatmul.f32.gmra.mxu2 %v4964_v12  ;;  %4833 = vmatmul.f32.gmra.mxu1 %v4641_v45 }
 0x4a9   : > { %5375 = vmatmul.f32.gmra.mxu3 %v5278_v62 }
 0x4aa   : > { %v4257_v33 = vpop.f32.mrf.mxu0 }
 0x4ab   : > { %v4411_v28 = vadd.f32 %v4365_v53, %v4257_v33 }
 0x4ad   : > { %vm4549_vm3 = vcmp.gt.f32.partialorder %v4411_v28, 0.0  ;;  %v4596_v30 = vmul.f32 %v10209_v23, %v4411_v28  ;;  %8499 = vmatmul.msk.f32.gmra.mxu0 %vm288_vm1, %v4037_v18 }
 0x4af   : > { %v4642_v11 = vsel %vm4549_vm3, %v4411_v28, %v4596_v30  ;;  %v4965_v4 = vld [vmem:[#allocation2 + $0x69] sm:$0xff] }
 0x4b0   : > { %v5279_v47 = vld [vmem:[#allocation2 + $0x6a] sm:$0xff]  ;;  %4688 = vst [vmem:[#allocation2 + $0x78] sm:$0xff] %v4642_v11  ;;  %5064 = vmatmul.f32.gmra.mxu2 %v4965_v4  ;;  %4836 = vmatmul.f32.gmra.mxu1 %v4642_v11  ;;  %v4043_v4 = vld [vmem:[%s8794_s6 + $0x152] sm:$0xff] }
 0x4b1   : > { %5378 = vmatmul.f32.gmra.mxu3 %v5279_v47  ;;  %v4371_v11 = vld [vmem:[#allocation2 + $0xa8] sm:$0xff] }
 0x4b2   : > { %v4260_v34 = vpop.f32.mrf.mxu0 }
 0x4b3   : > { %v4412_v41 = vadd.f32 %v4366_v38, %v4260_v34 }
 0x4b5   : > { %vm4550_vm4 = vcmp.gt.f32.partialorder %v4412_v41, 0.0  ;;  %v4597_v37 = vmul.f32 %v10209_v23, %v4412_v41  ;;  %8500 = vmatmul.msk.f32.gmra.mxu0 %vm288_vm1, %v4038_v17  ;;  %v4792_v2 = vpop.f32.mrf.mxu1 }
 0x4b7   : > { %v4643_v61 = vsel %vm4550_vm4, %v4412_v41, %v4597_v37  ;;  %v4966_v10 = vld [vmem:[#allocation2 + $0x71] sm:$0xff] }
 0x4b8   : > { %v5280_v44 = vld [vmem:[#allocation2 + $0x72] sm:$0xff]  ;;  %4689 = vst [vmem:[#allocation2 + $0x80] sm:$0xff] %v4643_v61  ;;  %5067 = vmatmul.f32.gmra.mxu2 %v4966_v10  ;;  %4839 = vmatmul.f32.gmra.mxu1 %v4643_v61 }
 0x4b9   : > { %5381 = vmatmul.f32.gmra.mxu3 %v5280_v44 }
 0x4ba   : > { %v4263_v16 = vpop.f32.mrf.mxu0 }
 0x4bb   : > { %v4413_v36 = vadd.f32 %v4367_v14, %v4263_v16  ;;  %v4372_v14 = vld [vmem:[#allocation2 + $0xb0] sm:$0xff] }
 0x4bd   : > { %vm4551_vm5 = vcmp.gt.f32.partialorder %v4413_v36, 0.0  ;;  %v4598_v48 = vmul.f32 %v10209_v23, %v4413_v36  ;;  %8501 = vmatmul.msk.f32.gmra.mxu0 %vm288_vm1, %v4039_v6  ;;  %v4795_v49 = vpop.f32.mrf.mxu1  ;;  %v4044_v6 = vld [vmem:[%s8794_s6 + $0x15a] sm:$0xff] }
 0x4bf   : > { %v4644_v29 = vsel %vm4551_vm5, %v4413_v36, %v4598_v48  ;;  %v4967_v32 = vld [vmem:[#allocation2 + $0x79] sm:$0xff] }
 0x4c0   : > { %v5281_v7 = vld [vmem:[#allocation2 + $0x7a] sm:$0xff]  ;;  %4690 = vst [vmem:[#allocation2 + $0x88] sm:$0xff] %v4644_v29  ;;  %5070 = vmatmul.f32.gmra.mxu2 %v4967_v32  ;;  %4842 = vmatmul.f32.gmra.mxu1 %v4644_v29 }
 0x4c1   : > { %5384 = vmatmul.f32.gmra.mxu3 %v5281_v7 }
 0x4c2   : > { %v4266_v55 = vpop.f32.mrf.mxu0 }
 0x4c3   : > { %v4414_v8 = vadd.f32 %v4368_v39, %v4266_v55  ;;  %v8609_v55 = vld [vmem:[%s11065_s2 + $0x378] sm:$0xff] }
 0x4c4   : > { %6579 = vmatpush.msra.mxu0 %v8609_v55 }
 0x4c5   : > { %vm4552_vm6 = vcmp.gt.f32.partialorder %v4414_v8, 0.0  ;;  %v4599_v19 = vmul.f32 %v10209_v23, %v4414_v8  ;;  %8502 = vmatmul.msk.f32.gmra.mxu0 %vm288_vm1, %v4040_v46  ;;  %v4798_v1 = vpop.f32.mrf.mxu1 }
 0x4c7   : > { %v4645_v9 = vsel %vm4552_vm6, %v4414_v8, %v4599_v19  ;;  %v4968_v0 = vld [vmem:[#allocation2 + $0x81] sm:$0xff]  ;;  %v8568_v19 = vld [vmem:[%s11065_s2 + $0x230] sm:$0xff] }
 0x4c8   : > { %v5282_v20 = vld [vmem:[#allocation2 + $0x82] sm:$0xff]  ;;  %4691 = vst [vmem:[#allocation2 + $0x90] sm:$0xff] %v4645_v9  ;;  %5073 = vmatmul.f32.gmra.mxu2 %v4968_v0  ;;  %4845 = vmatmul.f32.gmra.mxu1 %v4645_v9  ;;  %v4373_v0 = vld [vmem:[#allocation2 + $0xb8] sm:$0xff] }
 0x4c9   : > { %5387 = vmatmul.f32.gmra.mxu3 %v5282_v20  ;;  %5960 = vmatpush.msrb.mxu2 %v8568_v19  ;;  %v4045_v20 = vld [vmem:[%s8794_s6 + $0x162] sm:$0xff] }
 0x4ca   : > { %v4269_v50 = vpop.f32.mrf.mxu0 }
 0x4cb   : > { %v4415_v51 = vadd.f32 %v4369_v52, %v4269_v50  ;;  %v5026_v27 = vpop.f32.mrf.mxu2 }
 0x4cc   : > { %v5340_v13 = vpop.f32.mrf.mxu3  ;;  %v5186_v31 = vadd.f32 %v5026_v27, %v4792_v2  ;;  %v8606_v27 = vld [vmem:[%s11065_s2 + $0x360] sm:$0xff] }
 0x4cd   : > { %vm4553_vm7 = vcmp.gt.f32.partialorder %v4415_v51, 0.0  ;;  %v4600_v42 = vmul.f32 %v10209_v23, %v4415_v51  ;;  %8503 = vmatmul.msk.f32.gmra.mxu0 %vm288_vm1, %v4041_v57  ;;  %v10343_v15 = vpop.f32.mrf.mxu1 }
 0x4ce   : > { %v5500_v5 = vadd.f32 %v5340_v13, %v5186_v31 }
 0x4cf   : > { %v4646_v56 = vsel %vm4553_vm7, %v4415_v51, %v4600_v42  ;;  %v4969_v43 = vld [vmem:[#allocation2 + $0x89] sm:$0xff] }
 0x4d0   : > { %v5283_v22 = vld [vmem:[#allocation2 + $0x8a] sm:$0xff]  ;;  %4692 = vst [vmem:[#allocation2 + $0x98] sm:$0xff] %v4646_v56  ;;  %5076 = vmatmul.f32.gmra.mxu2 %v4969_v43  ;;  %4848 = vmatmul.f32.gmra.mxu1 %v4646_v56 }
 0x4d1   : > { %5390 = vmatmul.f32.gmra.mxu3 %v5283_v22  ;;  %5540 = vst [vmem:[%s10341_s17] sm:$0xff] %v5500_v5  ;;  %v8605_v5 = vld [vmem:[%s11065_s2 + $0x358] sm:$0xff]  ;;  %v8604_v22 = vld [vmem:[%s11065_s2 + $0x350] sm:$0xff] }
 0x4d2   : > { %v4272_v21 = vpop.f32.mrf.mxu0 }
 0x4d3   : > { %v4416_v25 = vadd.f32 %v4370_v40, %v4272_v21  ;;  %v5029_v45 = vpop.f32.mrf.mxu2  ;;  %v4374_v21 = vld [vmem:[#allocation2 + $0xc0] sm:$0xff]  ;;  %v4046_v40 = vld [vmem:[%s8794_s6 + $0x16a] sm:$0xff] }
 0x4d4   : > { %v5343_v12 = vpop.f32.mrf.mxu3  ;;  %v5187_v62 = vadd.f32 %v5029_v45, %v4795_v49 }
 0x4d5   : > { %vm4554_vm8 = vcmp.gt.f32.partialorder %v4416_v25, 0.0  ;;  %v4601_v60 = vmul.f32 %v10209_v23, %v4416_v25  ;;  %8504 = vmatmul.msk.f32.gmra.mxu0 %vm288_vm1, %v4042_v26  ;;  %v10355_v33 = vpop.f32.mrf.mxu1 }
 0x4d6   : > { %v5501_v54 = vadd.f32 %v5343_v12, %v5187_v62  ;;  %v8603_v12 = vld [vmem:[%s11065_s2 + $0x348] sm:$0xff] }
 0x4d7   : > { %v4647_v53 = vsel %vm4554_vm8, %v4416_v25, %v4601_v60  ;;  %v4970_v18 = vld [vmem:[#allocation2 + $0x91] sm:$0xff] }
 0x4d8   : > { %v5284_v28 = vld [vmem:[#allocation2 + $0x92] sm:$0xff]  ;;  %4693 = vst [vmem:[#allocation2 + $0xa0] sm:$0xff] %v4647_v53  ;;  %5079 = vmatmul.f32.gmra.mxu2 %v4970_v18  ;;  %4851 = vmatmul.f32.gmra.mxu1 %v4647_v53  ;;  %v8602_v53 = vld [vmem:[%s11065_s2 + $0x340] sm:$0xff] }
 0x4d9   : > { %5393 = vmatmul.f32.gmra.mxu3 %v5284_v28  ;;  %5541 = vst [vmem:[%s10341_s17 + $0x8] sm:$0xff] %v5501_v54 }
 0x4da   : > { %v4275_v30 = vpop.f32.mrf.mxu0 }
 0x4db   : > { %v4417_v47 = vadd.f32 %v4371_v11, %v4275_v30  ;;  %v5032_v34 = vpop.f32.mrf.mxu2  ;;  %v8551_v11 = vld [vmem:[%s11065_s2 + $0x1a8] sm:$0xff] }
 0x4dc   : > { %v5346_v38 = vpop.f32.mrf.mxu3  ;;  %v5188_v17 = vadd.f32 %v5032_v34, %v4798_v1  ;;  %v8608_v1 = vld [vmem:[%s11065_s2 + $0x370] sm:$0xff]  ;;  %5647 = vmatpush.msrb.mxu1 %v8551_v11 }
 0x4dd   : > { %vm4555_vm9 = vcmp.gt.f32.partialorder %v4417_v47, 0.0  ;;  %v4602_v41 = vmul.f32 %v10209_v23, %v4417_v47  ;;  %8505 = vmatmul.msk.f32.gmra.mxu0 %vm288_vm1, %v4043_v4  ;;  %v10361_v2 = vpop.f32.mrf.mxu1  ;;  %v8601_v4 = vld [vmem:[%s11065_s2 + $0x338] sm:$0xff] }
 0x4de   : > { %v5502_v37 = vadd.f32 %v5346_v38, %v5188_v17  ;;  %6580 = vmatpush.msra.mxu0 %v8608_v1  ;;  %v4375_v38 = vld [vmem:[#allocation2 + $0xc8] sm:$0xff]  ;;  %v4047_v17 = vld [vmem:[%s8794_s6 + $0x172] sm:$0xff] }
 0x4df   : > { %v4648_v61 = vsel %vm4555_vm9, %v4417_v47, %v4602_v41  ;;  %v4971_v10 = vld [vmem:[#allocation2 + $0x99] sm:$0xff]  ;;  %v8567_v47 = vld [vmem:[%s11065_s2 + $0x228] sm:$0xff] }
 0x4e0   : > { %v5285_v44 = vld [vmem:[#allocation2 + $0x9a] sm:$0xff]  ;;  %4694 = vst [vmem:[#allocation2 + $0xa8] sm:$0xff] %v4648_v61  ;;  %5082 = vmatmul.f32.gmra.mxu2 %v4971_v10  ;;  %4854 = vmatmul.f32.gmra.mxu1 %v4648_v61  ;;  %v8600_v61 = vld [vmem:[%s11065_s2 + $0x330] sm:$0xff] }
 0x4e1   : > { %5396 = vmatmul.f32.gmra.mxu3 %v5285_v44  ;;  %5542 = vst [vmem:[%s10341_s17 + $0x10] sm:$0xff] %v5502_v37  ;;  %6581 = vmatpush.msra.mxu0 %v8607_v35 }
 0x4e2   : > { %v4278_v16 = vpop.f32.mrf.mxu0  ;;  %5961 = vmatpush.msrb.mxu2 %v8567_v47  ;;  %v8582_v47 = vld [vmem:[%s11065_s2 + $0x2a0] sm:$0xff] }
 0x4e3   : > { %v4418_v36 = vadd.f32 %v4372_v14, %v4278_v16  ;;  %v5035_v48 = vpop.f32.mrf.mxu2  ;;  %6582 = vmatpush.msra.mxu0 %v8606_v27  ;;  %v8599_v16 = vld [vmem:[%s11065_s2 + $0x328] sm:$0xff]  ;;  %v4377_v27 = vld [vmem:[#allocation2 + $0xd8] sm:$0xff] }
 0x4e4   : > { %v5349_v49 = vpop.f32.mrf.mxu3  ;;  %v5189_v29 = vadd.f32 %v5035_v48, %v10343_v15  ;;  %v8598_v48 = vld [vmem:[%s11065_s2 + $0x320] sm:$0xff] }
 0x4e5   : > { %vm4556_vm10 = vcmp.gt.f32.partialorder %v4418_v36, 0.0  ;;  %v4603_v32 = vmul.f32 %v10209_v23, %v4418_v36  ;;  %8506 = vmatmul.msk.f32.gmra.mxu0 %vm288_vm1, %v4044_v6  ;;  %v10374_v58 = vpop.f32.mrf.mxu1 }
 0x4e6   : > { %v5503_v7 = vadd.f32 %v5349_v49, %v5189_v29  ;;  %6583 = vmatpush.msra.mxu0 %v8605_v5  ;;  %v4376_v29 = vld [vmem:[#allocation2 + $0xd0] sm:$0xff] }
 0x4e7   : > { %v4649_v39 = vsel %vm4556_vm10, %v4418_v36, %v4603_v32  ;;  %v4972_v46 = vld [vmem:[#allocation2 + $0xa1] sm:$0xff] }
 0x4e8   : > { %v5286_v8 = vld [vmem:[#allocation2 + $0xa2] sm:$0xff]  ;;  %4695 = vst [vmem:[#allocation2 + $0xb0] sm:$0xff] %v4649_v39  ;;  %5085 = vmatmul.f32.gmra.mxu2 %v4972_v46  ;;  %4857 = vmatmul.f32.gmra.mxu1 %v4649_v39  ;;  %v4048_v32 = vld [vmem:[%s8794_s6 + $0x17a] sm:$0xff] }
 0x4e9   : > { %5399 = vmatmul.f32.gmra.mxu3 %v5286_v8  ;;  %5543 = vst [vmem:[%s10341_s17 + $0x18] sm:$0xff] %v5503_v7  ;;  %6584 = vmatpush.msra.mxu0 %v8604_v22  ;;  %v8597_v39 = vld [vmem:[%s11065_s2 + $0x318] sm:$0xff] }
 0x4ea   : > { %v4281_v9 = vpop.f32.mrf.mxu0 }
 0x4eb   : > { %v4419_v50 = vadd.f32 %v4373_v0, %v4281_v9  ;;  %v5038_v52 = vpop.f32.mrf.mxu2  ;;  %6585 = vmatpush.msra.mxu0 %v8603_v12  ;;  %v8596_v9 = vld [vmem:[%s11065_s2 + $0x310] sm:$0xff] }
 0x4ec   : > { %v5352_v57 = vpop.f32.mrf.mxu3  ;;  %v5190_v51 = vadd.f32 %v5038_v52, %v10355_v33  ;;  %v8583_v52 = vld [vmem:[%s11065_s2 + $0x2a8] sm:$0xff] }
 0x4ed   : > { %vm4557_vm11 = vcmp.gt.f32.partialorder %v4419_v50, 0.0  ;;  %v4604_v13 = vmul.f32 %v10209_v23, %v4419_v50  ;;  %8507 = vmatmul.msk.f32.gmra.mxu0 %vm288_vm1, %v4045_v20  ;;  %v10396_v42 = vpop.f32.mrf.mxu1  ;;  %6275 = vmatpush.msrb.mxu3 %v8583_v52  ;;  %v4050_v12 = vld [vmem:[%s8794_s6 + $0x18a] sm:$0xff] }
 0x4ee   : > { %v5504_v31 = vadd.f32 %v5352_v57, %v5190_v51  ;;  %6586 = vmatpush.msra.mxu0 %v8602_v53  ;;  %v8550_v57 = vld [vmem:[%s11065_s2 + $0x1a0] sm:$0xff] }
 0x4ef   : > { %v4650_v15 = vsel %vm4557_vm11, %v4419_v50, %v4604_v13  ;;  %v4973_v56 = vld [vmem:[#allocation2 + $0xa9] sm:$0xff]  ;;  %5648 = vmatpush.msrb.mxu1 %v8550_v57  ;;  %6276 = vmatpush.msrb.mxu3 %v8582_v47  ;;  %v6525_v47 = vld [vmem:[#allocation2 + $0x40] sm:$0xff] }
 0x4f0   : > { %v5287_v43 = vld [vmem:[#allocation2 + $0xaa] sm:$0xff]  ;;  %4696 = vst [vmem:[#allocation2 + $0xb8] sm:$0xff] %v4650_v15  ;;  %5088 = vmatmul.f32.gmra.mxu2 %v4973_v56  ;;  %4860 = vmatmul.f32.gmra.mxu1 %v4650_v15  ;;  %v4049_v13 = vld [vmem:[%s8794_s6 + $0x182] sm:$0xff] }
 0x4f1   : > { %5402 = vmatmul.f32.gmra.mxu3 %v5287_v43  ;;  %5544 = vst [vmem:[%s10341_s17 + $0x20] sm:$0xff] %v5504_v31  ;;  %6587 = vmatpush.msra.mxu0 %v8601_v4  ;;  %v8595_v50 = vld [vmem:[%s11065_s2 + $0x308] sm:$0xff]  ;;  %v8594_v15 = vld [vmem:[%s11065_s2 + $0x300] sm:$0xff]  ;;  %v6523_v57 = vld [vmem:[#allocation2 + $0x30] sm:$0xff] }
 0x4f2   : > { %v4284_v59 = vpop.f32.mrf.mxu0 }
 0x4f3   : > { %v4420_v26 = vadd.f32 %v4374_v21, %v4284_v59  ;;  %v5041_v25 = vpop.f32.mrf.mxu2  ;;  %6588 = vmatpush.msra.mxu0 %v8600_v61 }
 0x4f4   : > { %v5355_v45 = vpop.f32.mrf.mxu3  ;;  %v5191_v62 = vadd.f32 %v5041_v25, %v10361_v2 }
 0x4f5   : > { %vm4558_vm12 = vcmp.gt.f32.partialorder %v4420_v26, 0.0  ;;  %v4605_v60 = vmul.f32 %v10209_v23, %v4420_v26  ;;  %8508 = vmatmul.msk.f32.gmra.mxu0 %vm288_vm1, %v4046_v40  ;;  %v10415_v33 = vpop.f32.mrf.mxu1 }
 0x4f6   : > { %v5505_v54 = vadd.f32 %v5355_v45, %v5191_v62  ;;  %6589 = vmatpush.msra.mxu0 %v8599_v16  ;;  %v4378_v45 = vld [vmem:[#allocation2 + $0xe0] sm:$0xff] }
 0x4f7   : > { %v4651_v18 = vsel %vm4558_vm12, %v4420_v26, %v4605_v60  ;;  %v4974_v28 = vld [vmem:[#allocation2 + $0xb1] sm:$0xff]  ;;  %v8566_v26 = vld [vmem:[%s11065_s2 + $0x220] sm:$0xff] }
 0x4f8   : > { %v5288_v30 = vld [vmem:[#allocation2 + $0xb2] sm:$0xff]  ;;  %4697 = vst [vmem:[#allocation2 + $0xc0] sm:$0xff] %v4651_v18  ;;  %5091 = vmatmul.f32.gmra.mxu2 %v4974_v28  ;;  %4863 = vmatmul.f32.gmra.mxu1 %v4651_v18 }
 0x4f9   : > { %5405 = vmatmul.f32.gmra.mxu3 %v5288_v30  ;;  %5545 = vst [vmem:[%s10341_s17 + $0x28] sm:$0xff] %v5505_v54  ;;  %6590 = vmatpush.msra.mxu0 %v8598_v48 }
 0x4fa   : > { %v4287_v34 = vpop.f32.mrf.mxu0  ;;  %5962 = vmatpush.msrb.mxu2 %v8566_v26  ;;  %v6524_v26 = vld [vmem:[#allocation2 + $0x38] sm:$0xff] }
 0x4fb   : > { %v4421_v41 = vadd.f32 %v4375_v38, %v4287_v34  ;;  %v5044_v37 = vpop.f32.mrf.mxu2  ;;  %6591 = vmatpush.msra.mxu0 %v8597_v39  ;;  %v4379_v38 = vld [vmem:[#allocation2 + $0xe8] sm:$0xff] }
 0x4fc   : > { %v5358_v2 = vpop.f32.mrf.mxu3  ;;  %v5192_v10 = vadd.f32 %v5044_v37, %v10374_v58 }
 0x4fd   : > { %vm4559_vm13 = vcmp.gt.f32.partialorder %v4421_v41, 0.0  ;;  %v4606_v44 = vmul.f32 %v10209_v23, %v4421_v41  ;;  %8509 = vmatmul.msk.f32.gmra.mxu0 %vm288_vm1, %v4047_v17  ;;  %v10437_v63 = vpop.f32.mrf.mxu1  ;;  %v4051_v17 = vld [vmem:[%s8794_s6 + $0x192] sm:$0xff] }
 0x4fe   : > { %v5506_v3 = vadd.f32 %v5358_v2, %v5192_v10  ;;  %6592 = vmatpush.msra.mxu0 %v8596_v9 }
 0x4ff   : > { %v4652_v14 = vsel %vm4559_vm13, %v4421_v41, %v4606_v44  ;;  %v4975_v6 = vld [vmem:[#allocation2 + $0xb9] sm:$0xff] }
 0x500   : > { %v5289_v36 = vld [vmem:[#allocation2 + $0xba] sm:$0xff]  ;;  %4698 = vst [vmem:[#allocation2 + $0xc8] sm:$0xff] %v4652_v14  ;;  %5094 = vmatmul.f32.gmra.mxu2 %v4975_v6  ;;  %4866 = vmatmul.f32.gmra.mxu1 %v4652_v14 }
 0x501   : > { %5408 = vmatmul.f32.gmra.mxu3 %v5289_v36  ;;  %5546 = vst [vmem:[%s10341_s17 + $0x30] sm:$0xff] %v5506_v3  ;;  %6593 = vmatpush.msra.mxu0 %v8595_v50  ;;  %v8549_v6 = vld [vmem:[%s11065_s2 + $0x198] sm:$0xff] }
 0x502   : > { %v4290_v49 = vpop.f32.mrf.mxu0  ;;  %v8565_v36 = vld [vmem:[%s11065_s2 + $0x218] sm:$0xff]  ;;  %5649 = vmatpush.msrb.mxu1 %v8549_v6  ;;  %v6526_v6 = vld [vmem:[#allocation2 + $0x48] sm:$0xff] }
 0x503   : > { %v4422_v7 = vadd.f32 %v4376_v29, %v4290_v49  ;;  %v5047_v58 = vpop.f32.mrf.mxu2  ;;  %6594 = vmatpush.msra.mxu0 %v8594_v15  ;;  %5963 = vmatpush.msrb.mxu2 %v8565_v36  ;;  %v4380_v49 = vld [vmem:[#allocation2 + $0xf0] sm:$0xff] }
 0x504   : > { %v5361_v55 = vpop.f32.mrf.mxu3  ;;  %v5193_v46 = vadd.f32 %v5047_v58, %v10396_v42  ;;  %v6522_v58 = vld [vmem:[#allocation2 + $0x28] sm:$0xff] }
 0x505   : > { %vm4560_vm14 = vcmp.gt.f32.partialorder %v4422_v7, 0.0  ;;  %v4607_v8 = vmul.f32 %v10209_v23, %v4422_v7  ;;  %8510 = vmatmul.msk.f32.gmra.mxu0 %vm288_vm1, %v4048_v32  ;;  %v10453_v1 = vpop.f32.mrf.mxu1 }
 0x506   : > { %v5507_v19 = vadd.f32 %v5361_v55, %v5193_v46 }
 0x507   : > { %v4653_v0 = vsel %vm4560_vm14, %v4422_v7, %v4607_v8  ;;  %v4976_v20 = vld [vmem:[#allocation2 + $0xc1] sm:$0xff] }
 0x508   : > { %v5290_v35 = vld [vmem:[#allocation2 + $0xc2] sm:$0xff]  ;;  %4699 = vst [vmem:[#allocation2 + $0xd0] sm:$0xff] %v4653_v0  ;;  %5097 = vmatmul.f32.gmra.mxu2 %v4976_v20  ;;  %4869 = vmatmul.f32.gmra.mxu1 %v4653_v0  ;;  %v4381_v20 = vld [vmem:[#allocation2 + $0xf8] sm:$0xff] }
 0x509   : > { %5411 = vmatmul.f32.gmra.mxu3 %v5290_v35  ;;  %5547 = vst [vmem:[%s10341_s17 + $0x38] sm:$0xff] %v5507_v19 }
 0x50a   : > { %v4293_v51 = vpop.f32.mrf.mxu0 }
 0x50b   : > { %v4423_v31 = vadd.f32 %v4377_v27, %v4293_v51  ;;  %v5050_v42 = vpop.f32.mrf.mxu2 }
 0x50c   : > { %v5364_v5 = vpop.f32.mrf.mxu3  ;;  %v5194_v56 = vadd.f32 %v5050_v42, %v10415_v33 }
 0x50d   : > { %vm4561_vm15 = vcmp.gt.f32.partialorder %v4423_v31, 0.0  ;;  %v4608_v43 = vmul.f32 %v10209_v23, %v4423_v31  ;;  %8511 = vmatmul.msk.f32.gmra.mxu0 %vm288_vm1, %v4049_v13  ;;  %v10475_v24 = vpop.f32.mrf.mxu1 }
 0x50e   : > { %v5508_v22 = vadd.f32 %v5364_v5, %v5194_v56  ;;  %v8581_v56 = vld [vmem:[%s11065_s2 + $0x298] sm:$0xff] }
 0x50f   : > { %v4654_v59 = vsel %vm4561_vm15, %v4423_v31, %v4608_v43  ;;  %v4977_v21 = vld [vmem:[#allocation2 + $0xc9] sm:$0xff]  ;;  %6277 = vmatpush.msrb.mxu3 %v8581_v56  ;;  %v6528_v56 = vld [vmem:[#allocation2 + $0x58] sm:$0xff] }
 0x510   : > { %v5291_v40 = vld [vmem:[#allocation2 + $0xca] sm:$0xff]  ;;  %4700 = vst [vmem:[#allocation2 + $0xd8] sm:$0xff] %v4654_v59  ;;  %5100 = vmatmul.f32.gmra.mxu2 %v4977_v21  ;;  %4872 = vmatmul.f32.gmra.mxu1 %v4654_v59 }
 0x511   : > { %5414 = vmatmul.f32.gmra.mxu3 %v5291_v40  ;;  %5548 = vst [vmem:[%s10341_s17 + $0x40] sm:$0xff] %v5508_v22  ;;  %v8548_v43 = vld [vmem:[%s11065_s2 + $0x190] sm:$0xff] }
 0x512   : > { %v4296_v25 = vpop.f32.mrf.mxu0  ;;  %5650 = vmatpush.msrb.mxu1 %v8548_v43 }
 0x513   : > { %v4424_v62 = vadd.f32 %v4378_v45, %v4296_v25  ;;  %v5053_v60 = vpop.f32.mrf.mxu2 }
 0x514   : > { %v5367_v54 = vpop.f32.mrf.mxu3  ;;  %v5195_v33 = vadd.f32 %v5053_v60, %v10437_v63 }
 0x515   : > { %vm4562_vm2 = vcmp.gt.f32.partialorder %v4424_v62, 0.0  ;;  %v4609_v53 = vmul.f32 %v10209_v23, %v4424_v62  ;;  %8512 = vmatmul.msk.f32.gmra.mxu0 %vm288_vm1, %v4050_v12  ;;  %v4828_v28 = vpop.f32.mrf.mxu1 }
 0x516   : > { %v5509_v18 = vadd.f32 %v5367_v54, %v5195_v33 }
 0x517   : > { %v4655_v30 = vsel %vm4562_vm2, %v4424_v62, %v4609_v53  ;;  %v4978_v11 = vld [vmem:[#allocation2 + $0xd1] sm:$0xff] }
 0x518   : > { %v5292_v4 = vld [vmem:[#allocation2 + $0xd2] sm:$0xff]  ;;  %4701 = vst [vmem:[#allocation2 + $0xe0] sm:$0xff] %v4655_v30  ;;  %5103 = vmatmul.f32.gmra.mxu2 %v4978_v11  ;;  %4875 = vmatmul.f32.gmra.mxu1 %v4655_v30 }
 0x519   : > { %5417 = vmatmul.f32.gmra.mxu3 %v5292_v4  ;;  %5549 = vst [vmem:[%s10341_s17 + $0x48] sm:$0xff] %v5509_v18  ;;  %v8564_v53 = vld [vmem:[%s11065_s2 + $0x210] sm:$0xff] }
 0x51a   : > { %v4299_v34 = vpop.f32.mrf.mxu0  ;;  %5964 = vmatpush.msrb.mxu2 %v8564_v53  ;;  %v6529_v53 = vld [vmem:[#allocation2 + $0x60] sm:$0xff] }
 0x51b   : > { %v4425_v41 = vadd.f32 %v4379_v38, %v4299_v34  ;;  %v5056_v37 = vpop.f32.mrf.mxu2 }
 0x51c   : > { %v5370_v2 = vpop.f32.mrf.mxu3  ;;  %v5196_v61 = vadd.f32 %v5056_v37, %v10453_v1 }
 0x51d   : > { %vm4563_vm3 = vcmp.gt.f32.partialorder %v4425_v41, 0.0  ;;  %v4610_v10 = vmul.f32 %v10209_v23, %v4425_v41  ;;  %8513 = vmatmul.msk.f32.gmra.mxu0 %vm288_vm1, %v4051_v17  ;;  %v10493_v3 = vpop.f32.mrf.mxu1 }
 0x51e   : > { %v5510_v44 = vadd.f32 %v5370_v2, %v5196_v61 }
 0x51f   : > { %v4656_v63 = vsel %vm4563_vm3, %v4425_v41, %v4610_v10  ;;  %v4979_v16 = vld [vmem:[#allocation2 + $0xd9] sm:$0xff]  ;;  %v8580_v10 = vld [vmem:[%s11065_s2 + $0x290] sm:$0xff] }
 0x520   : > { %v5293_v14 = vld [vmem:[#allocation2 + $0xda] sm:$0xff]  ;;  %4702 = vst [vmem:[#allocation2 + $0xe8] sm:$0xff] %v4656_v63  ;;  %5106 = vmatmul.f32.gmra.mxu2 %v4979_v16  ;;  %4878 = vmatmul.f32.gmra.mxu1 %v4656_v63 }
 0x521   : > { %5420 = vmatmul.f32.gmra.mxu3 %v5293_v14  ;;  %5550 = vst [vmem:[%s10341_s17 + $0x50] sm:$0xff] %v5510_v44 }
 0x522   : > { %v4302_v48 = vpop.f32.mrf.mxu0  ;;  %6278 = vmatpush.msrb.mxu3 %v8580_v10  ;;  %v6530_v10 = vld [vmem:[#allocation2 + $0x68] sm:$0xff] }
 0x523   : > { %v4426_v29 = vadd.f32 %v4380_v49, %v4302_v48  ;;  %v5059_v32 = vpop.f32.mrf.mxu2 }
 0x524   : > { %v5373_v7 = vpop.f32.mrf.mxu3  ;;  %v5197_v55 = vadd.f32 %v5059_v32, %v10475_v24  ;;  %v4382_v24 = vld [vmem:[#allocation2 + $0x100] sm:$0xff] }
 0x525   : > { %vm4564_vm4 = vcmp.gt.f32.partialorder %v4426_v29, 0.0  ;;  %v4611_v39 = vmul.f32 %v10209_v23, %v4426_v29  ;;  %6595 = vmatmul.f32.vlgmr.msra.gmra.mxu0 %v6522_v58  ;;  %v4834_v8 = vpop.f32.mrf.mxu1 }
 0x526   : > { %v5511_v46 = vadd.f32 %v5373_v7, %v5197_v55  ;;  %v8547_v55 = vld [vmem:[%s11065_s2 + $0x188] sm:$0xff] }
 0x527   : > { %v4657_v19 = vsel %vm4564_vm4, %v4426_v29, %v4611_v39  ;;  %v4980_v1 = vld [vmem:[#allocation2 + $0xe1] sm:$0xff]  ;;  %5651 = vmatpush.msrb.mxu1 %v8547_v55  ;;  %v6531_v55 = vld [vmem:[#allocation2 + $0x70] sm:$0xff] }
 0x528   : > { %v5294_v9 = vld [vmem:[#allocation2 + $0xe2] sm:$0xff]  ;;  %4703 = vst [vmem:[#allocation2 + $0xf0] sm:$0xff] %v4657_v19  ;;  %5109 = vmatmul.f32.gmra.mxu2 %v4980_v1  ;;  %4881 = vmatmul.f32.gmra.mxu1 %v4657_v19 }
 0x529   : > { %5423 = vmatmul.f32.gmra.mxu3 %v5294_v9  ;;  %5551 = vst [vmem:[%s10341_s17 + $0x58] sm:$0xff] %v5511_v46  ;;  %v8563_v39 = vld [vmem:[%s11065_s2 + $0x208] sm:$0xff] }
 0x52a   : > { %v4305_v0 = vpop.f32.mrf.mxu0  ;;  %5965 = vmatpush.msrb.mxu2 %v8563_v39 }
 0x52b   : > { %v4427_v35 = vadd.f32 %v4381_v20, %v4305_v0  ;;  %v5062_v50 = vpop.f32.mrf.mxu2  ;;  %v6527_v0 = vld [vmem:[#allocation2 + $0x50] sm:$0xff] }
 0x52c   : > { %v5376_v52 = vpop.f32.mrf.mxu3  ;;  %v5198_v51 = vadd.f32 %v5062_v50, %v4828_v28  ;;  %v4383_v28 = vld [vmem:[#allocation2 + $0x108] sm:$0xff] }
 0x52d   : > { %vm4565_vm5 = vcmp.gt.f32.partialorder %v4427_v35, 0.0  ;;  %v4612_v27 = vmul.f32 %v10209_v23, %v4427_v35  ;;  %6598 = vmatmul.f32.gmra.mxu0 %v6523_v57  ;;  %v10506_v31 = vpop.f32.mrf.mxu1 }
 0x52e   : > { %v5512_v13 = vadd.f32 %v5376_v52, %v5198_v51 }
 0x52f   : > { %v4658_v42 = vsel %vm4565_vm5, %v4427_v35, %v4612_v27  ;;  %v4981_v5 = vld [vmem:[#allocation2 + $0xe9] sm:$0xff] }
 0x530   : > { %v5295_v15 = vld [vmem:[#allocation2 + $0xea] sm:$0xff]  ;;  %4704 = vst [vmem:[#allocation2 + $0xf8] sm:$0xff] %v4658_v42  ;;  %5112 = vmatmul.f32.gmra.mxu2 %v4981_v5  ;;  %4884 = vmatmul.f32.gmra.mxu1 %v4658_v42 }
 0x531   : > { %5426 = vmatmul.f32.gmra.mxu3 %v5295_v15  ;;  %5552 = vst [vmem:[%s10341_s17 + $0x60] sm:$0xff] %v5512_v13 }
 0x532   : > { %v4308_v22 = vpop.f32.mrf.mxu0 }
 0x533   : > { %v4428_v59 = vadd.f32 %v4382_v24, %v4308_v22  ;;  %v5065_v21 = vpop.f32.mrf.mxu2 }
 0x534   : > { %v5379_v40 = vpop.f32.mrf.mxu3  ;;  %v5199_v25 = vadd.f32 %v5065_v21, %v10493_v3  ;;  %v4384_v3 = vld [vmem:[#allocation2 + $0x110] sm:$0xff] }
 0x535   : > { %vm4566_vm6 = vcmp.gt.f32.partialorder %v4428_v59, 0.0  ;;  %v4613_v45 = vmul.f32 %v10209_v23, %v4428_v59  ;;  %6601 = vmatmul.f32.gmra.mxu0 %v6524_v26  ;;  %v10517_v62 = vpop.f32.mrf.mxu1 }
 0x536   : > { %v5513_v12 = vadd.f32 %v5379_v40, %v5199_v25  ;;  %v8546_v25 = vld [vmem:[%s11065_s2 + $0x180] sm:$0xff] }
 0x537   : > { %v4659_v60 = vsel %vm4566_vm6, %v4428_v59, %v4613_v45  ;;  %v4982_v54 = vld [vmem:[#allocation2 + $0xf1] sm:$0xff]  ;;  %v8579_v45 = vld [vmem:[%s11065_s2 + $0x288] sm:$0xff]  ;;  %5652 = vmatpush.msrb.mxu1 %v8546_v25 }
 0x538   : > { %v5296_v33 = vld [vmem:[#allocation2 + $0xf2] sm:$0xff]  ;;  %4705 = vst [vmem:[#allocation2 + $0x100] sm:$0xff] %v4659_v60  ;;  %5115 = vmatmul.f32.gmra.mxu2 %v4982_v54  ;;  %4887 = vmatmul.f32.gmra.mxu1 %v4659_v60 }
 0x539   : > { %5429 = vmatmul.f32.gmra.mxu3 %v5296_v33  ;;  %5553 = vst [vmem:[%s10341_s17 + $0x68] sm:$0xff] %v5513_v12 }
 0x53a   : > { %v4311_v18 = vpop.f32.mrf.mxu0  ;;  %6279 = vmatpush.msrb.mxu3 %v8579_v45  ;;  %v6533_v45 = vld [vmem:[#allocation2 + $0x80] sm:$0xff] }
 0x53b   : > { %v4429_v30 = vadd.f32 %v4383_v28, %v4311_v18  ;;  %v5068_v11 = vpop.f32.mrf.mxu2 }
 0x53c   : > { %v5382_v4 = vpop.f32.mrf.mxu3  ;;  %v5200_v34 = vadd.f32 %v5068_v11, %v4834_v8  ;;  %v4385_v8 = vld [vmem:[#allocation2 + $0x118] sm:$0xff] }
 0x53d   : > { %vm4567_vm7 = vcmp.gt.f32.partialorder %v4429_v30, 0.0  ;;  %v4614_v38 = vmul.f32 %v10209_v23, %v4429_v30  ;;  %6604 = vmatmul.f32.gmra.mxu0 %v6525_v47  ;;  %v4843_v41 = vpop.f32.mrf.mxu1 }
 0x53e   : > { %v5514_v17 = vadd.f32 %v5382_v4, %v5200_v34 }
 0x53f   : > { %v4660_v37 = vsel %vm4567_vm7, %v4429_v30, %v4614_v38  ;;  %v4983_v2 = vld [vmem:[#allocation2 + $0xf9] sm:$0xff] }
 0x540   : > { %v5297_v61 = vld [vmem:[#allocation2 + $0xfa] sm:$0xff]  ;;  %4706 = vst [vmem:[#allocation2 + $0x108] sm:$0xff] %v4660_v37  ;;  %5118 = vmatmul.f32.gmra.mxu2 %v4983_v2  ;;  %4890 = vmatmul.f32.gmra.mxu1 %v4660_v37 }
 0x541   : > { %5432 = vmatmul.f32.gmra.mxu3 %v5297_v61  ;;  %5554 = vst [vmem:[%s10341_s17 + $0x70] sm:$0xff] %v5514_v17  ;;  %v8562_v38 = vld [vmem:[%s11065_s2 + $0x200] sm:$0xff] }
 0x542   : > { %v4314_v44 = vpop.f32.mrf.mxu0  ;;  %5966 = vmatpush.msrb.mxu2 %v8562_v38 }
 0x543   : > { %v4430_v63 = vadd.f32 %v4384_v3, %v4314_v44  ;;  %v5071_v16 = vpop.f32.mrf.mxu2 }
 0x544   : > { %v5385_v14 = vpop.f32.mrf.mxu3  ;;  %v5201_v36 = vadd.f32 %v5071_v16, %v10506_v31  ;;  %v4386_v31 = vld [vmem:[#allocation2 + $0x120] sm:$0xff] }
 0x545   : > { %vm4568_vm8 = vcmp.gt.f32.partialorder %v4430_v63, 0.0  ;;  %v4615_v48 = vmul.f32 %v10209_v23, %v4430_v63  ;;  %6607 = vmatmul.f32.gmra.mxu0 %v6526_v6  ;;  %v10530_v29 = vpop.f32.mrf.mxu1 }
 0x546   : > { %v5515_v49 = vadd.f32 %v5385_v14, %v5201_v36 }
 0x547   : > { %v4661_v32 = vsel %vm4568_vm8, %v4430_v63, %v4615_v48  ;;  %v4984_v7 = vld [vmem:[#allocation2 + $0x101] sm:$0xff] }
 0x548   : > { %v5298_v58 = vld [vmem:[#allocation2 + $0x102] sm:$0xff]  ;;  %4707 = vst [vmem:[#allocation2 + $0x110] sm:$0xff] %v4661_v32  ;;  %5121 = vmatmul.f32.gmra.mxu2 %v4984_v7  ;;  %4893 = vmatmul.f32.gmra.mxu1 %v4661_v32 }
 0x549   : > { %5435 = vmatmul.f32.gmra.mxu3 %v5298_v58  ;;  %5555 = vst [vmem:[%s10341_s17 + $0x78] sm:$0xff] %v5515_v49  ;;  %v8578_v48 = vld [vmem:[%s11065_s2 + $0x280] sm:$0xff] }
 0x54a   : > { %v4317_v46 = vpop.f32.mrf.mxu0  ;;  %6280 = vmatpush.msrb.mxu3 %v8578_v48 }
 0x54b   : > { %v4431_v19 = vadd.f32 %v4385_v8, %v4317_v46  ;;  %v5074_v1 = vpop.f32.mrf.mxu2 }
 0x54c   : > { %v5388_v9 = vpop.f32.mrf.mxu3  ;;  %v5202_v20 = vadd.f32 %v5074_v1, %v10517_v62  ;;  %v4387_v62 = vld [vmem:[#allocation2 + $0x128] sm:$0xff] }
 0x54d   : > { %vm4569_vm9 = vcmp.gt.f32.partialorder %v4431_v19, 0.0  ;;  %v4616_v35 = vmul.f32 %v10209_v23, %v4431_v19  ;;  %6610 = vmatmul.f32.gmra.mxu0 %v6527_v0  ;;  %v4849_v52 = vpop.f32.mrf.mxu1 }
 0x54e   : > { %v5516_v50 = vadd.f32 %v5388_v9, %v5202_v20  ;;  %v8625_v20 = vld [vmem:[%s11065_s2 + $0x3f8] sm:$0xff] }
 0x54f   : > { %v4662_v57 = vsel %vm4569_vm9, %v4431_v19, %v4616_v35  ;;  %v4985_v51 = vld [vmem:[#allocation2 + $0x109] sm:$0xff]  ;;  %v8641_v35 = vld [vmem:[%s11065_s2 + $0x478] sm:$0xff]  ;;  %6893 = vmatpush.msra.mxu1 %v8625_v20 }
 0x550   : > { %v5299_v27 = vld [vmem:[#allocation2 + $0x10a] sm:$0xff]  ;;  %4708 = vst [vmem:[#allocation2 + $0x118] sm:$0xff] %v4662_v57  ;;  %5124 = vmatmul.f32.gmra.mxu2 %v4985_v51  ;;  %4896 = vmatmul.f32.gmra.mxu1 %v4662_v57 }
 0x551   : > { %5438 = vmatmul.f32.gmra.mxu3 %v5299_v27  ;;  %5556 = vst [vmem:[%s10341_s17 + $0x80] sm:$0xff] %v5516_v50  ;;  %7207 = vmatpush.msra.mxu2 %v8641_v35  ;;  %v8623_v20 = vld [vmem:[%s11065_s2 + $0x3e8] sm:$0xff] }
 0x552   : > { %v4320_v13 = vpop.f32.mrf.mxu0 }
 0x553   : > { %v4432_v42 = vadd.f32 %v4386_v31, %v4320_v13  ;;  %v5077_v5 = vpop.f32.mrf.mxu2  ;;  %v6532_v13 = vld [vmem:[#allocation2 + $0x78] sm:$0xff] }
 0x554   : > { %v5391_v15 = vpop.f32.mrf.mxu3  ;;  %v5203_v43 = vadd.f32 %v5077_v5, %v4843_v41  ;;  %v4388_v41 = vld [vmem:[#allocation2 + $0x130] sm:$0xff] }
 0x555   : > { %vm4570_vm10 = vcmp.gt.f32.partialorder %v4432_v42, 0.0  ;;  %v4617_v22 = vmul.f32 %v10209_v23, %v4432_v42  ;;  %6613 = vmatmul.f32.gmra.mxu0 %v6528_v56  ;;  %v10543_v59 = vpop.f32.mrf.mxu1 }
 0x556   : > { %v5517_v24 = vadd.f32 %v5391_v15, %v5203_v43 }
 0x557   : > { %v4663_v21 = vsel %vm4570_vm10, %v4432_v42, %v4617_v22  ;;  %v4986_v40 = vld [vmem:[#allocation2 + $0x111] sm:$0xff] }
 0x558   : > { %v5300_v26 = vld [vmem:[#allocation2 + $0x112] sm:$0xff]  ;;  %4709 = vst [vmem:[#allocation2 + $0x120] sm:$0xff] %v4663_v21  ;;  %5127 = vmatmul.f32.gmra.mxu2 %v4986_v40  ;;  %4899 = vmatmul.f32.gmra.mxu1 %v4663_v21  ;;  %v4391_v21 = vld [vmem:[#allocation2 + $0x148] sm:$0xff] }
 0x559   : > { %5441 = vmatmul.f32.gmra.mxu3 %v5300_v26  ;;  %5557 = vst [vmem:[%s10341_s17 + $0x88] sm:$0xff] %v5517_v24  ;;  %v5580_v24 = vld [vmem:[#allocation2 + $0x14] sm:$0xff] }
 0x55a   : > { %v4323_v12 = vpop.f32.mrf.mxu0 }
 0x55b   : > { %v4433_v60 = vadd.f32 %v4387_v62, %v4323_v12  ;;  %v5080_v54 = vpop.f32.mrf.mxu2 }
 0x55c   : > { %v5394_v33 = vpop.f32.mrf.mxu3  ;;  %v5204_v18 = vadd.f32 %v5080_v54, %v10530_v29  ;;  %v4389_v29 = vld [vmem:[#allocation2 + $0x138] sm:$0xff] }
 0x55d   : > { %vm4571_vm11 = vcmp.gt.f32.partialorder %v4433_v60, 0.0  ;;  %v4618_v28 = vmul.f32 %v10209_v23, %v4433_v60  ;;  %6616 = vmatmul.f32.gmra.mxu0 %v6529_v53  ;;  %v10554_v11 = vpop.f32.mrf.mxu1 }
 0x55e   : > { %v5518_v30 = vadd.f32 %v5394_v33, %v5204_v18 }
 0x55f   : > { %v4664_v4 = vsel %vm4571_vm11, %v4433_v60, %v4618_v28  ;;  %v4987_v47 = vld [vmem:[#allocation2 + $0x119] sm:$0xff] }
 0x560   : > { %v5301_v34 = vld [vmem:[#allocation2 + $0x11a] sm:$0xff]  ;;  %4710 = vst [vmem:[#allocation2 + $0x128] sm:$0xff] %v4664_v4  ;;  %5130 = vmatmul.f32.gmra.mxu2 %v4987_v47  ;;  %4902 = vmatmul.f32.gmra.mxu1 %v4664_v4  ;;  %v4392_v47 = vld [vmem:[#allocation2 + $0x150] sm:$0xff] }
 0x561   : > { %5444 = vmatmul.f32.gmra.mxu3 %v5301_v34  ;;  %5558 = vst [vmem:[%s10341_s17 + $0x90] sm:$0xff] %v5518_v30  ;;  %v5581_v28 = vld [vmem:[#allocation2 + $0x1c] sm:$0xff]  ;;  %v8640_v34 = vld [vmem:[%s11065_s2 + $0x470] sm:$0xff] }
 0x562   : > { %v4326_v17 = vpop.f32.mrf.mxu0  ;;  %v7544_v30 = vld [vmem:[%s11066_s3] sm:$0xf]  ;;  %7208 = vmatpush.msra.mxu2 %v8640_v34  ;;  %v5898_v34 = vld [vmem:[#allocation2 + $0x35] sm:$0xff] }
 0x563   : > { %v4434_v37 = vadd.f32 %v4388_v41, %v4326_v17  ;;  %v5083_v2 = vpop.f32.mrf.mxu2  ;;  %8642 = vmatpush.msk.msra.mxu3 %vm427_vm0, %v7544_v30  ;;  %v6538_v30 = vld [vmem:[#allocation2 + $0xa8] sm:$0xff] }
 0x564   : > { %v5397_v61 = vpop.f32.mrf.mxu3  ;;  %v5205_v44 = vadd.f32 %v5083_v2, %v4849_v52  ;;  %v4390_v52 = vld [vmem:[#allocation2 + $0x140] sm:$0xff] }
 0x565   : > { %vm4572_vm12 = vcmp.gt.f32.partialorder %v4434_v37, 0.0  ;;  %v4619_v3 = vmul.f32 %v10209_v23, %v4434_v37  ;;  %6619 = vmatmul.f32.gmra.mxu0 %v6530_v10  ;;  %v4858_v16 = vpop.f32.mrf.mxu1 }
 0x566   : > { %v5519_v63 = vadd.f32 %v5397_v61, %v5205_v44 }
 0x567   : > { %v4665_v14 = vsel %vm4572_vm12, %v4434_v37, %v4619_v3  ;;  %v4988_v6 = vld [vmem:[#allocation2 + $0x121] sm:$0xff] }
 0x568   : > { %v5302_v36 = vld [vmem:[#allocation2 + $0x122] sm:$0xff]  ;;  %4711 = vst [vmem:[#allocation2 + $0x130] sm:$0xff] %v4665_v14  ;;  %5133 = vmatmul.f32.gmra.mxu2 %v4988_v6  ;;  %4905 = vmatmul.f32.gmra.mxu1 %v4665_v14 }
 0x569   : > { %5447 = vmatmul.f32.gmra.mxu3 %v5302_v36  ;;  %5559 = vst [vmem:[%s10341_s17 + $0x98] sm:$0xff] %v5519_v63  ;;  %v6534_v37 = vld [vmem:[#allocation2 + $0x88] sm:$0xff]  ;;  %v5894_v63 = vld [vmem:[#allocation2 + $0x15] sm:$0xff] }
 0x56a   : > { %v4329_v49 = vpop.f32.mrf.mxu0  ;;  %v5582_v14 = vld [vmem:[#allocation2 + $0x24] sm:$0xff]  ;;  %v4393_v36 = vld [vmem:[#allocation2 + $0x158] sm:$0xff] }
 0x56b   : > { %v4435_v32 = vadd.f32 %v4389_v29, %v4329_v49  ;;  %v5086_v7 = vpop.f32.mrf.mxu2 }
 0x56c   : > { %v5400_v58 = vpop.f32.mrf.mxu3  ;;  %v5206_v39 = vadd.f32 %v5086_v7, %v10543_v59 }
 0x56d   : > { %vm4573_vm13 = vcmp.gt.f32.partialorder %v4435_v32, 0.0  ;;  %v4620_v46 = vmul.f32 %v10209_v23, %v4435_v32  ;;  %6622 = vmatmul.f32.gmra.mxu0 %v6531_v55  ;;  %v10567_v19 = vpop.f32.mrf.mxu1 }
 0x56e   : > { %v5520_v8 = vadd.f32 %v5400_v58, %v5206_v39 }
 0x56f   : > { %v4666_v1 = vsel %vm4573_vm13, %v4435_v32, %v4620_v46  ;;  %v4989_v9 = vld [vmem:[#allocation2 + $0x129] sm:$0xff] }
 0x570   : > { %v5303_v0 = vld [vmem:[#allocation2 + $0x12a] sm:$0xff]  ;;  %4712 = vst [vmem:[#allocation2 + $0x138] sm:$0xff] %v4666_v1  ;;  %5136 = vmatmul.f32.gmra.mxu2 %v4989_v9  ;;  %4908 = vmatmul.f32.gmra.mxu1 %v4666_v1 }
 0x571   : > { %5450 = vmatmul.f32.gmra.mxu3 %v5303_v0  ;;  %5560 = vst [vmem:[%s10341_s17 + $0xa0] sm:$0xff] %v5520_v8  ;;  %v6535_v32 = vld [vmem:[#allocation2 + $0x90] sm:$0xff]  ;;  %v5895_v8 = vld [vmem:[#allocation2 + $0x1d] sm:$0xff] }
 0x572   : > { %v4332_v50 = vpop.f32.mrf.mxu0  ;;  %v5583_v1 = vld [vmem:[#allocation2 + $0x2c] sm:$0xff]  ;;  %v4394_v0 = vld [vmem:[#allocation2 + $0x160] sm:$0xff] }
 0x573   : > { %v4436_v57 = vadd.f32 %v4390_v52, %v4332_v50  ;;  %v5089_v51 = vpop.f32.mrf.mxu2 }
 0x574   : > { %v5403_v27 = vpop.f32.mrf.mxu3  ;;  %v5207_v31 = vadd.f32 %v5089_v51, %v10554_v11  ;;  %v8624_v11 = vld [vmem:[%s11065_s2 + $0x3f0] sm:$0xff] }
 0x575   : > { %vm4574_vm14 = vcmp.gt.f32.partialorder %v4436_v57, 0.0  ;;  %v4621_v42 = vmul.f32 %v10209_v23, %v4436_v57  ;;  %6625 = vmatmul.f32.gmra.mxu0 %v6532_v13  ;;  %v10578_v15 = vpop.f32.mrf.mxu1  ;;  %6894 = vmatpush.msra.mxu1 %v8624_v11  ;;  %v8639_v13 = vld [vmem:[%s11065_s2 + $0x468] sm:$0xff] }
 0x576   : > { %v5521_v5 = vadd.f32 %v5403_v27, %v5207_v31  ;;  %7209 = vmatpush.msra.mxu2 %v8639_v13 }
 0x577   : > { %v4667_v56 = vsel %vm4574_vm14, %v4436_v57, %v4621_v42  ;;  %v4990_v43 = vld [vmem:[#allocation2 + $0x131] sm:$0xff]  ;;  %6895 = vmatpush.msra.mxu1 %v8623_v20 }
 0x578   : > { %v5304_v22 = vld [vmem:[#allocation2 + $0x132] sm:$0xff]  ;;  %4713 = vst [vmem:[#allocation2 + $0x140] sm:$0xff] %v4667_v56  ;;  %5139 = vmatmul.f32.gmra.mxu2 %v4990_v43  ;;  %5653 = vmatmul.f32.vlgmr.msrb.gmra.mxu1 %v5580_v24  ;;  %v6210_v56 = vld [vmem:[#allocation2 + $0x26] sm:$0xff] }
 0x579   : > { %5453 = vmatmul.f32.gmra.mxu3 %v5304_v22  ;;  %5561 = vst [vmem:[%s10341_s17 + $0xa8] sm:$0xff] %v5521_v5  ;;  %v6536_v57 = vld [vmem:[#allocation2 + $0x98] sm:$0xff]  ;;  %v4395_v24 = vld [vmem:[#allocation2 + $0x168] sm:$0xff] }
 0x57a   : > { %v4335_v59 = vpop.f32.mrf.mxu0  ;;  %v5584_v43 = vld [vmem:[#allocation2 + $0x34] sm:$0xff] }
 0x57b   : > { %v4437_v40 = vadd.f32 %v4391_v21, %v4335_v59  ;;  %v5092_v26 = vpop.f32.mrf.mxu2 }
 0x57c   : > { %v5406_v25 = vpop.f32.mrf.mxu3  ;;  %v5208_v12 = vadd.f32 %v5092_v26, %v4858_v16  ;;  %v6208_v16 = vld [vmem:[#allocation2 + $0x16] sm:$0xff]  ;;  %v6537_v26 = vld [vmem:[#allocation2 + $0xa0] sm:$0xff] }
 0x57d   : > { %vm4575_vm15 = vcmp.gt.f32.partialorder %v4437_v40, 0.0  ;;  %v4622_v62 = vmul.f32 %v10209_v23, %v4437_v40  ;;  %6628 = vmatmul.f32.gmra.mxu0 %v6533_v45  ;;  %v10582_v54 = vpop.f32.mrf.mxu1 }
 0x57e   : > { %v5522_v60 = vadd.f32 %v5406_v25, %v5208_v12 }
 0x57f   : > { %v4668_v33 = vsel %vm4575_vm15, %v4437_v40, %v4622_v62  ;;  %v4991_v53 = vld [vmem:[#allocation2 + $0x139] sm:$0xff] }
 0x580   : > { %v5305_v18 = vld [vmem:[#allocation2 + $0x13a] sm:$0xff]  ;;  %4714 = vst [vmem:[#allocation2 + $0x148] sm:$0xff] %v4668_v33  ;;  %5142 = vmatmul.f32.gmra.mxu2 %v4991_v53  ;;  %5656 = vmatmul.f32.gmra.mxu1 %v5581_v28  ;;  %v6211_v33 = vld [vmem:[#allocation2 + $0x2e] sm:$0xff] }
 0x581   : > { %5456 = vmatmul.f32.gmra.mxu3 %v5305_v18  ;;  %5562 = vst [vmem:[%s10341_s17 + $0xb0] sm:$0xff] %v5522_v60  ;;  %v5585_v53 = vld [vmem:[#allocation2 + $0x3c] sm:$0xff] }
 0x582   : > { %v4338_v4 = vpop.f32.mrf.mxu0 }
 0x583   : > { %v4438_v38 = vadd.f32 %v4392_v47, %v4338_v4  ;;  %v5095_v17 = vpop.f32.mrf.mxu2 }
 0x584   : > { %v5409_v41 = vpop.f32.mrf.mxu3  ;;  %v5209_v2 = vadd.f32 %v5095_v17, %v10567_v19  ;;  %v6209_v19 = vld [vmem:[#allocation2 + $0x1e] sm:$0xff] }
 0x585   : > { %vm4576_vm2 = vcmp.gt.f32.partialorder %v4438_v38, 0.0  ;;  %v4623_v61 = vmul.f32 %v10209_v23, %v4438_v38  ;;  %6631 = vmatmul.f32.gmra.mxu0 %v6534_v37  ;;  %v4870_v44 = vpop.f32.mrf.mxu1  ;;  %v5586_v17 = vld [vmem:[#allocation2 + $0x44] sm:$0xff] }
 0x586   : > { %v5523_v10 = vadd.f32 %v5409_v41, %v5209_v2  ;;  %v8638_v41 = vld [vmem:[%s11065_s2 + $0x460] sm:$0xff] }
 0x587   : > { %v4669_v3 = vsel %vm4576_vm2, %v4438_v38, %v4623_v61  ;;  %v6212_v38 = vld [vmem:[#allocation2 + $0x36] sm:$0xff]  ;;  %7210 = vmatpush.msra.mxu2 %v8638_v41  ;;  %v6545_v41 = vld [vmem:[#allocation2 + $0xe0] sm:$0xff] }
 0x588   : > { %4715 = vst [vmem:[#allocation2 + $0x150] sm:$0xff] %v4669_v3  ;;  %5967 = vmatmul.f32.vlgmr.msrb.gmra.mxu2 %v5894_v63  ;;  %5659 = vmatmul.f32.gmra.mxu1 %v5582_v14  ;;  %v6539_v61 = vld [vmem:[#allocation2 + $0xb0] sm:$0xff]  ;;  %v5899_v63 = vld [vmem:[#allocation2 + $0x3d] sm:$0xff] }
 0x589   : > { %6281 = vmatmul.f32.vlgmr.msrb.gmra.mxu3 %v6208_v16  ;;  %5563 = vst [vmem:[%s10341_s17 + $0xb8] sm:$0xff] %v5523_v10  ;;  %v6213_v16 = vld [vmem:[#allocation2 + $0x3e] sm:$0xff]  ;;  %v5587_v14 = vld [vmem:[#allocation2 + $0x4c] sm:$0xff] }
 0x58a   : > { %v4341_v6 = vpop.f32.mrf.mxu0 }
 0x58b   : > { %v4439_v48 = vadd.f32 %v4393_v36, %v4341_v6  ;;  %v5098_v49 = vpop.f32.mrf.mxu2 }
 0x58c   : > { %v5412_v29 = vpop.f32.mrf.mxu3  ;;  %v5210_v7 = vadd.f32 %v5098_v49, %v10578_v15  ;;  %v5896_v15 = vld [vmem:[#allocation2 + $0x25] sm:$0xff] }
 0x58d   : > { %vm4577_vm0 = vcmp.gt.f32.partialorder %v4439_v48, 0.0  ;;  %v4624_v58 = vmul.f32 %v10209_v23, %v4439_v48  ;;  %6634 = vmatmul.f32.gmra.mxu0 %v6535_v32  ;;  %v4873_v39 = vpop.f32.mrf.mxu1 }
 0x58e   : > { %v5524_v55 = vadd.f32 %v5412_v29, %v5210_v7  ;;  %v5900_v7 = vld [vmem:[#allocation2 + $0x45] sm:$0xff] }
 0x58f   : > { %v4670_v46 = vsel %vm4577_vm0, %v4439_v48, %v4624_v58  ;;  %v6540_v48 = vld [vmem:[#allocation2 + $0xb8] sm:$0xff]  ;;  %v6214_v58 = vld [vmem:[#allocation2 + $0x46] sm:$0xff] }
 0x590   : > { %4716 = vst [vmem:[#allocation2 + $0x158] sm:$0xff] %v4670_v46  ;;  %5970 = vmatmul.f32.gmra.mxu2 %v5895_v8  ;;  %5662 = vmatmul.f32.gmra.mxu1 %v5583_v1 }
 0x591   : > { %6284 = vmatmul.f32.gmra.mxu3 %v6209_v19  ;;  %5564 = vst [vmem:[%s10341_s17 + $0xc0] sm:$0xff] %v5524_v55  ;;  %v5588_v55 = vld [vmem:[#allocation2 + $0x54] sm:$0xff]  ;;  %v6541_v19 = vld [vmem:[#allocation2 + $0xc0] sm:$0xff] }
 0x592   : > { %v4344_v9 = vpop.f32.mrf.mxu0 }
 0x593   : > { %v4440_v35 = vadd.f32 %v4394_v0, %v4344_v9  ;;  %v5101_v50 = vpop.f32.mrf.mxu2  ;;  %v8637_v9 = vld [vmem:[%s11065_s2 + $0x458] sm:$0xff] }
 0x594   : > { %v5415_v52 = vpop.f32.mrf.mxu3  ;;  %v5211_v51 = vadd.f32 %v5101_v50, %v10582_v54  ;;  %v5897_v54 = vld [vmem:[#allocation2 + $0x2d] sm:$0xff]  ;;  %7211 = vmatpush.msra.mxu2 %v8637_v9 }
 0x595   : > { %vm4578_vm3 = vcmp.gt.f32.partialorder %v4440_v35, 0.0  ;;  %v4625_v27 = vmul.f32 %v10209_v23, %v4440_v35  ;;  %6637 = vmatmul.f32.gmra.mxu0 %v6536_v57  ;;  %v4876_v42 = vpop.f32.mrf.mxu1  ;;  %v6215_v50 = vld [vmem:[#allocation2 + $0x4e] sm:$0xff] }
 0x596   : > { %v5525_v31 = vadd.f32 %v5415_v52, %v5211_v51  ;;  %v5589_v52 = vld [vmem:[#allocation2 + $0x5c] sm:$0xff] }
 0x597   : > { %v4671_v5 = vsel %vm4578_vm3, %v4440_v35, %v4625_v27  ;;  %v5901_v35 = vld [vmem:[#allocation2 + $0x4d] sm:$0xff] }
 0x598   : > { %4717 = vst [vmem:[#allocation2 + $0x160] sm:$0xff] %v4671_v5  ;;  %5973 = vmatmul.f32.gmra.mxu2 %v5896_v15  ;;  %5665 = vmatmul.f32.gmra.mxu1 %v5584_v43  ;;  %v6542_v27 = vld [vmem:[#allocation2 + $0xc8] sm:$0xff]  ;;  %v5902_v15 = vld [vmem:[#allocation2 + $0x55] sm:$0xff] }
 0x599   : > { %6287 = vmatmul.f32.gmra.mxu3 %v6210_v56  ;;  %5565 = vst [vmem:[%s10341_s17 + $0xc8] sm:$0xff] %v5525_v31  ;;  %v6216_v56 = vld [vmem:[#allocation2 + $0x56] sm:$0xff]  ;;  %v5590_v43 = vld [vmem:[#allocation2 + $0x64] sm:$0xff] }
 0x59a   : > { %v4347_v22 = vpop.f32.mrf.mxu0 }
 0x59b   : > { %v4441_v59 = vadd.f32 %v4395_v24, %v4347_v22  ;;  %v5104_v21 = vpop.f32.mrf.mxu2 }
 0x59c   : > { %v5418_v40 = vpop.f32.mrf.mxu3  ;;  %v5212_v25 = vadd.f32 %v5104_v21, %v4870_v44 }
 0x59d   : > { %vm4579_vm4 = vcmp.gt.f32.partialorder %v4441_v59, 0.0  ;;  %v4626_v45 = vmul.f32 %v10209_v23, %v4441_v59  ;;  %6640 = vmatmul.f32.gmra.mxu0 %v6537_v26  ;;  %v4879_v62 = vpop.f32.mrf.mxu1  ;;  %v8622_v23 = vld [vmem:[%s11065_s2 + $0x3e0] sm:$0xff] }
 0x59e   : > { %v5526_v12 = vadd.f32 %v5418_v40, %v5212_v25  ;;  %6896 = vmatpush.msra.mxu1 %v8622_v23  ;;  %v8620_v40 = vld [vmem:[%s11065_s2 + $0x3d0] sm:$0xff]  ;;  %v5904_v23 = vld [vmem:[#allocation2 + $0x65] sm:$0xff] }
 0x59f   : > { %v4672_v60 = vsel %vm4579_vm4, %v4441_v59, %v4626_v45  ;;  %v6543_v59 = vld [vmem:[#allocation2 + $0xd0] sm:$0xff]  ;;  %v5903_v45 = vld [vmem:[#allocation2 + $0x5d] sm:$0xff] }
 0x5a0   : > { %4718 = vst [vmem:[#allocation2 + $0x168] sm:$0xff] %v4672_v60  ;;  %5976 = vmatmul.f32.gmra.mxu2 %v5897_v54  ;;  %5668 = vmatmul.f32.gmra.mxu1 %v5585_v53  ;;  %v5591_v60 = vld [vmem:[#allocation2 + $0x6c] sm:$0xff] }
 0x5a1   : > { %6290 = vmatmul.f32.gmra.mxu3 %v6211_v33  ;;  %5566 = vst [vmem:[%s10341_s17 + $0xd0] sm:$0xff] %v5526_v12  ;;  %v6217_v12 = vld [vmem:[#allocation2 + $0x5e] sm:$0xff]  ;;  %v8636_v54 = vld [vmem:[%s11065_s2 + $0x450] sm:$0xff] }
 0x5a2   : > { %v10628_v31 = vpop.f32.mrf.mxu0  ;;  %7212 = vmatpush.msra.mxu2 %v8636_v54  ;;  %v5597_v54 = vld [vmem:[#allocation2 + $0x9c] sm:$0xff] }
 0x5a3   : > { %v5107_v18 = vpop.f32.mrf.mxu2 }
 0x5a4   : > { %v5421_v28 = vpop.f32.mrf.mxu3  ;;  %v5213_v11 = vadd.f32 %v5107_v18, %v4873_v39  ;;  %v8621_v39 = vld [vmem:[%s11065_s2 + $0x3d8] sm:$0xff] }
 0x5a5   : > { %6643 = vmatmul.f32.gmra.mxu0 %v6538_v30  ;;  %v4882_v47 = vpop.f32.mrf.mxu1  ;;  %6897 = vmatpush.msra.mxu1 %v8621_v39  ;;  %v6544_v18 = vld [vmem:[#allocation2 + $0xd8] sm:$0xff] }
 0x5a6   : > { %v5527_v4 = vadd.f32 %v5421_v28, %v5213_v11 }
 0x5a7   : > { %6898 = vmatpush.msra.mxu1 %v8620_v40  ;;  %v6549_v40 = vld [vmem:[#allocation2 + $0x100] sm:$0xff] }
 0x5a8   : > { %5567 = vst [vmem:[%s10341_s17 + $0xd8] sm:$0xff] %v5527_v4  ;;  %5979 = vmatmul.f32.gmra.mxu2 %v5898_v34  ;;  %5671 = vmatmul.f32.gmra.mxu1 %v5586_v17  ;;  %v6218_v4 = vld [vmem:[#allocation2 + $0x66] sm:$0xff] }
 0x5a9   : > { %6293 = vmatmul.f32.gmra.mxu3 %v6212_v38 }
 0x5ab   : > { %v5110_v37 = vpop.f32.mrf.mxu2 }
 0x5ac   : > { %v5424_v2 = vpop.f32.mrf.mxu3  ;;  %v5214_v10 = vadd.f32 %v5110_v37, %v4876_v42 }
 0x5ad   : > { %6646 = vmatmul.f32.gmra.mxu0 %v6539_v61  ;;  %v4885_v3 = vpop.f32.mrf.mxu1 }
 0x5ae   : > { %v5528_v44 = vadd.f32 %v5424_v2, %v5214_v10  ;;  %v5905_v10 = vld [vmem:[#allocation2 + $0x6d] sm:$0xff] }
 0x5b0   : > { %5568 = vst [vmem:[%s10341_s17 + $0xe0] sm:$0xff] %v5528_v44  ;;  %5982 = vmatmul.f32.gmra.mxu2 %v5899_v63  ;;  %5674 = vmatmul.f32.gmra.mxu1 %v5587_v14  ;;  %v6219_v44 = vld [vmem:[#allocation2 + $0x6e] sm:$0xff] }
 0x5b1   : > { %6296 = vmatmul.f32.gmra.mxu3 %v6213_v16  ;;  %v8619_v63 = vld [vmem:[%s11065_s2 + $0x3c8] sm:$0xff] }
 0x5b2   : > { %6899 = vmatpush.msra.mxu1 %v8619_v63  ;;  %v8633_v63 = vld [vmem:[%s11065_s2 + $0x438] sm:$0xff] }
 0x5b3   : > { %v5113_v6 = vpop.f32.mrf.mxu2 }
 0x5b4   : > { %v5427_v36 = vpop.f32.mrf.mxu3  ;;  %v5215_v49 = vadd.f32 %v5113_v6, %v4879_v62  ;;  %v10634_v62 = vpop.f32.mrf.mxu0 }
 0x5b5   : > { %6649 = vmatmul.f32.gmra.mxu0 %v6540_v48  ;;  %v4888_v32 = vpop.f32.mrf.mxu1 }
 0x5b6   : > { %v5529_v29 = vadd.f32 %v5427_v36, %v5215_v49  ;;  %v6546_v36 = vld [vmem:[#allocation2 + $0xe8] sm:$0xff] }
 0x5b7   : > { %v8635_v49 = vld [vmem:[%s11065_s2 + $0x448] sm:$0xff] }
 0x5b8   : > { %5569 = vst [vmem:[%s10341_s17 + $0xe8] sm:$0xff] %v5529_v29  ;;  %5985 = vmatmul.f32.gmra.mxu2 %v5900_v7  ;;  %5677 = vmatmul.f32.gmra.mxu1 %v5588_v55  ;;  %v5906_v7 = vld [vmem:[#allocation2 + $0x75] sm:$0xff]  ;;  %v5594_v55 = vld [vmem:[#allocation2 + $0x84] sm:$0xff] }
 0x5b9   : > { %6299 = vmatmul.f32.gmra.mxu3 %v6214_v58  ;;  %7213 = vmatpush.msra.mxu2 %v8635_v49  ;;  %v6220_v58 = vld [vmem:[#allocation2 + $0x76] sm:$0xff]  ;;  %v5599_v49 = vld [vmem:[#allocation2 + $0xac] sm:$0xff] }
 0x5bb   : > { %v5116_v46 = vpop.f32.mrf.mxu2 }
 0x5bc   : > { %v5430_v8 = vpop.f32.mrf.mxu3  ;;  %v5216_v1 = vadd.f32 %v5116_v46, %v4882_v47  ;;  %v5592_v47 = vld [vmem:[#allocation2 + $0x74] sm:$0xff]  ;;  %v10641_v34 = vpop.f32.mrf.mxu0 }
 0x5bd   : > { %6652 = vmatmul.f32.gmra.mxu0 %v6541_v19  ;;  %v4891_v20 = vpop.f32.mrf.mxu1 }
 0x5be   : > { %v5530_v0 = vadd.f32 %v5430_v8, %v5216_v1  ;;  %v6547_v8 = vld [vmem:[#allocation2 + $0xf0] sm:$0xff] }
 0x5c0   : > { %5570 = vst [vmem:[%s10341_s17 + $0xf0] sm:$0xff] %v5530_v0  ;;  %5988 = vmatmul.f32.gmra.mxu2 %v5901_v35  ;;  %5680 = vmatmul.f32.gmra.mxu1 %v5589_v52  ;;  %v6221_v35 = vld [vmem:[#allocation2 + $0x7e] sm:$0xff] }
 0x5c1   : > { %6302 = vmatmul.f32.gmra.mxu3 %v6215_v50  ;;  %v5595_v50 = vld [vmem:[#allocation2 + $0x8c] sm:$0xff] }
 0x5c3   : > { %v5119_v57 = vpop.f32.mrf.mxu2 }
 0x5c4   : > { %v5433_v51 = vpop.f32.mrf.mxu3  ;;  %v5217_v13 = vadd.f32 %v5119_v57, %v4885_v3  ;;  %v5593_v3 = vld [vmem:[#allocation2 + $0x7c] sm:$0xff]  ;;  %v10647_v6 = vpop.f32.mrf.mxu0 }
 0x5c5   : > { %6655 = vmatmul.f32.gmra.mxu0 %v6542_v27  ;;  %v4894_v5 = vpop.f32.mrf.mxu1 }
 0x5c6   : > { %v5531_v42 = vadd.f32 %v5433_v51, %v5217_v13  ;;  %v6548_v51 = vld [vmem:[#allocation2 + $0xf8] sm:$0xff]  ;;  %v8618_v13 = vld [vmem:[%s11065_s2 + $0x3c0] sm:$0xff] }
 0x5c7   : > { %6900 = vmatpush.msra.mxu1 %v8618_v13  ;;  %v8616_v13 = vld [vmem:[%s11065_s2 + $0x3b0] sm:$0xff] }
 0x5c8   : > { %5571 = vst [vmem:[%s10341_s17 + $0xf8] sm:$0xff] %v5531_v42  ;;  %5991 = vmatmul.f32.gmra.mxu2 %v5902_v15  ;;  %5683 = vmatmul.f32.gmra.mxu1 %v5590_v43  ;;  %v5908_v15 = vld [vmem:[#allocation2 + $0x85] sm:$0xff] }
 0x5c9   : > { %6305 = vmatmul.f32.gmra.mxu3 %v6216_v56  ;;  %v6222_v56 = vld [vmem:[#allocation2 + $0x86] sm:$0xff] }
 0x5cb   : > { %v5122_v22 = vpop.f32.mrf.mxu2 }
 0x5cc   : > { %v5436_v24 = vpop.f32.mrf.mxu3  ;;  %v5218_v21 = vadd.f32 %v5122_v22, %v4888_v32  ;;  %v10653_v1 = vpop.f32.mrf.mxu0  ;;  %v5596_v22 = vld [vmem:[#allocation2 + $0x94] sm:$0xff] }
 0x5cd   : > { %6658 = vmatmul.f32.gmra.mxu0 %v6543_v59  ;;  %v4897_v25 = vpop.f32.mrf.mxu1 }
 0x5ce   : > { %v5532_v26 = vadd.f32 %v5436_v24, %v5218_v21  ;;  %v8634_v24 = vld [vmem:[%s11065_s2 + $0x440] sm:$0xff] }
 0x5cf   : > { %7214 = vmatpush.msra.mxu2 %v8634_v24  ;;  %v5601_v24 = vld [vmem:[#allocation2 + $0xbc] sm:$0xff] }
 0x5d0   : > { %5572 = vst [vmem:[%s10341_s17 + $0x100] sm:$0xff] %v5532_v26  ;;  %5994 = vmatmul.f32.gmra.mxu2 %v5903_v45  ;;  %5686 = vmatmul.f32.gmra.mxu1 %v5591_v60  ;;  %v6223_v60 = vld [vmem:[#allocation2 + $0x8e] sm:$0xff] }
 0x5d1   : > { %6308 = vmatmul.f32.gmra.mxu3 %v6217_v12  ;;  %v5909_v12 = vld [vmem:[#allocation2 + $0x8d] sm:$0xff]  ;;  %7215 = vmatpush.msra.mxu2 %v8633_v63 }
 0x5d3   : > { %v5125_v33 = vpop.f32.mrf.mxu2 }
 0x5d4   : > { %v5439_v53 = vpop.f32.mrf.mxu3  ;;  %v5219_v28 = vadd.f32 %v5125_v33, %v4891_v20  ;;  %v5907_v20 = vld [vmem:[#allocation2 + $0x7d] sm:$0xff]  ;;  %v10659_v43 = vpop.f32.mrf.mxu0 }
 0x5d5   : > { %6661 = vmatmul.f32.gmra.mxu0 %v6544_v18  ;;  %v4900_v11 = vpop.f32.mrf.mxu1 }
 0x5d6   : > { %v5533_v30 = vadd.f32 %v5439_v53, %v5219_v28  ;;  %v6550_v28 = vld [vmem:[#allocation2 + $0x108] sm:$0xff] }
 0x5d8   : > { %5573 = vst [vmem:[%s10341_s17 + $0x108] sm:$0xff] %v5533_v30  ;;  %5997 = vmatmul.f32.gmra.mxu2 %v5904_v23  ;;  %5689 = vmatmul.f32.gmra.mxu1 %v5592_v47  ;;  %v6224_v47 = vld [vmem:[#allocation2 + $0x96] sm:$0xff] }
 0x5d9   : > { %6311 = vmatmul.f32.gmra.mxu3 %v6218_v4  ;;  %v5910_v4 = vld [vmem:[#allocation2 + $0x95] sm:$0xff] }
 0x5db   : > { %v5128_v38 = vpop.f32.mrf.mxu2 }
 0x5dc   : > { %v5442_v17 = vpop.f32.mrf.mxu3  ;;  %v5220_v37 = vadd.f32 %v5128_v38, %v4894_v5  ;;  %v10666_v33 = vpop.f32.mrf.mxu0  ;;  %v5598_v38 = vld [vmem:[#allocation2 + $0xa4] sm:$0xff] }
 0x5dd   : > { %6664 = vmatmul.f32.gmra.mxu0 %v6545_v41  ;;  %v4903_v61 = vpop.f32.mrf.mxu1 }
 0x5de   : > { %v5534_v2 = vadd.f32 %v5442_v17, %v5220_v37  ;;  %v5774_v17 = vld [vmem:[%s10341_s17] sm:$0xff]  ;;  %v8617_v37 = vld [vmem:[%s11065_s2 + $0x3b8] sm:$0xff] }
 0x5df   : > { %6901 = vmatpush.msra.mxu1 %v8617_v37 }
 0x5e0   : > { %5574 = vst [vmem:[%s10341_s17 + $0x110] sm:$0xff] %v5534_v2  ;;  %6000 = vmatmul.f32.gmra.mxu2 %v5905_v10  ;;  %5692 = vmatmul.f32.gmra.mxu1 %v5593_v3 }
 0x5e1   : > { %6314 = vmatmul.f32.gmra.mxu3 %v6219_v44  ;;  %v6551_v44 = vld [vmem:[#allocation2 + $0x110] sm:$0xff]  ;;  %6902 = vmatpush.msra.mxu1 %v8616_v13 }
 0x5e2   : > { %v6231_v13 = vld [vmem:[#allocation2 + $0xce] sm:$0xff] }
 0x5e3   : > { %v5131_v16 = vpop.f32.mrf.mxu2 }
 0x5e4   : > { %v5445_v14 = vpop.f32.mrf.mxu3  ;;  %v5221_v48 = vadd.f32 %v5131_v16, %v4897_v25  ;;  %v10673_v10 = vpop.f32.mrf.mxu0 }
 0x5e5   : > { %6667 = vmatmul.f32.gmra.mxu0 %v6546_v36  ;;  %v4906_v32 = vpop.f32.mrf.mxu1  ;;  %v5911_v36 = vld [vmem:[#allocation2 + $0x9d] sm:$0xff] }
 0x5e6   : > { %v5535_v29 = vadd.f32 %v5445_v14, %v5221_v48  ;;  %v6225_v48 = vld [vmem:[#allocation2 + $0x9e] sm:$0xff] }
 0x5e8   : > { %5575 = vst [vmem:[%s10341_s17 + $0x118] sm:$0xff] %v5535_v29  ;;  %6003 = vmatmul.f32.gmra.mxu2 %v5906_v7  ;;  %5695 = vmatmul.f32.gmra.mxu1 %v5594_v55  ;;  %v5775_v29 = vld [vmem:[%s10341_s17 + $0x8] sm:$0xff]  ;;  %v6552_v55 = vld [vmem:[#allocation2 + $0x118] sm:$0xff] }
 0x5e9   : > { %6317 = vmatmul.f32.gmra.mxu3 %v6220_v58 }
 0x5eb   : > { %v5134_v39 = vpop.f32.mrf.mxu2 }
 0x5ec   : > { %v5448_v46 = vpop.f32.mrf.mxu3  ;;  %v5222_v19 = vadd.f32 %v5134_v39, %v4900_v11 }
 0x5ed   : > { %6670 = vmatmul.f32.gmra.mxu0 %v6547_v8  ;;  %v4909_v0 = vpop.f32.mrf.mxu1 }
 0x5ee   : > { %v5536_v9 = vadd.f32 %v5448_v46, %v5222_v19  ;;  %v10680_v46 = vpop.f32.mrf.mxu0 }
 0x5f0   : > { %5576 = vst [vmem:[%s10341_s17 + $0x120] sm:$0xff] %v5536_v9  ;;  %6006 = vmatmul.f32.gmra.mxu2 %v5907_v20  ;;  %5698 = vmatmul.f32.gmra.mxu1 %v5595_v50  ;;  %v5912_v9 = vld [vmem:[#allocation2 + $0xa5] sm:$0xff]  ;;  %v5600_v20 = vld [vmem:[#allocation2 + $0xb4] sm:$0xff] }
 0x5f1   : > { %6320 = vmatmul.f32.gmra.mxu3 %v6221_v35  ;;  %v5776_v35 = vld [vmem:[%s10341_s17 + $0x10] sm:$0xff] }
 0x5f3   : > { %v5137_v52 = vpop.f32.mrf.mxu2 }
 0x5f4   : > { %v5451_v57 = vpop.f32.mrf.mxu3  ;;  %v5223_v27 = vadd.f32 %v5137_v52, %v4903_v61 }
 0x5f5   : > { %6673 = vmatmul.f32.gmra.mxu0 %v6548_v51  ;;  %v5654_v5 = vpop.f32.mrf.mxu1  ;;  %v6553_v51 = vld [vmem:[#allocation2 + $0x120] sm:$0xff] }
 0x5f6   : > { %v5537_v42 = vadd.f32 %v5451_v57, %v5223_v27  ;;  %v5814_v41 = vadd.f32 %v5774_v17, %v5654_v5 }
 0x5f8   : > { %5577 = vst [vmem:[%s10341_s17 + $0x128] sm:$0xff] %v5537_v42  ;;  %6009 = vmatmul.f32.gmra.mxu2 %v5908_v15  ;;  %5701 = vmatmul.f32.gmra.mxu1 %v5596_v22  ;;  %v5913_v15 = vld [vmem:[#allocation2 + $0xad] sm:$0xff]  ;;  %v10687_v22 = vpop.f32.mrf.mxu0 }
 0x5f9   : > { %6323 = vmatmul.f32.gmra.mxu3 %v6222_v56  ;;  %v6227_v56 = vld [vmem:[#allocation2 + $0xae] sm:$0xff] }
 0x5fb   : > { %v5140_v59 = vpop.f32.mrf.mxu2 }
 0x5fc   : > { %v5454_v21 = vpop.f32.mrf.mxu3  ;;  %v5224_v26 = vadd.f32 %v5140_v59, %v4906_v32  ;;  %v5777_v59 = vld [vmem:[%s10341_s17 + $0x18] sm:$0xff] }
 0x5fd   : > { %6676 = vmatmul.f32.gmra.mxu0 %v6549_v40  ;;  %v5657_v45 = vpop.f32.mrf.mxu1  ;;  %v8632_v40 = vld [vmem:[%s11065_s2 + $0x430] sm:$0xff] }
 0x5fe   : > { %v5538_v25 = vadd.f32 %v5454_v21, %v5224_v26  ;;  %v5815_v32 = vadd.f32 %v5775_v29, %v5657_v45  ;;  %7216 = vmatpush.msra.mxu2 %v8632_v40  ;;  %v6554_v45 = vld [vmem:[#allocation2 + $0x128] sm:$0xff] }
 0x600   : > { %5578 = vst [vmem:[%s10341_s17 + $0x130] sm:$0xff] %v5538_v25  ;;  %6012 = vmatmul.f32.gmra.mxu2 %v5909_v12  ;;  %5704 = vmatmul.f32.gmra.mxu1 %v5597_v54 }
 0x601   : > { %6326 = vmatmul.f32.gmra.mxu3 %v6223_v60 }
 0x603   : > { %v5143_v53 = vpop.f32.mrf.mxu2 }
 0x604   : > { %v5457_v18 = vpop.f32.mrf.mxu3  ;;  %v5225_v30 = vadd.f32 %v5143_v53, %v4909_v0  ;;  %v6226_v0 = vld [vmem:[#allocation2 + $0xa6] sm:$0xff]  ;;  %v5914_v53 = vld [vmem:[#allocation2 + $0xb5] sm:$0xff] }
 0x605   : > { %6679 = vmatmul.f32.gmra.mxu0 %v6550_v28  ;;  %v5660_v23 = vpop.f32.mrf.mxu1  ;;  %v5602_v28 = vld [vmem:[#allocation2 + $0xc4] sm:$0xff] }
 0x606   : > { %v5539_v11 = vadd.f32 %v5457_v18, %v5225_v30  ;;  %v5816_v50 = vadd.f32 %v5776_v35, %v5660_v23  ;;  %v6228_v18 = vld [vmem:[#allocation2 + $0xb6] sm:$0xff]  ;;  %v5778_v30 = vld [vmem:[%s10341_s17 + $0x20] sm:$0xff] }
 0x607   : > { %v6557_v35 = vld [vmem:[#allocation2 + $0x140] sm:$0xff] }
 0x608   : > { %5579 = vst [vmem:[%s10341_s17 + $0x138] sm:$0xff] %v5539_v11  ;;  %6015 = vmatmul.f32.gmra.mxu2 %v5910_v4  ;;  %5707 = vmatmul.f32.gmra.mxu1 %v5598_v38  ;;  %v10696_v11 = vpop.f32.mrf.mxu0  ;;  %v6555_v38 = vld [vmem:[#allocation2 + $0x130] sm:$0xff] }
 0x609   : > { %6329 = vmatmul.f32.gmra.mxu3 %v6224_v47 }
 0x60b   : > { %v5968_v2 = vpop.f32.mrf.mxu2 }
 0x60c   : > { %v6282_v61 = vpop.f32.mrf.mxu3  ;;  %v6128_v3 = vadd.f32 %v5968_v2, %v5814_v41  ;;  %v5915_v2 = vld [vmem:[#allocation2 + $0xbd] sm:$0xff] }
 0x60d   : > { %6682 = vmatmul.f32.gmra.mxu0 %v6551_v44  ;;  %v5663_v14 = vpop.f32.mrf.mxu1  ;;  %v5603_v44 = vld [vmem:[#allocation2 + $0xcc] sm:$0xff] }
 0x60e   : > { %v6442_v16 = vadd.f32 %v6282_v61, %v6128_v3  ;;  %v5817_v21 = vadd.f32 %v5777_v59, %v5663_v14  ;;  %v6229_v61 = vld [vmem:[#allocation2 + $0xbe] sm:$0xff]  ;;  %v5779_v3 = vld [vmem:[%s10341_s17 + $0x28] sm:$0xff] }
 0x610   : > { %6482 = vst [vmem:[%s10341_s17] sm:$0xff] %v6442_v16  ;;  %6018 = vmatmul.f32.gmra.mxu2 %v5911_v36  ;;  %5710 = vmatmul.f32.gmra.mxu1 %v5599_v49  ;;  %v8615_v16 = vld [vmem:[%s11065_s2 + $0x3a8] sm:$0xff]  ;;  %v6556_v49 = vld [vmem:[#allocation2 + $0x138] sm:$0xff] }
 0x611   : > { %6332 = vmatmul.f32.gmra.mxu3 %v6225_v48  ;;  %6903 = vmatpush.msra.mxu1 %v8615_v16  ;;  %v10703_v48 = vpop.f32.mrf.mxu0 }
 0x613   : > { %v5971_v7 = vpop.f32.mrf.mxu2 }
 0x614   : > { %v6285_v58 = vpop.f32.mrf.mxu3  ;;  %v6129_v39 = vadd.f32 %v5971_v7, %v5815_v32  ;;  %v8631_v32 = vld [vmem:[%s11065_s2 + $0x428] sm:$0xff] }
 0x615   : > { %6685 = vmatmul.f32.gmra.mxu0 %v6552_v55  ;;  %v5666_v19 = vpop.f32.mrf.mxu1  ;;  %7217 = vmatpush.msra.mxu2 %v8631_v32  ;;  %v5916_v55 = vld [vmem:[#allocation2 + $0xc5] sm:$0xff] }
 0x616   : > { %v6443_v8 = vadd.f32 %v6285_v58, %v6129_v39  ;;  %v5818_v23 = vadd.f32 %v5778_v30, %v5666_v19  ;;  %v6230_v39 = vld [vmem:[#allocation2 + $0xc6] sm:$0xff]  ;;  %v5780_v19 = vld [vmem:[%s10341_s17 + $0x30] sm:$0xff] }
 0x617   : > { %v5920_v32 = vld [vmem:[#allocation2 + $0xe5] sm:$0xff] }
 0x618   : > { %6483 = vst [vmem:[%s10341_s17 + $0x8] sm:$0xff] %v6443_v8  ;;  %6021 = vmatmul.f32.gmra.mxu2 %v5912_v9  ;;  %5713 = vmatmul.f32.gmra.mxu1 %v5600_v20  ;;  %v5604_v8 = vld [vmem:[#allocation2 + $0xd4] sm:$0xff] }
 0x619   : > { %6335 = vmatmul.f32.gmra.mxu3 %v6226_v0 }
 0x61b   : > { %v5974_v52 = vpop.f32.mrf.mxu2 }
 0x61c   : > { %v6288_v57 = vpop.f32.mrf.mxu3  ;;  %v6130_v27 = vadd.f32 %v5974_v52, %v5816_v50  ;;  %v10710_v52 = vpop.f32.mrf.mxu0 }
 0x61d   : > { %6688 = vmatmul.f32.gmra.mxu0 %v6553_v51  ;;  %v5669_v5 = vpop.f32.mrf.mxu1 }
 0x61e   : > { %v6444_v42 = vadd.f32 %v6288_v57, %v6130_v27  ;;  %v5819_v63 = vadd.f32 %v5779_v3, %v5669_v5  ;;  %v5917_v27 = vld [vmem:[#allocation2 + $0xcd] sm:$0xff]  ;;  %v5781_v5 = vld [vmem:[%s10341_s17 + $0x38] sm:$0xff] }
 0x620   : > { %6484 = vst [vmem:[%s10341_s17 + $0x10] sm:$0xff] %v6444_v42  ;;  %6024 = vmatmul.f32.gmra.mxu2 %v5913_v15  ;;  %5716 = vmatmul.f32.gmra.mxu1 %v5601_v24  ;;  %v5605_v42 = vld [vmem:[#allocation2 + $0xdc] sm:$0xff] }
 0x621   : > { %6338 = vmatmul.f32.gmra.mxu3 %v6227_v56  ;;  %v8614_v56 = vld [vmem:[%s11065_s2 + $0x3a0] sm:$0xff] }
 0x622   : > { %6904 = vmatpush.msra.mxu1 %v8614_v56 }
 0x623   : > { %v5977_v26 = vpop.f32.mrf.mxu2 }
 0x624   : > { %v6291_v25 = vpop.f32.mrf.mxu3  ;;  %v6131_v12 = vadd.f32 %v5977_v26, %v5817_v21  ;;  %v6558_v21 = vld [vmem:[#allocation2 + $0x148] sm:$0xff] }
 0x625   : > { %6691 = vmatmul.f32.gmra.mxu0 %v6554_v45  ;;  %v5672_v54 = vpop.f32.mrf.mxu1  ;;  %v5918_v45 = vld [vmem:[#allocation2 + $0xd5] sm:$0xff] }
 0x626   : > { %v6445_v60 = vadd.f32 %v6291_v25, %v6131_v12  ;;  %v5820_v9 = vadd.f32 %v5780_v19, %v5672_v54  ;;  %v6232_v12 = vld [vmem:[#allocation2 + $0xd6] sm:$0xff]  ;;  %v5606_v54 = vld [vmem:[#allocation2 + $0xe4] sm:$0xff] }
 0x627   : > { %v8629_v19 = vld [vmem:[%s11065_s2 + $0x418] sm:$0xff] }
 0x628   : > { %6485 = vst [vmem:[%s10341_s17 + $0x18] sm:$0xff] %v6445_v60  ;;  %6027 = vmatmul.f32.gmra.mxu2 %v5914_v53  ;;  %5719 = vmatmul.f32.gmra.mxu1 %v5602_v28  ;;  %v10717_v60 = vpop.f32.mrf.mxu0  ;;  %v5782_v53 = vld [vmem:[%s10341_s17 + $0x40] sm:$0xff] }
 0x629   : > { %6341 = vmatmul.f32.gmra.mxu3 %v6228_v18  ;;  %v8630_v28 = vld [vmem:[%s11065_s2 + $0x420] sm:$0xff] }
 0x62a   : > { %7218 = vmatpush.msra.mxu2 %v8630_v28 }
 0x62b   : > { %v5980_v4 = vpop.f32.mrf.mxu2 }
 0x62c   : > { %v6294_v47 = vpop.f32.mrf.mxu3  ;;  %v6132_v17 = vadd.f32 %v5980_v4, %v5818_v23  ;;  %v6559_v4 = vld [vmem:[#allocation2 + $0x150] sm:$0xff]  ;;  %7219 = vmatpush.msra.mxu2 %v8629_v19 }
 0x62d   : > { %6694 = vmatmul.f32.gmra.mxu0 %v6555_v38  ;;  %v5675_v37 = vpop.f32.mrf.mxu1 }
 0x62e   : > { %v6446_v41 = vadd.f32 %v6294_v47, %v6132_v17  ;;  %v5821_v15 = vadd.f32 %v5781_v5, %v5675_v37  ;;  %v6233_v37 = vld [vmem:[#allocation2 + $0xde] sm:$0xff] }
 0x62f   : > { %v5785_v5 = vld [vmem:[%s10341_s17 + $0x58] sm:$0xff] }
 0x630   : > { %6486 = vst [vmem:[%s10341_s17 + $0x20] sm:$0xff] %v6446_v41  ;;  %6030 = vmatmul.f32.gmra.mxu2 %v5915_v2  ;;  %5722 = vmatmul.f32.gmra.mxu1 %v5603_v44  ;;  %v5919_v41 = vld [vmem:[#allocation2 + $0xdd] sm:$0xff]  ;;  %v5607_v2 = vld [vmem:[#allocation2 + $0xec] sm:$0xff]  ;;  %v10726_v44 = vpop.f32.mrf.mxu0 }
 0x631   : > { %6344 = vmatmul.f32.gmra.mxu3 %v6229_v61  ;;  %v5783_v61 = vld [vmem:[%s10341_s17 + $0x48] sm:$0xff] }
 0x633   : > { %v5983_v14 = vpop.f32.mrf.mxu2 }
 0x634   : > { %v6297_v36 = vpop.f32.mrf.mxu3  ;;  %v6133_v29 = vadd.f32 %v5983_v14, %v5819_v63  ;;  %v6560_v14 = vld [vmem:[#allocation2 + $0x158] sm:$0xff] }
 0x635   : > { %6697 = vmatmul.f32.gmra.mxu0 %v6556_v49  ;;  %v5678_v58 = vpop.f32.mrf.mxu1 }
 0x636   : > { %v6447_v7 = vadd.f32 %v6297_v36, %v6133_v29  ;;  %v5822_v18 = vadd.f32 %v5782_v53, %v5678_v58  ;;  %v5608_v58 = vld [vmem:[#allocation2 + $0xf4] sm:$0xff] }
 0x637   : > { %v8612_v53 = vld [vmem:[%s11065_s2 + $0x390] sm:$0xff] }
 0x638   : > { %6487 = vst [vmem:[%s10341_s17 + $0x28] sm:$0xff] %v6447_v7  ;;  %6033 = vmatmul.f32.gmra.mxu2 %v5916_v55  ;;  %5725 = vmatmul.f32.gmra.mxu1 %v5604_v8  ;;  %v6234_v7 = vld [vmem:[#allocation2 + $0xe6] sm:$0xff]  ;;  %v5784_v55 = vld [vmem:[%s10341_s17 + $0x50] sm:$0xff]  ;;  %v8613_v8 = vld [vmem:[%s11065_s2 + $0x398] sm:$0xff] }
 0x639   : > { %6347 = vmatmul.f32.gmra.mxu3 %v6230_v39  ;;  %6905 = vmatpush.msra.mxu1 %v8613_v8 }
 0x63b   : > { %v5986_v0 = vpop.f32.mrf.mxu2  ;;  %6906 = vmatpush.msra.mxu1 %v8612_v53 }
 0x63c   : > { %v6300_v20 = vpop.f32.mrf.mxu3  ;;  %v6134_v50 = vadd.f32 %v5986_v0, %v5820_v9 }
 0x63d   : > { %6700 = vmatmul.f32.gmra.mxu0 %v6557_v35  ;;  %v5681_v51 = vpop.f32.mrf.mxu1 }
 0x63e   : > { %v6448_v57 = vadd.f32 %v6300_v20, %v6134_v50  ;;  %v5823_v3 = vadd.f32 %v5783_v61, %v5681_v51  ;;  %v6561_v20 = vld [vmem:[#allocation2 + $0x160] sm:$0xff]  ;;  %v10736_v50 = vpop.f32.mrf.mxu0 }
 0x640   : > { %6488 = vst [vmem:[%s10341_s17 + $0x30] sm:$0xff] %v6448_v57  ;;  %6036 = vmatmul.f32.gmra.mxu2 %v5917_v27  ;;  %5728 = vmatmul.f32.gmra.mxu1 %v5605_v42  ;;  %v5921_v27 = vld [vmem:[#allocation2 + $0xed] sm:$0xff]  ;;  %v5609_v42 = vld [vmem:[#allocation2 + $0xfc] sm:$0xff] }
 0x641   : > { %6350 = vmatmul.f32.gmra.mxu3 %v6231_v13  ;;  %v6235_v13 = vld [vmem:[#allocation2 + $0xee] sm:$0xff] }
 0x643   : > { %v5989_v24 = vpop.f32.mrf.mxu2 }
 0x644   : > { %v6303_v59 = vpop.f32.mrf.mxu3  ;;  %v6135_v40 = vadd.f32 %v5989_v24, %v5821_v15 }
 0x645   : > { %6703 = vmatmul.f32.gmra.mxu0 %v6558_v21  ;;  %v5684_v25 = vpop.f32.mrf.mxu1 }
 0x646   : > { %v6449_v26 = vadd.f32 %v6303_v59, %v6135_v40  ;;  %v5824_v39 = vadd.f32 %v5784_v55, %v5684_v25  ;;  %v6236_v25 = vld [vmem:[#allocation2 + $0xf6] sm:$0xff] }
 0x648   : > { %6489 = vst [vmem:[%s10341_s17 + $0x38] sm:$0xff] %v6449_v26  ;;  %6039 = vmatmul.f32.gmra.mxu2 %v5918_v45  ;;  %5731 = vmatmul.f32.gmra.mxu1 %v5606_v54  ;;  %v5922_v26 = vld [vmem:[#allocation2 + $0xf5] sm:$0xff]  ;;  %v5610_v45 = vld [vmem:[#allocation2 + $0x104] sm:$0xff] }
 0x649   : > { %6353 = vmatmul.f32.gmra.mxu3 %v6232_v12  ;;  %v5786_v12 = vld [vmem:[%s10341_s17 + $0x60] sm:$0xff] }
 0x64b   : > { %v5992_v30 = vpop.f32.mrf.mxu2 }
 0x64c   : > { %v6306_v23 = vpop.f32.mrf.mxu3  ;;  %v6136_v47 = vadd.f32 %v5992_v30, %v5822_v18 }
 0x64d   : > { %6706 = vmatmul.f32.gmra.mxu0 %v6559_v4  ;;  %v5687_v17 = vpop.f32.mrf.mxu1 }
 0x64e   : > { %v6450_v38 = vadd.f32 %v6306_v23, %v6136_v47  ;;  %v5825_v15 = vadd.f32 %v5785_v5, %v5687_v17  ;;  %v5923_v47 = vld [vmem:[#allocation2 + $0xfd] sm:$0xff]  ;;  %v5611_v17 = vld [vmem:[#allocation2 + $0x10c] sm:$0xff] }
 0x650   : > { %6490 = vst [vmem:[%s10341_s17 + $0x40] sm:$0xff] %v6450_v38  ;;  %6042 = vmatmul.f32.gmra.mxu2 %v5919_v41  ;;  %5734 = vmatmul.f32.gmra.mxu1 %v5607_v2  ;;  %v6237_v38 = vld [vmem:[#allocation2 + $0xfe] sm:$0xff]  ;;  %v5787_v41 = vld [vmem:[%s10341_s17 + $0x68] sm:$0xff]  ;;  %v8628_v2 = vld [vmem:[%s11065_s2 + $0x410] sm:$0xff] }
 0x651   : > { %6356 = vmatmul.f32.gmra.mxu3 %v6233_v37  ;;  %7220 = vmatpush.msra.mxu2 %v8628_v2 }
 0x653   : > { %v5995_v63 = vpop.f32.mrf.mxu2 }
 0x654   : > { %v6309_v16 = vpop.f32.mrf.mxu3  ;;  %v6137_v36 = vadd.f32 %v5995_v63, %v5823_v3 }
 0x655   : > { %6709 = vmatmul.f32.gmra.mxu0 %v6560_v14  ;;  %v5690_v29 = vpop.f32.mrf.mxu1 }
 0x656   : > { %v6451_v49 = vadd.f32 %v6309_v16, %v6137_v36  ;;  %v5826_v54 = vadd.f32 %v5786_v12, %v5690_v29  ;;  %v5924_v36 = vld [vmem:[#allocation2 + $0x105] sm:$0xff]  ;;  %v5612_v29 = vld [vmem:[#allocation2 + $0x114] sm:$0xff] }
 0x658   : > { %6491 = vst [vmem:[%s10341_s17 + $0x48] sm:$0xff] %v6451_v49  ;;  %6045 = vmatmul.f32.gmra.mxu2 %v5920_v32  ;;  %5737 = vmatmul.f32.gmra.mxu1 %v5608_v58  ;;  %v6238_v49 = vld [vmem:[#allocation2 + $0x106] sm:$0xff]  ;;  %v5788_v32 = vld [vmem:[%s10341_s17 + $0x70] sm:$0xff] }
 0x659   : > { %6359 = vmatmul.f32.gmra.mxu3 %v6234_v7 }
 0x65b   : > { %v5998_v9 = vpop.f32.mrf.mxu2 }
 0x65c   : > { %v6312_v0 = vpop.f32.mrf.mxu3  ;;  %v6138_v35 = vadd.f32 %v5998_v9, %v5824_v39  ;;  %v5925_v9 = vld [vmem:[#allocation2 + $0x10d] sm:$0xff] }
 0x65d   : > { %6712 = vmatmul.f32.gmra.mxu0 %v6561_v20  ;;  %v5693_v51 = vpop.f32.mrf.mxu1  ;;  %v5613_v20 = vld [vmem:[#allocation2 + $0x11c] sm:$0xff] }
 0x65e   : > { %v6452_v57 = vadd.f32 %v6312_v0, %v6138_v35  ;;  %v5827_v37 = vadd.f32 %v5787_v41, %v5693_v51  ;;  %v6239_v0 = vld [vmem:[#allocation2 + $0x10e] sm:$0xff]  ;;  %v5789_v35 = vld [vmem:[%s10341_s17 + $0x78] sm:$0xff] }
 0x65f   : > { %v8611_v51 = vld [vmem:[%s11065_s2 + $0x388] sm:$0xff] }
 0x660   : > { %6492 = vst [vmem:[%s10341_s17 + $0x50] sm:$0xff] %v6452_v57  ;;  %6048 = vmatmul.f32.gmra.mxu2 %v5921_v27  ;;  %5740 = vmatmul.f32.gmra.mxu1 %v5609_v42  ;;  %v8627_v27 = vld [vmem:[%s11065_s2 + $0x408] sm:$0xff] }
 0x661   : > { %6362 = vmatmul.f32.gmra.mxu3 %v6235_v13  ;;  %6907 = vmatpush.msra.mxu1 %v8611_v51 }
 0x662   : > { %7221 = vmatpush.msra.mxu2 %v8627_v27  ;;  %v5930_v27 = vld [vmem:[#allocation2 + $0x135] sm:$0xff] }
 0x663   : > { %v6001_v56 = vpop.f32.mrf.mxu2 }
 0x664   : > { %v6315_v24 = vpop.f32.mrf.mxu3  ;;  %v6139_v59 = vadd.f32 %v6001_v56, %v5825_v15 }
 0x665   : > { %v5696_v40 = vpop.f32.mrf.mxu1 }
 0x666   : > { %v6453_v21 = vadd.f32 %v6315_v24, %v6139_v59  ;;  %v5828_v7 = vadd.f32 %v5788_v32, %v5696_v40  ;;  %v5926_v24 = vld [vmem:[#allocation2 + $0x115] sm:$0xff]  ;;  %v5790_v40 = vld [vmem:[%s10341_s17 + $0x80] sm:$0xff] }
 0x667   : > { %v6240_v59 = vld [vmem:[#allocation2 + $0x116] sm:$0xff] }
 0x668   : > { %6493 = vst [vmem:[%s10341_s17 + $0x58] sm:$0xff] %v6453_v21  ;;  %6051 = vmatmul.f32.gmra.mxu2 %v5922_v26  ;;  %5743 = vmatmul.f32.gmra.mxu1 %v5610_v45  ;;  %v5614_v21 = vld [vmem:[#allocation2 + $0x124] sm:$0xff] }
 0x669   : > { %6365 = vmatmul.f32.gmra.mxu3 %v6236_v25 }
 0x66b   : > { %v6004_v18 = vpop.f32.mrf.mxu2 }
 0x66c   : > { %v6318_v28 = vpop.f32.mrf.mxu3  ;;  %v6140_v30 = vadd.f32 %v6004_v18, %v5826_v54  ;;  %v5927_v18 = vld [vmem:[#allocation2 + $0x11d] sm:$0xff] }
 0x66d   : > { %v5699_v4 = vpop.f32.mrf.mxu1 }
 0x66e   : > { %v6454_v23 = vadd.f32 %v6318_v28, %v6140_v30  ;;  %v5829_v57 = vadd.f32 %v5789_v35, %v5699_v4  ;;  %v6241_v28 = vld [vmem:[#allocation2 + $0x11e] sm:$0xff]  ;;  %v5615_v30 = vld [vmem:[#allocation2 + $0x12c] sm:$0xff] }
 0x670   : > { %6494 = vst [vmem:[%s10341_s17 + $0x60] sm:$0xff] %v6454_v23  ;;  %6054 = vmatmul.f32.gmra.mxu2 %v5923_v47  ;;  %5746 = vmatmul.f32.gmra.mxu1 %v5611_v17  ;;  %v5791_v23 = vld [vmem:[%s10341_s17 + $0x88] sm:$0xff]  ;;  %v8610_v47 = vld [vmem:[%s11065_s2 + $0x380] sm:$0xff] }
 0x671   : > { %6368 = vmatmul.f32.gmra.mxu3 %v6237_v38  ;;  %6908 = vmatpush.msra.mxu1 %v8610_v47  ;;  %v6246_v47 = vld [vmem:[#allocation2 + $0x146] sm:$0xff] }
 0x673   : > { %v6007_v61 = vpop.f32.mrf.mxu2 }
 0x674   : > { %v6321_v3 = vpop.f32.mrf.mxu3  ;;  %v6141_v63 = vadd.f32 %v6007_v61, %v5827_v37  ;;  %v5928_v61 = vld [vmem:[#allocation2 + $0x125] sm:$0xff] }
 0x675   : > { %v5702_v14 = vpop.f32.mrf.mxu1 }
 0x676   : > { %v6455_v16 = vadd.f32 %v6321_v3, %v6141_v63  ;;  %v5830_v26 = vadd.f32 %v5790_v40, %v5702_v14  ;;  %v6242_v3 = vld [vmem:[#allocation2 + $0x126] sm:$0xff]  ;;  %v5616_v63 = vld [vmem:[#allocation2 + $0x134] sm:$0xff] }
 0x678   : > { %6495 = vst [vmem:[%s10341_s17 + $0x68] sm:$0xff] %v6455_v16  ;;  %6057 = vmatmul.f32.gmra.mxu2 %v5924_v36  ;;  %5749 = vmatmul.f32.gmra.mxu1 %v5612_v29  ;;  %v5792_v16 = vld [vmem:[%s10341_s17 + $0x90] sm:$0xff]  ;;  %v8626_v36 = vld [vmem:[%s11065_s2 + $0x400] sm:$0xff] }
 0x679   : > { %6371 = vmatmul.f32.gmra.mxu3 %v6238_v49  ;;  %7222 = vmatpush.msra.mxu2 %v8626_v36  ;;  %v6837_v36 = vld [vmem:[#allocation2 + $0x31] sm:$0xff] }
 0x67b   : > { %v6010_v58 = vpop.f32.mrf.mxu2 }
 0x67c   : > { %v6324_v55 = vpop.f32.mrf.mxu3  ;;  %v6142_v39 = vadd.f32 %v6010_v58, %v5828_v7 }
 0x67d   : > { %v5705_v19 = vpop.f32.mrf.mxu1 }
 0x67e   : > { %v6456_v8 = vadd.f32 %v6324_v55, %v6142_v39  ;;  %v5831_v4 = vadd.f32 %v5791_v23, %v5705_v19  ;;  %v5929_v55 = vld [vmem:[#allocation2 + $0x12d] sm:$0xff]  ;;  %v5793_v19 = vld [vmem:[%s10341_s17 + $0x98] sm:$0xff] }
 0x67f   : > { %v6243_v39 = vld [vmem:[#allocation2 + $0x12e] sm:$0xff] }
 0x680   : > { %6496 = vst [vmem:[%s10341_s17 + $0x70] sm:$0xff] %v6456_v8  ;;  %6060 = vmatmul.f32.gmra.mxu2 %v5925_v9  ;;  %5752 = vmatmul.f32.gmra.mxu1 %v5613_v20  ;;  %v5617_v8 = vld [vmem:[#allocation2 + $0x13c] sm:$0xff] }
 0x681   : > { %6374 = vmatmul.f32.gmra.mxu3 %v6239_v0 }
 0x683   : > { %v6013_v13 = vpop.f32.mrf.mxu2 }
 0x684   : > { %v6327_v42 = vpop.f32.mrf.mxu3  ;;  %v6143_v5 = vadd.f32 %v6013_v13, %v5829_v57  ;;  %v6244_v13 = vld [vmem:[#allocation2 + $0x136] sm:$0xff] }
 0x685   : > { %v5708_v56 = vpop.f32.mrf.mxu1 }
 0x686   : > { %v6457_v15 = vadd.f32 %v6327_v42, %v6143_v5  ;;  %v5832_v14 = vadd.f32 %v5792_v16, %v5708_v56  ;;  %v5618_v42 = vld [vmem:[#allocation2 + $0x144] sm:$0xff]  ;;  %v5933_v16 = vld [vmem:[#allocation2 + $0x14d] sm:$0xff] }
 0x687   : > { %v5794_v5 = vld [vmem:[%s10341_s17 + $0xa0] sm:$0xff] }
 0x688   : > { %6497 = vst [vmem:[%s10341_s17 + $0x78] sm:$0xff] %v6457_v15  ;;  %6063 = vmatmul.f32.gmra.mxu2 %v5926_v24  ;;  %5755 = vmatmul.f32.gmra.mxu1 %v5614_v21 }
 0x689   : > { %6377 = vmatmul.f32.gmra.mxu3 %v6240_v59 }
 0x68b   : > { %v6016_v25 = vpop.f32.mrf.mxu2 }
 0x68c   : > { %v6330_v45 = vpop.f32.mrf.mxu3  ;;  %v6144_v12 = vadd.f32 %v6016_v25, %v5830_v26  ;;  %v5931_v26 = vld [vmem:[#allocation2 + $0x13d] sm:$0xff] }
 0x68d   : > { %v5711_v53 = vpop.f32.mrf.mxu1  ;;  %v6245_v25 = vld [vmem:[#allocation2 + $0x13e] sm:$0xff] }
 0x68e   : > { %v6458_v54 = vadd.f32 %v6330_v45, %v6144_v12  ;;  %v5833_v9 = vadd.f32 %v5793_v19, %v5711_v53  ;;  %v5619_v45 = vld [vmem:[#allocation2 + $0x14c] sm:$0xff] }
 0x68f   : > { %v5795_v12 = vld [vmem:[%s10341_s17 + $0xa8] sm:$0xff] }
 0x690   : > { %6498 = vst [vmem:[%s10341_s17 + $0x80] sm:$0xff] %v6458_v54  ;;  %6066 = vmatmul.f32.gmra.mxu2 %v5927_v18  ;;  %5758 = vmatmul.f32.gmra.mxu1 %v5615_v30  ;;  %v7150_v19 = vld [vmem:[#allocation2 + $0x2a] sm:$0xff] }
 0x691   : > { %6380 = vmatmul.f32.gmra.mxu3 %v6241_v28 }
 0x693   : > { %v6019_v38 = vpop.f32.mrf.mxu2 }
 0x694   : > { %v6333_v17 = vpop.f32.mrf.mxu3  ;;  %v6145_v41 = vadd.f32 %v6019_v38, %v5831_v4  ;;  %v5932_v4 = vld [vmem:[#allocation2 + $0x145] sm:$0xff] }
 0x695   : > { %v5714_v2 = vpop.f32.mrf.mxu1  ;;  %v6836_v38 = vld [vmem:[#allocation2 + $0x29] sm:$0xff] }
 0x696   : > { %v6459_v37 = vadd.f32 %v6333_v17, %v6145_v41  ;;  %v5834_v15 = vadd.f32 %v5794_v5, %v5714_v2  ;;  %v5796_v17 = vld [vmem:[%s10341_s17 + $0xb0] sm:$0xff] }
 0x697   : > { %v7151_v5 = vld [vmem:[#allocation2 + $0x32] sm:$0xff] }
 0x698   : > { %6499 = vst [vmem:[%s10341_s17 + $0x88] sm:$0xff] %v6459_v37  ;;  %6069 = vmatmul.f32.gmra.mxu2 %v5928_v61  ;;  %5761 = vmatmul.f32.gmra.mxu1 %v5616_v63 }
 0x699   : > { %6383 = vmatmul.f32.gmra.mxu3 %v6242_v3 }
 0x69b   : > { %v6022_v49 = vpop.f32.mrf.mxu2 }
 0x69c   : > { %v6336_v29 = vpop.f32.mrf.mxu3  ;;  %v6146_v32 = vadd.f32 %v6022_v49, %v5832_v14  ;;  %v6247_v14 = vld [vmem:[#allocation2 + $0x14e] sm:$0xff]  ;;  %v5797_v49 = vld [vmem:[%s10341_s17 + $0xb8] sm:$0xff] }
 0x69d   : > { %v5717_v58 = vpop.f32.mrf.mxu1 }
 0x69e   : > { %v6460_v7 = vadd.f32 %v6336_v29, %v6146_v32  ;;  %v5835_v54 = vadd.f32 %v5795_v12, %v5717_v58  ;;  %v7152_v12 = vld [vmem:[#allocation2 + $0x3a] sm:$0xff] }
 0x6a0   : > { %6500 = vst [vmem:[%s10341_s17 + $0x90] sm:$0xff] %v6460_v7  ;;  %6072 = vmatmul.f32.gmra.mxu2 %v5929_v55  ;;  %5764 = vmatmul.f32.gmra.mxu1 %v5617_v8  ;;  %v7504_v55 = vld [vmem:[%s8794_s6 + $0x2a] sm:$0xff] }
 0x6a1   : > { %6386 = vmatmul.f32.gmra.mxu3 %v6243_v39 }
 0x6a3   : > { %v6025_v0 = vpop.f32.mrf.mxu2 }
 0x6a4   : > { %v6339_v20 = vpop.f32.mrf.mxu3  ;;  %v6147_v35 = vadd.f32 %v6025_v0, %v5833_v9  ;;  %v6838_v9 = vld [vmem:[#allocation2 + $0x39] sm:$0xff] }
 0x6a5   : > { %v5720_v51 = vpop.f32.mrf.mxu1  ;;  %v5798_v0 = vld [vmem:[%s10341_s17 + $0xc0] sm:$0xff] }
 0x6a6   : > { %v6461_v57 = vadd.f32 %v6339_v20, %v6147_v35  ;;  %v5836_v41 = vadd.f32 %v5796_v17, %v5720_v51  ;;  %v7153_v17 = vld [vmem:[#allocation2 + $0x42] sm:$0xff] }
 0x6a8   : > { %6501 = vst [vmem:[%s10341_s17 + $0x98] sm:$0xff] %v6461_v57  ;;  %6075 = vmatmul.f32.gmra.mxu2 %v5930_v27  ;;  %5767 = vmatmul.f32.gmra.mxu1 %v5618_v42  ;;  %v7505_v27 = vld [vmem:[%s8794_s6 + $0x32] sm:$0xff] }
 0x6a9   : > { %6389 = vmatmul.f32.gmra.mxu3 %v6244_v13 }
 0x6ab   : > { %v6028_v56 = vpop.f32.mrf.mxu2 }
 0x6ac   : > { %v6342_v24 = vpop.f32.mrf.mxu3  ;;  %v6148_v59 = vadd.f32 %v6028_v56, %v5834_v15  ;;  %v6839_v15 = vld [vmem:[#allocation2 + $0x41] sm:$0xff] }
 0x6ad   : > { %v5723_v40 = vpop.f32.mrf.mxu1  ;;  %v5799_v56 = vld [vmem:[%s10341_s17 + $0xc8] sm:$0xff] }
 0x6ae   : > { %v6462_v21 = vadd.f32 %v6342_v24, %v6148_v59  ;;  %v5837_v29 = vadd.f32 %v5797_v49, %v5723_v40  ;;  %v7154_v49 = vld [vmem:[#allocation2 + $0x4a] sm:$0xff] }
 0x6b0   : > { %6502 = vst [vmem:[%s10341_s17 + $0xa0] sm:$0xff] %v6462_v21  ;;  %6078 = vmatmul.f32.gmra.mxu2 %v5931_v26  ;;  %5770 = vmatmul.f32.gmra.mxu1 %v5619_v45  ;;  %v7506_v26 = vld [vmem:[%s8794_s6 + $0x3a] sm:$0xff] }
 0x6b1   : > { %6392 = vmatmul.f32.gmra.mxu3 %v6245_v25 }
 0x6b3   : > { %v6031_v53 = vpop.f32.mrf.mxu2 }
 0x6b4   : > { %v6345_v18 = vpop.f32.mrf.mxu3  ;;  %v6149_v28 = vadd.f32 %v6031_v53, %v5835_v54  ;;  %v6840_v54 = vld [vmem:[#allocation2 + $0x49] sm:$0xff] }
 0x6b5   : > { %v5726_v23 = vpop.f32.mrf.mxu1  ;;  %v5800_v53 = vld [vmem:[%s10341_s17 + $0xd0] sm:$0xff] }
 0x6b6   : > { %v6463_v30 = vadd.f32 %v6345_v18, %v6149_v28  ;;  %v5838_v20 = vadd.f32 %v5798_v0, %v5726_v23  ;;  %v7155_v0 = vld [vmem:[#allocation2 + $0x52] sm:$0xff] }
 0x6b8   : > { %6503 = vst [vmem:[%s10341_s17 + $0xa8] sm:$0xff] %v6463_v30  ;;  %6081 = vmatmul.f32.gmra.mxu2 %v5932_v4  ;;  %6909 = vmatmul.f32.vlgmr.msra.gmra.mxu1 %v6836_v38  ;;  %v7507_v4 = vld [vmem:[%s8794_s6 + $0x42] sm:$0xff] }
 0x6b9   : > { %6395 = vmatmul.f32.gmra.mxu3 %v6246_v47 }
 0x6bb   : > { %v6034_v37 = vpop.f32.mrf.mxu2 }
 0x6bc   : > { %v6348_v2 = vpop.f32.mrf.mxu3  ;;  %v6150_v61 = vadd.f32 %v6034_v37, %v5836_v41  ;;  %v6841_v41 = vld [vmem:[#allocation2 + $0x51] sm:$0xff] }
 0x6bd   : > { %v5729_v63 = vpop.f32.mrf.mxu1  ;;  %v5801_v37 = vld [vmem:[%s10341_s17 + $0xd8] sm:$0xff] }
 0x6be   : > { %v6464_v3 = vadd.f32 %v6348_v2, %v6150_v61  ;;  %v5839_v24 = vadd.f32 %v5799_v56, %v5729_v63  ;;  %v7156_v56 = vld [vmem:[#allocation2 + $0x5a] sm:$0xff] }
 0x6c0   : > { %6504 = vst [vmem:[%s10341_s17 + $0xb0] sm:$0xff] %v6464_v3  ;;  %6084 = vmatmul.f32.gmra.mxu2 %v5933_v16  ;;  %6912 = vmatmul.f32.gmra.mxu1 %v6837_v36  ;;  %v7508_v16 = vld [vmem:[%s8794_s6 + $0x4a] sm:$0xff] }
 0x6c1   : > { %6398 = vmatmul.f32.gmra.mxu3 %v6247_v14 }
 0x6c3   : > { %v6037_v32 = vpop.f32.mrf.mxu2 }
 0x6c4   : > { %v6351_v7 = vpop.f32.mrf.mxu3  ;;  %v6151_v58 = vadd.f32 %v6037_v32, %v5837_v29  ;;  %v6842_v29 = vld [vmem:[#allocation2 + $0x59] sm:$0xff] }
 0x6c5   : > { %v5732_v8 = vpop.f32.mrf.mxu1  ;;  %v5802_v32 = vld [vmem:[%s10341_s17 + $0xe0] sm:$0xff] }
 0x6c6   : > { %v6465_v39 = vadd.f32 %v6351_v7, %v6151_v58  ;;  %v5840_v18 = vadd.f32 %v5800_v53, %v5732_v8  ;;  %v7509_v8 = vld [vmem:[%s8794_s6 + $0x52] sm:$0xff]  ;;  %v7157_v53 = vld [vmem:[#allocation2 + $0x62] sm:$0xff] }
 0x6c8   : > { %6505 = vst [vmem:[%s10341_s17 + $0xb8] sm:$0xff] %v6465_v39  ;;  %7223 = vmatmul.f32.vlgmr.msra.gmra.mxu2 %v7150_v19  ;;  %6915 = vmatmul.f32.gmra.mxu1 %v6838_v9 }
 0x6c9   : > { %8643 = vmatmul.msk.f32.vlgmr.msra.gmra.mxu3 %vm288_vm1, %v7504_v55 }
 0x6cb   : > { %v6040_v35 = vpop.f32.mrf.mxu2 }
 0x6cc   : > { %v6354_v57 = vpop.f32.mrf.mxu3  ;;  %v6152_v51 = vadd.f32 %v6040_v35, %v5838_v20  ;;  %v6843_v20 = vld [vmem:[#allocation2 + $0x61] sm:$0xff] }
 0x6cd   : > { %v5735_v42 = vpop.f32.mrf.mxu1  ;;  %v5803_v35 = vld [vmem:[%s10341_s17 + $0xe8] sm:$0xff] }
 0x6ce   : > { %v6466_v13 = vadd.f32 %v6354_v57, %v6152_v51  ;;  %v5841_v2 = vadd.f32 %v5801_v37, %v5735_v42  ;;  %v7510_v42 = vld [vmem:[%s8794_s6 + $0x5a] sm:$0xff]  ;;  %v7158_v37 = vld [vmem:[#allocation2 + $0x6a] sm:$0xff] }
 0x6d0   : > { %6506 = vst [vmem:[%s10341_s17 + $0xc0] sm:$0xff] %v6466_v13  ;;  %7226 = vmatmul.f32.gmra.mxu2 %v7151_v5  ;;  %6918 = vmatmul.f32.gmra.mxu1 %v6839_v15 }
 0x6d1   : > { %8644 = vmatmul.msk.f32.gmra.mxu3 %vm288_vm1, %v7505_v27 }
 0x6d3   : > { %v6043_v59 = vpop.f32.mrf.mxu2 }
 0x6d4   : > { %v6357_v21 = vpop.f32.mrf.mxu3  ;;  %v6153_v40 = vadd.f32 %v6043_v59, %v5839_v24  ;;  %v6844_v24 = vld [vmem:[#allocation2 + $0x69] sm:$0xff] }
 0x6d5   : > { %v5738_v45 = vpop.f32.mrf.mxu1  ;;  %v5804_v59 = vld [vmem:[%s10341_s17 + $0xf0] sm:$0xff] }
 0x6d6   : > { %v6467_v25 = vadd.f32 %v6357_v21, %v6153_v40  ;;  %v5842_v7 = vadd.f32 %v5802_v32, %v5738_v45  ;;  %v7511_v45 = vld [vmem:[%s8794_s6 + $0x62] sm:$0xff]  ;;  %v7159_v32 = vld [vmem:[#allocation2 + $0x72] sm:$0xff] }
 0x6d8   : > { %6507 = vst [vmem:[%s10341_s17 + $0xc8] sm:$0xff] %v6467_v25  ;;  %7229 = vmatmul.f32.gmra.mxu2 %v7152_v12  ;;  %6921 = vmatmul.f32.gmra.mxu1 %v6840_v54 }
 0x6d9   : > { %8645 = vmatmul.msk.f32.gmra.mxu3 %vm288_vm1, %v7506_v26 }
 0x6db   : > { %v6046_v28 = vpop.f32.mrf.mxu2 }
 0x6dc   : > { %v6360_v30 = vpop.f32.mrf.mxu3  ;;  %v6154_v23 = vadd.f32 %v6046_v28, %v5840_v18  ;;  %v6845_v18 = vld [vmem:[#allocation2 + $0x71] sm:$0xff] }
 0x6dd   : > { %v5741_v38 = vpop.f32.mrf.mxu1  ;;  %v5805_v28 = vld [vmem:[%s10341_s17 + $0xf8] sm:$0xff] }
 0x6de   : > { %v6468_v47 = vadd.f32 %v6360_v30, %v6154_v23  ;;  %v5843_v57 = vadd.f32 %v5803_v35, %v5741_v38  ;;  %v7512_v38 = vld [vmem:[%s8794_s6 + $0x6a] sm:$0xff]  ;;  %v7160_v35 = vld [vmem:[#allocation2 + $0x7a] sm:$0xff] }
 0x6e0   : > { %6508 = vst [vmem:[%s10341_s17 + $0xd0] sm:$0xff] %v6468_v47  ;;  %7232 = vmatmul.f32.gmra.mxu2 %v7153_v17  ;;  %6924 = vmatmul.f32.gmra.mxu1 %v6841_v41 }
 0x6e1   : > { %8646 = vmatmul.msk.f32.gmra.mxu3 %vm288_vm1, %v7507_v4 }
 0x6e3   : > { %v6049_v61 = vpop.f32.mrf.mxu2 }
 0x6e4   : > { %v6363_v3 = vpop.f32.mrf.mxu3  ;;  %v6155_v63 = vadd.f32 %v6049_v61, %v5841_v2  ;;  %v6846_v2 = vld [vmem:[#allocation2 + $0x79] sm:$0xff] }
 0x6e5   : > { %v5744_v36 = vpop.f32.mrf.mxu1  ;;  %v5806_v61 = vld [vmem:[%s10341_s17 + $0x100] sm:$0xff] }
 0x6e6   : > { %v6469_v14 = vadd.f32 %v6363_v3, %v6155_v63  ;;  %v5844_v21 = vadd.f32 %v5804_v59, %v5744_v36  ;;  %v7513_v36 = vld [vmem:[%s8794_s6 + $0x72] sm:$0xff]  ;;  %v7161_v59 = vld [vmem:[#allocation2 + $0x82] sm:$0xff] }
 0x6e8   : > { %6509 = vst [vmem:[%s10341_s17 + $0xd8] sm:$0xff] %v6469_v14  ;;  %7235 = vmatmul.f32.gmra.mxu2 %v7154_v49  ;;  %6927 = vmatmul.f32.gmra.mxu1 %v6842_v29 }
 0x6e9   : > { %8647 = vmatmul.msk.f32.gmra.mxu3 %vm288_vm1, %v7508_v16 }
 0x6eb   : > { %v6052_v58 = vpop.f32.mrf.mxu2 }
 0x6ec   : > { %v6366_v55 = vpop.f32.mrf.mxu3  ;;  %v6156_v39 = vadd.f32 %v6052_v58, %v5842_v7  ;;  %v6847_v7 = vld [vmem:[#allocation2 + $0x81] sm:$0xff] }
 0x6ed   : > { %v5747_v9 = vpop.f32.mrf.mxu1  ;;  %v5807_v58 = vld [vmem:[%s10341_s17 + $0x108] sm:$0xff] }
 0x6ee   : > { %v6470_v19 = vadd.f32 %v6366_v55, %v6156_v39  ;;  %v5845_v30 = vadd.f32 %v5805_v28, %v5747_v9  ;;  %v7514_v9 = vld [vmem:[%s8794_s6 + $0x7a] sm:$0xff]  ;;  %v7162_v28 = vld [vmem:[#allocation2 + $0x8a] sm:$0xff] }
 0x6f0   : > { %6510 = vst [vmem:[%s10341_s17 + $0xe0] sm:$0xff] %v6470_v19  ;;  %7238 = vmatmul.f32.gmra.mxu2 %v7155_v0  ;;  %6930 = vmatmul.f32.gmra.mxu1 %v6843_v20 }
 0x6f1   : > { %8648 = vmatmul.msk.f32.gmra.mxu3 %vm288_vm1, %v7509_v8 }
 0x6f3   : > { %v6055_v51 = vpop.f32.mrf.mxu2 }
 0x6f4   : > { %v6369_v27 = vpop.f32.mrf.mxu3  ;;  %v6157_v13 = vadd.f32 %v6055_v51, %v5843_v57  ;;  %v6848_v57 = vld [vmem:[#allocation2 + $0x89] sm:$0xff] }
 0x6f5   : > { %v5750_v15 = vpop.f32.mrf.mxu1  ;;  %v5808_v51 = vld [vmem:[%s10341_s17 + $0x110] sm:$0xff] }
 0x6f6   : > { %v6471_v5 = vadd.f32 %v6369_v27, %v6157_v13  ;;  %v5846_v3 = vadd.f32 %v5806_v61, %v5750_v15  ;;  %v7515_v15 = vld [vmem:[%s8794_s6 + $0x82] sm:$0xff]  ;;  %v7163_v61 = vld [vmem:[#allocation2 + $0x92] sm:$0xff] }
 0x6f8   : > { %6511 = vst [vmem:[%s10341_s17 + $0xe8] sm:$0xff] %v6471_v5  ;;  %7241 = vmatmul.f32.gmra.mxu2 %v7156_v56  ;;  %6933 = vmatmul.f32.gmra.mxu1 %v6844_v24 }
 0x6f9   : > { %8649 = vmatmul.msk.f32.gmra.mxu3 %vm288_vm1, %v7510_v42 }
 0x6fb   : > { %v6058_v40 = vpop.f32.mrf.mxu2 }
 0x6fc   : > { %v6372_v26 = vpop.f32.mrf.mxu3  ;;  %v6158_v25 = vadd.f32 %v6058_v40, %v5844_v21  ;;  %v6849_v21 = vld [vmem:[#allocation2 + $0x91] sm:$0xff] }
 0x6fd   : > { %v5753_v54 = vpop.f32.mrf.mxu1  ;;  %v5809_v40 = vld [vmem:[%s10341_s17 + $0x118] sm:$0xff] }
 0x6fe   : > { %v6472_v12 = vadd.f32 %v6372_v26, %v6158_v25  ;;  %v5847_v55 = vadd.f32 %v5807_v58, %v5753_v54  ;;  %v7516_v54 = vld [vmem:[%s8794_s6 + $0x8a] sm:$0xff]  ;;  %v7164_v58 = vld [vmem:[#allocation2 + $0x9a] sm:$0xff] }
 0x700   : > { %6512 = vst [vmem:[%s10341_s17 + $0xf0] sm:$0xff] %v6472_v12  ;;  %7244 = vmatmul.f32.gmra.mxu2 %v7157_v53  ;;  %6936 = vmatmul.f32.gmra.mxu1 %v6845_v18 }
 0x701   : > { %8650 = vmatmul.msk.f32.gmra.mxu3 %vm288_vm1, %v7511_v45 }
 0x703   : > { %v6061_v23 = vpop.f32.mrf.mxu2 }
 0x704   : > { %v6375_v4 = vpop.f32.mrf.mxu3  ;;  %v6159_v47 = vadd.f32 %v6061_v23, %v5845_v30  ;;  %v6850_v30 = vld [vmem:[#allocation2 + $0x99] sm:$0xff] }
 0x705   : > { %v5756_v41 = vpop.f32.mrf.mxu1  ;;  %v5810_v23 = vld [vmem:[%s10341_s17 + $0x120] sm:$0xff] }
 0x706   : > { %v6473_v17 = vadd.f32 %v6375_v4, %v6159_v47  ;;  %v5848_v27 = vadd.f32 %v5808_v51, %v5756_v41  ;;  %v7517_v41 = vld [vmem:[%s8794_s6 + $0x92] sm:$0xff]  ;;  %v7165_v51 = vld [vmem:[#allocation2 + $0xa2] sm:$0xff] }
 0x708   : > { %6513 = vst [vmem:[%s10341_s17 + $0xf8] sm:$0xff] %v6473_v17  ;;  %7247 = vmatmul.f32.gmra.mxu2 %v7158_v37  ;;  %6939 = vmatmul.f32.gmra.mxu1 %v6846_v2 }
 0x709   : > { %8651 = vmatmul.msk.f32.gmra.mxu3 %vm288_vm1, %v7512_v38 }
 0x70b   : > { %v6064_v63 = vpop.f32.mrf.mxu2 }
 0x70c   : > { %v6378_v16 = vpop.f32.mrf.mxu3  ;;  %v6160_v14 = vadd.f32 %v6064_v63, %v5846_v3  ;;  %v6851_v3 = vld [vmem:[#allocation2 + $0xa1] sm:$0xff] }
 0x70d   : > { %v5759_v29 = vpop.f32.mrf.mxu1  ;;  %v5811_v63 = vld [vmem:[%s10341_s17 + $0x128] sm:$0xff] }
 0x70e   : > { %v6474_v49 = vadd.f32 %v6378_v16, %v6160_v14  ;;  %v5849_v26 = vadd.f32 %v5809_v40, %v5759_v29  ;;  %v7518_v29 = vld [vmem:[%s8794_s6 + $0x9a] sm:$0xff] }
 0x710   : > { %6514 = vst [vmem:[%s10341_s17 + $0x100] sm:$0xff] %v6474_v49  ;;  %7250 = vmatmul.f32.gmra.mxu2 %v7159_v32  ;;  %6942 = vmatmul.f32.gmra.mxu1 %v6847_v7 }
 0x711   : > { %8652 = vmatmul.msk.f32.gmra.mxu3 %vm288_vm1, %v7513_v36 }
 0x713   : > { %v6067_v39 = vpop.f32.mrf.mxu2 }
 0x714   : > { %v6381_v8 = vpop.f32.mrf.mxu3  ;;  %v6161_v19 = vadd.f32 %v6067_v39, %v5847_v55  ;;  %v6852_v55 = vld [vmem:[#allocation2 + $0xa9] sm:$0xff] }
 0x715   : > { %v5762_v20 = vpop.f32.mrf.mxu1  ;;  %v5812_v39 = vld [vmem:[%s10341_s17 + $0x130] sm:$0xff] }
 0x716   : > { %v6475_v0 = vadd.f32 %v6381_v8, %v6161_v19  ;;  %v5850_v4 = vadd.f32 %v5810_v23, %v5762_v20  ;;  %v7519_v20 = vld [vmem:[%s8794_s6 + $0xa2] sm:$0xff]  ;;  %v7521_v23 = vld [vmem:[%s8794_s6 + $0xb2] sm:$0xff] }
 0x718   : > { %6515 = vst [vmem:[%s10341_s17 + $0x108] sm:$0xff] %v6475_v0  ;;  %7253 = vmatmul.f32.gmra.mxu2 %v7160_v35  ;;  %6945 = vmatmul.f32.gmra.mxu1 %v6848_v57 }
 0x719   : > { %8653 = vmatmul.msk.f32.gmra.mxu3 %vm288_vm1, %v7514_v9 }
 0x71b   : > { %v6070_v13 = vpop.f32.mrf.mxu2 }
 0x71c   : > { %v6384_v42 = vpop.f32.mrf.mxu3  ;;  %v6162_v5 = vadd.f32 %v6070_v13, %v5848_v27  ;;  %v6853_v27 = vld [vmem:[#allocation2 + $0xb1] sm:$0xff] }
 0x71d   : > { %v5765_v24 = vpop.f32.mrf.mxu1  ;;  %v5813_v13 = vld [vmem:[%s10341_s17 + $0x138] sm:$0xff] }
 0x71e   : > { %v6476_v56 = vadd.f32 %v6384_v42, %v6162_v5  ;;  %v5851_v16 = vadd.f32 %v5811_v63, %v5765_v24  ;;  %v6716_v24 = vld [vmem:[%s10341_s17] sm:$0xff] }
 0x720   : > { %6516 = vst [vmem:[%s10341_s17 + $0x110] sm:$0xff] %v6476_v56  ;;  %7256 = vmatmul.f32.gmra.mxu2 %v7161_v59  ;;  %6948 = vmatmul.f32.gmra.mxu1 %v6849_v21  ;;  %v7520_v59 = vld [vmem:[%s8794_s6 + $0xaa] sm:$0xff] }
 0x721   : > { %8654 = vmatmul.msk.f32.gmra.mxu3 %vm288_vm1, %v7515_v15 }
 0x723   : > { %v6073_v25 = vpop.f32.mrf.mxu2 }
 0x724   : > { %v6387_v45 = vpop.f32.mrf.mxu3  ;;  %v6163_v12 = vadd.f32 %v6073_v25, %v5849_v26  ;;  %v7166_v26 = vld [vmem:[#allocation2 + $0xaa] sm:$0xff]  ;;  %v6756_v25 = vadd.f32 %v6716_v24, %v10628_v31  ;;  %v6720_v24 = vld [vmem:[%s10341_s17 + $0x20] sm:$0xff] }
 0x725   : > { %v5768_v18 = vpop.f32.mrf.mxu1 }
 0x726   : > { %v6477_v53 = vadd.f32 %v6387_v45, %v6163_v12  ;;  %v5852_v8 = vadd.f32 %v5812_v39, %v5768_v18  ;;  %v6854_v45 = vld [vmem:[#allocation2 + $0xb9] sm:$0xff]  ;;  %v10851_v18 = vstv %s8082_s9 }
 0x728   : > { %6517 = vst [vmem:[%s10341_s17 + $0x118] sm:$0xff] %v6477_v53  ;;  %7259 = vmatmul.f32.gmra.mxu2 %v7162_v28  ;;  %6951 = vmatmul.f32.gmra.mxu1 %v6850_v30  ;;  %v6717_v30 = vld [vmem:[%s10341_s17 + $0x8] sm:$0xff] }
 0x729   : > { %8655 = vmatmul.msk.f32.gmra.mxu3 %vm288_vm1, %v7516_v54 }
 0x72b   : > { %v6076_v47 = vpop.f32.mrf.mxu2 }
 0x72c   : > { %v6390_v38 = vpop.f32.mrf.mxu3  ;;  %v6164_v17 = vadd.f32 %v6076_v47, %v5850_v4  ;;  %v7167_v47 = vld [vmem:[#allocation2 + $0xb2] sm:$0xff] }
 0x72d   : > { %v5771_v2 = vpop.f32.mrf.mxu1 }
 0x72e   : > { %v6478_v37 = vadd.f32 %v6390_v38, %v6164_v17  ;;  %v5853_v42 = vadd.f32 %v5813_v13, %v5771_v2  ;;  %v6757_v38 = vadd.f32 %v6717_v30, %v10634_v62  ;;  %v6855_v17 = vld [vmem:[#allocation2 + $0xc1] sm:$0xff] }
 0x730   : > { %6518 = vst [vmem:[%s10341_s17 + $0x120] sm:$0xff] %v6478_v37  ;;  %7262 = vmatmul.f32.gmra.mxu2 %v7163_v61  ;;  %6954 = vmatmul.f32.gmra.mxu1 %v6851_v3 }
 0x731   : > { %8656 = vmatmul.msk.f32.gmra.mxu3 %vm288_vm1, %v7517_v41 }
 0x733   : > { %v6079_v14 = vpop.f32.mrf.mxu2 }
 0x734   : > { %v6393_v36 = vpop.f32.mrf.mxu3  ;;  %v6165_v49 = vadd.f32 %v6079_v14, %v5851_v16  ;;  %v6718_v16 = vld [vmem:[%s10341_s17 + $0x10] sm:$0xff]  ;;  %v7522_v14 = vld [vmem:[%s8794_s6 + $0xba] sm:$0xff] }
 0x735   : > { %v6910_v7 = vpop.f32.mrf.mxu1 }
 0x736   : > { %v6479_v32 = vadd.f32 %v6393_v36, %v6165_v49  ;;  %v7070_v12 = vadd.f32 %v6910_v7, %v6756_v25  ;;  %v7168_v49 = vld [vmem:[#allocation2 + $0xba] sm:$0xff] }
 0x737   : > { %v6858_v25 = vld [vmem:[#allocation2 + $0xd9] sm:$0xff] }
 0x738   : > { %6519 = vst [vmem:[%s10341_s17 + $0x128] sm:$0xff] %v6479_v32  ;;  %7265 = vmatmul.f32.gmra.mxu2 %v7164_v58  ;;  %6957 = vmatmul.f32.gmra.mxu1 %v6852_v55  ;;  %v6856_v32 = vld [vmem:[#allocation2 + $0xc9] sm:$0xff] }
 0x739   : > { %8657 = vmatmul.msk.f32.gmra.mxu3 %vm288_vm1, %v7518_v29  ;;  %v6758_v29 = vadd.f32 %v6718_v16, %v10641_v34  ;;  %v6722_v16 = vld [vmem:[%s10341_s17 + $0x30] sm:$0xff] }
 0x73b   : > { %v6082_v19 = vpop.f32.mrf.mxu2 }
 0x73c   : > { %v6396_v9 = vpop.f32.mrf.mxu3  ;;  %v6166_v0 = vadd.f32 %v6082_v19, %v5852_v8 }
 0x73d   : > { %v6913_v57 = vpop.f32.mrf.mxu1 }
 0x73e   : > { %v6480_v35 = vadd.f32 %v6396_v9, %v6166_v0  ;;  %v7071_v2 = vadd.f32 %v6913_v57, %v6757_v38  ;;  %v6719_v9 = vld [vmem:[%s10341_s17 + $0x18] sm:$0xff]  ;;  %v7523_v0 = vld [vmem:[%s8794_s6 + $0xc2] sm:$0xff] }
 0x73f   : > { %v6759_v57 = vadd.f32 %v6719_v9, %v10647_v6  ;;  %v7527_v9 = vld [vmem:[%s8794_s6 + $0xe2] sm:$0xff] }
 0x740   : > { %6520 = vst [vmem:[%s10341_s17 + $0x130] sm:$0xff] %v6480_v35  ;;  %7268 = vmatmul.f32.gmra.mxu2 %v7165_v51  ;;  %6960 = vmatmul.f32.gmra.mxu1 %v6853_v27  ;;  %v7169_v35 = vld [vmem:[#allocation2 + $0xc2] sm:$0xff]  ;;  %v6857_v51 = vld [vmem:[#allocation2 + $0xd1] sm:$0xff] }
 0x741   : > { %8658 = vmatmul.msk.f32.gmra.mxu3 %vm288_vm1, %v7519_v20 }
 0x743   : > { %v6085_v5 = vpop.f32.mrf.mxu2 }
 0x744   : > { %v6399_v15 = vpop.f32.mrf.mxu3  ;;  %v6167_v56 = vadd.f32 %v6085_v5, %v5853_v42 }
 0x745   : > { %v6916_v40 = vpop.f32.mrf.mxu1 }
 0x746   : > { %v6481_v21 = vadd.f32 %v6399_v15, %v6167_v56  ;;  %v7072_v55 = vadd.f32 %v6916_v40, %v6758_v29  ;;  %v7170_v40 = vld [vmem:[#allocation2 + $0xca] sm:$0xff] }
 0x747   : > { %v6860_v29 = vld [vmem:[#allocation2 + $0xe9] sm:$0xff] }
 0x748   : > { %6521 = vst [vmem:[%s10341_s17 + $0x138] sm:$0xff] %v6481_v21  ;;  %7271 = vmatmul.f32.gmra.mxu2 %v7166_v26  ;;  %6963 = vmatmul.f32.gmra.mxu1 %v6854_v45  ;;  %v6760_v26 = vadd.f32 %v6720_v24, %v10653_v1 }
 0x749   : > { %8659 = vmatmul.msk.f32.gmra.mxu3 %vm288_vm1, %v7520_v59  ;;  %v7524_v59 = vld [vmem:[%s8794_s6 + $0xca] sm:$0xff] }
 0x74b   : > { %v7224_v54 = vpop.f32.mrf.mxu2 }
 0x74c   : > { %v7685_v53 = vpop.f32.mrf.mxu3  ;;  %v7384_v28 = vadd.f32 %v7224_v54, %v7070_v12 }
 0x74d   : > { %v6919_v4 = vpop.f32.mrf.mxu1 }
 0x74e   : > { %vm7805_vm5 = vcmp.gt.f32.partialorder %v7384_v28, 0.0  ;;  %v7846_v31 = vmul.f32 %v10851_v18, %v7384_v28  ;;  %v7073_v42 = vadd.f32 %v6919_v4, %v6759_v57  ;;  %v7525_v4 = vld [vmem:[%s8794_s6 + $0xd2] sm:$0xff] }
 0x750   : > { %7274 = vmatmul.f32.gmra.mxu2 %v7167_v47  ;;  %v7886_v41 = vsel %vm7805_vm5, %v7384_v28, %v7846_v31  ;;  %6966 = vmatmul.f32.gmra.mxu1 %v6855_v17  ;;  %v7171_v47 = vld [vmem:[#allocation2 + $0xd2] sm:$0xff]  ;;  %v6859_v17 = vld [vmem:[#allocation2 + $0xe1] sm:$0xff] }
 0x751   : > { %8660 = vmatmul.msk.f32.gmra.mxu3 %vm288_vm1, %v7521_v23  ;;  %v7926_v37 = vadd.f32 %v7886_v41, %v7685_v53  ;;  %v6721_v23 = vld [vmem:[%s10341_s17 + $0x28] sm:$0xff] }
 0x752   : > { %v6761_v38 = vadd.f32 %v6721_v23, %v10659_v43  ;;  %v7175_v23 = vld [vmem:[#allocation2 + $0xf2] sm:$0xff] }
 0x753   : > { %v7227_v61 = vpop.f32.mrf.mxu2  ;;  %7966 = vst [vmem:[%s10341_s17] sm:$0xff] %v7926_v37 }
 0x754   : > { %v7688_v3 = vpop.f32.mrf.mxu3  ;;  %v7385_v63 = vadd.f32 %v7227_v61, %v7071_v2 }
 0x755   : > { %v6922_v36 = vpop.f32.mrf.mxu1 }
 0x756   : > { %vm7806_vm6 = vcmp.gt.f32.partialorder %v7385_v63, 0.0  ;;  %v7847_v62 = vmul.f32 %v10851_v18, %v7385_v63  ;;  %v7074_v54 = vadd.f32 %v6922_v36, %v6760_v26 }
 0x758   : > { %7277 = vmatmul.f32.gmra.mxu2 %v7168_v49  ;;  %v7887_v7 = vsel %vm7806_vm6, %v7385_v63, %v7847_v62  ;;  %6969 = vmatmul.f32.gmra.mxu1 %v6856_v32  ;;  %v7172_v62 = vld [vmem:[#allocation2 + $0xda] sm:$0xff]  ;;  %v6762_v49 = vadd.f32 %v6722_v16, %v10666_v33  ;;  %v10910_v16 = vpop.f32.mrf.mxu0 }
 0x759   : > { %8661 = vmatmul.msk.f32.gmra.mxu3 %vm288_vm1, %v7522_v14  ;;  %v7927_v58 = vadd.f32 %v7887_v7, %v7688_v3  ;;  %v7526_v14 = vld [vmem:[%s8794_s6 + $0xda] sm:$0xff] }
 0x75b   : > { %v7230_v39 = vpop.f32.mrf.mxu2  ;;  %7967 = vst [vmem:[%s10341_s17 + $0x8] sm:$0xff] %v7927_v58 }
 0x75c   : > { %v7691_v8 = vpop.f32.mrf.mxu3  ;;  %v7386_v19 = vadd.f32 %v7230_v39, %v7072_v55 }
 0x75d   : > { %v6925_v20 = vpop.f32.mrf.mxu1 }
 0x75e   : > { %vm7807_vm7 = vcmp.gt.f32.partialorder %v7386_v19, 0.0  ;;  %v7848_v34 = vmul.f32 %v10851_v18, %v7386_v19  ;;  %v7075_v2 = vadd.f32 %v6925_v20, %v6761_v38  ;;  %v7173_v20 = vld [vmem:[#allocation2 + $0xe2] sm:$0xff] }
 0x760   : > { %7280 = vmatmul.f32.gmra.mxu2 %v7169_v35  ;;  %v7888_v27 = vsel %vm7807_vm7, %v7386_v19, %v7848_v34  ;;  %6972 = vmatmul.f32.gmra.mxu1 %v6857_v51  ;;  %v6723_v19 = vld [vmem:[%s10341_s17 + $0x38] sm:$0xff] }
 0x761   : > { %8662 = vmatmul.msk.f32.gmra.mxu3 %vm288_vm1, %v7523_v0  ;;  %v7928_v13 = vadd.f32 %v7888_v27, %v7691_v8  ;;  %v6763_v34 = vadd.f32 %v6723_v19, %v10673_v10  ;;  %v6861_v35 = vld [vmem:[#allocation2 + $0xf1] sm:$0xff] }
 0x763   : > { %v7233_v5 = vpop.f32.mrf.mxu2  ;;  %7968 = vst [vmem:[%s10341_s17 + $0x10] sm:$0xff] %v7928_v13 }
 0x764   : > { %v7694_v15 = vpop.f32.mrf.mxu3  ;;  %v7387_v56 = vadd.f32 %v7233_v5, %v7073_v42 }
 0x765   : > { %v6928_v21 = vpop.f32.mrf.mxu1 }
 0x766   : > { %vm7808_vm8 = vcmp.gt.f32.partialorder %v7387_v56, 0.0  ;;  %v7849_v6 = vmul.f32 %v10851_v18, %v7387_v56  ;;  %v7076_v58 = vadd.f32 %v6928_v21, %v6762_v49 }
 0x768   : > { %7283 = vmatmul.f32.gmra.mxu2 %v7170_v40  ;;  %v7889_v45 = vsel %vm7808_vm8, %v7387_v56, %v7849_v6  ;;  %6975 = vmatmul.f32.gmra.mxu1 %v6858_v25  ;;  %v7528_v56 = vld [vmem:[%s8794_s6 + $0xea] sm:$0xff]  ;;  %v6862_v6 = vld [vmem:[#allocation2 + $0xf9] sm:$0xff] }
 0x769   : > { %8663 = vmatmul.msk.f32.gmra.mxu3 %vm288_vm1, %v7524_v59  ;;  %v7929_v12 = vadd.f32 %v7889_v45, %v7694_v15  ;;  %v6724_v15 = vld [vmem:[%s10341_s17 + $0x40] sm:$0xff]  ;;  %v7174_v59 = vld [vmem:[#allocation2 + $0xea] sm:$0xff] }
 0x76a   : > { %v6764_v21 = vadd.f32 %v6724_v15, %v10680_v46 }
 0x76b   : > { %v7236_v53 = vpop.f32.mrf.mxu2  ;;  %7969 = vst [vmem:[%s10341_s17 + $0x18] sm:$0xff] %v7929_v12 }
 0x76c   : > { %v7697_v28 = vpop.f32.mrf.mxu3  ;;  %v7388_v30 = vadd.f32 %v7236_v53, %v7074_v54  ;;  %v6725_v53 = vld [vmem:[%s10341_s17 + $0x48] sm:$0xff] }
 0x76d   : > { %v6931_v31 = vpop.f32.mrf.mxu1 }
 0x76e   : > { %vm7809_vm9 = vcmp.gt.f32.partialorder %v7388_v30, 0.0  ;;  %v7850_v1 = vmul.f32 %v10851_v18, %v7388_v30  ;;  %v7077_v27 = vadd.f32 %v6931_v31, %v6763_v34  ;;  %v6863_v31 = vld [vmem:[#allocation2 + $0x101] sm:$0xff] }
 0x770   : > { %7286 = vmatmul.f32.gmra.mxu2 %v7171_v47  ;;  %v7890_v41 = vsel %vm7809_vm9, %v7388_v30, %v7850_v1  ;;  %6978 = vmatmul.f32.gmra.mxu1 %v6859_v17 }
 0x771   : > { %8664 = vmatmul.msk.f32.gmra.mxu3 %vm288_vm1, %v7525_v4  ;;  %v7930_v37 = vadd.f32 %v7890_v41, %v7697_v28  ;;  %v7529_v28 = vld [vmem:[%s8794_s6 + $0xf2] sm:$0xff]  ;;  %v6765_v4 = vadd.f32 %v6725_v53, %v10687_v22 }
 0x773   : > { %v7239_v61 = vpop.f32.mrf.mxu2  ;;  %7970 = vst [vmem:[%s10341_s17 + $0x20] sm:$0xff] %v7930_v37 }
 0x774   : > { %v7700_v3 = vpop.f32.mrf.mxu3  ;;  %v7389_v63 = vadd.f32 %v7239_v61, %v7075_v2  ;;  %v6726_v2 = vld [vmem:[%s10341_s17 + $0x50] sm:$0xff]  ;;  %v7530_v61 = vld [vmem:[%s8794_s6 + $0xfa] sm:$0xff] }
 0x775   : > { %v6934_v36 = vpop.f32.mrf.mxu1 }
 0x776   : > { %vm7810_vm10 = vcmp.gt.f32.partialorder %v7389_v63, 0.0  ;;  %v7851_v43 = vmul.f32 %v10851_v18, %v7389_v63  ;;  %v7078_v25 = vadd.f32 %v6934_v36, %v6764_v21  ;;  %v6864_v36 = vld [vmem:[#allocation2 + $0x109] sm:$0xff] }
 0x778   : > { %7289 = vmatmul.f32.gmra.mxu2 %v7172_v62  ;;  %v7891_v32 = vsel %vm7810_vm10, %v7389_v63, %v7851_v43  ;;  %6981 = vmatmul.f32.gmra.mxu1 %v6860_v29  ;;  %v7176_v63 = vld [vmem:[#allocation2 + $0xfa] sm:$0xff] }
 0x779   : > { %8665 = vmatmul.msk.f32.gmra.mxu3 %vm288_vm1, %v7526_v14  ;;  %v7931_v7 = vadd.f32 %v7891_v32, %v7700_v3  ;;  %v6766_v14 = vadd.f32 %v6726_v2, %v10696_v11 }
 0x77b   : > { %v7242_v55 = vpop.f32.mrf.mxu2  ;;  %7971 = vst [vmem:[%s10341_s17 + $0x28] sm:$0xff] %v7931_v7 }
 0x77c   : > { %v7703_v39 = vpop.f32.mrf.mxu3  ;;  %v7390_v8 = vadd.f32 %v7242_v55, %v7076_v58  ;;  %v6727_v58 = vld [vmem:[%s10341_s17 + $0x58] sm:$0xff]  ;;  %v7531_v55 = vld [vmem:[%s8794_s6 + $0x102] sm:$0xff] }
 0x77d   : > { %v6937_v0 = vpop.f32.mrf.mxu1  ;;  %v6767_v19 = vadd.f32 %v6727_v58, %v10703_v48 }
 0x77e   : > { %vm7811_vm11 = vcmp.gt.f32.partialorder %v7390_v8, 0.0  ;;  %v7852_v33 = vmul.f32 %v10851_v18, %v7390_v8  ;;  %v7079_v38 = vadd.f32 %v6937_v0, %v6765_v4 }
 0x780   : > { %7292 = vmatmul.f32.gmra.mxu2 %v7173_v20  ;;  %v7892_v57 = vsel %vm7811_vm11, %v7390_v8, %v7852_v33  ;;  %6984 = vmatmul.f32.gmra.mxu1 %v6861_v35  ;;  %v7177_v8 = vld [vmem:[#allocation2 + $0x102] sm:$0xff]  ;;  %v10920_v20 = vpop.f32.mrf.mxu0 }
 0x781   : > { %8666 = vmatmul.msk.f32.gmra.mxu3 %vm288_vm1, %v7527_v9  ;;  %v7932_v51 = vadd.f32 %v7892_v57, %v7703_v39  ;;  %v6865_v9 = vld [vmem:[#allocation2 + $0x111] sm:$0xff] }
 0x783   : > { %v7245_v13 = vpop.f32.mrf.mxu2  ;;  %7972 = vst [vmem:[%s10341_s17 + $0x30] sm:$0xff] %v7932_v51 }
 0x784   : > { %v7706_v42 = vpop.f32.mrf.mxu3  ;;  %v7391_v5 = vadd.f32 %v7245_v13, %v7077_v27  ;;  %v6728_v27 = vld [vmem:[%s10341_s17 + $0x60] sm:$0xff]  ;;  %v7532_v13 = vld [vmem:[%s8794_s6 + $0x10a] sm:$0xff] }
 0x785   : > { %v6940_v24 = vpop.f32.mrf.mxu1  ;;  %v6768_v15 = vadd.f32 %v6728_v27, %v10710_v52  ;;  %v6870_v27 = vld [vmem:[#allocation2 + $0x139] sm:$0xff] }
 0x786   : > { %vm7812_vm12 = vcmp.gt.f32.partialorder %v7391_v5, 0.0  ;;  %v7853_v10 = vmul.f32 %v10851_v18, %v7391_v5  ;;  %v7080_v49 = vadd.f32 %v6940_v24, %v6766_v14 }
 0x788   : > { %7295 = vmatmul.f32.gmra.mxu2 %v7174_v59  ;;  %v7893_v40 = vsel %vm7812_vm12, %v7391_v5, %v7853_v10  ;;  %6987 = vmatmul.f32.gmra.mxu1 %v6862_v6  ;;  %v7178_v5 = vld [vmem:[#allocation2 + $0x10a] sm:$0xff] }
 0x789   : > { %8667 = vmatmul.msk.f32.gmra.mxu3 %vm288_vm1, %v7528_v56  ;;  %v7933_v26 = vadd.f32 %v7893_v40, %v7706_v42  ;;  %v6866_v56 = vld [vmem:[#allocation2 + $0x119] sm:$0xff]  ;;  %v10929_v40 = vpop.f32.mrf.mxu0 }
 0x78b   : > { %v7248_v45 = vpop.f32.mrf.mxu2  ;;  %7973 = vst [vmem:[%s10341_s17 + $0x38] sm:$0xff] %v7933_v26 }
 0x78c   : > { %v7709_v12 = vpop.f32.mrf.mxu3  ;;  %v7392_v54 = vadd.f32 %v7248_v45, %v7078_v25  ;;  %v6729_v25 = vld [vmem:[%s10341_s17 + $0x68] sm:$0xff]  ;;  %v7533_v45 = vld [vmem:[%s8794_s6 + $0x112] sm:$0xff] }
 0x78d   : > { %v6943_v30 = vpop.f32.mrf.mxu1  ;;  %v6769_v53 = vadd.f32 %v6729_v25, %v10717_v60  ;;  %v6871_v25 = vld [vmem:[#allocation2 + $0x141] sm:$0xff] }
 0x78e   : > { %vm7813_vm13 = vcmp.gt.f32.partialorder %v7392_v54, 0.0  ;;  %v7854_v46 = vmul.f32 %v10851_v18, %v7392_v54  ;;  %v7081_v34 = vadd.f32 %v6943_v30, %v6767_v19 }
 0x790   : > { %7298 = vmatmul.f32.gmra.mxu2 %v7175_v23  ;;  %v7894_v1 = vsel %vm7813_vm13, %v7392_v54, %v7854_v46  ;;  %6990 = vmatmul.f32.gmra.mxu1 %v6863_v31  ;;  %v7179_v54 = vld [vmem:[#allocation2 + $0x112] sm:$0xff] }
 0x791   : > { %8668 = vmatmul.msk.f32.gmra.mxu3 %vm288_vm1, %v7529_v28  ;;  %v7934_v47 = vadd.f32 %v7894_v1, %v7709_v12  ;;  %v6867_v28 = vld [vmem:[#allocation2 + $0x121] sm:$0xff] }
 0x793   : > { %v7251_v17 = vpop.f32.mrf.mxu2  ;;  %7974 = vst [vmem:[%s10341_s17 + $0x40] sm:$0xff] %v7934_v47  ;;  %v6730_v47 = vld [vmem:[%s10341_s17 + $0x70] sm:$0xff] }
 0x794   : > { %v7712_v41 = vpop.f32.mrf.mxu3  ;;  %v7393_v37 = vadd.f32 %v7251_v17, %v7079_v38  ;;  %v7534_v38 = vld [vmem:[%s8794_s6 + $0x11a] sm:$0xff]  ;;  %v10939_v17 = vpop.f32.mrf.mxu0  ;;  %v6770_v2 = vadd.f32 %v6730_v47, %v10726_v44  ;;  %v6872_v47 = vld [vmem:[#allocation2 + $0x149] sm:$0xff] }
 0x795   : > { %v6946_v3 = vpop.f32.mrf.mxu1 }
 0x796   : > { %vm7814_vm14 = vcmp.gt.f32.partialorder %v7393_v37, 0.0  ;;  %v7855_v22 = vmul.f32 %v10851_v18, %v7393_v37  ;;  %v7082_v59 = vadd.f32 %v6946_v3, %v6768_v15 }
 0x798   : > { %7301 = vmatmul.f32.gmra.mxu2 %v7176_v63  ;;  %v7895_v43 = vsel %vm7814_vm14, %v7393_v37, %v7855_v22  ;;  %6993 = vmatmul.f32.gmra.mxu1 %v6864_v36  ;;  %v7180_v37 = vld [vmem:[#allocation2 + $0x11a] sm:$0xff] }
 0x799   : > { %8669 = vmatmul.msk.f32.gmra.mxu3 %vm288_vm1, %v7530_v61  ;;  %v7935_v62 = vadd.f32 %v7895_v43, %v7712_v41  ;;  %v6868_v61 = vld [vmem:[#allocation2 + $0x129] sm:$0xff] }
 0x79b   : > { %v7254_v29 = vpop.f32.mrf.mxu2  ;;  %7975 = vst [vmem:[%s10341_s17 + $0x48] sm:$0xff] %v7935_v62  ;;  %v6731_v62 = vld [vmem:[%s10341_s17 + $0x78] sm:$0xff] }
 0x79c   : > { %v7715_v32 = vpop.f32.mrf.mxu3  ;;  %v7394_v7 = vadd.f32 %v7254_v29, %v7080_v49  ;;  %v7535_v49 = vld [vmem:[%s8794_s6 + $0x122] sm:$0xff]  ;;  %v6771_v58 = vadd.f32 %v6731_v62, %v10736_v50  ;;  %v6873_v62 = vld [vmem:[#allocation2 + $0x151] sm:$0xff] }
 0x79d   : > { %v6949_v39 = vpop.f32.mrf.mxu1 }
 0x79e   : > { %vm7815_vm15 = vcmp.gt.f32.partialorder %v7394_v7, 0.0  ;;  %v7856_v11 = vmul.f32 %v10851_v18, %v7394_v7  ;;  %v7083_v23 = vadd.f32 %v6949_v39, %v6769_v53 }
 0x7a0   : > { %7304 = vmatmul.f32.gmra.mxu2 %v7177_v8  ;;  %v7896_v0 = vsel %vm7815_vm15, %v7394_v7, %v7856_v11  ;;  %6996 = vmatmul.f32.gmra.mxu1 %v6865_v9  ;;  %v10948_v7 = vpop.f32.mrf.mxu0 }
 0x7a1   : > { %8670 = vmatmul.msk.f32.gmra.mxu3 %vm288_vm1, %v7531_v55  ;;  %v7936_v33 = vadd.f32 %v7896_v0, %v7715_v32  ;;  %v7181_v32 = vld [vmem:[#allocation2 + $0x122] sm:$0xff]  ;;  %v6869_v55 = vld [vmem:[#allocation2 + $0x131] sm:$0xff] }
 0x7a3   : > { %v7257_v35 = vpop.f32.mrf.mxu2  ;;  %7976 = vst [vmem:[%s10341_s17 + $0x50] sm:$0xff] %v7936_v33  ;;  %v6732_v33 = vld [vmem:[%s10341_s17 + $0x80] sm:$0xff] }
 0x7a4   : > { %v7718_v57 = vpop.f32.mrf.mxu3  ;;  %v7395_v51 = vadd.f32 %v7257_v35, %v7081_v34  ;;  %v7536_v34 = vld [vmem:[%s8794_s6 + $0x12a] sm:$0xff] }
 0x7a5   : > { %v6952_v42 = vpop.f32.mrf.mxu1 }
 0x7a6   : > { %vm7816_vm2 = vcmp.gt.f32.partialorder %v7395_v51, 0.0  ;;  %v7857_v48 = vmul.f32 %v10851_v18, %v7395_v51  ;;  %v7084_v63 = vadd.f32 %v6952_v42, %v6770_v2 }
 0x7a8   : > { %7307 = vmatmul.f32.gmra.mxu2 %v7178_v5  ;;  %v7897_v24 = vsel %vm7816_vm2, %v7395_v51, %v7857_v48  ;;  %6999 = vmatmul.f32.gmra.mxu1 %v6866_v56  ;;  %v6772_v51 = vadd.f32 %v6732_v33, %v10910_v16  ;;  %v10958_v48 = vpop.f32.mrf.mxu0  ;;  %v6874_v33 = vld [vmem:[#allocation2 + $0x159] sm:$0xff] }
 0x7a9   : > { %8671 = vmatmul.msk.f32.gmra.mxu3 %vm288_vm1, %v7532_v13  ;;  %v7937_v10 = vadd.f32 %v7897_v24, %v7718_v57  ;;  %v7182_v57 = vld [vmem:[#allocation2 + $0x12a] sm:$0xff] }
 0x7ab   : > { %v7260_v21 = vpop.f32.mrf.mxu2  ;;  %7977 = vst [vmem:[%s10341_s17 + $0x58] sm:$0xff] %v7937_v10  ;;  %v6733_v10 = vld [vmem:[%s10341_s17 + $0x88] sm:$0xff] }
 0x7ac   : > { %v7721_v6 = vpop.f32.mrf.mxu3  ;;  %v7396_v26 = vadd.f32 %v7260_v21, %v7082_v59  ;;  %v7537_v59 = vld [vmem:[%s8794_s6 + $0x132] sm:$0xff] }
 0x7ad   : > { %v6955_v12 = vpop.f32.mrf.mxu1 }
 0x7ae   : > { %vm7817_vm0 = vcmp.gt.f32.partialorder %v7396_v26, 0.0  ;;  %v7858_v52 = vmul.f32 %v10851_v18, %v7396_v26  ;;  %v7085_v8 = vadd.f32 %v6955_v12, %v6771_v58 }
 0x7b0   : > { %7310 = vmatmul.f32.gmra.mxu2 %v7179_v54  ;;  %v7898_v30 = vsel %vm7817_vm0, %v7396_v26, %v7858_v52  ;;  %7002 = vmatmul.f32.gmra.mxu1 %v6867_v28  ;;  %v6773_v26 = vadd.f32 %v6733_v10, %v10920_v20  ;;  %v10967_v28 = vpop.f32.mrf.mxu0 }
 0x7b1   : > { %8672 = vmatmul.msk.f32.gmra.mxu3 %vm288_vm1, %v7533_v45  ;;  %v7938_v46 = vadd.f32 %v7898_v30, %v7721_v6  ;;  %v7183_v6 = vld [vmem:[#allocation2 + $0x132] sm:$0xff] }
 0x7b3   : > { %v7263_v4 = vpop.f32.mrf.mxu2  ;;  %7978 = vst [vmem:[%s10341_s17 + $0x60] sm:$0xff] %v7938_v46  ;;  %v6734_v46 = vld [vmem:[%s10341_s17 + $0x90] sm:$0xff] }
 0x7b4   : > { %v7724_v31 = vpop.f32.mrf.mxu3  ;;  %v7397_v1 = vadd.f32 %v7263_v4, %v7083_v23  ;;  %v7538_v23 = vld [vmem:[%s8794_s6 + $0x13a] sm:$0xff] }
 0x7b5   : > { %v6958_v41 = vpop.f32.mrf.mxu1 }
 0x7b6   : > { %vm7818_vm3 = vcmp.gt.f32.partialorder %v7397_v1, 0.0  ;;  %v7859_v60 = vmul.f32 %v10851_v18, %v7397_v1  ;;  %v7086_v5 = vadd.f32 %v6958_v41, %v6772_v51 }
 0x7b8   : > { %7313 = vmatmul.f32.gmra.mxu2 %v7180_v37  ;;  %v7899_v3 = vsel %vm7818_vm3, %v7397_v1, %v7859_v60  ;;  %7005 = vmatmul.f32.gmra.mxu1 %v6868_v61  ;;  %v6774_v1 = vadd.f32 %v6734_v46, %v10929_v40 }
 0x7b9   : > { %8673 = vmatmul.msk.f32.gmra.mxu3 %vm288_vm1, %v7534_v38  ;;  %v7939_v22 = vadd.f32 %v7899_v3, %v7724_v31  ;;  %v7184_v31 = vld [vmem:[#allocation2 + $0x13a] sm:$0xff] }
 0x7ba   : > { %v6735_v3 = vld [vmem:[%s10341_s17 + $0x98] sm:$0xff] }
 0x7bb   : > { %v7266_v14 = vpop.f32.mrf.mxu2  ;;  %7979 = vst [vmem:[%s10341_s17 + $0x68] sm:$0xff] %v7939_v22  ;;  %v7539_v22 = vld [vmem:[%s8794_s6 + $0x142] sm:$0xff] }
 0x7bc   : > { %v7727_v36 = vpop.f32.mrf.mxu3  ;;  %v7398_v43 = vadd.f32 %v7266_v14, %v7084_v63  ;;  %v10977_v63 = vpop.f32.mrf.mxu0 }
 0x7bd   : > { %v6961_v29 = vpop.f32.mrf.mxu1 }
 0x7be   : > { %vm7819_vm4 = vcmp.gt.f32.partialorder %v7398_v43, 0.0  ;;  %v7860_v44 = vmul.f32 %v10851_v18, %v7398_v43  ;;  %v7087_v52 = vadd.f32 %v6961_v29, %v6773_v26 }
 0x7c0   : > { %7316 = vmatmul.f32.gmra.mxu2 %v7181_v32  ;;  %v7900_v39 = vsel %vm7819_vm4, %v7398_v43, %v7860_v44  ;;  %7008 = vmatmul.f32.gmra.mxu1 %v6869_v55  ;;  %v6775_v43 = vadd.f32 %v6735_v3, %v10939_v17 }
 0x7c1   : > { %8674 = vmatmul.msk.f32.gmra.mxu3 %vm288_vm1, %v7535_v49  ;;  %v7940_v11 = vadd.f32 %v7900_v39, %v7727_v36  ;;  %v7185_v36 = vld [vmem:[#allocation2 + $0x142] sm:$0xff] }
 0x7c2   : > { %v6736_v39 = vld [vmem:[%s10341_s17 + $0xa0] sm:$0xff] }
 0x7c3   : > { %v7269_v19 = vpop.f32.mrf.mxu2  ;;  %7980 = vst [vmem:[%s10341_s17 + $0x70] sm:$0xff] %v7940_v11  ;;  %v7540_v11 = vld [vmem:[%s8794_s6 + $0x14a] sm:$0xff] }
 0x7c4   : > { %v7730_v9 = vpop.f32.mrf.mxu3  ;;  %v7399_v0 = vadd.f32 %v7269_v19, %v7085_v8  ;;  %v7186_v19 = vld [vmem:[#allocation2 + $0x14a] sm:$0xff] }
 0x7c5   : > { %v6964_v35 = vpop.f32.mrf.mxu1 }
 0x7c6   : > { %vm7820_vm5 = vcmp.gt.f32.partialorder %v7399_v0, 0.0  ;;  %v7861_v50 = vmul.f32 %v10851_v18, %v7399_v0  ;;  %v7088_v60 = vadd.f32 %v6964_v35, %v6774_v1 }
 0x7c8   : > { %7319 = vmatmul.f32.gmra.mxu2 %v7182_v57  ;;  %v7901_v13 = vsel %vm7820_vm5, %v7399_v0, %v7861_v50  ;;  %7011 = vmatmul.f32.gmra.mxu1 %v6870_v27  ;;  %v6776_v0 = vadd.f32 %v6736_v39, %v10948_v7 }
 0x7c9   : > { %8675 = vmatmul.msk.f32.gmra.mxu3 %vm288_vm1, %v7536_v34  ;;  %v7941_v42 = vadd.f32 %v7901_v13, %v7730_v9  ;;  %v10986_v9 = vpop.f32.mrf.mxu0  ;;  %v6737_v13 = vld [vmem:[%s10341_s17 + $0xa8] sm:$0xff] }
 0x7cb   : > { %v7272_v15 = vpop.f32.mrf.mxu2  ;;  %7981 = vst [vmem:[%s10341_s17 + $0x78] sm:$0xff] %v7941_v42  ;;  %v7541_v42 = vld [vmem:[%s8794_s6 + $0x152] sm:$0xff] }
 0x7cc   : > { %v7733_v56 = vpop.f32.mrf.mxu3  ;;  %v7400_v24 = vadd.f32 %v7272_v15, %v7086_v5  ;;  %v7187_v15 = vld [vmem:[#allocation2 + $0x152] sm:$0xff] }
 0x7cd   : > { %v6967_v21 = vpop.f32.mrf.mxu1 }
 0x7ce   : > { %vm7821_vm6 = vcmp.gt.f32.partialorder %v7400_v24, 0.0  ;;  %v7862_v16 = vmul.f32 %v10851_v18, %v7400_v24  ;;  %v7089_v44 = vadd.f32 %v6967_v21, %v6775_v43 }
 0x7d0   : > { %7322 = vmatmul.f32.gmra.mxu2 %v7183_v6  ;;  %v7902_v45 = vsel %vm7821_vm6, %v7400_v24, %v7862_v16  ;;  %7014 = vmatmul.f32.gmra.mxu1 %v6871_v25  ;;  %v6875_v24 = vld [vmem:[#allocation2 + $0x161] sm:$0xff] }
 0x7d1   : > { %8676 = vmatmul.msk.f32.gmra.mxu3 %vm288_vm1, %v7537_v59  ;;  %v7942_v12 = vadd.f32 %v7902_v45, %v7733_v56  ;;  %v6777_v56 = vadd.f32 %v6737_v13, %v10958_v48  ;;  %v6671_v21 = vpop.f32.mrf.mxu0  ;;  %v6738_v45 = vld [vmem:[%s10341_s17 + $0xb0] sm:$0xff] }
 0x7d3   : > { %v7275_v54 = vpop.f32.mrf.mxu2  ;;  %7982 = vst [vmem:[%s10341_s17 + $0x80] sm:$0xff] %v7942_v12  ;;  %v7542_v12 = vld [vmem:[%s8794_s6 + $0x15a] sm:$0xff] }
 0x7d4   : > { %v7736_v53 = vpop.f32.mrf.mxu3  ;;  %v7401_v30 = vadd.f32 %v7275_v54, %v7087_v52  ;;  %v7188_v54 = vld [vmem:[#allocation2 + $0x15a] sm:$0xff] }
 0x7d5   : > { %v6970_v4 = vpop.f32.mrf.mxu1 }
 0x7d6   : > { %vm7822_vm7 = vcmp.gt.f32.partialorder %v7401_v30, 0.0  ;;  %v7863_v20 = vmul.f32 %v10851_v18, %v7401_v30  ;;  %v7090_v50 = vadd.f32 %v6970_v4, %v6776_v0 }
 0x7d8   : > { %7325 = vmatmul.f32.gmra.mxu2 %v7184_v31  ;;  %v7903_v38 = vsel %vm7822_vm7, %v7401_v30, %v7863_v20  ;;  %7017 = vmatmul.f32.gmra.mxu1 %v6872_v47  ;;  %v6739_v47 = vld [vmem:[%s10341_s17 + $0xb8] sm:$0xff] }
 0x7d9   : > { %8677 = vmatmul.msk.f32.gmra.mxu3 %vm288_vm1, %v7538_v23  ;;  %v7943_v41 = vadd.f32 %v7903_v38, %v7736_v53  ;;  %v6778_v53 = vadd.f32 %v6738_v45, %v10967_v28  ;;  %v6674_v31 = vpop.f32.mrf.mxu0  ;;  %v7543_v38 = vld [vmem:[%s8794_s6 + $0x162] sm:$0xff] }
 0x7da   : > { %v7189_v28 = vld [vmem:[#allocation2 + $0x162] sm:$0xff] }
 0x7db   : > { %v7278_v37 = vpop.f32.mrf.mxu2  ;;  %7983 = vst [vmem:[%s10341_s17 + $0x88] sm:$0xff] %v7943_v41 }
 0x7dc   : > { %v7739_v2 = vpop.f32.mrf.mxu3  ;;  %v7402_v61 = vadd.f32 %v7278_v37, %v7088_v60  ;;  %v6779_v37 = vadd.f32 %v6739_v47, %v10977_v63 }
 0x7dd   : > { %v6973_v14 = vpop.f32.mrf.mxu1 }
 0x7de   : > { %vm7823_vm8 = vcmp.gt.f32.partialorder %v7402_v61, 0.0  ;;  %v7864_v40 = vmul.f32 %v10851_v18, %v7402_v61  ;;  %v7091_v16 = vadd.f32 %v6973_v14, %v6777_v56 }
 0x7e0   : > { %7328 = vmatmul.f32.gmra.mxu2 %v7185_v36  ;;  %v7904_v49 = vsel %vm7823_vm8, %v7402_v61, %v7864_v40  ;;  %7020 = vmatmul.f32.gmra.mxu1 %v6873_v62  ;;  %v6740_v36 = vld [vmem:[%s10341_s17 + $0xc0] sm:$0xff] }
 0x7e1   : > { %8678 = vmatmul.msk.f32.gmra.mxu3 %vm288_vm1, %v7539_v22  ;;  %v7944_v29 = vadd.f32 %v7904_v49, %v7739_v2  ;;  %v6677_v43 = vpop.f32.mrf.mxu0  ;;  %v6780_v63 = vadd.f32 %v6740_v36, %v10986_v9 }
 0x7e3   : > { %v7281_v32 = vpop.f32.mrf.mxu2  ;;  %7984 = vst [vmem:[%s10341_s17 + $0x90] sm:$0xff] %v7944_v29 }
 0x7e4   : > { %v7742_v58 = vpop.f32.mrf.mxu3  ;;  %v7403_v55 = vadd.f32 %v7281_v32, %v7089_v44 }
 0x7e5   : > { %v6976_v8 = vpop.f32.mrf.mxu1 }
 0x7e6   : > { %vm7824_vm9 = vcmp.gt.f32.partialorder %v7403_v55, 0.0  ;;  %v7865_v17 = vmul.f32 %v10851_v18, %v7403_v55  ;;  %v7092_v23 = vadd.f32 %v6976_v8, %v6778_v53 }
 0x7e8   : > { %7331 = vmatmul.f32.gmra.mxu2 %v7186_v19  ;;  %v7905_v34 = vsel %vm7824_vm9, %v7403_v55, %v7865_v17  ;;  %7023 = vmatmul.f32.gmra.mxu1 %v6874_v33 }
 0x7e9   : > { %8679 = vmatmul.msk.f32.gmra.mxu3 %vm288_vm1, %v7540_v11  ;;  %v7945_v35 = vadd.f32 %v7905_v34, %v7742_v58  ;;  %v6741_v11 = vld [vmem:[%s10341_s17 + $0xc8] sm:$0xff]  ;;  %v6680_v19 = vpop.f32.mrf.mxu0 }
 0x7ea   : > { %v6781_v0 = vadd.f32 %v6741_v11, %v6671_v21  ;;  %v6743_v21 = vld [vmem:[%s10341_s17 + $0xd8] sm:$0xff] }
 0x7eb   : > { %v7284_v57 = vpop.f32.mrf.mxu2  ;;  %7985 = vst [vmem:[%s10341_s17 + $0x98] sm:$0xff] %v7945_v35 }
 0x7ec   : > { %v7745_v51 = vpop.f32.mrf.mxu3  ;;  %v7404_v27 = vadd.f32 %v7284_v57, %v7090_v50 }
 0x7ed   : > { %v6979_v5 = vpop.f32.mrf.mxu1 }
 0x7ee   : > { %vm7825_vm10 = vcmp.gt.f32.partialorder %v7404_v27, 0.0  ;;  %v7866_v7 = vmul.f32 %v10851_v18, %v7404_v27  ;;  %v7093_v3 = vadd.f32 %v6979_v5, %v6779_v37 }
 0x7f0   : > { %7334 = vmatmul.f32.gmra.mxu2 %v7187_v15  ;;  %v7906_v10 = vsel %vm7825_vm10, %v7404_v27, %v7866_v7  ;;  %7026 = vmatmul.f32.gmra.mxu1 %v6875_v24 }
 0x7f1   : > { %8680 = vmatmul.msk.f32.gmra.mxu3 %vm288_vm1, %v7541_v42  ;;  %v7946_v59 = vadd.f32 %v7906_v10, %v7745_v51  ;;  %v6742_v51 = vld [vmem:[%s10341_s17 + $0xd0] sm:$0xff]  ;;  %v6683_v15 = vpop.f32.mrf.mxu0 }
 0x7f2   : > { %v6782_v42 = vadd.f32 %v6742_v51, %v6674_v31 }
 0x7f3   : > { %v7287_v6 = vpop.f32.mrf.mxu2  ;;  %7986 = vst [vmem:[%s10341_s17 + $0xa0] sm:$0xff] %v7946_v59 }
 0x7f4   : > { %v7748_v26 = vpop.f32.mrf.mxu3  ;;  %v7405_v25 = vadd.f32 %v7287_v6, %v7091_v16 }
 0x7f5   : > { %v6982_v52 = vpop.f32.mrf.mxu1 }
 0x7f6   : > { %vm7826_vm11 = vcmp.gt.f32.partialorder %v7405_v25, 0.0  ;;  %v7867_v48 = vmul.f32 %v10851_v18, %v7405_v25  ;;  %v7094_v32 = vadd.f32 %v6982_v52, %v6780_v63 }
 0x7f8   : > { %7337 = vmatmul.f32.gmra.mxu2 %v7188_v54  ;;  %v7907_v30 = vsel %vm7826_vm11, %v7405_v25, %v7867_v48 }
 0x7f9   : > { %8681 = vmatmul.msk.f32.gmra.mxu3 %vm288_vm1, %v7542_v12  ;;  %v7947_v46 = vadd.f32 %v7907_v30, %v7748_v26  ;;  %v6783_v26 = vadd.f32 %v6743_v21, %v6677_v43  ;;  %v6686_v54 = vpop.f32.mrf.mxu0  ;;  %v6744_v30 = vld [vmem:[%s10341_s17 + $0xe0] sm:$0xff] }
 0x7fb   : > { %v7290_v4 = vpop.f32.mrf.mxu2  ;;  %7987 = vst [vmem:[%s10341_s17 + $0xa8] sm:$0xff] %v7947_v46 }
 0x7fc   : > { %v7751_v20 = vpop.f32.mrf.mxu3  ;;  %v7406_v1 = vadd.f32 %v7290_v4, %v7092_v23  ;;  %v6784_v4 = vadd.f32 %v6744_v30, %v6680_v19  ;;  %v6750_v30 = vld [vmem:[%s10341_s17 + $0x110] sm:$0xff] }
 0x7fd   : > { %v6985_v41 = vpop.f32.mrf.mxu1 }
 0x7fe   : > { %vm7827_vm12 = vcmp.gt.f32.partialorder %v7406_v1, 0.0  ;;  %v7868_v60 = vmul.f32 %v10851_v18, %v7406_v1  ;;  %v7095_v9 = vadd.f32 %v6985_v41, %v6781_v0 }
 0x800   : > { %7340 = vmatmul.f32.gmra.mxu2 %v7189_v28  ;;  %v7908_v2 = vsel %vm7827_vm12, %v7406_v1, %v7868_v60  ;;  %v6745_v60 = vld [vmem:[%s10341_s17 + $0xe8] sm:$0xff] }
 0x801   : > { %8682 = vmatmul.msk.f32.gmra.mxu3 %vm288_vm1, %v7543_v38  ;;  %v7948_v61 = vadd.f32 %v7908_v2, %v7751_v20  ;;  %v6689_v28 = vpop.f32.mrf.mxu0 }
 0x803   : > { %v7293_v22 = vpop.f32.mrf.mxu2  ;;  %7988 = vst [vmem:[%s10341_s17 + $0xb0] sm:$0xff] %v7948_v61  ;;  %v6785_v61 = vadd.f32 %v6745_v60, %v6683_v15 }
 0x804   : > { %v7754_v14 = vpop.f32.mrf.mxu3  ;;  %v7407_v40 = vadd.f32 %v7293_v22, %v7093_v3 }
 0x805   : > { %v6988_v62 = vpop.f32.mrf.mxu1 }
 0x806   : > { %vm7828_vm13 = vcmp.gt.f32.partialorder %v7407_v40, 0.0  ;;  %v7869_v49 = vmul.f32 %v10851_v18, %v7407_v40  ;;  %v7096_v56 = vadd.f32 %v6988_v62, %v6782_v42  ;;  %v6746_v62 = vld [vmem:[%s10341_s17 + $0xf0] sm:$0xff] }
 0x808   : > { %v7909_v29 = vsel %vm7828_vm13, %v7407_v40, %v7869_v49 }
 0x809   : > { %v7949_v44 = vadd.f32 %v7909_v29, %v7754_v14  ;;  %v6692_v63 = vpop.f32.mrf.mxu0  ;;  %v6786_v29 = vadd.f32 %v6746_v62, %v6686_v54 }
 0x80b   : > { %v7296_v58 = vpop.f32.mrf.mxu2  ;;  %7989 = vst [vmem:[%s10341_s17 + $0xb8] sm:$0xff] %v7949_v44 }
 0x80c   : > { %v7757_v55 = vpop.f32.mrf.mxu3  ;;  %v7408_v39 = vadd.f32 %v7296_v58, %v7094_v32 }
 0x80d   : > { %v6991_v8 = vpop.f32.mrf.mxu1 }
 0x80e   : > { %vm7829_vm1 = vcmp.gt.f32.partialorder %v7408_v39, 0.0  ;;  %v7870_v17 = vmul.f32 %v10851_v18, %v7408_v39  ;;  %v7097_v12 = vadd.f32 %v6991_v8, %v6783_v26 }
 0x810   : > { %v7910_v33 = vsel %vm7829_vm1, %v7408_v39, %v7870_v17  ;;  %v6747_v17 = vld [vmem:[%s10341_s17 + $0xf8] sm:$0xff] }
 0x811   : > { %v7950_v34 = vadd.f32 %v7910_v33, %v7757_v55  ;;  %v6787_v0 = vadd.f32 %v6747_v17, %v6689_v28  ;;  %v6751_v28 = vld [vmem:[%s10341_s17 + $0x118] sm:$0xff] }
 0x813   : > { %v7299_v35 = vpop.f32.mrf.mxu2  ;;  %7990 = vst [vmem:[%s10341_s17 + $0xc0] sm:$0xff] %v7950_v34 }
 0x814   : > { %v7760_v50 = vpop.f32.mrf.mxu3  ;;  %v7409_v57 = vadd.f32 %v7299_v35, %v7095_v9  ;;  %v6695_v9 = vpop.f32.mrf.mxu0 }
 0x815   : > { %v6994_v27 = vpop.f32.mrf.mxu1 }
 0x816   : > { %vm7830_vm14 = vcmp.gt.f32.partialorder %v7409_v57, 0.0  ;;  %v7871_v13 = vmul.f32 %v10851_v18, %v7409_v57  ;;  %v7098_v1 = vadd.f32 %v6994_v27, %v6784_v4 }
 0x818   : > { %v7911_v5 = vsel %vm7830_vm14, %v7409_v57, %v7871_v13  ;;  %v6748_v13 = vld [vmem:[%s10341_s17 + $0x100] sm:$0xff] }
 0x819   : > { %v7951_v7 = vadd.f32 %v7911_v5, %v7760_v50  ;;  %v6788_v5 = vadd.f32 %v6748_v13, %v6692_v63  ;;  %v6754_v13 = vld [vmem:[%s10341_s17 + $0x130] sm:$0xff] }
 0x81b   : > { %v7302_v24 = vpop.f32.mrf.mxu2  ;;  %7991 = vst [vmem:[%s10341_s17 + $0xc8] sm:$0xff] %v7951_v7 }
 0x81c   : > { %v7763_v10 = vpop.f32.mrf.mxu3  ;;  %v7410_v59 = vadd.f32 %v7302_v24, %v7096_v56 }
 0x81d   : > { %v6997_v16 = vpop.f32.mrf.mxu1 }
 0x81e   : > { %vm7831_vm15 = vcmp.gt.f32.partialorder %v7410_v59, 0.0  ;;  %v7872_v6 = vmul.f32 %v10851_v18, %v7410_v59  ;;  %v7099_v14 = vadd.f32 %v6997_v16, %v6785_v61 }
 0x820   : > { %v7912_v25 = vsel %vm7831_vm15, %v7410_v59, %v7872_v6  ;;  %v6698_v59 = vpop.f32.mrf.mxu0  ;;  %v6749_v6 = vld [vmem:[%s10341_s17 + $0x108] sm:$0xff] }
 0x821   : > { %v7952_v45 = vadd.f32 %v7912_v25, %v7763_v10  ;;  %v6789_v25 = vadd.f32 %v6749_v6, %v6695_v9 }
 0x823   : > { %v7305_v52 = vpop.f32.mrf.mxu2  ;;  %7992 = vst [vmem:[%s10341_s17 + $0xd0] sm:$0xff] %v7952_v45 }
 0x824   : > { %v7766_v48 = vpop.f32.mrf.mxu3  ;;  %v7411_v53 = vadd.f32 %v7305_v52, %v7097_v12 }
 0x825   : > { %v7000_v46 = vpop.f32.mrf.mxu1 }
 0x826   : > { %vm7832_vm2 = vcmp.gt.f32.partialorder %v7411_v53, 0.0  ;;  %v7873_v23 = vmul.f32 %v10851_v18, %v7411_v53  ;;  %v7100_v55 = vadd.f32 %v7000_v46, %v6786_v29 }
 0x828   : > { %v7913_v20 = vsel %vm7832_vm2, %v7411_v53, %v7873_v23  ;;  %v6701_v46 = vpop.f32.mrf.mxu0 }
 0x829   : > { %v7953_v31 = vadd.f32 %v7913_v20, %v7766_v48  ;;  %v6790_v20 = vadd.f32 %v6750_v30, %v6698_v59  ;;  %v6791_v61 = vadd.f32 %v6751_v28, %v6701_v46 }
 0x82b   : > { %v7308_v47 = vpop.f32.mrf.mxu2  ;;  %7993 = vst [vmem:[%s10341_s17 + $0xd8] sm:$0xff] %v7953_v31 }
 0x82c   : > { %v7769_v38 = vpop.f32.mrf.mxu3  ;;  %v7412_v41 = vadd.f32 %v7308_v47, %v7098_v1 }
 0x82d   : > { %v7003_v37 = vpop.f32.mrf.mxu1 }
 0x82e   : > { %vm7833_vm0 = vcmp.gt.f32.partialorder %v7412_v41, 0.0  ;;  %v7874_v2 = vmul.f32 %v10851_v18, %v7412_v41  ;;  %v7101_v35 = vadd.f32 %v7003_v37, %v6787_v0 }
 0x830   : > { %v7914_v3 = vsel %vm7833_vm0, %v7412_v41, %v7874_v2  ;;  %v6704_v2 = vpop.f32.mrf.mxu0 }
 0x831   : > { %v7954_v22 = vadd.f32 %v7914_v3, %v7769_v38 }
 0x833   : > { %v7311_v40 = vpop.f32.mrf.mxu2  ;;  %7994 = vst [vmem:[%s10341_s17 + $0xe0] sm:$0xff] %v7954_v22 }
 0x834   : > { %v7772_v36 = vpop.f32.mrf.mxu3  ;;  %v7413_v43 = vadd.f32 %v7311_v40, %v7099_v14 }
 0x835   : > { %v7006_v44 = vpop.f32.mrf.mxu1 }
 0x836   : > { %vm7834_vm3 = vcmp.gt.f32.partialorder %v7413_v43, 0.0  ;;  %v7875_v49 = vmul.f32 %v10851_v18, %v7413_v43  ;;  %v7102_v56 = vadd.f32 %v7006_v44, %v6788_v5 }
 0x838   : > { %v7915_v32 = vsel %vm7834_vm3, %v7413_v43, %v7875_v49  ;;  %v6752_v49 = vld [vmem:[%s10341_s17 + $0x120] sm:$0xff] }
 0x839   : > { %v7955_v58 = vadd.f32 %v7915_v32, %v7772_v36  ;;  %v6792_v29 = vadd.f32 %v6752_v49, %v6704_v2 }
 0x83b   : > { %v7314_v39 = vpop.f32.mrf.mxu2  ;;  %7995 = vst [vmem:[%s10341_s17 + $0xe8] sm:$0xff] %v7955_v58  ;;  %v6707_v58 = vpop.f32.mrf.mxu0 }
 0x83c   : > { %v7775_v11 = vpop.f32.mrf.mxu3  ;;  %v7414_v8 = vadd.f32 %v7314_v39, %v7100_v55 }
 0x83d   : > { %v7009_v50 = vpop.f32.mrf.mxu1 }
 0x83e   : > { %vm7835_vm4 = vcmp.gt.f32.partialorder %v7414_v8, 0.0  ;;  %v7876_v19 = vmul.f32 %v10851_v18, %v7414_v8  ;;  %v7103_v52 = vadd.f32 %v7009_v50, %v6789_v25 }
 0x840   : > { %v7916_v33 = vsel %vm7835_vm4, %v7414_v8, %v7876_v19  ;;  %v6753_v19 = vld [vmem:[%s10341_s17 + $0x128] sm:$0xff] }
 0x841   : > { %v7956_v34 = vadd.f32 %v7916_v33, %v7775_v11  ;;  %v6793_v33 = vadd.f32 %v6753_v19, %v6707_v58 }
 0x843   : > { %v7317_v57 = vpop.f32.mrf.mxu2  ;;  %7996 = vst [vmem:[%s10341_s17 + $0xf0] sm:$0xff] %v7956_v34 }
 0x844   : > { %v7778_v51 = vpop.f32.mrf.mxu3  ;;  %v7415_v27 = vadd.f32 %v7317_v57, %v7101_v35 }
 0x845   : > { %v7012_v16 = vpop.f32.mrf.mxu1 }
 0x846   : > { %vm7836_vm5 = vcmp.gt.f32.partialorder %v7415_v27, 0.0  ;;  %v7877_v42 = vmul.f32 %v10851_v18, %v7415_v27  ;;  %v7104_v47 = vadd.f32 %v7012_v16, %v6790_v20  ;;  %v6755_v16 = vld [vmem:[%s10341_s17 + $0x138] sm:$0xff] }
 0x848   : > { %v7917_v7 = vsel %vm7836_vm5, %v7415_v27, %v7877_v42  ;;  %v6710_v27 = vpop.f32.mrf.mxu0 }
 0x849   : > { %v7957_v15 = vadd.f32 %v7917_v7, %v7778_v51  ;;  %v6794_v7 = vadd.f32 %v6754_v13, %v6710_v27 }
 0x84b   : > { %v7320_v24 = vpop.f32.mrf.mxu2  ;;  %7997 = vst [vmem:[%s10341_s17 + $0xf8] sm:$0xff] %v7957_v15 }
 0x84c   : > { %v7781_v10 = vpop.f32.mrf.mxu3  ;;  %v7416_v21 = vadd.f32 %v7320_v24, %v7102_v56 }
 0x84d   : > { %v7015_v23 = vpop.f32.mrf.mxu1 }
 0x84e   : > { %vm7837_vm6 = vcmp.gt.f32.partialorder %v7416_v21, 0.0  ;;  %v7878_v26 = vmul.f32 %v10851_v18, %v7416_v21  ;;  %v7105_v40 = vadd.f32 %v7015_v23, %v6791_v61 }
 0x850   : > { %v7918_v45 = vsel %vm7837_vm6, %v7416_v21, %v7878_v26  ;;  %v6713_v26 = vpop.f32.mrf.mxu0 }
 0x851   : > { %v7958_v12 = vadd.f32 %v7918_v45, %v7781_v10  ;;  %v6795_v45 = vadd.f32 %v6755_v16, %v6713_v26 }
 0x853   : > { %v7323_v48 = vpop.f32.mrf.mxu2  ;;  %7998 = vst [vmem:[%s10341_s17 + $0x100] sm:$0xff] %v7958_v12 }
 0x854   : > { %v7784_v54 = vpop.f32.mrf.mxu3  ;;  %v7417_v53 = vadd.f32 %v7323_v48, %v7103_v52 }
 0x855   : > { %v7018_v3 = vpop.f32.mrf.mxu1 }
 0x856   : > { %vm7838_vm7 = vcmp.gt.f32.partialorder %v7417_v53, 0.0  ;;  %v7879_v4 = vmul.f32 %v10851_v18, %v7417_v53  ;;  %v7106_v55 = vadd.f32 %v7018_v3, %v6792_v29 }
 0x858   : > { %v7919_v31 = vsel %vm7838_vm7, %v7417_v53, %v7879_v4 }
 0x859   : > { %v7959_v1 = vadd.f32 %v7919_v31, %v7784_v54 }
 0x85b   : > { %v7326_v38 = vpop.f32.mrf.mxu2  ;;  %7999 = vst [vmem:[%s10341_s17 + $0x108] sm:$0xff] %v7959_v1 }
 0x85c   : > { %v7787_v41 = vpop.f32.mrf.mxu3  ;;  %v7418_v60 = vadd.f32 %v7326_v38, %v7104_v47 }
 0x85d   : > { %v7021_v39 = vpop.f32.mrf.mxu1 }
 0x85e   : > { %vm7839_vm8 = vcmp.gt.f32.partialorder %v7418_v60, 0.0  ;;  %v7880_v37 = vmul.f32 %v10851_v18, %v7418_v60  ;;  %v7107_v35 = vadd.f32 %v7021_v39, %v6793_v33 }
 0x860   : > { %v7920_v22 = vsel %vm7839_vm8, %v7418_v60, %v7880_v37 }
 0x861   : > { %v7960_v14 = vadd.f32 %v7920_v22, %v7787_v41 }
 0x863   : > { %v7329_v36 = vpop.f32.mrf.mxu2  ;;  %8000 = vst [vmem:[%s10341_s17 + $0x110] sm:$0xff] %v7960_v14 }
 0x864   : > { %v7790_v43 = vpop.f32.mrf.mxu3  ;;  %v7419_v62 = vadd.f32 %v7329_v36, %v7105_v40 }
 0x865   : > { %v7024_v42 = vpop.f32.mrf.mxu1 }
 0x866   : > { %vm7840_vm9 = vcmp.gt.f32.partialorder %v7419_v62, 0.0  ;;  %v7881_v63 = vmul.f32 %v10851_v18, %v7419_v62  ;;  %v7108_v24 = vadd.f32 %v7024_v42, %v6794_v7 }
 0x868   : > { %v7921_v44 = vsel %vm7840_vm9, %v7419_v62, %v7881_v63 }
 0x869   : > { %v7961_v32 = vadd.f32 %v7921_v44, %v7790_v43 }
 0x86b   : > { %v7332_v11 = vpop.f32.mrf.mxu2  ;;  %8001 = vst [vmem:[%s10341_s17 + $0x118] sm:$0xff] %v7961_v32 }
 0x86c   : > { %v7793_v8 = vpop.f32.mrf.mxu3  ;;  %v7420_v17 = vadd.f32 %v7332_v11, %v7106_v55 }
 0x86d   : > { %v7027_v25 = vpop.f32.mrf.mxu1 }
 0x86e   : > { %vm7841_vm10 = vcmp.gt.f32.partialorder %v7420_v17, 0.0  ;;  %v7882_v0 = vmul.f32 %v10851_v18, %v7420_v17  ;;  %v7109_v48 = vadd.f32 %v7027_v25, %v6795_v45 }
 0x870   : > { %v7922_v34 = vsel %vm7841_vm10, %v7420_v17, %v7882_v0 }
 0x871   : > { %v7962_v9 = vadd.f32 %v7922_v34, %v7793_v8 }
 0x873   : > { %v7335_v50 = vpop.f32.mrf.mxu2  ;;  %8002 = vst [vmem:[%s10341_s17 + $0x120] sm:$0xff] %v7962_v9 }
 0x874   : > { %v7796_v57 = vpop.f32.mrf.mxu3  ;;  %v7421_v51 = vadd.f32 %v7335_v50, %v7107_v35 }
 0x876   : > { %vm7842_vm11 = vcmp.gt.f32.partialorder %v7421_v51, 0.0  ;;  %v7883_v5 = vmul.f32 %v10851_v18, %v7421_v51 }
 0x878   : > { %v7923_v15 = vsel %vm7842_vm11, %v7421_v51, %v7883_v5 }
 0x879   : > { %v7963_v56 = vadd.f32 %v7923_v15, %v7796_v57 }
 0x87b   : > { %v7338_v10 = vpop.f32.mrf.mxu2  ;;  %8003 = vst [vmem:[%s10341_s17 + $0x128] sm:$0xff] %v7963_v56 }
 0x87c   : > { %v7422_v59 = vadd.f32 %v7338_v10, %v7108_v24  ;;  %v7799_v21 = vpop.f32.mrf.mxu3 }
 0x87e   : > { %vm7843_vm12 = vcmp.gt.f32.partialorder %v7422_v59, 0.0  ;;  %v7884_v6 = vmul.f32 %v10851_v18, %v7422_v59 }
 0x880   : > { %v7924_v12 = vsel %vm7843_vm12, %v7422_v59, %v7884_v6 }
 0x881   : > { %v7964_v52 = vadd.f32 %v7924_v12, %v7799_v21 }
 0x883   : > { %v7341_v54 = vpop.f32.mrf.mxu2  ;;  %8004 = vst [vmem:[%s10341_s17 + $0x130] sm:$0xff] %v7964_v52 }
 0x884   : > { %v7423_v53 = vadd.f32 %v7341_v54, %v7109_v48  ;;  %v7802_v30 = vpop.f32.mrf.mxu3 }
 0x886   : > { %vm7844_vm13 = vcmp.gt.f32.partialorder %v7423_v53, 0.0  ;;  %v7885_v46 = vmul.f32 %v10851_v18, %v7423_v53 }
 0x888   : > { %v7925_v23 = vsel %vm7844_vm13, %v7423_v53, %v7885_v46 }
 0x889   : > { %v7965_v4 = vadd.f32 %v7925_v23, %v7802_v30 }
 0x88b   : > { %8005 = vst [vmem:[%s10341_s17 + $0x138] sm:$0xff] %v7965_v4 }
 0x88c PF: > { %s16_s18 = sadd.s32 1, %s8735_s18  }
 0x88d   : > { %p13_p7 = scmp.ge.s32.totalorder %s16_s18, 4  }
 0x88f   :  { %15 = sbr.rel (!%p13_p7) target bundleno = 1 (0x1), region = 91 }
 0x894   :  { %8027 = vsyncpa [#allocation4], 1 }
 0x895   :  { %8029 = vsyncpa [#allocation4 + $0x1], 1 }

</bundles_post_ra>
